<compile_context>
chip_gen: v6e
topology: v6e:2x2x1
jax: 0.10.0
libtpu: 0.0.40
codegen_flags: <defaults>
</compile_context>

<pallas_src>
import jax
import jax.numpy as jnp
from jax.experimental import pallas as pl
from jax.experimental.pallas import tpu as pltpu

# ----------------------------- static config --------------------------------
WINDOW_SIZE = 32
INPUT_DIM = WINDOW_SIZE // 2 + 1          # 17 features
CONV_LAYERS = [
    {'kernel_size': (41, 11), 'stride': (2, 2), 'out_channels': 32, 'padding': (20, 5)},
    {'kernel_size': (21, 11), 'stride': (2, 1), 'out_channels': 32, 'padding': (10, 5)},
]
RNN_HIDDEN = 32
NUM_RNN_LAYERS = 2
HIDDEN = 64
NUM_CLASSES = 29
BN_EPS = 1e-5


# ----------------------------- tiling helpers --------------------------------
def _pad_to(n, m):
    return ((n + m - 1) // m) * m


def _pick_row_tile(rows, k_block, itemsize, max_tile=1024, budget_bytes=4 << 20):
    """Largest row tile (mult. of 16, <= max_tile) whose input block fits the
    per-block VMEM budget; capped at the (16-padded) row count for small inputs."""
    tr = max_tile
    while tr > 16 and tr * k_block * itemsize > budget_bytes:
        tr //= 2
    return min(tr, _pad_to(max(rows, 1), 16))


# ----------------------------- Pallas kernels -------------------------------
def _conv_kernel(p_ref, w_ref, shift_ref, mask_ref, o_ref):
    # Single-K-block conv-as-matmul; BN scale pre-folded into w, shift holds
    # beta + (bias - mean) * scale; ReLU; per-row time-validity mask; bf16 out.
    acc = jnp.dot(p_ref[...], w_ref[...], preferred_element_type=jnp.float32)
    y = jnp.maximum(acc + shift_ref[...], 0.0) * mask_ref[...]
    o_ref[...] = y.astype(o_ref.dtype)


def _linear_kernel(x_ref, w_ref, b_ref, o_ref):
    o_ref[...] = (jnp.dot(x_ref[...], w_ref[...],
                          preferred_element_type=jnp.float32) + b_ref[...])


def _make_gru_kernel(TT, T_total, H):
    """GRU chunk kernel. Gate columns: [r_f r_b | z_f z_b | n_f n_b] (H each).
    State layout: h = [fwd H | bwd H].  Validity mask computed in-kernel from
    per-batch lengths (fwd: t < len; bwd: T-len <= t < T)."""
    H2 = 2 * H

    def kernel(len_ref, g_ref, whh_ref, bhh_ref, o_ref, h_ref):
        @pl.when(pl.program_id(0) == 0)
        def _():
            h_ref[...] = jnp.zeros_like(h_ref)

        whh = whh_ref[...]                                   # (2H, 6H) bf16
        bhh = bhh_ref[...]                                   # (1, 6H)  f32
        lens = len_ref[...]                                  # (B, 1)   int32
        B = lens.shape[0]
        is_fwd = jax.lax.broadcasted_iota(jnp.int32, (B, H2), 1) < H
        bwd_start = T_total - lens                           # (B, 1)
        t0 = pl.program_id(0) * TT

        def step(t, h):
            tg = t0 + t
            gx = g_ref[t]                                    # (B, 6H) f32
            gh = jnp.dot(h.astype(jnp.bfloat16), whh,
                         preferred_element_type=jnp.float32) + bhh
            # fused r|z sigmoid over the contiguous first 4H lanes
            rz = jax.nn.sigmoid(gx[:, :2 * H2] + gh[:, :2 * H2])
            r = rz[:, :H2]
            z = rz[:, H2:]
            n = jnp.tanh(gx[:, 2 * H2:] + r * gh[:, 2 * H2:])
            h_new = (1.0 - z) * n + z * h
            fwd_ok = (tg < lens).astype(jnp.float32)                          # (B,1)
            bwd_ok = jnp.logical_and(tg >= bwd_start,
                                     tg < T_total).astype(jnp.float32)        # (B,1)
            m = jnp.where(is_fwd, fwd_ok, bwd_ok)                             # (B,2H)
            o_ref[t] = m * h_new                  # packed-seq: zero past length
            return m * h_new + (1.0 - m) * h      # hold state past length

        h_ref[...] = jax.lax.fori_loop(0, TT, step, h_ref[...],
                                       unroll=min(8, TT))
    return kernel


def _fc_logsoftmax_kernel(x_ref, w1_ref, b1_ref, w2_ref, b2_ref, o_ref):
    h = jnp.dot(x_ref[...], w1_ref[...], preferred_element_type=jnp.float32) + b1_ref[...]
    h = jnp.clip(h, 0.0, 20.0)                # Hardtanh(0,20); Dropout=id in eval
    logits = (jnp.dot(h.astype(jnp.bfloat16), w2_ref[...],
                      preferred_element_type=jnp.float32) + b2_ref[...])
    m = jnp.max(logits, axis=-1, keepdims=True)
    lse = m + jnp.log(jnp.sum(jnp.exp(logits - m), axis=-1, keepdims=True))
    o_ref[...] = logits - lse


# ----------------------------- kernel wrappers -------------------------------
def conv_bn_relu_mask(patches, w, shift, rowmask):
    """patches (R,K) bf16, w (K,O) bf16 (BN scale folded), shift (1,O) f32,
    rowmask (R,1) f32 -> (R,O) bf16."""
    R, K = patches.shape
    O = w.shape[1]
    Kp = _pad_to(K, 128)                      # single K block: no K-grid waste
    tr = _pick_row_tile(R, Kp, itemsize=2)
    Rp = _pad_to(R, tr)

    patches = jnp.pad(patches, ((0, Rp - R), (0, Kp - K)))
    w = jnp.pad(w, ((0, Kp - K), (0, 0)))
    rowmask = jnp.pad(rowmask, ((0, Rp - R), (0, 0)))

    out = pl.pallas_call(
        _conv_kernel,
        out_shape=jax.ShapeDtypeStruct((Rp, O), jnp.bfloat16),
        grid=(Rp // tr,),
        in_specs=[
            pl.BlockSpec((tr, Kp), lambda i: (i, 0)),
            pl.BlockSpec((Kp, O), lambda i: (0, 0)),     # resident weight
            pl.BlockSpec((1, O), lambda i: (0, 0)),
            pl.BlockSpec((tr, 1), lambda i: (i, 0)),
        ],
        out_specs=pl.BlockSpec((tr, O), lambda i: (i, 0)),
        compiler_params=pltpu.CompilerParams(dimension_semantics=("parallel",)),
    )(patches, w, shift, rowmask)
    return out[:R]


def linear(x, w, b):
    """Row-tiled (x @ w + b) with bf16 MXU operands, f32 accumulation/output."""
    R, K = x.shape
    N = w.shape[1]
    tr = _pick_row_tile(R, K, itemsize=2)
    Rp = _pad_to(R, tr)
    x = x.astype(jnp.bfloat16)
    if Rp != R:
        x = jnp.pad(x, ((0, Rp - R), (0, 0)))
    out = pl.pallas_call(
        _linear_kernel,
        out_shape=jax.ShapeDtypeStruct((Rp, N), jnp.float32),
        grid=(Rp // tr,),
        in_specs=[
            pl.BlockSpec((tr, K), lambda i: (i, 0)),
            pl.BlockSpec((K, N), lambda i: (0, 0)),      # resident weight
            pl.BlockSpec((1, N), lambda i: (0, 0)),
        ],
        out_specs=pl.BlockSpec((tr, N), lambda i: (i, 0)),
        compiler_params=pltpu.CompilerParams(dimension_semantics=("parallel",)),
    )(x, w.astype(jnp.bfloat16), b)
    return out[:R]


def gru_scan(gates, lengths, w_hh, b_hh, T_total):
    """gates (T,B,6H) f32 (time-major, bwd columns already time-reversed),
    lengths (B,) int32, w_hh (2H,6H), b_hh (1,6H) -> (T,B,2H) f32."""
    T, B, G = gates.shape
    H2 = G // 3
    H = H2 // 2
    n_chunks = -(-T_total // 64)              # TT <= 64, minimal padding
    TT = -(-T_total // n_chunks)
    Tp = TT * n_chunks
    if Tp != T:
        gates = jnp.pad(gates, ((0, Tp - T), (0, 0), (0, 0)))

    out = pl.pallas_call(
        _make_gru_kernel(TT, T_total, H),
        out_shape=jax.ShapeDtypeStruct((Tp, B, H2), jnp.float32),
        grid=(Tp // TT,),
        in_specs=[
            pl.BlockSpec((B, 1), lambda i: (0, 0)),          # lengths, resident
            pl.BlockSpec((TT, B, G), lambda i: (i, 0, 0)),
            pl.BlockSpec((H2, G), lambda i: (0, 0)),         # resident weights
            pl.BlockSpec((1, G), lambda i: (0, 0)),
        ],
        out_specs=pl.BlockSpec((TT, B, H2), lambda i: (i, 0, 0)),
        scratch_shapes=[pltpu.VMEM((B, H2), jnp.float32)],
        compiler_params=pltpu.CompilerParams(dimension_semantics=("arbitrary",)),
    )(lengths.reshape(B, 1).astype(jnp.int32), gates,
      w_hh.astype(jnp.bfloat16), b_hh)
    return out[:T_total]


def fc_logsoftmax(x, fp):
    R, Hin = x.shape
    Hid = fp['w1'].shape[1]
    C = fp['w2'].shape[1]
    Cp = _pad_to(C, 128)                      # lane-dense output stores
    w2p = jnp.pad(fp['w2'], ((0, 0), (0, Cp - C))).astype(jnp.bfloat16)
    b2p = jnp.pad(fp['b2'], ((0, 0), (0, Cp - C)), constant_values=-1e9)
    tr = _pick_row_tile(R, Hin, itemsize=2)
    Rp = _pad_to(R, tr)
    x = x.astype(jnp.bfloat16)
    if Rp != R:
        x = jnp.pad(x, ((0, Rp - R), (0, 0)))
    out = pl.pallas_call(
        _fc_logsoftmax_kernel,
        out_shape=jax.ShapeDtypeStruct((Rp, Cp), jnp.float32),
        grid=(Rp // tr,),
        in_specs=[
            pl.BlockSpec((tr, Hin), lambda i: (i, 0)),
            pl.BlockSpec((Hin, Hid), lambda i: (0, 0)),
            pl.BlockSpec((1, Hid), lambda i: (0, 0)),
            pl.BlockSpec((Hid, Cp), lambda i: (0, 0)),
            pl.BlockSpec((1, Cp), lambda i: (0, 0)),
        ],
        out_specs=pl.BlockSpec((tr, Cp), lambda i: (i, 0)),
        compiler_params=pltpu.CompilerParams(dimension_semantics=("parallel",)),
    )(x, fp['w1'].astype(jnp.bfloat16), fp['b1'], w2p, b2p)
    return out[:R, :C]


# ----------------------------- JAX glue --------------------------------------
def im2col_cl(x, kh, kw, sh, sw, ph, pw, row_order):
    """Channels-last im2col.  x: (B, H, W, C) -> patches (R, kh*kw*C).
    row_order 'bhw': rows ordered (B, Hout, Wout); 'wbh': (Wout, B, Hout)."""
    B, H, W, C = x.shape
    Hout = (H + 2 * ph - kh) // sh + 1
    Wout = (W + 2 * pw - kw) // sw + 1
    xp = jnp.pad(x, ((0, 0), (ph, ph), (pw, pw), (0, 0)))
    hi = (jnp.arange(Hout) * sh)[:, None] + jnp.arange(kh)[None, :]     # (Hout, kh)
    wi = (jnp.arange(Wout) * sw)[:, None] + jnp.arange(kw)[None, :]     # (Wout, kw)
    p = xp[:, hi[:, None, :, None], wi[None, :, None, :], :]            # (B,Hout,Wout,kh,kw,C)
    if row_order == 'wbh':
        p = p.transpose(2, 0, 1, 3, 4, 5)                               # (Wout,B,Hout,kh,kw,C)
    patches = p.reshape(-1, kh * kw * C)                                # feature order (kh,kw,C)
    return patches, Hout, Wout


def conv_block(x, cp, cfg, lengths, row_order):
    """One Conv2d + BatchNorm2d(eval) + ReLU + time-length mask block.
    x: (B, H, W, C) channels-last bf16."""
    kh, kw = cfg['kernel_size']
    sh, sw = cfg['stride']
    ph, pw = cfg['padding']
    B, _, _, C = x.shape
    O = cp['w'].shape[0]

    patches, Hout, Wout = im2col_cl(x, kh, kw, sh, sw, ph, pw, row_order)
    out_len = (lengths + 2 * pw - kw) // sw + 1                          # time dim = W

    scale = cp['gamma'] / jnp.sqrt(cp['rvar'] + BN_EPS)                  # (O,)
    shift = cp['beta'] + (cp['b'] - cp['rmean']) * scale                 # (O,)
    # Weight laid out (kh, kw, C, O) to match patch feature order; BN scale folded in.
    wmat = (cp['w'].transpose(2, 3, 1, 0).reshape(kh * kw * C, O)
            * scale[None, :]).astype(jnp.bfloat16)

    tmask = (jnp.arange(Wout)[None, :] < out_len[:, None]).astype(jnp.float32)   # (B, Wout)
    if row_order == 'bhw':
        rowmask = jnp.broadcast_to(tmask[:, None, :], (B, Hout, Wout)).reshape(-1, 1)
    else:
        rowmask = jnp.broadcast_to(tmask.T[:, :, None], (Wout, B, Hout)).reshape(-1, 1)

    y = conv_bn_relu_mask(patches, wmat, shift[None, :], rowmask)        # (R, O) bf16
    if row_order == 'bhw':
        y = y.reshape(B, Hout, Wout, O)                                  # channels-last
    else:
        y = y.reshape(Wout, B, Hout, O)                                  # time-major
    return y, out_len


def gru_bidir_layer(x_tm, lengths, p):
    """x_tm: (T, B, In) -> (T, B, H); forward+backward GRU, directions summed."""
    T, B, In = x_tm.shape
    H = p['w_hh'].shape[0] // 2
    G = 6 * H

    # One fused input projection for both directions (time-major rows -> no transpose).
    gates = linear(x_tm.reshape(T * B, In), p['w_ih'], p['b_ih']).reshape(T, B, G)

    # Time-reverse only the backward-direction columns (odd H-blocks).
    col_is_bwd = ((jnp.arange(G) // H) % 2 == 1)
    g_scan = jnp.where(col_is_bwd[None, None, :], gates[::-1], gates)    # (T, B, 6H)

    out = gru_scan(g_scan, lengths, p['w_hh'], p['b_hh'], T)             # (T, B, 2H)
    return out[:, :, :H] + out[::-1][:, :, H:]                           # sum directions


def deepspeech2_forward(params, x, lengths):
    """x: (B, T, N) float32, lengths: (B,) int32 -> (log_probs (B,T',C), out_lengths)."""
    # PyTorch: x.unsqueeze(1).transpose_(2,3) -> (B,1,N,T); we use channels-last (B,N,T,1).
    h = jnp.transpose(x, (0, 2, 1))[..., None].astype(jnp.bfloat16)
    cfg1, cfg2 = CONV_LAYERS
    h, out_len = conv_block(h, params['convs'][0], cfg1, lengths, row_order='bhw')
    h, out_len = conv_block(h, params['convs'][1], cfg2, out_len, row_order='wbh')
    Tc, B, D, O = h.shape
    ht = h.reshape(Tc, B, D * O)              # (T, B, D*C), time-major RNN input
    for layer in params['rnns']:
        ht = gru_bidir_layer(ht, out_len, layer)                         # (T, B, H)
    Tf, Bf, Hf = ht.shape
    logp = fc_logsoftmax(ht.reshape(Tf * Bf, Hf), params['fc'])
    logp = logp.reshape(Tf, Bf, NUM_CLASSES).transpose(1, 0, 2)          # (B, T', C)
    return logp, out_len


# ----------------------------- parameter init --------------------------------
def _interleave_gate_cols(a_f, a_b, H):
    """Interleave per-gate column blocks: [r_f r_b | z_f z_b | n_f n_b]."""
    parts = []
    for g in range(3):
        parts.append(a_f[..., g * H:(g + 1) * H])
        parts.append(a_b[..., g * H:(g + 1) * H])
    return jnp.concatenate(parts, axis=-1)


def init_params(key):
    keys = iter(jax.random.split(key, 64))
    nrm = lambda shape: 0.1 * jax.random.normal(next(keys), shape, jnp.float32)
    params = {}

    conv_params = []
    in_ch = 1
    for cfg in CONV_LAYERS:
        O = cfg['out_channels']
        kh, kw = cfg['kernel_size']
        conv_params.append(dict(
            w=nrm((O, in_ch, kh, kw)), b=nrm((O,)),
            gamma=1.0 + nrm((O,)), beta=nrm((O,)),
            rmean=nrm((O,)),
            rvar=1.0 + 0.1 * jax.random.uniform(next(keys), (O,), jnp.float32)))
        in_ch = O
    params['convs'] = conv_params

    # rnn input size = freq_after_convs * out_channels (same as _rnn_input_size).
    # NOTE: layer-0 input features are ordered (freq, channel) = (d, c) -- a fixed
    # permutation of PyTorch's (c, d) flattening; w_ih rows are generated in that order.
    freq = INPUT_DIM
    for cfg in CONV_LAYERS:
        freq = (freq + 2 * cfg['padding'][0] - (cfg['kernel_size'][0] - 1) - 1) \
               // cfg['stride'][0] + 1
    rnn_input_size = freq * in_ch

    H = RNN_HIDDEN
    rnn_layers = []
    in_size = rnn_input_size
    for l in range(NUM_RNN_LAYERS):
        # SequenceWise BatchNorm1d (eval) on layer input for layers >= 1, folded into W_ih
        if l > 0:
            g = 1.0 + nrm((in_size,))
            bt = nrm((in_size,))
            rm = nrm((in_size,))
            rv = 1.0 + 0.1 * jax.random.uniform(next(keys), (in_size,), jnp.float32)
            s = g / jnp.sqrt(rv + BN_EPS)
            c = bt - rm * s
        else:
            s = jnp.ones((in_size,), jnp.float32)
            c = jnp.zeros((in_size,), jnp.float32)

        dir_w_ih, dir_b_ih, dir_w_hh, dir_b_hh = [], [], [], []
        for _d in range(2):
            w_ih = nrm((3 * H, in_size))       # PyTorch gate order: r, z, n
            w_hh = nrm((3 * H, H))
            b_ih = nrm((3 * H,))
            b_hh = nrm((3 * H,))
            dir_w_ih.append((w_ih * s[None, :]).T)       # (in, 3H), BN folded
            dir_b_ih.append(b_ih + w_ih @ c)             # (3H,)
            dir_w_hh.append(w_hh.T)                      # (H, 3H)
            dir_b_hh.append(b_hh)                        # (3H,)

        # Fused input projection: columns [r_f r_b | z_f z_b | n_f n_b]
        w_ih_cat = _interleave_gate_cols(dir_w_ih[0], dir_w_ih[1], H)    # (in, 6H)
        b_ih_cat = _interleave_gate_cols(dir_b_ih[0][None, :], dir_b_ih[1][None, :], H)

        # Block-diagonal recurrent weights: rows [fwd h | bwd h] -> same col layout
        w_hh_blk = jnp.zeros((2 * H, 6 * H), jnp.float32)
        for gidx in range(3):
            w_hh_blk = w_hh_blk.at[:H, (2 * gidx) * H:(2 * gidx + 1) * H].set(
                dir_w_hh[0][:, gidx * H:(gidx + 1) * H])
            w_hh_blk = w_hh_blk.at[H:, (2 * gidx + 1) * H:(2 * gidx + 2) * H].set(
                dir_w_hh[1][:, gidx * H:(gidx + 1) * H])
        b_hh_cat = _interleave_gate_cols(dir_b_hh[0][None, :], dir_b_hh[1][None, :], H)

        rnn_layers.append(dict(w_ih=w_ih_cat, b_ih=b_ih_cat,
                               w_hh=w_hh_blk, b_hh=b_hh_cat))
        in_size = H
    params['rnns'] = rnn_layers

    w1 = nrm((HIDDEN, RNN_HIDDEN))
    b1 = nrm((HIDDEN,))
    w2 = nrm((NUM_CLASSES, HIDDEN))
    b2 = nrm((NUM_CLASSES,))
    params['fc'] = dict(w1=w1.T, b1=b1[None, :], w2=w2.T, b2=b2[None, :])
    return params


# ----------------------------- main ------------------------------------------
if __name__ == "__main__":
    key = jax.random.PRNGKey(0)
    kp, kx = jax.random.split(key)
    params = init_params(kp)

    B, T = 2, 16
    x = jax.random.normal(kx, (B, T, INPUT_DIM), jnp.float32)
    lengths = jnp.array([16, 12], dtype=jnp.int32)

    fwd = jax.jit(deepspeech2_forward)
    log_probs, out_lengths = fwd(params, x, lengths)
    jax.block_until_ready((log_probs, out_lengths))

    assert log_probs.shape[0] == B and log_probs.shape[-1] == NUM_CLASSES
    assert bool(jnp.all(jnp.isfinite(log_probs)))
    print("KERNEL_OK")
</pallas_src>

<mosaic_0001>
module attributes {stable_mosaic.version = 11 : i64} {
  func.func @_conv_kernel(%arg0: i32, %arg1: memref<144x512xbf16, #tpu.memory_space<vmem>>, %arg2: memref<512x32xbf16, #tpu.memory_space<vmem>>, %arg3: memref<1x32xf32, #tpu.memory_space<vmem>>, %arg4: memref<144x1xf32, #tpu.memory_space<vmem>>, %arg5: memref<144x32xbf16, #tpu.memory_space<vmem>>) attributes {dimension_semantics = [#tpu.dimension_semantics<parallel>], iteration_bounds = array<i64: 1>, scalar_prefetch = 0 : i64, scratch_operands = 0 : i64, tpu.core_type = #tpu.core_type<tc>, window_params = [{transform_indices = @transform_0, window_bounds = array<i64: 144, 512>}, {pipeline_mode = #tpu.pipeline_mode<synchronous>, transform_indices = @transform_1, window_bounds = array<i64: 512, 32>}, {pipeline_mode = #tpu.pipeline_mode<synchronous>, transform_indices = @transform_2, window_bounds = array<i64: 1, 32>}, {transform_indices = @transform_3, window_bounds = array<i64: 144, 1>}, {transform_indices = @transform_4, window_bounds = array<i64: 144, 32>}]} {
    %c0 = arith.constant 0 : index
    %c0_0 = arith.constant 0 : index
    %0 = vector.load %arg1[%c0, %c0_0] : memref<144x512xbf16, #tpu.memory_space<vmem>>, vector<144x512xbf16>
    %c0_1 = arith.constant 0 : index
    %c0_2 = arith.constant 0 : index
    %1 = vector.load %arg2[%c0_1, %c0_2] : memref<512x32xbf16, #tpu.memory_space<vmem>>, vector<512x32xbf16>
    %cst = arith.constant dense<0.000000e+00> : vector<144x32xf32>
    %2 = tpu.matmul %0, %1, %cst {dimension_numbers = #tpu.dot_dimension_numbers<[1], [0], [0], [1], [0, 0, 1, 1], [], []>} : vector<144x512xbf16>, vector<512x32xbf16>, vector<144x32xf32> -> vector<144x32xf32>
    %c0_3 = arith.constant 0 : index
    %c0_4 = arith.constant 0 : index
    %3 = vector.load %arg3[%c0_3, %c0_4] : memref<1x32xf32, #tpu.memory_space<vmem>>, vector<1x32xf32>
    %4 = vector.broadcast %3 : vector<1x32xf32> to vector<144x32xf32>
    %5 = arith.addf %2, %4 : vector<144x32xf32>
    %cst_5 = arith.constant 0.000000e+00 : f32
    %6 = vector.broadcast %cst_5 : f32 to vector<144x32xf32>
    %7 = arith.maximumf %5, %6 : vector<144x32xf32>
    %c0_6 = arith.constant 0 : index
    %c0_7 = arith.constant 0 : index
    %8 = vector.load %arg4[%c0_6, %c0_7] : memref<144x1xf32, #tpu.memory_space<vmem>>, vector<144x1xf32>
    %9 = vector.broadcast %8 : vector<144x1xf32> to vector<144x32xf32>
    %10 = arith.mulf %7, %9 : vector<144x32xf32>
    %11 = arith.truncf %10 : vector<144x32xf32> to vector<144x32xbf16>
    %c0_8 = arith.constant 0 : index
    %c0_9 = arith.constant 0 : index
    %12 = vector.load %arg5[%c0_8, %c0_9] : memref<144x32xbf16, #tpu.memory_space<vmem>>, vector<144x32xbf16>
    tpu.vector_store %arg5[%c0_8, %c0_9], %11 {strides = array<i32>} : memref<144x32xbf16, #tpu.memory_space<vmem>>, vector<144x32xbf16>,
    return
  }
  func.func @transform_0(%arg0: i32) -> (i32, i32) {
    %c0_i32 = arith.constant 0 : i32
    %c0_i32_0 = arith.constant 0 : i32
    return %arg0, %c0_i32 : i32, i32
  }
  func.func @transform_1(%arg0: i32) -> (i32, i32) {
    %c0_i32 = arith.constant 0 : i32
    %c0_i32_0 = arith.constant 0 : i32
    %c0_i32_1 = arith.constant 0 : i32
    return %c0_i32, %c0_i32_0 : i32, i32
  }
  func.func @transform_2(%arg0: i32) -> (i32, i32) {
    %c0_i32 = arith.constant 0 : i32
    %c0_i32_0 = arith.constant 0 : i32
    %c0_i32_1 = arith.constant 0 : i32
    return %c0_i32, %c0_i32_0 : i32, i32
  }
  func.func @transform_3(%arg0: i32) -> (i32, i32) {
    %c0_i32 = arith.constant 0 : i32
    %c0_i32_0 = arith.constant 0 : i32
    return %arg0, %c0_i32 : i32, i32
  }
  func.func @transform_4(%arg0: i32) -> (i32, i32) {
    %c0_i32 = arith.constant 0 : i32
    %c0_i32_0 = arith.constant 0 : i32
    return %arg0, %c0_i32 : i32, i32
  }
}

module attributes {stable_mosaic.version = 11 : i64} {
  func.func @_conv_kernel(%arg0: i32, %arg1: memref<80x7424xbf16, #tpu.memory_space<vmem>>, %arg2: memref<7424x32xbf16, #tpu.memory_space<vmem>>, %arg3: memref<1x32xf32, #tpu.memory_space<vmem>>, %arg4: memref<80x1xf32, #tpu.memory_space<vmem>>, %arg5: memref<80x32xbf16, #tpu.memory_space<vmem>>) attributes {dimension_semantics = [#tpu.dimension_semantics<parallel>], iteration_bounds = array<i64: 1>, scalar_prefetch = 0 : i64, scratch_operands = 0 : i64, tpu.core_type = #tpu.core_type<tc>, window_params = [{transform_indices = @transform_0, window_bounds = array<i64: 80, 7424>}, {pipeline_mode = #tpu.pipeline_mode<synchronous>, transform_indices = @transform_1, window_bounds = array<i64: 7424, 32>}, {pipeline_mode = #tpu.pipeline_mode<synchronous>, transform_indices = @transform_2, window_bounds = array<i64: 1, 32>}, {transform_indices = @transform_3, window_bounds = array<i64: 80, 1>}, {transform_indices = @transform_4, window_bounds = array<i64: 80, 32>}]} {
    %c0 = arith.constant 0 : index
    %c0_0 = arith.constant 0 : index
    %0 = vector.load %arg1[%c0, %c0_0] : memref<80x7424xbf16, #tpu.memory_space<vmem>>, vector<80x7424xbf16>
    %c0_1 = arith.constant 0 : index
    %c0_2 = arith.constant 0 : index
    %1 = vector.load %arg2[%c0_1, %c0_2] : memref<7424x32xbf16, #tpu.memory_space<vmem>>, vector<7424x32xbf16>
    %cst = arith.constant dense<0.000000e+00> : vector<80x32xf32>
    %2 = tpu.matmul %0, %1, %cst {dimension_numbers = #tpu.dot_dimension_numbers<[1], [0], [0], [1], [0, 0, 1, 1], [], []>} : vector<80x7424xbf16>, vector<7424x32xbf16>, vector<80x32xf32> -> vector<80x32xf32>
    %c0_3 = arith.constant 0 : index
    %c0_4 = arith.constant 0 : index
    %3 = vector.load %arg3[%c0_3, %c0_4] : memref<1x32xf32, #tpu.memory_space<vmem>>, vector<1x32xf32>
    %4 = vector.broadcast %3 : vector<1x32xf32> to vector<80x32xf32>
    %5 = arith.addf %2, %4 : vector<80x32xf32>
    %cst_5 = arith.constant 0.000000e+00 : f32
    %6 = vector.broadcast %cst_5 : f32 to vector<80x32xf32>
    %7 = arith.maximumf %5, %6 : vector<80x32xf32>
    %c0_6 = arith.constant 0 : index
    %c0_7 = arith.constant 0 : index
    %8 = vector.load %arg4[%c0_6, %c0_7] : memref<80x1xf32, #tpu.memory_space<vmem>>, vector<80x1xf32>
    %9 = vector.broadcast %8 : vector<80x1xf32> to vector<80x32xf32>
    %10 = arith.mulf %7, %9 : vector<80x32xf32>
    %11 = arith.truncf %10 : vector<80x32xf32> to vector<80x32xbf16>
    %c0_8 = arith.constant 0 : index
    %c0_9 = arith.constant 0 : index
    %12 = vector.load %arg5[%c0_8, %c0_9] : memref<80x32xbf16, #tpu.memory_space<vmem>>, vector<80x32xbf16>
    tpu.vector_store %arg5[%c0_8, %c0_9], %11 {strides = array<i32>} : memref<80x32xbf16, #tpu.memory_space<vmem>>, vector<80x32xbf16>,
    return
  }
  func.func @transform_0(%arg0: i32) -> (i32, i32) {
    %c0_i32 = arith.constant 0 : i32
    %c0_i32_0 = arith.constant 0 : i32
    return %arg0, %c0_i32 : i32, i32
  }
  func.func @transform_1(%arg0: i32) -> (i32, i32) {
    %c0_i32 = arith.constant 0 : i32
    %c0_i32_0 = arith.constant 0 : i32
    %c0_i32_1 = arith.constant 0 : i32
    return %c0_i32, %c0_i32_0 : i32, i32
  }
  func.func @transform_2(%arg0: i32) -> (i32, i32) {
    %c0_i32 = arith.constant 0 : i32
    %c0_i32_0 = arith.constant 0 : i32
    %c0_i32_1 = arith.constant 0 : i32
    return %c0_i32, %c0_i32_0 : i32, i32
  }
  func.func @transform_3(%arg0: i32) -> (i32, i32) {
    %c0_i32 = arith.constant 0 : i32
    %c0_i32_0 = arith.constant 0 : i32
    return %arg0, %c0_i32 : i32, i32
  }
  func.func @transform_4(%arg0: i32) -> (i32, i32) {
    %c0_i32 = arith.constant 0 : i32
    %c0_i32_0 = arith.constant 0 : i32
    return %arg0, %c0_i32 : i32, i32
  }
}

module attributes {stable_mosaic.version = 11 : i64} {
  func.func @_linear_kernel(%arg0: i32, %arg1: memref<16x160xbf16, #tpu.memory_space<vmem>>, %arg2: memref<160x192xbf16, #tpu.memory_space<vmem>>, %arg3: memref<1x192xf32, #tpu.memory_space<vmem>>, %arg4: memref<16x192xf32, #tpu.memory_space<vmem>>) attributes {dimension_semantics = [#tpu.dimension_semantics<parallel>], iteration_bounds = array<i64: 1>, scalar_prefetch = 0 : i64, scratch_operands = 0 : i64, tpu.core_type = #tpu.core_type<tc>, window_params = [{transform_indices = @transform_0, window_bounds = array<i64: 16, 160>}, {pipeline_mode = #tpu.pipeline_mode<synchronous>, transform_indices = @transform_1, window_bounds = array<i64: 160, 192>}, {pipeline_mode = #tpu.pipeline_mode<synchronous>, transform_indices = @transform_2, window_bounds = array<i64: 1, 192>}, {transform_indices = @transform_3, window_bounds = array<i64: 16, 192>}]} {
    %c0 = arith.constant 0 : index
    %c0_0 = arith.constant 0 : index
    %0 = vector.load %arg1[%c0, %c0_0] : memref<16x160xbf16, #tpu.memory_space<vmem>>, vector<16x160xbf16>
    %c0_1 = arith.constant 0 : index
    %c0_2 = arith.constant 0 : index
    %1 = vector.load %arg2[%c0_1, %c0_2] : memref<160x192xbf16, #tpu.memory_space<vmem>>, vector<160x192xbf16>
    %cst = arith.constant dense<0.000000e+00> : vector<16x192xf32>
    %2 = tpu.matmul %0, %1, %cst {dimension_numbers = #tpu.dot_dimension_numbers<[1], [0], [0], [1], [0, 0, 1, 1], [], []>} : vector<16x160xbf16>, vector<160x192xbf16>, vector<16x192xf32> -> vector<16x192xf32>
    %c0_3 = arith.constant 0 : index
    %c0_4 = arith.constant 0 : index
    %3 = vector.load %arg3[%c0_3, %c0_4] : memref<1x192xf32, #tpu.memory_space<vmem>>, vector<1x192xf32>
    %4 = vector.broadcast %3 : vector<1x192xf32> to vector<16x192xf32>
    %5 = arith.addf %2, %4 : vector<16x192xf32>
    %c0_5 = arith.constant 0 : index
    %c0_6 = arith.constant 0 : index
    %6 = vector.load %arg4[%c0_5, %c0_6] : memref<16x192xf32, #tpu.memory_space<vmem>>, vector<16x192xf32>
    tpu.vector_store %arg4[%c0_5, %c0_6], %5 {strides = array<i32>} : memref<16x192xf32, #tpu.memory_space<vmem>>, vector<16x192xf32>,
    return
  }
  func.func @transform_0(%arg0: i32) -> (i32, i32) {
    %c0_i32 = arith.constant 0 : i32
    %c0_i32_0 = arith.constant 0 : i32
    return %arg0, %c0_i32 : i32, i32
  }
  func.func @transform_1(%arg0: i32) -> (i32, i32) {
    %c0_i32 = arith.constant 0 : i32
    %c0_i32_0 = arith.constant 0 : i32
    %c0_i32_1 = arith.constant 0 : i32
    return %c0_i32, %c0_i32_0 : i32, i32
  }
  func.func @transform_2(%arg0: i32) -> (i32, i32) {
    %c0_i32 = arith.constant 0 : i32
    %c0_i32_0 = arith.constant 0 : i32
    %c0_i32_1 = arith.constant 0 : i32
    return %c0_i32, %c0_i32_0 : i32, i32
  }
  func.func @transform_3(%arg0: i32) -> (i32, i32) {
    %c0_i32 = arith.constant 0 : i32
    %c0_i32_0 = arith.constant 0 : i32
    return %arg0, %c0_i32 : i32, i32
  }
}

module attributes {stable_mosaic.version = 11 : i64} {
  func.func @kernel(%arg0: i32, %arg1: memref<2x1xi32, #tpu.memory_space<vmem>>, %arg2: memref<8x2x192xf32, #tpu.memory_space<vmem>>, %arg3: memref<64x192xbf16, #tpu.memory_space<vmem>>, %arg4: memref<1x192xf32, #tpu.memory_space<vmem>>, %arg5: memref<8x2x64xf32, #tpu.memory_space<vmem>>, %arg6: memref<2x64xf32, #tpu.memory_space<vmem>>) attributes {dimension_semantics = [#tpu.dimension_semantics<arbitrary>], iteration_bounds = array<i64: 1>, scalar_prefetch = 0 : i64, scratch_operands = 1 : i64, tpu.core_type = #tpu.core_type<tc>, window_params = [{pipeline_mode = #tpu.pipeline_mode<synchronous>, transform_indices = @transform_0, window_bounds = array<i64: 2, 1>}, {transform_indices = @transform_1, window_bounds = array<i64: 8, 2, 192>}, {pipeline_mode = #tpu.pipeline_mode<synchronous>, transform_indices = @transform_2, window_bounds = array<i64: 64, 192>}, {pipeline_mode = #tpu.pipeline_mode<synchronous>, transform_indices = @transform_3, window_bounds = array<i64: 1, 192>}, {transform_indices = @transform_4, window_bounds = array<i64: 8, 2, 64>}]} {
    %c0_i32 = arith.constant 0 : i32
    %0 = arith.cmpi eq, %arg0, %c0_i32 : i32
    %1 = arith.extui %0 : i1 to i32
    %c0_i32_0 = arith.constant 0 : i32
    %2 = arith.cmpi ne, %1, %c0_i32_0 : i32
    scf.if %2 {
      %cst_84 = arith.constant 0.000000e+00 : f32
      %446 = vector.broadcast %cst_84 : f32 to vector<2x64xf32>
      %c0_85 = arith.constant 0 : index
      %c0_86 = arith.constant 0 : index
      %447 = vector.load %arg6[%c0_85, %c0_86] : memref<2x64xf32, #tpu.memory_space<vmem>>, vector<2x64xf32>
      tpu.vector_store %arg6[%c0_85, %c0_86], %446 {strides = array<i32>} : memref<2x64xf32, #tpu.memory_space<vmem>>, vector<2x64xf32>,
    } else {
    }
    %c0 = arith.constant 0 : index
    %c0_1 = arith.constant 0 : index
    %3 = vector.load %arg3[%c0, %c0_1] : memref<64x192xbf16, #tpu.memory_space<vmem>>, vector<64x192xbf16>
    %c0_2 = arith.constant 0 : index
    %c0_3 = arith.constant 0 : index
    %4 = vector.load %arg4[%c0_2, %c0_3] : memref<1x192xf32, #tpu.memory_space<vmem>>, vector<1x192xf32>
    %c0_4 = arith.constant 0 : index
    %c0_5 = arith.constant 0 : index
    %5 = vector.load %arg1[%c0_4, %c0_5] : memref<2x1xi32, #tpu.memory_space<vmem>>, vector<2x1xi32>
    %6 = tpu.iota {dimensions = array<i32: 1>} : vector<2x64xi32>
    %c32_i32 = arith.constant 32 : i32
    %7 = vector.broadcast %c32_i32 : i32 to vector<2x64xi32>
    %8 = arith.cmpi slt, %6, %7 : vector<2x64xi32>
    %c8_i32 = arith.constant 8 : i32
    %9 = vector.broadcast %c8_i32 : i32 to vector<2x1xi32>
    %10 = arith.subi %9, %5 : vector<2x1xi32>
    %c8_i32_6 = arith.constant 8 : i32
    %11 = arith.muli %arg0, %c8_i32_6 : i32
    %c0_7 = arith.constant 0 : index
    %c0_8 = arith.constant 0 : index
    %12 = vector.load %arg6[%c0_7, %c0_8] : memref<2x64xf32, #tpu.memory_space<vmem>>, vector<2x64xf32>
    %c0_i32_9 = arith.constant 0 : i32
    %13 = arith.addi %11, %c0_i32_9 : i32
    %14 = arith.index_cast %c0_i32_9 : i32 to index
    %c0_10 = arith.constant 0 : index
    %c0_11 = arith.constant 0 : index
    %15 = vector.load %arg2[%14, %c0_10, %c0_11] : memref<8x2x192xf32, #tpu.memory_space<vmem>>, vector<1x2x192xf32>
    %16 = vector.shape_cast %15 : vector<1x2x192xf32> to vector<2x192xf32>
    %17 = arith.truncf %12 : vector<2x64xf32> to vector<2x64xbf16>
    %cst = arith.constant dense<0.000000e+00> : vector<2x192xf32>
    %18 = tpu.matmul %17, %3, %cst {dimension_numbers = #tpu.dot_dimension_numbers<[1], [0], [0], [1], [0, 0, 1, 1], [], []>} : vector<2x64xbf16>, vector<64x192xbf16>, vector<2x192xf32> -> vector<2x192xf32>
    %19 = vector.broadcast %4 : vector<1x192xf32> to vector<2x192xf32>
    %20 = arith.addf %18, %19 : vector<2x192xf32>
    %21 = vector.extract_strided_slice %16 {offsets = [0, 0], sizes = [2, 128], strides = [1, 1]} : vector<2x192xf32> to vector<2x128xf32>
    %22 = vector.extract_strided_slice %20 {offsets = [0, 0], sizes = [2, 128], strides = [1, 1]} : vector<2x192xf32> to vector<2x128xf32>
    %23 = arith.addf %21, %22 : vector<2x128xf32>
    %24 = arith.negf %23 : vector<2x128xf32>
    %25 = math.exp %24 : vector<2x128xf32>
    %cst_12 = arith.constant 1.000000e+00 : f32
    %26 = vector.broadcast %cst_12 : f32 to vector<2x128xf32>
    %27 = arith.addf %26, %25 : vector<2x128xf32>
    %28 = arith.divf %26, %27 : vector<2x128xf32>
    %29 = vector.extract_strided_slice %28 {offsets = [0, 0], sizes = [2, 64], strides = [1, 1]} : vector<2x128xf32> to vector<2x64xf32>
    %30 = vector.extract_strided_slice %28 {offsets = [0, 64], sizes = [2, 64], strides = [1, 1]} : vector<2x128xf32> to vector<2x64xf32>
    %31 = vector.extract_strided_slice %16 {offsets = [0, 128], sizes = [2, 64], strides = [1, 1]} : vector<2x192xf32> to vector<2x64xf32>
    %32 = vector.extract_strided_slice %20 {offsets = [0, 128], sizes = [2, 64], strides = [1, 1]} : vector<2x192xf32> to vector<2x64xf32>
    %33 = arith.mulf %29, %32 : vector<2x64xf32>
    %34 = arith.addf %31, %33 : vector<2x64xf32>
    %35 = math.tanh %34 : vector<2x64xf32>
    %cst_13 = arith.constant 1.000000e+00 : f32
    %36 = vector.broadcast %cst_13 : f32 to vector<2x64xf32>
    %37 = arith.subf %36, %30 : vector<2x64xf32>
    %38 = arith.mulf %37, %35 : vector<2x64xf32>
    %39 = arith.mulf %30, %12 : vector<2x64xf32>
    %40 = arith.addf %38, %39 : vector<2x64xf32>
    %41 = vector.broadcast %13 : i32 to vector<2x1xi32>
    %42 = arith.cmpi slt, %41, %5 : vector<2x1xi32>
    %43 = arith.extui %42 : vector<2x1xi1> to vector<2x1xi32>
    %44 = arith.sitofp %43 : vector<2x1xi32> to vector<2x1xf32>
    %45 = vector.broadcast %13 : i32 to vector<2x1xi32>
    %46 = arith.cmpi sge, %45, %10 : vector<2x1xi32>
    %c8_i32_14 = arith.constant 8 : i32
    %47 = arith.cmpi slt, %13, %c8_i32_14 : i32
    %48 = vector.broadcast %47 : i1 to vector<2x1xi1>
    %49 = arith.andi %46, %48 : vector<2x1xi1>
    %50 = arith.extui %49 : vector<2x1xi1> to vector<2x1xi32>
    %51 = arith.sitofp %50 : vector<2x1xi32> to vector<2x1xf32>
    %52 = vector.shape_cast %44 : vector<2x1xf32> to vector<2x1xf32>
    %53 = vector.broadcast %52 : vector<2x1xf32> to vector<2x64xf32>
    %54 = vector.shape_cast %51 : vector<2x1xf32> to vector<2x1xf32>
    %55 = vector.broadcast %54 : vector<2x1xf32> to vector<2x64xf32>
    %56 = arith.select %8, %53, %55 : vector<2x64xi1>, vector<2x64xf32>
    %57 = arith.mulf %56, %40 : vector<2x64xf32>
    %58 = arith.index_cast %c0_i32_9 : i32 to index
    %c0_15 = arith.constant 0 : index
    %c0_16 = arith.constant 0 : index
    %59 = vector.load %arg5[%58, %c0_15, %c0_16] : memref<8x2x64xf32, #tpu.memory_space<vmem>>, vector<1x2x64xf32>
    %60 = vector.shape_cast %59 : vector<1x2x64xf32> to vector<2x64xf32>
    %61 = vector.shape_cast %57 : vector<2x64xf32> to vector<1x2x64xf32>
    tpu.vector_store %arg5[%58, %c0_15, %c0_16], %61 {strides = array<i32>} : memref<8x2x64xf32, #tpu.memory_space<vmem>>, vector<1x2x64xf32>,
    %62 = arith.mulf %56, %40 : vector<2x64xf32>
    %cst_17 = arith.constant 1.000000e+00 : f32
    %63 = vector.broadcast %cst_17 : f32 to vector<2x64xf32>
    %64 = arith.subf %63, %56 : vector<2x64xf32>
    %65 = arith.mulf %64, %12 : vector<2x64xf32>
    %66 = arith.addf %62, %65 : vector<2x64xf32>
    %c1_i32 = arith.constant 1 : i32
    %67 = arith.addi %11, %c1_i32 : i32
    %68 = arith.index_cast %c1_i32 : i32 to index
    %c0_18 = arith.constant 0 : index
    %c0_19 = arith.constant 0 : index
    %69 = vector.load %arg2[%68, %c0_18, %c0_19] : memref<8x2x192xf32, #tpu.memory_space<vmem>>, vector<1x2x192xf32>
    %70 = vector.shape_cast %69 : vector<1x2x192xf32> to vector<2x192xf32>
    %71 = arith.truncf %66 : vector<2x64xf32> to vector<2x64xbf16>
    %cst_20 = arith.constant dense<0.000000e+00> : vector<2x192xf32>
    %72 = tpu.matmul %71, %3, %cst_20 {dimension_numbers = #tpu.dot_dimension_numbers<[1], [0], [0], [1], [0, 0, 1, 1], [], []>} : vector<2x64xbf16>, vector<64x192xbf16>, vector<2x192xf32> -> vector<2x192xf32>
    %73 = vector.broadcast %4 : vector<1x192xf32> to vector<2x192xf32>
    %74 = arith.addf %72, %73 : vector<2x192xf32>
    %75 = vector.extract_strided_slice %70 {offsets = [0, 0], sizes = [2, 128], strides = [1, 1]} : vector<2x192xf32> to vector<2x128xf32>
    %76 = vector.extract_strided_slice %74 {offsets = [0, 0], sizes = [2, 128], strides = [1, 1]} : vector<2x192xf32> to vector<2x128xf32>
    %77 = arith.addf %75, %76 : vector<2x128xf32>
    %78 = arith.negf %77 : vector<2x128xf32>
    %79 = math.exp %78 : vector<2x128xf32>
    %cst_21 = arith.constant 1.000000e+00 : f32
    %80 = vector.broadcast %cst_21 : f32 to vector<2x128xf32>
    %81 = arith.addf %80, %79 : vector<2x128xf32>
    %82 = arith.divf %80, %81 : vector<2x128xf32>
    %83 = vector.extract_strided_slice %82 {offsets = [0, 0], sizes = [2, 64], strides = [1, 1]} : vector<2x128xf32> to vector<2x64xf32>
    %84 = vector.extract_strided_slice %82 {offsets = [0, 64], sizes = [2, 64], strides = [1, 1]} : vector<2x128xf32> to vector<2x64xf32>
    %85 = vector.extract_strided_slice %70 {offsets = [0, 128], sizes = [2, 64], strides = [1, 1]} : vector<2x192xf32> to vector<2x64xf32>
    %86 = vector.extract_strided_slice %74 {offsets = [0, 128], sizes = [2, 64], strides = [1, 1]} : vector<2x192xf32> to vector<2x64xf32>
    %87 = arith.mulf %83, %86 : vector<2x64xf32>
    %88 = arith.addf %85, %87 : vector<2x64xf32>
    %89 = math.tanh %88 : vector<2x64xf32>
    %cst_22 = arith.constant 1.000000e+00 : f32
    %90 = vector.broadcast %cst_22 : f32 to vector<2x64xf32>
    %91 = arith.subf %90, %84 : vector<2x64xf32>
    %92 = arith.mulf %91, %89 : vector<2x64xf32>
    %93 = arith.mulf %84, %66 : vector<2x64xf32>
    %94 = arith.addf %92, %93 : vector<2x64xf32>
    %95 = vector.broadcast %67 : i32 to vector<2x1xi32>
    %96 = arith.cmpi slt, %95, %5 : vector<2x1xi32>
    %97 = arith.extui %96 : vector<2x1xi1> to vector<2x1xi32>
    %98 = arith.sitofp %97 : vector<2x1xi32> to vector<2x1xf32>
    %99 = vector.broadcast %67 : i32 to vector<2x1xi32>
    %100 = arith.cmpi sge, %99, %10 : vector<2x1xi32>
    %c8_i32_23 = arith.constant 8 : i32
    %101 = arith.cmpi slt, %67, %c8_i32_23 : i32
    %102 = vector.broadcast %101 : i1 to vector<2x1xi1>
    %103 = arith.andi %100, %102 : vector<2x1xi1>
    %104 = arith.extui %103 : vector<2x1xi1> to vector<2x1xi32>
    %105 = arith.sitofp %104 : vector<2x1xi32> to vector<2x1xf32>
    %106 = vector.shape_cast %98 : vector<2x1xf32> to vector<2x1xf32>
    %107 = vector.broadcast %106 : vector<2x1xf32> to vector<2x64xf32>
    %108 = vector.shape_cast %105 : vector<2x1xf32> to vector<2x1xf32>
    %109 = vector.broadcast %108 : vector<2x1xf32> to vector<2x64xf32>
    %110 = arith.select %8, %107, %109 : vector<2x64xi1>, vector<2x64xf32>
    %111 = arith.mulf %110, %94 : vector<2x64xf32>
    %112 = arith.index_cast %c1_i32 : i32 to index
    %c0_24 = arith.constant 0 : index
    %c0_25 = arith.constant 0 : index
    %113 = vector.load %arg5[%112, %c0_24, %c0_25] : memref<8x2x64xf32, #tpu.memory_space<vmem>>, vector<1x2x64xf32>
    %114 = vector.shape_cast %113 : vector<1x2x64xf32> to vector<2x64xf32>
    %115 = vector.shape_cast %111 : vector<2x64xf32> to vector<1x2x64xf32>
    tpu.vector_store %arg5[%112, %c0_24, %c0_25], %115 {strides = array<i32>} : memref<8x2x64xf32, #tpu.memory_space<vmem>>, vector<1x2x64xf32>,
    %116 = arith.mulf %110, %94 : vector<2x64xf32>
    %cst_26 = arith.constant 1.000000e+00 : f32
    %117 = vector.broadcast %cst_26 : f32 to vector<2x64xf32>
    %118 = arith.subf %117, %110 : vector<2x64xf32>
    %119 = arith.mulf %118, %66 : vector<2x64xf32>
    %120 = arith.addf %116, %119 : vector<2x64xf32>
    %c2_i32 = arith.constant 2 : i32
    %121 = arith.addi %11, %c2_i32 : i32
    %122 = arith.index_cast %c2_i32 : i32 to index
    %c0_27 = arith.constant 0 : index
    %c0_28 = arith.constant 0 : index
    %123 = vector.load %arg2[%122, %c0_27, %c0_28] : memref<8x2x192xf32, #tpu.memory_space<vmem>>, vector<1x2x192xf32>
    %124 = vector.shape_cast %123 : vector<1x2x192xf32> to vector<2x192xf32>
    %125 = arith.truncf %120 : vector<2x64xf32> to vector<2x64xbf16>
    %cst_29 = arith.constant dense<0.000000e+00> : vector<2x192xf32>
    %126 = tpu.matmul %125, %3, %cst_29 {dimension_numbers = #tpu.dot_dimension_numbers<[1], [0], [0], [1], [0, 0, 1, 1], [], []>} : vector<2x64xbf16>, vector<64x192xbf16>, vector<2x192xf32> -> vector<2x192xf32>
    %127 = vector.broadcast %4 : vector<1x192xf32> to vector<2x192xf32>
    %128 = arith.addf %126, %127 : vector<2x192xf32>
    %129 = vector.extract_strided_slice %124 {offsets = [0, 0], sizes = [2, 128], strides = [1, 1]} : vector<2x192xf32> to vector<2x128xf32>
    %130 = vector.extract_strided_slice %128 {offsets = [0, 0], sizes = [2, 128], strides = [1, 1]} : vector<2x192xf32> to vector<2x128xf32>
    %131 = arith.addf %129, %130 : vector<2x128xf32>
    %132 = arith.negf %131 : vector<2x128xf32>
    %133 = math.exp %132 : vector<2x128xf32>
    %cst_30 = arith.constant 1.000000e+00 : f32
    %134 = vector.broadcast %cst_30 : f32 to vector<2x128xf32>
    %135 = arith.addf %134, %133 : vector<2x128xf32>
    %136 = arith.divf %134, %135 : vector<2x128xf32>
    %137 = vector.extract_strided_slice %136 {offsets = [0, 0], sizes = [2, 64], strides = [1, 1]} : vector<2x128xf32> to vector<2x64xf32>
    %138 = vector.extract_strided_slice %136 {offsets = [0, 64], sizes = [2, 64], strides = [1, 1]} : vector<2x128xf32> to vector<2x64xf32>
    %139 = vector.extract_strided_slice %124 {offsets = [0, 128], sizes = [2, 64], strides = [1, 1]} : vector<2x192xf32> to vector<2x64xf32>
    %140 = vector.extract_strided_slice %128 {offsets = [0, 128], sizes = [2, 64], strides = [1, 1]} : vector<2x192xf32> to vector<2x64xf32>
    %141 = arith.mulf %137, %140 : vector<2x64xf32>
    %142 = arith.addf %139, %141 : vector<2x64xf32>
    %143 = math.tanh %142 : vector<2x64xf32>
    %cst_31 = arith.constant 1.000000e+00 : f32
    %144 = vector.broadcast %cst_31 : f32 to vector<2x64xf32>
    %145 = arith.subf %144, %138 : vector<2x64xf32>
    %146 = arith.mulf %145, %143 : vector<2x64xf32>
    %147 = arith.mulf %138, %120 : vector<2x64xf32>
    %148 = arith.addf %146, %147 : vector<2x64xf32>
    %149 = vector.broadcast %121 : i32 to vector<2x1xi32>
    %150 = arith.cmpi slt, %149, %5 : vector<2x1xi32>
    %151 = arith.extui %150 : vector<2x1xi1> to vector<2x1xi32>
    %152 = arith.sitofp %151 : vector<2x1xi32> to vector<2x1xf32>
    %153 = vector.broadcast %121 : i32 to vector<2x1xi32>
    %154 = arith.cmpi sge, %153, %10 : vector<2x1xi32>
    %c8_i32_32 = arith.constant 8 : i32
    %155 = arith.cmpi slt, %121, %c8_i32_32 : i32
    %156 = vector.broadcast %155 : i1 to vector<2x1xi1>
    %157 = arith.andi %154, %156 : vector<2x1xi1>
    %158 = arith.extui %157 : vector<2x1xi1> to vector<2x1xi32>
    %159 = arith.sitofp %158 : vector<2x1xi32> to vector<2x1xf32>
    %160 = vector.shape_cast %152 : vector<2x1xf32> to vector<2x1xf32>
    %161 = vector.broadcast %160 : vector<2x1xf32> to vector<2x64xf32>
    %162 = vector.shape_cast %159 : vector<2x1xf32> to vector<2x1xf32>
    %163 = vector.broadcast %162 : vector<2x1xf32> to vector<2x64xf32>
    %164 = arith.select %8, %161, %163 : vector<2x64xi1>, vector<2x64xf32>
    %165 = arith.mulf %164, %148 : vector<2x64xf32>
    %166 = arith.index_cast %c2_i32 : i32 to index
    %c0_33 = arith.constant 0 : index
    %c0_34 = arith.constant 0 : index
    %167 = vector.load %arg5[%166, %c0_33, %c0_34] : memref<8x2x64xf32, #tpu.memory_space<vmem>>, vector<1x2x64xf32>
    %168 = vector.shape_cast %167 : vector<1x2x64xf32> to vector<2x64xf32>
    %169 = vector.shape_cast %165 : vector<2x64xf32> to vector<1x2x64xf32>
    tpu.vector_store %arg5[%166, %c0_33, %c0_34], %169 {strides = array<i32>} : memref<8x2x64xf32, #tpu.memory_space<vmem>>, vector<1x2x64xf32>,
    %170 = arith.mulf %164, %148 : vector<2x64xf32>
    %cst_35 = arith.constant 1.000000e+00 : f32
    %171 = vector.broadcast %cst_35 : f32 to vector<2x64xf32>
    %172 = arith.subf %171, %164 : vector<2x64xf32>
    %173 = arith.mulf %172, %120 : vector<2x64xf32>
    %174 = arith.addf %170, %173 : vector<2x64xf32>
    %c3_i32 = arith.constant 3 : i32
    %175 = arith.addi %11, %c3_i32 : i32
    %176 = arith.index_cast %c3_i32 : i32 to index
    %c0_36 = arith.constant 0 : index
    %c0_37 = arith.constant 0 : index
    %177 = vector.load %arg2[%176, %c0_36, %c0_37] : memref<8x2x192xf32, #tpu.memory_space<vmem>>, vector<1x2x192xf32>
    %178 = vector.shape_cast %177 : vector<1x2x192xf32> to vector<2x192xf32>
    %179 = arith.truncf %174 : vector<2x64xf32> to vector<2x64xbf16>
    %cst_38 = arith.constant dense<0.000000e+00> : vector<2x192xf32>
    %180 = tpu.matmul %179, %3, %cst_38 {dimension_numbers = #tpu.dot_dimension_numbers<[1], [0], [0], [1], [0, 0, 1, 1], [], []>} : vector<2x64xbf16>, vector<64x192xbf16>, vector<2x192xf32> -> vector<2x192xf32>
    %181 = vector.broadcast %4 : vector<1x192xf32> to vector<2x192xf32>
    %182 = arith.addf %180, %181 : vector<2x192xf32>
    %183 = vector.extract_strided_slice %178 {offsets = [0, 0], sizes = [2, 128], strides = [1, 1]} : vector<2x192xf32> to vector<2x128xf32>
    %184 = vector.extract_strided_slice %182 {offsets = [0, 0], sizes = [2, 128], strides = [1, 1]} : vector<2x192xf32> to vector<2x128xf32>
    %185 = arith.addf %183, %184 : vector<2x128xf32>
    %186 = arith.negf %185 : vector<2x128xf32>
    %187 = math.exp %186 : vector<2x128xf32>
    %cst_39 = arith.constant 1.000000e+00 : f32
    %188 = vector.broadcast %cst_39 : f32 to vector<2x128xf32>
    %189 = arith.addf %188, %187 : vector<2x128xf32>
    %190 = arith.divf %188, %189 : vector<2x128xf32>
    %191 = vector.extract_strided_slice %190 {offsets = [0, 0], sizes = [2, 64], strides = [1, 1]} : vector<2x128xf32> to vector<2x64xf32>
    %192 = vector.extract_strided_slice %190 {offsets = [0, 64], sizes = [2, 64], strides = [1, 1]} : vector<2x128xf32> to vector<2x64xf32>
    %193 = vector.extract_strided_slice %178 {offsets = [0, 128], sizes = [2, 64], strides = [1, 1]} : vector<2x192xf32> to vector<2x64xf32>
    %194 = vector.extract_strided_slice %182 {offsets = [0, 128], sizes = [2, 64], strides = [1, 1]} : vector<2x192xf32> to vector<2x64xf32>
    %195 = arith.mulf %191, %194 : vector<2x64xf32>
    %196 = arith.addf %193, %195 : vector<2x64xf32>
    %197 = math.tanh %196 : vector<2x64xf32>
    %cst_40 = arith.constant 1.000000e+00 : f32
    %198 = vector.broadcast %cst_40 : f32 to vector<2x64xf32>
    %199 = arith.subf %198, %192 : vector<2x64xf32>
    %200 = arith.mulf %199, %197 : vector<2x64xf32>
    %201 = arith.mulf %192, %174 : vector<2x64xf32>
    %202 = arith.addf %200, %201 : vector<2x64xf32>
    %203 = vector.broadcast %175 : i32 to vector<2x1xi32>
    %204 = arith.cmpi slt, %203, %5 : vector<2x1xi32>
    %205 = arith.extui %204 : vector<2x1xi1> to vector<2x1xi32>
    %206 = arith.sitofp %205 : vector<2x1xi32> to vector<2x1xf32>
    %207 = vector.broadcast %175 : i32 to vector<2x1xi32>
    %208 = arith.cmpi sge, %207, %10 : vector<2x1xi32>
    %c8_i32_41 = arith.constant 8 : i32
    %209 = arith.cmpi slt, %175, %c8_i32_41 : i32
    %210 = vector.broadcast %209 : i1 to vector<2x1xi1>
    %211 = arith.andi %208, %210 : vector<2x1xi1>
    %212 = arith.extui %211 : vector<2x1xi1> to vector<2x1xi32>
    %213 = arith.sitofp %212 : vector<2x1xi32> to vector<2x1xf32>
    %214 = vector.shape_cast %206 : vector<2x1xf32> to vector<2x1xf32>
    %215 = vector.broadcast %214 : vector<2x1xf32> to vector<2x64xf32>
    %216 = vector.shape_cast %213 : vector<2x1xf32> to vector<2x1xf32>
    %217 = vector.broadcast %216 : vector<2x1xf32> to vector<2x64xf32>
    %218 = arith.select %8, %215, %217 : vector<2x64xi1>, vector<2x64xf32>
    %219 = arith.mulf %218, %202 : vector<2x64xf32>
    %220 = arith.index_cast %c3_i32 : i32 to index
    %c0_42 = arith.constant 0 : index
    %c0_43 = arith.constant 0 : index
    %221 = vector.load %arg5[%220, %c0_42, %c0_43] : memref<8x2x64xf32, #tpu.memory_space<vmem>>, vector<1x2x64xf32>
    %222 = vector.shape_cast %221 : vector<1x2x64xf32> to vector<2x64xf32>
    %223 = vector.shape_cast %219 : vector<2x64xf32> to vector<1x2x64xf32>
    tpu.vector_store %arg5[%220, %c0_42, %c0_43], %223 {strides = array<i32>} : memref<8x2x64xf32, #tpu.memory_space<vmem>>, vector<1x2x64xf32>,
    %224 = arith.mulf %218, %202 : vector<2x64xf32>
    %cst_44 = arith.constant 1.000000e+00 : f32
    %225 = vector.broadcast %cst_44 : f32 to vector<2x64xf32>
    %226 = arith.subf %225, %218 : vector<2x64xf32>
    %227 = arith.mulf %226, %174 : vector<2x64xf32>
    %228 = arith.addf %224, %227 : vector<2x64xf32>
    %c4_i32 = arith.constant 4 : i32
    %229 = arith.addi %11, %c4_i32 : i32
    %230 = arith.index_cast %c4_i32 : i32 to index
    %c0_45 = arith.constant 0 : index
    %c0_46 = arith.constant 0 : index
    %231 = vector.load %arg2[%230, %c0_45, %c0_46] : memref<8x2x192xf32, #tpu.memory_space<vmem>>, vector<1x2x192xf32>
    %232 = vector.shape_cast %231 : vector<1x2x192xf32> to vector<2x192xf32>
    %233 = arith.truncf %228 : vector<2x64xf32> to vector<2x64xbf16>
    %cst_47 = arith.constant dense<0.000000e+00> : vector<2x192xf32>
    %234 = tpu.matmul %233, %3, %cst_47 {dimension_numbers = #tpu.dot_dimension_numbers<[1], [0], [0], [1], [0, 0, 1, 1], [], []>} : vector<2x64xbf16>, vector<64x192xbf16>, vector<2x192xf32> -> vector<2x192xf32>
    %235 = vector.broadcast %4 : vector<1x192xf32> to vector<2x192xf32>
    %236 = arith.addf %234, %235 : vector<2x192xf32>
    %237 = vector.extract_strided_slice %232 {offsets = [0, 0], sizes = [2, 128], strides = [1, 1]} : vector<2x192xf32> to vector<2x128xf32>
    %238 = vector.extract_strided_slice %236 {offsets = [0, 0], sizes = [2, 128], strides = [1, 1]} : vector<2x192xf32> to vector<2x128xf32>
    %239 = arith.addf %237, %238 : vector<2x128xf32>
    %240 = arith.negf %239 : vector<2x128xf32>
    %241 = math.exp %240 : vector<2x128xf32>
    %cst_48 = arith.constant 1.000000e+00 : f32
    %242 = vector.broadcast %cst_48 : f32 to vector<2x128xf32>
    %243 = arith.addf %242, %241 : vector<2x128xf32>
    %244 = arith.divf %242, %243 : vector<2x128xf32>
    %245 = vector.extract_strided_slice %244 {offsets = [0, 0], sizes = [2, 64], strides = [1, 1]} : vector<2x128xf32> to vector<2x64xf32>
    %246 = vector.extract_strided_slice %244 {offsets = [0, 64], sizes = [2, 64], strides = [1, 1]} : vector<2x128xf32> to vector<2x64xf32>
    %247 = vector.extract_strided_slice %232 {offsets = [0, 128], sizes = [2, 64], strides = [1, 1]} : vector<2x192xf32> to vector<2x64xf32>
    %248 = vector.extract_strided_slice %236 {offsets = [0, 128], sizes = [2, 64], strides = [1, 1]} : vector<2x192xf32> to vector<2x64xf32>
    %249 = arith.mulf %245, %248 : vector<2x64xf32>
    %250 = arith.addf %247, %249 : vector<2x64xf32>
    %251 = math.tanh %250 : vector<2x64xf32>
    %cst_49 = arith.constant 1.000000e+00 : f32
    %252 = vector.broadcast %cst_49 : f32 to vector<2x64xf32>
    %253 = arith.subf %252, %246 : vector<2x64xf32>
    %254 = arith.mulf %253, %251 : vector<2x64xf32>
    %255 = arith.mulf %246, %228 : vector<2x64xf32>
    %256 = arith.addf %254, %255 : vector<2x64xf32>
    %257 = vector.broadcast %229 : i32 to vector<2x1xi32>
    %258 = arith.cmpi slt, %257, %5 : vector<2x1xi32>
    %259 = arith.extui %258 : vector<2x1xi1> to vector<2x1xi32>
    %260 = arith.sitofp %259 : vector<2x1xi32> to vector<2x1xf32>
    %261 = vector.broadcast %229 : i32 to vector<2x1xi32>
    %262 = arith.cmpi sge, %261, %10 : vector<2x1xi32>
    %c8_i32_50 = arith.constant 8 : i32
    %263 = arith.cmpi slt, %229, %c8_i32_50 : i32
    %264 = vector.broadcast %263 : i1 to vector<2x1xi1>
    %265 = arith.andi %262, %264 : vector<2x1xi1>
    %266 = arith.extui %265 : vector<2x1xi1> to vector<2x1xi32>
    %267 = arith.sitofp %266 : vector<2x1xi32> to vector<2x1xf32>
    %268 = vector.shape_cast %260 : vector<2x1xf32> to vector<2x1xf32>
    %269 = vector.broadcast %268 : vector<2x1xf32> to vector<2x64xf32>
    %270 = vector.shape_cast %267 : vector<2x1xf32> to vector<2x1xf32>
    %271 = vector.broadcast %270 : vector<2x1xf32> to vector<2x64xf32>
    %272 = arith.select %8, %269, %271 : vector<2x64xi1>, vector<2x64xf32>
    %273 = arith.mulf %272, %256 : vector<2x64xf32>
    %274 = arith.index_cast %c4_i32 : i32 to index
    %c0_51 = arith.constant 0 : index
    %c0_52 = arith.constant 0 : index
    %275 = vector.load %arg5[%274, %c0_51, %c0_52] : memref<8x2x64xf32, #tpu.memory_space<vmem>>, vector<1x2x64xf32>
    %276 = vector.shape_cast %275 : vector<1x2x64xf32> to vector<2x64xf32>
    %277 = vector.shape_cast %273 : vector<2x64xf32> to vector<1x2x64xf32>
    tpu.vector_store %arg5[%274, %c0_51, %c0_52], %277 {strides = array<i32>} : memref<8x2x64xf32, #tpu.memory_space<vmem>>, vector<1x2x64xf32>,
    %278 = arith.mulf %272, %256 : vector<2x64xf32>
    %cst_53 = arith.constant 1.000000e+00 : f32
    %279 = vector.broadcast %cst_53 : f32 to vector<2x64xf32>
    %280 = arith.subf %279, %272 : vector<2x64xf32>
    %281 = arith.mulf %280, %228 : vector<2x64xf32>
    %282 = arith.addf %278, %281 : vector<2x64xf32>
    %c5_i32 = arith.constant 5 : i32
    %283 = arith.addi %11, %c5_i32 : i32
    %284 = arith.index_cast %c5_i32 : i32 to index
    %c0_54 = arith.constant 0 : index
    %c0_55 = arith.constant 0 : index
    %285 = vector.load %arg2[%284, %c0_54, %c0_55] : memref<8x2x192xf32, #tpu.memory_space<vmem>>, vector<1x2x192xf32>
    %286 = vector.shape_cast %285 : vector<1x2x192xf32> to vector<2x192xf32>
    %287 = arith.truncf %282 : vector<2x64xf32> to vector<2x64xbf16>
    %cst_56 = arith.constant dense<0.000000e+00> : vector<2x192xf32>
    %288 = tpu.matmul %287, %3, %cst_56 {dimension_numbers = #tpu.dot_dimension_numbers<[1], [0], [0], [1], [0, 0, 1, 1], [], []>} : vector<2x64xbf16>, vector<64x192xbf16>, vector<2x192xf32> -> vector<2x192xf32>
    %289 = vector.broadcast %4 : vector<1x192xf32> to vector<2x192xf32>
    %290 = arith.addf %288, %289 : vector<2x192xf32>
    %291 = vector.extract_strided_slice %286 {offsets = [0, 0], sizes = [2, 128], strides = [1, 1]} : vector<2x192xf32> to vector<2x128xf32>
    %292 = vector.extract_strided_slice %290 {offsets = [0, 0], sizes = [2, 128], strides = [1, 1]} : vector<2x192xf32> to vector<2x128xf32>
    %293 = arith.addf %291, %292 : vector<2x128xf32>
    %294 = arith.negf %293 : vector<2x128xf32>
    %295 = math.exp %294 : vector<2x128xf32>
    %cst_57 = arith.constant 1.000000e+00 : f32
    %296 = vector.broadcast %cst_57 : f32 to vector<2x128xf32>
    %297 = arith.addf %296, %295 : vector<2x128xf32>
    %298 = arith.divf %296, %297 : vector<2x128xf32>
    %299 = vector.extract_strided_slice %298 {offsets = [0, 0], sizes = [2, 64], strides = [1, 1]} : vector<2x128xf32> to vector<2x64xf32>
    %300 = vector.extract_strided_slice %298 {offsets = [0, 64], sizes = [2, 64], strides = [1, 1]} : vector<2x128xf32> to vector<2x64xf32>
    %301 = vector.extract_strided_slice %286 {offsets = [0, 128], sizes = [2, 64], strides = [1, 1]} : vector<2x192xf32> to vector<2x64xf32>
    %302 = vector.extract_strided_slice %290 {offsets = [0, 128], sizes = [2, 64], strides = [1, 1]} : vector<2x192xf32> to vector<2x64xf32>
    %303 = arith.mulf %299, %302 : vector<2x64xf32>
    %304 = arith.addf %301, %303 : vector<2x64xf32>
    %305 = math.tanh %304 : vector<2x64xf32>
    %cst_58 = arith.constant 1.000000e+00 : f32
    %306 = vector.broadcast %cst_58 : f32 to vector<2x64xf32>
    %307 = arith.subf %306, %300 : vector<2x64xf32>
    %308 = arith.mulf %307, %305 : vector<2x64xf32>
    %309 = arith.mulf %300, %282 : vector<2x64xf32>
    %310 = arith.addf %308, %309 : vector<2x64xf32>
    %311 = vector.broadcast %283 : i32 to vector<2x1xi32>
    %312 = arith.cmpi slt, %311, %5 : vector<2x1xi32>
    %313 = arith.extui %312 : vector<2x1xi1> to vector<2x1xi32>
    %314 = arith.sitofp %313 : vector<2x1xi32> to vector<2x1xf32>
    %315 = vector.broadcast %283 : i32 to vector<2x1xi32>
    %316 = arith.cmpi sge, %315, %10 : vector<2x1xi32>
    %c8_i32_59 = arith.constant 8 : i32
    %317 = arith.cmpi slt, %283, %c8_i32_59 : i32
    %318 = vector.broadcast %317 : i1 to vector<2x1xi1>
    %319 = arith.andi %316, %318 : vector<2x1xi1>
    %320 = arith.extui %319 : vector<2x1xi1> to vector<2x1xi32>
    %321 = arith.sitofp %320 : vector<2x1xi32> to vector<2x1xf32>
    %322 = vector.shape_cast %314 : vector<2x1xf32> to vector<2x1xf32>
    %323 = vector.broadcast %322 : vector<2x1xf32> to vector<2x64xf32>
    %324 = vector.shape_cast %321 : vector<2x1xf32> to vector<2x1xf32>
    %325 = vector.broadcast %324 : vector<2x1xf32> to vector<2x64xf32>
    %326 = arith.select %8, %323, %325 : vector<2x64xi1>, vector<2x64xf32>
    %327 = arith.mulf %326, %310 : vector<2x64xf32>
    %328 = arith.index_cast %c5_i32 : i32 to index
    %c0_60 = arith.constant 0 : index
    %c0_61 = arith.constant 0 : index
    %329 = vector.load %arg5[%328, %c0_60, %c0_61] : memref<8x2x64xf32, #tpu.memory_space<vmem>>, vector<1x2x64xf32>
    %330 = vector.shape_cast %329 : vector<1x2x64xf32> to vector<2x64xf32>
    %331 = vector.shape_cast %327 : vector<2x64xf32> to vector<1x2x64xf32>
    tpu.vector_store %arg5[%328, %c0_60, %c0_61], %331 {strides = array<i32>} : memref<8x2x64xf32, #tpu.memory_space<vmem>>, vector<1x2x64xf32>,
    %332 = arith.mulf %326, %310 : vector<2x64xf32>
    %cst_62 = arith.constant 1.000000e+00 : f32
    %333 = vector.broadcast %cst_62 : f32 to vector<2x64xf32>
    %334 = arith.subf %333, %326 : vector<2x64xf32>
    %335 = arith.mulf %334, %282 : vector<2x64xf32>
    %336 = arith.addf %332, %335 : vector<2x64xf32>
    %c6_i32 = arith.constant 6 : i32
    %337 = arith.addi %11, %c6_i32 : i32
    %338 = arith.index_cast %c6_i32 : i32 to index
    %c0_63 = arith.constant 0 : index
    %c0_64 = arith.constant 0 : index
    %339 = vector.load %arg2[%338, %c0_63, %c0_64] : memref<8x2x192xf32, #tpu.memory_space<vmem>>, vector<1x2x192xf32>
    %340 = vector.shape_cast %339 : vector<1x2x192xf32> to vector<2x192xf32>
    %341 = arith.truncf %336 : vector<2x64xf32> to vector<2x64xbf16>
    %cst_65 = arith.constant dense<0.000000e+00> : vector<2x192xf32>
    %342 = tpu.matmul %341, %3, %cst_65 {dimension_numbers = #tpu.dot_dimension_numbers<[1], [0], [0], [1], [0, 0, 1, 1], [], []>} : vector<2x64xbf16>, vector<64x192xbf16>, vector<2x192xf32> -> vector<2x192xf32>
    %343 = vector.broadcast %4 : vector<1x192xf32> to vector<2x192xf32>
    %344 = arith.addf %342, %343 : vector<2x192xf32>
    %345 = vector.extract_strided_slice %340 {offsets = [0, 0], sizes = [2, 128], strides = [1, 1]} : vector<2x192xf32> to vector<2x128xf32>
    %346 = vector.extract_strided_slice %344 {offsets = [0, 0], sizes = [2, 128], strides = [1, 1]} : vector<2x192xf32> to vector<2x128xf32>
    %347 = arith.addf %345, %346 : vector<2x128xf32>
    %348 = arith.negf %347 : vector<2x128xf32>
    %349 = math.exp %348 : vector<2x128xf32>
    %cst_66 = arith.constant 1.000000e+00 : f32
    %350 = vector.broadcast %cst_66 : f32 to vector<2x128xf32>
    %351 = arith.addf %350, %349 : vector<2x128xf32>
    %352 = arith.divf %350, %351 : vector<2x128xf32>
    %353 = vector.extract_strided_slice %352 {offsets = [0, 0], sizes = [2, 64], strides = [1, 1]} : vector<2x128xf32> to vector<2x64xf32>
    %354 = vector.extract_strided_slice %352 {offsets = [0, 64], sizes = [2, 64], strides = [1, 1]} : vector<2x128xf32> to vector<2x64xf32>
    %355 = vector.extract_strided_slice %340 {offsets = [0, 128], sizes = [2, 64], strides = [1, 1]} : vector<2x192xf32> to vector<2x64xf32>
    %356 = vector.extract_strided_slice %344 {offsets = [0, 128], sizes = [2, 64], strides = [1, 1]} : vector<2x192xf32> to vector<2x64xf32>
    %357 = arith.mulf %353, %356 : vector<2x64xf32>
    %358 = arith.addf %355, %357 : vector<2x64xf32>
    %359 = math.tanh %358 : vector<2x64xf32>
    %cst_67 = arith.constant 1.000000e+00 : f32
    %360 = vector.broadcast %cst_67 : f32 to vector<2x64xf32>
    %361 = arith.subf %360, %354 : vector<2x64xf32>
    %362 = arith.mulf %361, %359 : vector<2x64xf32>
    %363 = arith.mulf %354, %336 : vector<2x64xf32>
    %364 = arith.addf %362, %363 : vector<2x64xf32>
    %365 = vector.broadcast %337 : i32 to vector<2x1xi32>
    %366 = arith.cmpi slt, %365, %5 : vector<2x1xi32>
    %367 = arith.extui %366 : vector<2x1xi1> to vector<2x1xi32>
    %368 = arith.sitofp %367 : vector<2x1xi32> to vector<2x1xf32>
    %369 = vector.broadcast %337 : i32 to vector<2x1xi32>
    %370 = arith.cmpi sge, %369, %10 : vector<2x1xi32>
    %c8_i32_68 = arith.constant 8 : i32
    %371 = arith.cmpi slt, %337, %c8_i32_68 : i32
    %372 = vector.broadcast %371 : i1 to vector<2x1xi1>
    %373 = arith.andi %370, %372 : vector<2x1xi1>
    %374 = arith.extui %373 : vector<2x1xi1> to vector<2x1xi32>
    %375 = arith.sitofp %374 : vector<2x1xi32> to vector<2x1xf32>
    %376 = vector.shape_cast %368 : vector<2x1xf32> to vector<2x1xf32>
    %377 = vector.broadcast %376 : vector<2x1xf32> to vector<2x64xf32>
    %378 = vector.shape_cast %375 : vector<2x1xf32> to vector<2x1xf32>
    %379 = vector.broadcast %378 : vector<2x1xf32> to vector<2x64xf32>
    %380 = arith.select %8, %377, %379 : vector<2x64xi1>, vector<2x64xf32>
    %381 = arith.mulf %380, %364 : vector<2x64xf32>
    %382 = arith.index_cast %c6_i32 : i32 to index
    %c0_69 = arith.constant 0 : index
    %c0_70 = arith.constant 0 : index
    %383 = vector.load %arg5[%382, %c0_69, %c0_70] : memref<8x2x64xf32, #tpu.memory_space<vmem>>, vector<1x2x64xf32>
    %384 = vector.shape_cast %383 : vector<1x2x64xf32> to vector<2x64xf32>
    %385 = vector.shape_cast %381 : vector<2x64xf32> to vector<1x2x64xf32>
    tpu.vector_store %arg5[%382, %c0_69, %c0_70], %385 {strides = array<i32>} : memref<8x2x64xf32, #tpu.memory_space<vmem>>, vector<1x2x64xf32>,
    %386 = arith.mulf %380, %364 : vector<2x64xf32>
    %cst_71 = arith.constant 1.000000e+00 : f32
    %387 = vector.broadcast %cst_71 : f32 to vector<2x64xf32>
    %388 = arith.subf %387, %380 : vector<2x64xf32>
    %389 = arith.mulf %388, %336 : vector<2x64xf32>
    %390 = arith.addf %386, %389 : vector<2x64xf32>
    %c7_i32 = arith.constant 7 : i32
    %391 = arith.addi %11, %c7_i32 : i32
    %392 = arith.index_cast %c7_i32 : i32 to index
    %c0_72 = arith.constant 0 : index
    %c0_73 = arith.constant 0 : index
    %393 = vector.load %arg2[%392, %c0_72, %c0_73] : memref<8x2x192xf32, #tpu.memory_space<vmem>>, vector<1x2x192xf32>
    %394 = vector.shape_cast %393 : vector<1x2x192xf32> to vector<2x192xf32>
    %395 = arith.truncf %390 : vector<2x64xf32> to vector<2x64xbf16>
    %cst_74 = arith.constant dense<0.000000e+00> : vector<2x192xf32>
    %396 = tpu.matmul %395, %3, %cst_74 {dimension_numbers = #tpu.dot_dimension_numbers<[1], [0], [0], [1], [0, 0, 1, 1], [], []>} : vector<2x64xbf16>, vector<64x192xbf16>, vector<2x192xf32> -> vector<2x192xf32>
    %397 = vector.broadcast %4 : vector<1x192xf32> to vector<2x192xf32>
    %398 = arith.addf %396, %397 : vector<2x192xf32>
    %399 = vector.extract_strided_slice %394 {offsets = [0, 0], sizes = [2, 128], strides = [1, 1]} : vector<2x192xf32> to vector<2x128xf32>
    %400 = vector.extract_strided_slice %398 {offsets = [0, 0], sizes = [2, 128], strides = [1, 1]} : vector<2x192xf32> to vector<2x128xf32>
    %401 = arith.addf %399, %400 : vector<2x128xf32>
    %402 = arith.negf %401 : vector<2x128xf32>
    %403 = math.exp %402 : vector<2x128xf32>
    %cst_75 = arith.constant 1.000000e+00 : f32
    %404 = vector.broadcast %cst_75 : f32 to vector<2x128xf32>
    %405 = arith.addf %404, %403 : vector<2x128xf32>
    %406 = arith.divf %404, %405 : vector<2x128xf32>
    %407 = vector.extract_strided_slice %406 {offsets = [0, 0], sizes = [2, 64], strides = [1, 1]} : vector<2x128xf32> to vector<2x64xf32>
    %408 = vector.extract_strided_slice %406 {offsets = [0, 64], sizes = [2, 64], strides = [1, 1]} : vector<2x128xf32> to vector<2x64xf32>
    %409 = vector.extract_strided_slice %394 {offsets = [0, 128], sizes = [2, 64], strides = [1, 1]} : vector<2x192xf32> to vector<2x64xf32>
    %410 = vector.extract_strided_slice %398 {offsets = [0, 128], sizes = [2, 64], strides = [1, 1]} : vector<2x192xf32> to vector<2x64xf32>
    %411 = arith.mulf %407, %410 : vector<2x64xf32>
    %412 = arith.addf %409, %411 : vector<2x64xf32>
    %413 = math.tanh %412 : vector<2x64xf32>
    %cst_76 = arith.constant 1.000000e+00 : f32
    %414 = vector.broadcast %cst_76 : f32 to vector<2x64xf32>
    %415 = arith.subf %414, %408 : vector<2x64xf32>
    %416 = arith.mulf %415, %413 : vector<2x64xf32>
    %417 = arith.mulf %408, %390 : vector<2x64xf32>
    %418 = arith.addf %416, %417 : vector<2x64xf32>
    %419 = vector.broadcast %391 : i32 to vector<2x1xi32>
    %420 = arith.cmpi slt, %419, %5 : vector<2x1xi32>
    %421 = arith.extui %420 : vector<2x1xi1> to vector<2x1xi32>
    %422 = arith.sitofp %421 : vector<2x1xi32> to vector<2x1xf32>
    %423 = vector.broadcast %391 : i32 to vector<2x1xi32>
    %424 = arith.cmpi sge, %423, %10 : vector<2x1xi32>
    %c8_i32_77 = arith.constant 8 : i32
    %425 = arith.cmpi slt, %391, %c8_i32_77 : i32
    %426 = vector.broadcast %425 : i1 to vector<2x1xi1>
    %427 = arith.andi %424, %426 : vector<2x1xi1>
    %428 = arith.extui %427 : vector<2x1xi1> to vector<2x1xi32>
    %429 = arith.sitofp %428 : vector<2x1xi32> to vector<2x1xf32>
    %430 = vector.shape_cast %422 : vector<2x1xf32> to vector<2x1xf32>
    %431 = vector.broadcast %430 : vector<2x1xf32> to vector<2x64xf32>
    %432 = vector.shape_cast %429 : vector<2x1xf32> to vector<2x1xf32>
    %433 = vector.broadcast %432 : vector<2x1xf32> to vector<2x64xf32>
    %434 = arith.select %8, %431, %433 : vector<2x64xi1>, vector<2x64xf32>
    %435 = arith.mulf %434, %418 : vector<2x64xf32>
    %436 = arith.index_cast %c7_i32 : i32 to index
    %c0_78 = arith.constant 0 : index
    %c0_79 = arith.constant 0 : index
    %437 = vector.load %arg5[%436, %c0_78, %c0_79] : memref<8x2x64xf32, #tpu.memory_space<vmem>>, vector<1x2x64xf32>
    %438 = vector.shape_cast %437 : vector<1x2x64xf32> to vector<2x64xf32>
    %439 = vector.shape_cast %435 : vector<2x64xf32> to vector<1x2x64xf32>
    tpu.vector_store %arg5[%436, %c0_78, %c0_79], %439 {strides = array<i32>} : memref<8x2x64xf32, #tpu.memory_space<vmem>>, vector<1x2x64xf32>,
    %440 = arith.mulf %434, %418 : vector<2x64xf32>
    %cst_80 = arith.constant 1.000000e+00 : f32
    %441 = vector.broadcast %cst_80 : f32 to vector<2x64xf32>
    %442 = arith.subf %441, %434 : vector<2x64xf32>
    %443 = arith.mulf %442, %390 : vector<2x64xf32>
    %444 = arith.addf %440, %443 : vector<2x64xf32>
    %c8_i32_81 = arith.constant 8 : i32
    %c0_82 = arith.constant 0 : index
    %c0_83 = arith.constant 0 : index
    %445 = vector.load %arg6[%c0_82, %c0_83] : memref<2x64xf32, #tpu.memory_space<vmem>>, vector<2x64xf32>
    tpu.vector_store %arg6[%c0_82, %c0_83], %444 {strides = array<i32>} : memref<2x64xf32, #tpu.memory_space<vmem>>, vector<2x64xf32>,
    return
  }
  func.func @transform_0(%arg0: i32) -> (i32, i32) {
    %c0_i32 = arith.constant 0 : i32
    %c0_i32_0 = arith.constant 0 : i32
    %c0_i32_1 = arith.constant 0 : i32
    return %c0_i32, %c0_i32_0 : i32, i32
  }
  func.func @transform_1(%arg0: i32) -> (i32, i32, i32) {
    %c0_i32 = arith.constant 0 : i32
    %c0_i32_0 = arith.constant 0 : i32
    %c0_i32_1 = arith.constant 0 : i32
    return %arg0, %c0_i32, %c0_i32_0 : i32, i32, i32
  }
  func.func @transform_2(%arg0: i32) -> (i32, i32) {
    %c0_i32 = arith.constant 0 : i32
    %c0_i32_0 = arith.constant 0 : i32
    %c0_i32_1 = arith.constant 0 : i32
    return %c0_i32, %c0_i32_0 : i32, i32
  }
  func.func @transform_3(%arg0: i32) -> (i32, i32) {
    %c0_i32 = arith.constant 0 : i32
    %c0_i32_0 = arith.constant 0 : i32
    %c0_i32_1 = arith.constant 0 : i32
    return %c0_i32, %c0_i32_0 : i32, i32
  }
  func.func @transform_4(%arg0: i32) -> (i32, i32, i32) {
    %c0_i32 = arith.constant 0 : i32
    %c0_i32_0 = arith.constant 0 : i32
    %c0_i32_1 = arith.constant 0 : i32
    return %arg0, %c0_i32, %c0_i32_0 : i32, i32, i32
  }
}

module attributes {stable_mosaic.version = 11 : i64} {
  func.func @_linear_kernel(%arg0: i32, %arg1: memref<16x32xbf16, #tpu.memory_space<vmem>>, %arg2: memref<32x192xbf16, #tpu.memory_space<vmem>>, %arg3: memref<1x192xf32, #tpu.memory_space<vmem>>, %arg4: memref<16x192xf32, #tpu.memory_space<vmem>>) attributes {dimension_semantics = [#tpu.dimension_semantics<parallel>], iteration_bounds = array<i64: 1>, scalar_prefetch = 0 : i64, scratch_operands = 0 : i64, tpu.core_type = #tpu.core_type<tc>, window_params = [{transform_indices = @transform_0, window_bounds = array<i64: 16, 32>}, {pipeline_mode = #tpu.pipeline_mode<synchronous>, transform_indices = @transform_1, window_bounds = array<i64: 32, 192>}, {pipeline_mode = #tpu.pipeline_mode<synchronous>, transform_indices = @transform_2, window_bounds = array<i64: 1, 192>}, {transform_indices = @transform_3, window_bounds = array<i64: 16, 192>}]} {
    %c0 = arith.constant 0 : index
    %c0_0 = arith.constant 0 : index
    %0 = vector.load %arg1[%c0, %c0_0] : memref<16x32xbf16, #tpu.memory_space<vmem>>, vector<16x32xbf16>
    %c0_1 = arith.constant 0 : index
    %c0_2 = arith.constant 0 : index
    %1 = vector.load %arg2[%c0_1, %c0_2] : memref<32x192xbf16, #tpu.memory_space<vmem>>, vector<32x192xbf16>
    %cst = arith.constant dense<0.000000e+00> : vector<16x192xf32>
    %2 = tpu.matmul %0, %1, %cst {dimension_numbers = #tpu.dot_dimension_numbers<[1], [0], [0], [1], [0, 0, 1, 1], [], []>} : vector<16x32xbf16>, vector<32x192xbf16>, vector<16x192xf32> -> vector<16x192xf32>
    %c0_3 = arith.constant 0 : index
    %c0_4 = arith.constant 0 : index
    %3 = vector.load %arg3[%c0_3, %c0_4] : memref<1x192xf32, #tpu.memory_space<vmem>>, vector<1x192xf32>
    %4 = vector.broadcast %3 : vector<1x192xf32> to vector<16x192xf32>
    %5 = arith.addf %2, %4 : vector<16x192xf32>
    %c0_5 = arith.constant 0 : index
    %c0_6 = arith.constant 0 : index
    %6 = vector.load %arg4[%c0_5, %c0_6] : memref<16x192xf32, #tpu.memory_space<vmem>>, vector<16x192xf32>
    tpu.vector_store %arg4[%c0_5, %c0_6], %5 {strides = array<i32>} : memref<16x192xf32, #tpu.memory_space<vmem>>, vector<16x192xf32>,
    return
  }
  func.func @transform_0(%arg0: i32) -> (i32, i32) {
    %c0_i32 = arith.constant 0 : i32
    %c0_i32_0 = arith.constant 0 : i32
    return %arg0, %c0_i32 : i32, i32
  }
  func.func @transform_1(%arg0: i32) -> (i32, i32) {
    %c0_i32 = arith.constant 0 : i32
    %c0_i32_0 = arith.constant 0 : i32
    %c0_i32_1 = arith.constant 0 : i32
    return %c0_i32, %c0_i32_0 : i32, i32
  }
  func.func @transform_2(%arg0: i32) -> (i32, i32) {
    %c0_i32 = arith.constant 0 : i32
    %c0_i32_0 = arith.constant 0 : i32
    %c0_i32_1 = arith.constant 0 : i32
    return %c0_i32, %c0_i32_0 : i32, i32
  }
  func.func @transform_3(%arg0: i32) -> (i32, i32) {
    %c0_i32 = arith.constant 0 : i32
    %c0_i32_0 = arith.constant 0 : i32
    return %arg0, %c0_i32 : i32, i32
  }
}

module attributes {stable_mosaic.version = 11 : i64} {
  func.func @_fc_logsoftmax_kernel(%arg0: i32, %arg1: memref<16x32xbf16, #tpu.memory_space<vmem>>, %arg2: memref<32x64xbf16, #tpu.memory_space<vmem>>, %arg3: memref<1x64xf32, #tpu.memory_space<vmem>>, %arg4: memref<64x128xbf16, #tpu.memory_space<vmem>>, %arg5: memref<1x128xf32, #tpu.memory_space<vmem>>, %arg6: memref<16x128xf32, #tpu.memory_space<vmem>>) attributes {dimension_semantics = [#tpu.dimension_semantics<parallel>], iteration_bounds = array<i64: 1>, scalar_prefetch = 0 : i64, scratch_operands = 0 : i64, tpu.core_type = #tpu.core_type<tc>, window_params = [{transform_indices = @transform_0, window_bounds = array<i64: 16, 32>}, {pipeline_mode = #tpu.pipeline_mode<synchronous>, transform_indices = @transform_1, window_bounds = array<i64: 32, 64>}, {pipeline_mode = #tpu.pipeline_mode<synchronous>, transform_indices = @transform_2, window_bounds = array<i64: 1, 64>}, {pipeline_mode = #tpu.pipeline_mode<synchronous>, transform_indices = @transform_3, window_bounds = array<i64: 64, 128>}, {pipeline_mode = #tpu.pipeline_mode<synchronous>, transform_indices = @transform_4, window_bounds = array<i64: 1, 128>}, {transform_indices = @transform_5, window_bounds = array<i64: 16, 128>}]} {
    %c0 = arith.constant 0 : index
    %c0_0 = arith.constant 0 : index
    %0 = vector.load %arg1[%c0, %c0_0] : memref<16x32xbf16, #tpu.memory_space<vmem>>, vector<16x32xbf16>
    %c0_1 = arith.constant 0 : index
    %c0_2 = arith.constant 0 : index
    %1 = vector.load %arg2[%c0_1, %c0_2] : memref<32x64xbf16, #tpu.memory_space<vmem>>, vector<32x64xbf16>
    %cst = arith.constant dense<0.000000e+00> : vector<16x64xf32>
    %2 = tpu.matmul %0, %1, %cst {dimension_numbers = #tpu.dot_dimension_numbers<[1], [0], [0], [1], [0, 0, 1, 1], [], []>} : vector<16x32xbf16>, vector<32x64xbf16>, vector<16x64xf32> -> vector<16x64xf32>
    %c0_3 = arith.constant 0 : index
    %c0_4 = arith.constant 0 : index
    %3 = vector.load %arg3[%c0_3, %c0_4] : memref<1x64xf32, #tpu.memory_space<vmem>>, vector<1x64xf32>
    %4 = vector.broadcast %3 : vector<1x64xf32> to vector<16x64xf32>
    %5 = arith.addf %2, %4 : vector<16x64xf32>
    %cst_5 = arith.constant 0.000000e+00 : f32
    %cst_6 = arith.constant 2.000000e+01 : f32
    %6 = vector.broadcast %cst_5 : f32 to vector<16x64xf32>
    %7 = arith.maximumf %6, %5 : vector<16x64xf32>
    %8 = vector.broadcast %cst_6 : f32 to vector<16x64xf32>
    %9 = arith.minimumf %8, %7 : vector<16x64xf32>
    %10 = arith.truncf %9 : vector<16x64xf32> to vector<16x64xbf16>
    %c0_7 = arith.constant 0 : index
    %c0_8 = arith.constant 0 : index
    %11 = vector.load %arg4[%c0_7, %c0_8] : memref<64x128xbf16, #tpu.memory_space<vmem>>, vector<64x128xbf16>
    %cst_9 = arith.constant dense<0.000000e+00> : vector<16x128xf32>
    %12 = tpu.matmul %10, %11, %cst_9 {dimension_numbers = #tpu.dot_dimension_numbers<[1], [0], [0], [1], [0, 0, 1, 1], [], []>} : vector<16x64xbf16>, vector<64x128xbf16>, vector<16x128xf32> -> vector<16x128xf32>
    %c0_10 = arith.constant 0 : index
    %c0_11 = arith.constant 0 : index
    %13 = vector.load %arg5[%c0_10, %c0_11] : memref<1x128xf32, #tpu.memory_space<vmem>>, vector<1x128xf32>
    %14 = vector.broadcast %13 : vector<1x128xf32> to vector<16x128xf32>
    %15 = arith.addf %12, %14 : vector<16x128xf32>
    %cst_12 = arith.constant dense<0xFF800000> : vector<16xf32>
    %16 = vector.multi_reduction <maximumf>, %15, %cst_12 [1] : vector<16x128xf32> to vector<16xf32>
    %17 = vector.shape_cast %16 : vector<16xf32> to vector<16x1xf32>
    %18 = vector.broadcast %17 : vector<16x1xf32> to vector<16x128xf32>
    %19 = arith.subf %15, %18 : vector<16x128xf32>
    %20 = math.exp %19 : vector<16x128xf32>
    %cst_13 = arith.constant dense<0.000000e+00> : vector<16xf32>
    %21 = vector.multi_reduction <add>, %20, %cst_13 [1] : vector<16x128xf32> to vector<16xf32>
    %22 = vector.shape_cast %21 : vector<16xf32> to vector<16x1xf32>
    %23 = math.log %22 : vector<16x1xf32>
    %24 = arith.addf %17, %23 : vector<16x1xf32>
    %25 = vector.broadcast %24 : vector<16x1xf32> to vector<16x128xf32>
    %26 = arith.subf %15, %25 : vector<16x128xf32>
    %c0_14 = arith.constant 0 : index
    %c0_15 = arith.constant 0 : index
    %27 = vector.load %arg6[%c0_14, %c0_15] : memref<16x128xf32, #tpu.memory_space<vmem>>, vector<16x128xf32>
    tpu.vector_store %arg6[%c0_14, %c0_15], %26 {strides = array<i32>} : memref<16x128xf32, #tpu.memory_space<vmem>>, vector<16x128xf32>,
    return
  }
  func.func @transform_0(%arg0: i32) -> (i32, i32) {
    %c0_i32 = arith.constant 0 : i32
    %c0_i32_0 = arith.constant 0 : i32
    return %arg0, %c0_i32 : i32, i32
  }
  func.func @transform_1(%arg0: i32) -> (i32, i32) {
    %c0_i32 = arith.constant 0 : i32
    %c0_i32_0 = arith.constant 0 : i32
    %c0_i32_1 = arith.constant 0 : i32
    return %c0_i32, %c0_i32_0 : i32, i32
  }
  func.func @transform_2(%arg0: i32) -> (i32, i32) {
    %c0_i32 = arith.constant 0 : i32
    %c0_i32_0 = arith.constant 0 : i32
    %c0_i32_1 = arith.constant 0 : i32
    return %c0_i32, %c0_i32_0 : i32, i32
  }
  func.func @transform_3(%arg0: i32) -> (i32, i32) {
    %c0_i32 = arith.constant 0 : i32
    %c0_i32_0 = arith.constant 0 : i32
    %c0_i32_1 = arith.constant 0 : i32
    return %c0_i32, %c0_i32_0 : i32, i32
  }
  func.func @transform_4(%arg0: i32) -> (i32, i32) {
    %c0_i32 = arith.constant 0 : i32
    %c0_i32_0 = arith.constant 0 : i32
    %c0_i32_1 = arith.constant 0 : i32
    return %c0_i32, %c0_i32_0 : i32, i32
  }
  func.func @transform_5(%arg0: i32) -> (i32, i32) {
    %c0_i32 = arith.constant 0 : i32
    %c0_i32_0 = arith.constant 0 : i32
    return %arg0, %c0_i32 : i32, i32
  }
}

</mosaic_0001>

<bundles_post_ra>
// kernel: deepspeech2_forward.7
= control target key start
LH: loop header
LB: loop body
LE: loop exit
PB: predicated region body
PF: predicated region fallthrough
CT: control target
= control target key end

     0   :  { %v1280_v1 = vmov 0   ;;  %vm923_vm0 = vcmask 257024   ;;  %s1659_s1 = inlined_call_operand.vmem [shape: bf16[512,32], index: 1, kind: input, shape index: {}]   ;;  %s1660_s0 = inlined_call_operand.vmem [shape: bf16[144,512], index: 0, kind: input, shape index: {}]   ;;  %s1661_s3 = inlined_call_operand.vmem [shape: f32[144,1], index: 3, kind: input, shape index: {}]   ;;  %s1662_s2 = inlined_call_operand.vmem [shape: f32[1,32], index: 2, kind: input, shape index: {}]   ;;  %s1663_s4 = inlined_call_operand.vmem [shape: bf16[144,32], index: 4, kind: output, shape index: {}]  }
   0x1   :  { %v1194_v0 = vld [vmem:[%s1659_s1 + $0x78] sm:$0xff]   ;;  %1192 = vset.pattern.permute.xlu0 %v1280_v1  ;;  %1193 = vset.pattern.permute.xlu1 %v1280_v1  ;;  %v1198_v5 = vld [vmem:[%s1659_s1 + $0x70] sm:$0xff]   ;;  %v1202_v9 = vld [vmem:[%s1659_s1 + $0x68] sm:$0xff]  }
   0x2   :  { %v1195_v2 = vld [vmem:[%s1659_s1 + $0xf8] sm:$0xff]   ;;  %1051 = vmatprep.subr.bf16.mxu0 %v1194_v0  ;;  %v1199_v6 = vld [vmem:[%s1659_s1 + $0xf0] sm:$0xff]   ;;  %v1203_v10 = vld [vmem:[%s1659_s1 + $0xe8] sm:$0xff]  }
   0x3   :  { %v1196_v3 = vld [vmem:[%s1659_s1 + $0x38] sm:$0xff]   ;;  %1121 = vmatprep.subr.bf16.mxu1 %v1195_v2  ;;  %v1200_v7 = vld [vmem:[%s1659_s1 + $0x30] sm:$0xff]   ;;  %v1204_v11 = vld [vmem:[%s1659_s1 + $0x28] sm:$0xff]  }
   0x4   :  { %v1197_v4 = vld [vmem:[%s1659_s1 + $0xb8] sm:$0xff]   ;;  %1052 = vmatpush3.bf16.msra.mxu0 %v1196_v3  ;;  %v1201_v8 = vld [vmem:[%s1659_s1 + $0xb0] sm:$0xff]   ;;  %v1205_v12 = vld [vmem:[%s1659_s1 + $0xa8] sm:$0xff]  }
   0x5   :  { %1122 = vmatpush3.bf16.msra.mxu1 %v1197_v4  ;;  %1053 = vmatprep.subr.bf16.mxu0 %v1198_v5  ;;  %v1206_v13 = vld [vmem:[%s1659_s1 + $0x60] sm:$0xff]   ;;  %v1210_v17 = vld [vmem:[%s1659_s1 + $0x58] sm:$0xff]   ;;  %v1214_v21 = vld [vmem:[%s1659_s1 + $0x50] sm:$0xff]  }
   0x6   :  { %1123 = vmatprep.subr.bf16.mxu1 %v1199_v6  ;;  %v1207_v14 = vld [vmem:[%s1659_s1 + $0xe0] sm:$0xff]   ;;  %v1211_v18 = vld [vmem:[%s1659_s1 + $0xd8] sm:$0xff]   ;;  %v1215_v22 = vld [vmem:[%s1659_s1 + $0xd0] sm:$0xff]  }
   0x7   :  { %v1208_v15 = vld [vmem:[%s1659_s1 + $0x20] sm:$0xff]   ;;  %v1212_v19 = vld [vmem:[%s1659_s1 + $0x18] sm:$0xff]   ;;  %v1216_v23 = vld [vmem:[%s1659_s1 + $0x10] sm:$0xff]  }
   0x8   :  { %1054 = vmatpush3.bf16.msra.mxu0 %v1200_v7  ;;  %v1209_v16 = vld [vmem:[%s1659_s1 + $0xa0] sm:$0xff]   ;;  %v1213_v20 = vld [vmem:[%s1659_s1 + $0x98] sm:$0xff]   ;;  %v1217_v24 = vld [vmem:[%s1659_s1 + $0x90] sm:$0xff]  }
   0x9   :  { %1124 = vmatpush3.bf16.msra.mxu1 %v1201_v8  ;;  %1055 = vmatprep.subr.bf16.mxu0 %v1202_v9  ;;  %v1218_v25 = vld [vmem:[%s1659_s1 + $0x48] sm:$0xff]   ;;  %v1222_v29 = vld [vmem:[%s1659_s1 + $0x40] sm:$0xff]   ;;  %v727_v49 = vld [vmem:[%s1661_s3 + $0x10] sm:$0xff] }
   0xa   :  { %1125 = vmatprep.subr.bf16.mxu1 %v1203_v10  ;;  %v1219_v26 = vld [vmem:[%s1659_s1 + $0xc8] sm:$0xff]   ;;  %v1223_v30 = vld [vmem:[%s1659_s1 + $0xc0] sm:$0xff]   ;;  %755 = vperm.xlu1 %1193, %v727_v49   ;;  %v728_v54 = vld [vmem:[%s1661_s3 + $0x18] sm:$0xff] }
   0xb   :  { %v1220_v27 = vld [vmem:[%s1659_s1 + $0x8] sm:$0xff]   ;;  %v1224_v31 = vld [vmem:[%s1659_s1] sm:$0xff]   ;;  %v731_v61 = vld [vmem:[%s1661_s3 + $0x30] sm:$0xff] }
   0xc   :  { %1056 = vmatpush3.bf16.msra.mxu0 %v1204_v11  ;;  %v1221_v28 = vld [vmem:[%s1659_s1 + $0x88] sm:$0xff]   ;;  %v1225_v32 = vld [vmem:[%s1659_s1 + $0x80] sm:$0xff]   ;;  %v732_v62 = vld [vmem:[%s1661_s3 + $0x38] sm:$0xff] }
   0xd   :  { %1126 = vmatpush3.bf16.msra.mxu1 %v1205_v12  ;;  %1057 = vmatprep.subr.bf16.mxu0 %v1206_v13  ;;  %v1226_v33 = vld [vmem:[%s1660_s0] ss:$16 sps:$4 sm:$0xff]   ;;  %v1228_v34 = vld [vmem:[%s1660_s0 + $0x4] ss:$16 sps:$4 sm:$0xff]   ;;  %v1229_v35 = vld [vmem:[%s1660_s0 + $0x8] ss:$16 sps:$4 sm:$0xff]  }
   0xe   :  { %1127 = vmatprep.subr.bf16.mxu1 %v1207_v14  ;;  %v1231_v36 = vld [vmem:[%s1660_s0 + $0xc] ss:$16 sps:$4 sm:$0xff]   ;;  %529 = vmatprep.mubr.bf16.mxu0 %v1228_v34  ;;  %v1232_v37 = vld [vmem:[%s1660_s0 + $0x24] ss:$16 sps:$4 sm:$0xff]   ;;  %v1236_v39 = vld [vmem:[%s1660_s0 + $0x20] ss:$16 sps:$4 sm:$0xff]  }
   0xf   :  { %634 = vmatprep.mubr.bf16.mxu1 %v1231_v36  ;;  %v1234_v38 = vld [vmem:[%s1660_s0 + $0x2c] ss:$16 sps:$4 sm:$0xff]   ;;  %v1237_v40 = vld [vmem:[%s1660_s0 + $0x28] ss:$16 sps:$4 sm:$0xff]   ;;  %v1238_v41 = vld [vmem:[%s1660_s0 + $0x44] ss:$16 sps:$4 sm:$0xff]   ;;  %760 = vperm.xlu1 %1193, %v728_v54  }
  0x10   :  { %1058 = vmatpush3.bf16.msra.mxu0 %v1208_v15  ;;  %v1240_v42 = vld [vmem:[%s1660_s0 + $0x4c] ss:$16 sps:$4 sm:$0xff]   ;;  %v1242_v43 = vld [vmem:[%s1660_s0 + $0x40] ss:$16 sps:$4 sm:$0xff]   ;;  %v1243_v44 = vld [vmem:[%s1660_s0 + $0x48] ss:$16 sps:$4 sm:$0xff]  }
  0x11   :  { %1128 = vmatpush3.bf16.msra.mxu1 %v1209_v16  ;;  %1059 = vmatprep.subr.bf16.mxu0 %v1210_v17  ;;  %v1244_v45 = vld [vmem:[%s1660_s0 + $0x64] ss:$16 sps:$4 sm:$0xff]   ;;  %v1246_v46 = vld [vmem:[%s1660_s0 + $0x6c] ss:$16 sps:$4 sm:$0xff]   ;;  %v1248_v47 = vld [vmem:[%s1660_s0 + $0x60] ss:$16 sps:$4 sm:$0xff]  }
  0x12   :  { %1129 = vmatprep.subr.bf16.mxu1 %v1211_v18  ;;  %v725_v48 = vld [vmem:[%s1661_s3] sm:$0xff]  ;;  %v1249_v50 = vld [vmem:[%s1660_s0 + $0x68] ss:$16 sps:$4 sm:$0xff]   ;;  %v1252_v52 = vld [vmem:[%s1660_s0 + $0x8c] ss:$16 sps:$4 sm:$0xff]  }
  0x13   :  { %v1250_v51 = vld [vmem:[%s1660_s0 + $0x84] ss:$16 sps:$4 sm:$0xff]   ;;  %745 = vperm.xlu0 %1192, %v725_v48   ;;  %v726_v53 = vld [vmem:[%s1661_s3 + $0x8] sm:$0xff]  ;;  %v1254_v56 = vld [vmem:[%s1660_s0 + $0x80] ss:$16 sps:$4 sm:$0xff]  }
  0x14   :  { %1060 = vmatpush3.bf16.msra.mxu0 %v1212_v19  ;;  %v729_v55 = vld [vmem:[%s1661_s3 + $0x20] sm:$0xff]  ;;  %v730_v57 = vld [vmem:[%s1661_s3 + $0x28] sm:$0xff]  ;;  %v735_v5 = vld [vmem:[%s1661_s3 + $0x50] sm:$0xff] }
  0x15   :  { %1130 = vmatpush3.bf16.msra.mxu1 %v1213_v20  ;;  %1061 = vmatprep.subr.bf16.mxu0 %v1214_v21  ;;  %v1255_v58 = vld [vmem:[%s1660_s0 + $0x88] ss:$16 sps:$4 sm:$0xff]   ;;  %v1256_v59 = vld [vmem:[%s1660_s0 + $0xa4] ss:$16 sps:$4 sm:$0xff]   ;;  %v1258_v60 = vld [vmem:[%s1660_s0 + $0xac] ss:$16 sps:$4 sm:$0xff]  }
  0x16   :  { %1131 = vmatprep.subr.bf16.mxu1 %v1215_v22  ;;  %770 = vperm.xlu1 %1193, %v730_v57   ;;  %v733_v63 = vld [vmem:[%s1661_s3 + $0x40] sm:$0xff]  ;;  %v734_v1 = vld [vmem:[%s1661_s3 + $0x48] sm:$0xff]  ;;  %v736_v6 = vld [vmem:[%s1661_s3 + $0x58] sm:$0xff] }
  0x17   :  { %750 = vperm.xlu0 %1192, %v726_v53   ;;  %v1260_v0 = vld [vmem:[%s1660_s0 + $0xa0] ss:$16 sps:$4 sm:$0xff]   ;;  %v1261_v2 = vld [vmem:[%s1660_s0 + $0xa8] ss:$16 sps:$4 sm:$0xff]   ;;  %v1262_v3 = vld [vmem:[%s1660_s0 + $0xc4] ss:$16 sps:$4 sm:$0xff]  }
  0x18   :  { %1062 = vmatpush3.bf16.msra.mxu0 %v1216_v23  ;;  %v1264_v4 = vld [vmem:[%s1660_s0 + $0xcc] ss:$16 sps:$4 sm:$0xff]   ;;  %v737_v7 = vld [vmem:[%s1661_s3 + $0x60] sm:$0xff]  ;;  %v1267_v10 = vld [vmem:[%s1660_s0 + $0xc8] ss:$16 sps:$4 sm:$0xff]  }
  0x19   :  { %1132 = vmatpush3.bf16.msra.mxu1 %v1217_v24  ;;  %1063 = vmatprep.subr.bf16.mxu0 %v1218_v25  ;;  %v1266_v8 = vld [vmem:[%s1660_s0 + $0xc0] ss:$16 sps:$4 sm:$0xff]   ;;  %v738_v9 = vld [vmem:[%s1661_s3 + $0x68] sm:$0xff]  ;;  %v1268_v11 = vld [vmem:[%s1660_s0 + $0xe4] ss:$16 sps:$4 sm:$0xff]  }
  0x1a   :  { %1133 = vmatprep.subr.bf16.mxu1 %v1219_v26  ;;  %780 = vperm.xlu1 %1193, %v732_v62   ;;  %v1270_v12 = vld [vmem:[%s1660_s0 + $0xec] ss:$16 sps:$4 sm:$0xff]   ;;  %v739_v13 = vld [vmem:[%s1661_s3 + $0x70] sm:$0xff]  ;;  %v741_v15 = vld [vmem:[%s1661_s3 + $0x80] sm:$0xff] }
  0x1b   :  { %765 = vperm.xlu0 %1192, %v729_v55   ;;  %v740_v14 = vld [vmem:[%s1661_s3 + $0x78] sm:$0xff]  ;;  %v1272_v16 = vld [vmem:[%s1660_s0 + $0xe0] ss:$16 sps:$4 sm:$0xff]   ;;  %v742_v17 = vld [vmem:[%s1661_s3 + $0x88] sm:$0xff] }
  0x1c   :  { %1064 = vmatpush3.bf16.msra.mxu0 %v1220_v27  ;;  %v1273_v18 = vld [vmem:[%s1660_s0 + $0xe8] ss:$16 sps:$4 sm:$0xff]   ;;  %v1274_v19 = vld [vmem:[%s1660_s0 + $0x104] ss:$16 sps:$4 sm:$0xff]   ;;  %v1276_v20 = vld [vmem:[%s1660_s0 + $0x10c] ss:$16 sps:$4 sm:$0xff]  }
  0x1d   :  { %1134 = vmatpush3.bf16.msra.mxu1 %v1221_v28  ;;  %1065 = vmatprep.subr.bf16.mxu0 %v1222_v29  ;;  %v1278_v21 = vld [vmem:[%s1660_s0 + $0x100] ss:$16 sps:$4 sm:$0xff]   ;;  %v1279_v22 = vld [vmem:[%s1660_s0 + $0x108] ss:$16 sps:$4 sm:$0xff]  }
  0x1e   :  { %1135 = vmatprep.subr.bf16.mxu1 %v1223_v30  ;;  %790 = vperm.xlu1 %1193, %v734_v1   ;;  %v1567_v25 = vld [vmem:[%s1662_s2] ss:$0 sm:$0xff] }
  0x1f   :  { %775 = vperm.xlu0 %1192, %v731_v61  }
  0x20   :  { %1066 = vmatpush3.bf16.msra.mxu0 %v1224_v31 }
  0x21   :  { %1136 = vmatpush3.bf16.msra.mxu1 %v1225_v32 }
  0x22   :  { %800 = vperm.xlu1 %1193, %v736_v6  }
  0x23   :  { %530 = vmatmul.mubr.bf16.vlgmr.msra.gmra.mxu0 %v1226_v33  ;;  %785 = vperm.xlu0 %1192, %v733_v63  }
  0x24   :  { %635 = vmatmul.mubr.bf16.vlgmr.msra.gmra.mxu1 %v1229_v35  ;;  %537 = vmatprep.mubr.bf16.mxu0 %v1232_v37 }
  0x25   :  { %642 = vmatprep.mubr.bf16.mxu1 %v1234_v38 }
  0x26   :  { %810 = vperm.xlu1 %1193, %v738_v9  }
  0x27   :  { %795 = vperm.xlu0 %1192, %v735_v5  }
  0x2a   :  { %820 = vperm.xlu1 %1193, %v740_v14  }
  0x2b   :  { %538 = vmatmul.mubr.bf16.gmra.mxu0 %v1236_v39  ;;  %805 = vperm.xlu0 %1192, %v737_v7  }
  0x2c   :  { %643 = vmatmul.mubr.bf16.gmra.mxu1 %v1237_v40  ;;  %545 = vmatprep.mubr.bf16.mxu0 %v1238_v41 }
  0x2d   :  { %650 = vmatprep.mubr.bf16.mxu1 %v1240_v42 }
  0x2e   :  { %830 = vperm.xlu1 %1193, %v742_v17  }
  0x2f   :  { %815 = vperm.xlu0 %1192, %v739_v13  }
  0x33   :  { %546 = vmatmul.mubr.bf16.gmra.mxu0 %v1242_v43  ;;  %825 = vperm.xlu0 %1192, %v741_v15  }
  0x34   :  { %651 = vmatmul.mubr.bf16.gmra.mxu1 %v1243_v44  ;;  %553 = vmatprep.mubr.bf16.mxu0 %v1244_v45 }
  0x35   :  { %658 = vmatprep.mubr.bf16.mxu1 %v1246_v46 }
  0x3b   :  { %554 = vmatmul.mubr.bf16.gmra.mxu0 %v1248_v47 }
  0x3c   :  { %659 = vmatmul.mubr.bf16.gmra.mxu1 %v1249_v50  ;;  %561 = vmatprep.mubr.bf16.mxu0 %v1250_v51 }
  0x3d   :  { %666 = vmatprep.mubr.bf16.mxu1 %v1252_v52 }
  0x43   :  { %562 = vmatmul.mubr.bf16.gmra.mxu0 %v1254_v56 }
  0x44   :  { %667 = vmatmul.mubr.bf16.gmra.mxu1 %v1255_v58  ;;  %569 = vmatprep.mubr.bf16.mxu0 %v1256_v59 }
  0x45   :  { %674 = vmatprep.mubr.bf16.mxu1 %v1258_v60 }
  0x4b   :  { %570 = vmatmul.mubr.bf16.gmra.mxu0 %v1260_v0 }
  0x4c   :  { %675 = vmatmul.mubr.bf16.gmra.mxu1 %v1261_v2  ;;  %577 = vmatprep.mubr.bf16.mxu0 %v1262_v3 }
  0x4d   :  { %682 = vmatprep.mubr.bf16.mxu1 %v1264_v4 }
  0x53   :  { %578 = vmatmul.mubr.bf16.gmra.mxu0 %v1266_v8 }
  0x54   :  { %683 = vmatmul.mubr.bf16.gmra.mxu1 %v1267_v10  ;;  %585 = vmatprep.mubr.bf16.mxu0 %v1268_v11 }
  0x55   :  { %690 = vmatprep.mubr.bf16.mxu1 %v1270_v12 }
  0x5b   :  { %586 = vmatmul.mubr.bf16.gmra.mxu0 %v1272_v16 }
  0x5c   :  { %691 = vmatmul.mubr.bf16.gmra.mxu1 %v1273_v18  ;;  %593 = vmatprep.mubr.bf16.mxu0 %v1274_v19 }
  0x5d   :  { %698 = vmatprep.mubr.bf16.mxu1 %v1276_v20 }
  0x63   :  { %594 = vmatmul.mubr.bf16.gmra.mxu0 %v1278_v21 }
  0x64   :  { %699 = vmatmul.mubr.bf16.gmra.mxu1 %v1279_v22 }
  0x85   :  { %v756_v60 = vpop.permute.xlu1 %755 }
  0x8a   :  { %v761_v14 = vpop.permute.xlu1 %760 }
  0x8e   :  { %v746_v34 = vpop.permute.xlu0 %745 }
  0x92   :  { %v751_v49 = vpop.permute.xlu0 %750 }
  0xe3   :  { %v1067_v23 = vpop.f32.mrf.mxu0 }
  0xe4   :  { %v1137_v24 = vpop.f32.mrf.mxu1 }
  0xe5   :  { %v1068_v26 = vpop.f32.mrf.mxu0 }
  0xe6   :  { %v1069_v27 = vadd.f32 %v1068_v26, %v1067_v23  ;;  %v1138_v28 = vpop.f32.mrf.mxu1 }
  0xe7   :  { %v1070_v29 = vpop.f32.mrf.mxu0  ;;  %v1139_v31 = vadd.f32 %v1138_v28, %v1137_v24 }
  0xe8   :  { %v532_v30 = vadd.f32 %v1069_v27, %v1567_v25  ;;  %v1140_v32 = vpop.f32.mrf.mxu1  ;;  %v766_v27 = vpop.permute.xlu0 %765 }
  0xe9   :  { %v1071_v33 = vpop.f32.mrf.mxu0 }
  0xea   :  { %v637_v35 = vadd.f32 %v1139_v31, %v532_v30  ;;  %v1072_v36 = vadd.f32 %v1071_v33, %v1070_v29  ;;  %v1141_v37 = vpop.f32.mrf.mxu1 }
  0xeb   :  { %v1073_v38 = vpop.f32.mrf.mxu0  ;;  %v1142_v40 = vadd.f32 %v1141_v37, %v1140_v32 }
  0xec   :  { %v535_v39 = vadd.f32 %v1072_v36, %v1567_v25  ;;  %v1143_v41 = vpop.f32.mrf.mxu1  ;;  %v707_v42 = vmax.f32 %v637_v35, 0.0 }
  0xed   :  { %v1074_v43 = vpop.f32.mrf.mxu0 }
  0xee   :  { %v640_v44 = vadd.f32 %v1142_v40, %v535_v39  ;;  %v833_v45 = vmul.f32 %v746_v34, %v707_v42  ;;  %v1075_v46 = vadd.f32 %v1074_v43, %v1073_v38  ;;  %v1144_v47 = vpop.f32.mrf.mxu1  ;;  %v771_v39 = vpop.permute.xlu1 %770 }
  0xef   :  { %v1076_v48 = vpop.f32.mrf.mxu0  ;;  %v1145_v52 = vadd.f32 %v1144_v47, %v1143_v41 }
  0xf0   :  { %v1033_v50 = vpack.c.bf16 %v833_v45, %v833_v45  ;;  %v540_v51 = vadd.f32 %v1075_v46, %v1567_v25  ;;  %v1146_v53 = vpop.f32.mrf.mxu1  ;;  %v708_v54 = vmax.f32 %v640_v44, 0.0 }
  0xf1   :  { %v1077_v55 = vpop.f32.mrf.mxu0 }
  0xf2   :  { %924 = vst.msk [vmem:[%s1663_s4] sm:$0xf] %vm923_vm0, %v1033_v50  ;;  %v645_v56 = vadd.f32 %v1145_v52, %v540_v51  ;;  %v834_v57 = vmul.f32 %v751_v49, %v708_v54  ;;  %v1078_v58 = vadd.f32 %v1077_v55, %v1076_v48  ;;  %v1147_v59 = vpop.f32.mrf.mxu1  ;;  %v776_v51 = vpop.permute.xlu0 %775 }
  0xf3   :  { %v1079_v61 = vpop.f32.mrf.mxu0  ;;  %v1148_v1 = vadd.f32 %v1147_v59, %v1146_v53 }
  0xf4   :  { %v709_v62 = vmax.f32 %v645_v56, 0.0  ;;  %v1034_v63 = vpack.c.bf16 %v834_v57, %v834_v57  ;;  %v543_v0 = vadd.f32 %v1078_v58, %v1567_v25  ;;  %v1149_v2 = vpop.f32.mrf.mxu1 }
  0xf5   :  { %v1080_v3 = vpop.f32.mrf.mxu0 }
  0xf6   :  { %v835_v4 = vmul.f32 %v756_v60, %v709_v62  ;;  %925 = vst.msk [vmem:[%s1663_s4 + $0x4] sm:$0xf] %vm923_vm0, %v1034_v63  ;;  %v648_v5 = vadd.f32 %v1148_v1, %v543_v0  ;;  %v1081_v6 = vadd.f32 %v1080_v3, %v1079_v61  ;;  %v1150_v7 = vpop.f32.mrf.mxu1  ;;  %v781_v63 = vpop.permute.xlu1 %780 }
  0xf7   :  { %v1082_v8 = vpop.f32.mrf.mxu0  ;;  %v1151_v12 = vadd.f32 %v1150_v7, %v1149_v2 }
  0xf8   :  { %v1035_v9 = vpack.c.bf16 %v835_v4, %v835_v4  ;;  %v710_v10 = vmax.f32 %v648_v5, 0.0  ;;  %v548_v11 = vadd.f32 %v1081_v6, %v1567_v25  ;;  %v1152_v13 = vpop.f32.mrf.mxu1 }
  0xf9   :  { %v1083_v15 = vpop.f32.mrf.mxu0 }
  0xfa   :  { %926 = vst.msk [vmem:[%s1663_s4 + $0x8] sm:$0xf] %vm923_vm0, %v1035_v9  ;;  %v836_v16 = vmul.f32 %v761_v14, %v710_v10  ;;  %v653_v17 = vadd.f32 %v1151_v12, %v548_v11  ;;  %v1084_v18 = vadd.f32 %v1083_v15, %v1082_v8  ;;  %v1153_v19 = vpop.f32.mrf.mxu1  ;;  %v786_v11 = vpop.permute.xlu0 %785 }
  0xfb   :  { %v1085_v20 = vpop.f32.mrf.mxu0  ;;  %v1154_v24 = vadd.f32 %v1153_v19, %v1152_v13 }
  0xfc   :  { %v1036_v21 = vpack.c.bf16 %v836_v16, %v836_v16  ;;  %v711_v22 = vmax.f32 %v653_v17, 0.0  ;;  %v551_v23 = vadd.f32 %v1084_v18, %v1567_v25  ;;  %v1155_v26 = vpop.f32.mrf.mxu1 }
  0xfd   :  { %v1086_v28 = vpop.f32.mrf.mxu0 }
  0xfe   :  { %927 = vst.msk [vmem:[%s1663_s4 + $0xc] sm:$0xf] %vm923_vm0, %v1036_v21  ;;  %v837_v29 = vmul.f32 %v766_v27, %v711_v22  ;;  %v656_v30 = vadd.f32 %v1154_v24, %v551_v23  ;;  %v1087_v31 = vadd.f32 %v1086_v28, %v1085_v20  ;;  %v1156_v32 = vpop.f32.mrf.mxu1  ;;  %v791_v23 = vpop.permute.xlu1 %790 }
  0xff   :  { %v1088_v33 = vpop.f32.mrf.mxu0  ;;  %v1157_v37 = vadd.f32 %v1156_v32, %v1155_v26 }
 0x100   :  { %v1037_v34 = vpack.c.bf16 %v837_v29, %v837_v29  ;;  %v712_v35 = vmax.f32 %v656_v30, 0.0  ;;  %v556_v36 = vadd.f32 %v1087_v31, %v1567_v25  ;;  %v1158_v38 = vpop.f32.mrf.mxu1 }
 0x101   :  { %v1089_v40 = vpop.f32.mrf.mxu0 }
 0x102   :  { %928 = vst.msk [vmem:[%s1663_s4 + $0x10] sm:$0xf] %vm923_vm0, %v1037_v34  ;;  %v838_v41 = vmul.f32 %v771_v39, %v712_v35  ;;  %v661_v42 = vadd.f32 %v1157_v37, %v556_v36  ;;  %v1090_v43 = vadd.f32 %v1089_v40, %v1088_v33  ;;  %v1159_v44 = vpop.f32.mrf.mxu1  ;;  %v796_v36 = vpop.permute.xlu0 %795 }
 0x103   :  { %v1091_v45 = vpop.f32.mrf.mxu0  ;;  %v1160_v49 = vadd.f32 %v1159_v44, %v1158_v38 }
 0x104   :  { %v1038_v46 = vpack.c.bf16 %v838_v41, %v838_v41  ;;  %v713_v47 = vmax.f32 %v661_v42, 0.0  ;;  %v559_v48 = vadd.f32 %v1090_v43, %v1567_v25  ;;  %v1161_v50 = vpop.f32.mrf.mxu1 }
 0x105   :  { %v1092_v52 = vpop.f32.mrf.mxu0 }
 0x106   :  { %929 = vst.msk [vmem:[%s1663_s4 + $0x14] sm:$0xf] %vm923_vm0, %v1038_v46  ;;  %v839_v53 = vmul.f32 %v776_v51, %v713_v47  ;;  %v664_v54 = vadd.f32 %v1160_v49, %v559_v48  ;;  %v1093_v55 = vadd.f32 %v1092_v52, %v1091_v45  ;;  %v1162_v56 = vpop.f32.mrf.mxu1  ;;  %v801_v48 = vpop.permute.xlu1 %800 }
 0x107   :  { %v1094_v57 = vpop.f32.mrf.mxu0  ;;  %v1163_v61 = vadd.f32 %v1162_v56, %v1161_v50 }
 0x108   :  { %v1039_v58 = vpack.c.bf16 %v839_v53, %v839_v53  ;;  %v714_v59 = vmax.f32 %v664_v54, 0.0  ;;  %v564_v60 = vadd.f32 %v1093_v55, %v1567_v25  ;;  %v1164_v62 = vpop.f32.mrf.mxu1 }
 0x109   :  { %v1095_v0 = vpop.f32.mrf.mxu0 }
 0x10a   :  { %930 = vst.msk [vmem:[%s1663_s4 + $0x18] sm:$0xf] %vm923_vm0, %v1039_v58  ;;  %v840_v1 = vmul.f32 %v781_v63, %v714_v59  ;;  %v669_v2 = vadd.f32 %v1163_v61, %v564_v60  ;;  %v1096_v3 = vadd.f32 %v1095_v0, %v1094_v57  ;;  %v1165_v4 = vpop.f32.mrf.mxu1  ;;  %v806_v60 = vpop.permute.xlu0 %805 }
 0x10b   :  { %v1097_v5 = vpop.f32.mrf.mxu0  ;;  %v1166_v9 = vadd.f32 %v1165_v4, %v1164_v62 }
 0x10c   :  { %v1040_v6 = vpack.c.bf16 %v840_v1, %v840_v1  ;;  %v715_v7 = vmax.f32 %v669_v2, 0.0  ;;  %v567_v8 = vadd.f32 %v1096_v3, %v1567_v25  ;;  %v1167_v10 = vpop.f32.mrf.mxu1 }
 0x10d   :  { %v1098_v12 = vpop.f32.mrf.mxu0 }
 0x10e   :  { %931 = vst.msk [vmem:[%s1663_s4 + $0x1c] sm:$0xf] %vm923_vm0, %v1040_v6  ;;  %v841_v13 = vmul.f32 %v786_v11, %v715_v7  ;;  %v672_v14 = vadd.f32 %v1166_v9, %v567_v8  ;;  %v1099_v15 = vadd.f32 %v1098_v12, %v1097_v5  ;;  %v1168_v16 = vpop.f32.mrf.mxu1  ;;  %v811_v8 = vpop.permute.xlu1 %810 }
 0x10f   :  { %v1100_v17 = vpop.f32.mrf.mxu0  ;;  %v1169_v21 = vadd.f32 %v1168_v16, %v1167_v10 }
 0x110   :  { %v1041_v18 = vpack.c.bf16 %v841_v13, %v841_v13  ;;  %v716_v19 = vmax.f32 %v672_v14, 0.0  ;;  %v572_v20 = vadd.f32 %v1099_v15, %v1567_v25  ;;  %v1170_v22 = vpop.f32.mrf.mxu1 }
 0x111   :  { %v1101_v24 = vpop.f32.mrf.mxu0 }
 0x112   :  { %932 = vst.msk [vmem:[%s1663_s4 + $0x20] sm:$0xf] %vm923_vm0, %v1041_v18  ;;  %v842_v26 = vmul.f32 %v791_v23, %v716_v19  ;;  %v677_v27 = vadd.f32 %v1169_v21, %v572_v20  ;;  %v1102_v28 = vadd.f32 %v1101_v24, %v1100_v17  ;;  %v1171_v29 = vpop.f32.mrf.mxu1  ;;  %v816_v20 = vpop.permute.xlu0 %815 }
 0x113   :  { %v1103_v30 = vpop.f32.mrf.mxu0  ;;  %v1172_v34 = vadd.f32 %v1171_v29, %v1170_v22 }
 0x114   :  { %v1042_v31 = vpack.c.bf16 %v842_v26, %v842_v26  ;;  %v717_v32 = vmax.f32 %v677_v27, 0.0  ;;  %v575_v33 = vadd.f32 %v1102_v28, %v1567_v25  ;;  %v1173_v35 = vpop.f32.mrf.mxu1 }
 0x115   :  { %v1104_v37 = vpop.f32.mrf.mxu0 }
 0x116   :  { %933 = vst.msk [vmem:[%s1663_s4 + $0x24] sm:$0xf] %vm923_vm0, %v1042_v31  ;;  %v843_v38 = vmul.f32 %v796_v36, %v717_v32  ;;  %v680_v39 = vadd.f32 %v1172_v34, %v575_v33  ;;  %v1105_v40 = vadd.f32 %v1104_v37, %v1103_v30  ;;  %v1174_v41 = vpop.f32.mrf.mxu1  ;;  %v821_v33 = vpop.permute.xlu1 %820 }
 0x117   :  { %v1106_v42 = vpop.f32.mrf.mxu0  ;;  %v1175_v46 = vadd.f32 %v1174_v41, %v1173_v35 }
 0x118   :  { %v1043_v43 = vpack.c.bf16 %v843_v38, %v843_v38  ;;  %v718_v44 = vmax.f32 %v680_v39, 0.0  ;;  %v580_v45 = vadd.f32 %v1105_v40, %v1567_v25  ;;  %v1176_v47 = vpop.f32.mrf.mxu1 }
 0x119   :  { %v1107_v49 = vpop.f32.mrf.mxu0 }
 0x11a   :  { %934 = vst.msk [vmem:[%s1663_s4 + $0x28] sm:$0xf] %vm923_vm0, %v1043_v43  ;;  %v844_v50 = vmul.f32 %v801_v48, %v718_v44  ;;  %v685_v51 = vadd.f32 %v1175_v46, %v580_v45  ;;  %v1108_v52 = vadd.f32 %v1107_v49, %v1106_v42  ;;  %v1177_v53 = vpop.f32.mrf.mxu1  ;;  %v826_v43 = vpop.permute.xlu0 %825 }
 0x11b   :  { %v1109_v54 = vpop.f32.mrf.mxu0  ;;  %v1178_v58 = vadd.f32 %v1177_v53, %v1176_v47  ;;  %v831_v48 = vpop.permute.xlu1 %830 }
 0x11c   :  { %v1044_v55 = vpack.c.bf16 %v844_v50, %v844_v50  ;;  %v719_v56 = vmax.f32 %v685_v51, 0.0  ;;  %v583_v57 = vadd.f32 %v1108_v52, %v1567_v25  ;;  %v1179_v59 = vpop.f32.mrf.mxu1 }
 0x11d   :  { %v1110_v61 = vpop.f32.mrf.mxu0 }
 0x11e   :  { %935 = vst.msk [vmem:[%s1663_s4 + $0x2c] sm:$0xf] %vm923_vm0, %v1044_v55  ;;  %v845_v62 = vmul.f32 %v806_v60, %v719_v56  ;;  %v688_v63 = vadd.f32 %v1178_v58, %v583_v57  ;;  %v1111_v0 = vadd.f32 %v1110_v61, %v1109_v54  ;;  %v1180_v1 = vpop.f32.mrf.mxu1 }
 0x11f   :  { %v1112_v2 = vpop.f32.mrf.mxu0  ;;  %v1181_v6 = vadd.f32 %v1180_v1, %v1179_v59 }
 0x120   :  { %v1045_v3 = vpack.c.bf16 %v845_v62, %v845_v62  ;;  %v720_v4 = vmax.f32 %v688_v63, 0.0  ;;  %v588_v5 = vadd.f32 %v1111_v0, %v1567_v25  ;;  %v1182_v7 = vpop.f32.mrf.mxu1 }
 0x121   :  { %v1113_v9 = vpop.f32.mrf.mxu0 }
 0x122   :  { %936 = vst.msk [vmem:[%s1663_s4 + $0x30] sm:$0xf] %vm923_vm0, %v1045_v3  ;;  %v846_v10 = vmul.f32 %v811_v8, %v720_v4  ;;  %v693_v11 = vadd.f32 %v1181_v6, %v588_v5  ;;  %v1114_v12 = vadd.f32 %v1113_v9, %v1112_v2  ;;  %v1183_v13 = vpop.f32.mrf.mxu1 }
 0x123   :  { %v1115_v14 = vpop.f32.mrf.mxu0  ;;  %v1184_v18 = vadd.f32 %v1183_v13, %v1182_v7 }
 0x124   :  { %v1046_v15 = vpack.c.bf16 %v846_v10, %v846_v10  ;;  %v721_v16 = vmax.f32 %v693_v11, 0.0  ;;  %v591_v17 = vadd.f32 %v1114_v12, %v1567_v25  ;;  %v1185_v19 = vpop.f32.mrf.mxu1 }
 0x125   :  { %v1116_v21 = vpop.f32.mrf.mxu0 }
 0x126   :  { %937 = vst.msk [vmem:[%s1663_s4 + $0x34] sm:$0xf] %vm923_vm0, %v1046_v15  ;;  %v847_v22 = vmul.f32 %v816_v20, %v721_v16  ;;  %v696_v23 = vadd.f32 %v1184_v18, %v591_v17  ;;  %v1117_v24 = vadd.f32 %v1116_v21, %v1115_v14  ;;  %v1186_v26 = vpop.f32.mrf.mxu1 }
 0x127   :  { %v1118_v27 = vpop.f32.mrf.mxu0  ;;  %v1187_v31 = vadd.f32 %v1186_v26, %v1185_v19 }
 0x128   :  { %v1047_v28 = vpack.c.bf16 %v847_v22, %v847_v22  ;;  %v722_v29 = vmax.f32 %v696_v23, 0.0  ;;  %v596_v30 = vadd.f32 %v1117_v24, %v1567_v25  ;;  %v1188_v32 = vpop.f32.mrf.mxu1 }
 0x129   :  { %v1119_v34 = vpop.f32.mrf.mxu0 }
 0x12a   :  { %938 = vst.msk [vmem:[%s1663_s4 + $0x38] sm:$0xf] %vm923_vm0, %v1047_v28  ;;  %v848_v35 = vmul.f32 %v821_v33, %v722_v29  ;;  %v701_v36 = vadd.f32 %v1187_v31, %v596_v30  ;;  %v1120_v37 = vadd.f32 %v1119_v34, %v1118_v27  ;;  %v1189_v38 = vpop.f32.mrf.mxu1 }
 0x12b   :  { %v1190_v42 = vadd.f32 %v1189_v38, %v1188_v32 }
 0x12c   :  { %v1048_v39 = vpack.c.bf16 %v848_v35, %v848_v35  ;;  %v723_v40 = vmax.f32 %v701_v36, 0.0  ;;  %v599_v41 = vadd.f32 %v1120_v37, %v1567_v25 }
 0x12e   :  { %939 = vst.msk [vmem:[%s1663_s4 + $0x3c] sm:$0xf] %vm923_vm0, %v1048_v39  ;;  %v849_v44 = vmul.f32 %v826_v43, %v723_v40  ;;  %v704_v45 = vadd.f32 %v1190_v42, %v599_v41 }
 0x130   :  { %v1049_v46 = vpack.c.bf16 %v849_v44, %v849_v44  ;;  %v724_v47 = vmax.f32 %v704_v45, 0.0 }
 0x132   :  { %940 = vst.msk [vmem:[%s1663_s4 + $0x40] sm:$0xf] %vm923_vm0, %v1049_v46  ;;  %v850_v49 = vmul.f32 %v831_v48, %v724_v47 }
 0x134   :  { %v1050_v50 = vpack.c.bf16 %v850_v49, %v850_v49 }
 0x136   :  { %941 = vst.msk [vmem:[%s1663_s4 + $0x44] sm:$0xf] %vm923_vm0, %v1050_v50 }

// kernel: deepspeech2_forward.9
= control target key start
LH: loop header
LB: loop body
LE: loop exit
PB: predicated region body
PF: predicated region fallthrough
CT: control target
= control target key end

     0   :  { %vm158_vm0 = vcmask 261120   ;;  %v39_v22 = vlaneseq  ;;  %vm206_vm1 = vcmask 523264   ;;  %s371_s1 = inlined_call_operand.vmem [shape: bf16[160,192], index: 1, kind: input, shape index: {}]   ;;  %s372_s0 = inlined_call_operand.vmem [shape: bf16[16,160], index: 0, kind: input, shape index: {}]   ;;  %s373_s2 = inlined_call_operand.vmem [shape: f32[1,192], index: 2, kind: input, shape index: {}]   ;;  %s374_s3 = inlined_call_operand.vmem [shape: f32[16,192], index: 3, kind: output, shape index: {}]  }
   0x1   :  { %v237_v0 = vld [vmem:[%s371_s1 + $0x74] ss:$8 sps:$4 sm:$0xff]   ;;  %v239_v1 = vld [vmem:[%s371_s1 + $0x70] ss:$8 sps:$4 sm:$0xff]   ;;  %v240_v2 = vld [vmem:[%s371_s1 + $0x64] ss:$8 sps:$4 sm:$0xff]  }
   0x2   :  { %162 = vmatprep.subr.bf16.mxu0 %v237_v0  ;;  %v242_v3 = vld [vmem:[%s371_s1 + $0x60] ss:$8 sps:$4 sm:$0xff]   ;;  %v243_v4 = vld [vmem:[%s371_s1 + $0x54] ss:$8 sps:$4 sm:$0xff]   ;;  %v245_v5 = vld [vmem:[%s371_s1 + $0x50] ss:$8 sps:$4 sm:$0xff]  }
   0x3   :  { %163 = vmatpush1.bf16.msra.mxu0 %v239_v1  ;;  %v246_v6 = vld [vmem:[%s371_s1 + $0x44] ss:$8 sps:$4 sm:$0xff]   ;;  %v248_v7 = vld [vmem:[%s371_s1 + $0x40] ss:$8 sps:$4 sm:$0xff]   ;;  %v249_v8 = vld [vmem:[%s371_s1 + $0x34] ss:$8 sps:$4 sm:$0xff]  }
   0x4   :  { %164 = vmatprep.subr.bf16.mxu0 %v240_v2  ;;  %v269_v9 = vld [vmem:[%s372_s0 + $0x4] ss:$8 sps:$4 sm:$0xff]   ;;  %v251_v10 = vld [vmem:[%s371_s1 + $0x30] ss:$8 sps:$4 sm:$0xff]   ;;  %v254_v12 = vld [vmem:[%s371_s1 + $0x20] ss:$8 sps:$4 sm:$0xff]  }
   0x5   :  { %v252_v11 = vld [vmem:[%s371_s1 + $0x24] ss:$8 sps:$4 sm:$0xff]   ;;  %236 = vmatprep.mubr.msk.bf16.mxu0 %vm158_vm0, %v269_v9  ;;  %v255_v13 = vld [vmem:[%s371_s1 + $0x14] ss:$8 sps:$4 sm:$0xff]   ;;  %v257_v14 = vld [vmem:[%s371_s1 + $0x10] ss:$8 sps:$4 sm:$0xff]  }
   0x6   :  { %v258_v15 = vld [vmem:[%s371_s1 + $0x4] ss:$8 sps:$4 sm:$0xff]   ;;  %v260_v16 = vld [vmem:[%s371_s1] ss:$8 sps:$4 sm:$0xff]   ;;  %v261_v17 = vld [vmem:[%s371_s1 + $0x94] ss:$8 sps:$4 sm:$0xff]  }
   0x7   :  { %165 = vmatpush1.bf16.msra.mxu0 %v242_v3  ;;  %v263_v18 = vld [vmem:[%s371_s1 + $0x90] ss:$8 sps:$4 sm:$0xff]   ;;  %v264_v19 = vld [vmem:[%s371_s1 + $0x84] ss:$8 sps:$4 sm:$0xff]   ;;  %v266_v20 = vld [vmem:[%s371_s1 + $0x80] ss:$8 sps:$4 sm:$0xff]  }
   0x8   :  { %166 = vmatprep.subr.bf16.mxu0 %v243_v4  ;;  %v267_v21 = vld [vmem:[%s372_s0] ss:$8 sps:$4 sm:$0xff]   ;;  %v40_v23 = vshrl.u32 %v39_v22, 7 }
   0x9   :  { %v37_v25 = vld [vmem:[%s373_s2] sm:$0x3] }
   0xa   :  { %v41_v24 = vsub.s32 0, %v40_v23  ;;  %v45_v26 = vsub.s32 1, %v40_v23 }
   0xb   :  { %167 = vmatpush1.bf16.msra.mxu0 %v245_v5 }
   0xc   :  { %168 = vmatprep.subr.bf16.mxu0 %v246_v6  ;;  %v42_v27 = vrot.slane %v37_v25, %v41_v24  ;;  %v46_v28 = vrot.slane %v37_v25, %v45_v26 }
   0xf   :  { %169 = vmatpush1.bf16.msra.mxu0 %v248_v7 }
  0x10   :  { %170 = vmatprep.subr.bf16.mxu0 %v249_v8 }
  0x13   :  { %171 = vmatpush1.bf16.msra.mxu0 %v251_v10 }
  0x14   :  { %172 = vmatprep.subr.bf16.mxu0 %v252_v11 }
  0x17   :  { %173 = vmatpush1.bf16.msra.mxu0 %v254_v12 }
  0x18   :  { %174 = vmatprep.subr.bf16.mxu0 %v255_v13 }
  0x1b   :  { %175 = vmatpush1.bf16.msra.mxu0 %v257_v14 }
  0x1c   :  { %176 = vmatprep.subr.bf16.mxu0 %v258_v15 }
  0x1f   :  { %177 = vmatpush1.bf16.msra.mxu0 %v260_v16 }
  0x20   :  { %190 = vmatprep.subr.bf16.mxu0 %v261_v17 }
  0x23   :  { %191 = vmatpush2.bf16.msra.mxu0 %v263_v18 }
  0x24   :  { %192 = vmatprep.subr.bf16.mxu0 %v264_v19 }
  0x27   :  { %193 = vmatpush2.bf16.msra.mxu0 %v266_v20 }
  0x2a   :  { %195 = vmatmul.mubr.bf16.vlgmr.msra.gmra.mxu0 %v267_v21 }
  0xea   :  { %v196_v29 = vpop.f32.mrf.mxu0 }
  0xeb   :  { %v197_v30 = vadd.f32 %v196_v29, %v42_v27 }
  0xec   :  { %v198_v31 = vpop.f32.mrf.mxu0 }
  0xed   :  { %205 = vst [vmem:[%s374_s3] sm:$0xff] %v197_v30  ;;  %v199_v32 = vadd.f32 %v198_v31, %v46_v28 }
  0xee   :  { %v200_v33 = vpop.f32.mrf.mxu0 }
  0xef   :  { %207 = vst.msk [vmem:[%s374_s3 + $0x8] sm:$0xff] %vm206_vm1, %v199_v32  ;;  %v201_v34 = vadd.f32 %v200_v33, %v42_v27 }
  0xf0   :  { %v202_v35 = vpop.f32.mrf.mxu0 }
  0xf1   :  { %208 = vst [vmem:[%s374_s3 + $0x10] sm:$0xff] %v201_v34  ;;  %v203_v36 = vadd.f32 %v202_v35, %v46_v28 }
  0xf3   :  { %209 = vst.msk [vmem:[%s374_s3 + $0x18] sm:$0xff] %vm206_vm1, %v203_v36 }

// kernel: deepspeech2_forward.11
= control target key start
LH: loop header
LB: loop body
LE: loop exit
PB: predicated region body
PF: predicated region fallthrough
CT: control target
= control target key end

     0   :  { %v128_v1 = vmov 0   ;;  %vm58_vm0 = vcmask 261120   ;;  %v23_v6 = vlaneseq  ;;  %vm106_vm1 = vcmask 523264   ;;  %s179_s1 = inlined_call_operand.vmem [shape: bf16[32,192], index: 1, kind: input, shape index: {}]   ;;  %s180_s0 = inlined_call_operand.vmem [shape: bf16[16,32], index: 0, kind: input, shape index: {}]   ;;  %s181_s2 = inlined_call_operand.vmem [shape: f32[1,192], index: 2, kind: input, shape index: {}]   ;;  %s182_s3 = inlined_call_operand.vmem [shape: f32[16,192], index: 3, kind: output, shape index: {}]  }
   0x1   :  { %v121_v0 = vld [vmem:[%s179_s1 + $0x14] ss:$8 sps:$4 sm:$0xff]   ;;  %94 = vmatprep.mubr.bf16.mxu0 %v128_v1  ;;  %v123_v2 = vld [vmem:[%s179_s1 + $0x10] ss:$8 sps:$4 sm:$0xff]   ;;  %v124_v3 = vld [vmem:[%s179_s1 + $0x4] ss:$8 sps:$4 sm:$0xff]  }
   0x2   :  { %74 = vmatprep.subr.bf16.mxu0 %v121_v0  ;;  %v126_v4 = vld [vmem:[%s179_s1] ss:$8 sps:$4 sm:$0xff]   ;;  %v24_v7 = vshrl.u32 %v23_v6, 7 }
   0x3   :  { %75 = vmatpush1.bf16.msra.mxu0 %v123_v2  ;;  %v127_v5 = vld [vmem:[%s180_s0] sm:$0xff]  }
   0x4   :  { %76 = vmatprep.subr.bf16.mxu0 %v124_v3  ;;  %v25_v8 = vsub.s32 0, %v24_v7  ;;  %v21_v9 = vld [vmem:[%s181_s2] sm:$0x3]  ;;  %v29_v10 = vsub.s32 1, %v24_v7 }
   0x6   :  { %v26_v11 = vrot.slane %v21_v9, %v25_v8  ;;  %v30_v12 = vrot.slane %v21_v9, %v29_v10 }
   0x7   :  { %77 = vmatpush1.bf16.msra.mxu0 %v126_v4 }
   0xa   :  { %119 = vmatmul.mubr.msk.bf16.vlgmr.msra.gmra.mxu0 %vm58_vm0, %v127_v5 }
  0xca   :  { %v96_v13 = vpop.f32.mrf.mxu0 }
  0xcb   :  { %v97_v14 = vadd.f32 %v96_v13, %v26_v11 }
  0xcc   :  { %v98_v15 = vpop.f32.mrf.mxu0 }
  0xcd   :  { %105 = vst [vmem:[%s182_s3] sm:$0xff] %v97_v14  ;;  %v99_v16 = vadd.f32 %v98_v15, %v30_v12 }
  0xce   :  { %v100_v17 = vpop.f32.mrf.mxu0 }
  0xcf   :  { %107 = vst.msk [vmem:[%s182_s3 + $0x8] sm:$0xff] %vm106_vm1, %v99_v16  ;;  %v101_v18 = vadd.f32 %v100_v17, %v26_v11 }
  0xd0   :  { %v102_v19 = vpop.f32.mrf.mxu0 }
  0xd1   :  { %108 = vst [vmem:[%s182_s3 + $0x10] sm:$0xff] %v101_v18  ;;  %v103_v20 = vadd.f32 %v102_v19, %v30_v12 }
  0xd3   :  { %109 = vst.msk [vmem:[%s182_s3 + $0x18] sm:$0xff] %vm106_vm1, %v103_v20 }

// kernel: deepspeech2_forward.13
= control target key start
LH: loop header
LB: loop body
LE: loop exit
PB: predicated region body
PF: predicated region fallthrough
CT: control target
= control target key end

     0   :  { %v269_v0 = vmov 0.0   ;;  %vm270_vm0 = vmmov 0   ;;  %vm51_vm1 = vcmask 261120   ;;  %vm140_vm2 = vcmask 523264   ;;  %s334_s1 = inlined_call_operand.vmem [shape: bf16[32,64], index: 1, kind: input, shape index: {}]   ;;  %s335_s3 = inlined_call_operand.vmem [shape: bf16[64,128], index: 3, kind: input, shape index: {}]   ;;  %s336_s0 = inlined_call_operand.vmem [shape: bf16[16,32], index: 0, kind: input, shape index: {}]   ;;  %s337_s2 = inlined_call_operand.vmem [shape: f32[1,64], index: 2, kind: input, shape index: {}]   ;;  %s338_s4 = inlined_call_operand.vmem [shape: f32[1,128], index: 4, kind: input, shape index: {}]   ;;  %s339_s5 = inlined_call_operand.vmem [shape: f32[16,128], index: 5, kind: output, shape index: {}]  }
   0x1   :  { %232 = vmatprep.subr.bf16.mxu0 %v269_v0  ;;  %v254_v1 = vld [vmem:[%s334_s1 + $0x8] sm:$0xff]   ;;  %236 = vmatprep.mubr.msk.bf16.mxu0 %vm270_vm0, %v269_v0  ;;  %v255_v2 = vld [vmem:[%s334_s1] sm:$0xff]   ;;  %v257_v3 = vld [vmem:[%s335_s3 + $0x18] sm:$0xff]  }
   0x2   :  { %240 = vmatprep.subr.bf16.mxu1 %v269_v0  ;;  %248 = vmatprep.mubr.msk.bf16.mxu1 %vm270_vm0, %v269_v0  ;;  %v256_v4 = vld [vmem:[%s336_s0] sm:$0xff]   ;;  %v258_v5 = vld [vmem:[%s335_s3 + $0x10] sm:$0xff]   ;;  %v259_v6 = vld [vmem:[%s335_s3 + $0x8] sm:$0xff]  }
   0x3   :  { %233 = vmatpush3.bf16.msra.mxu0 %v254_v1  ;;  %241 = vmatpush3.bf16.msra.mxu1 %v257_v3  ;;  %v260_v7 = vld [vmem:[%s335_s3] sm:$0xff]  }
   0x4   :  { %234 = vmatprep.subr.bf16.mxu0 %v269_v0  ;;  %242 = vmatprep.subr.bf16.mxu1 %v269_v0  ;;  %v213_v8 = vld [vmem:[%s337_s2] ss:$0 sm:$0xff] }
   0x5   :  { %v218_v20 = vld [vmem:[%s338_s4] ss:$0 sm:$0xff] }
   0x7   :  { %235 = vmatpush3.bf16.msra.mxu0 %v255_v2  ;;  %243 = vmatpush3.bf16.msra.mxu1 %v258_v5 }
   0x8   :  { %244 = vmatprep.subr.bf16.mxu1 %v269_v0 }
   0xa   :  { %237 = vmatmul.mubr.msk.bf16.vlgmr.msra.gmra.mxu0 %vm51_vm1, %v256_v4 }
   0xb   :  { %245 = vmatpush3.bf16.msra.mxu1 %v259_v6 }
   0xc   :  { %246 = vmatprep.subr.bf16.mxu1 %v269_v0 }
   0xf   :  { %247 = vmatpush3.bf16.msra.mxu1 %v260_v7 }
  0xca   :  { %v89_v9 = vpop.f32.mrf.mxu0 }
  0xcb   :  { %v90_v10 = vadd.f32 %v213_v8, %v89_v9 }
  0xcc   :  { %v238_v11 = vpop.f32.mrf.mxu0 }
  0xcd   :  { %v96_v13 = vmax.f32 %v90_v10, 0.0 }
  0xce   :  { %v92_v12 = vpop.f32.mrf.mxu0 }
  0xcf   :  { %v93_v14 = vadd.f32 %v213_v8, %v92_v12  ;;  %v98_v17 = vmin.f32 %v96_v13, 20.0 }
  0xd0   :  { %v239_v15 = vpop.f32.mrf.mxu0 }
  0xd1   :  { %v97_v16 = vmax.f32 %v93_v14, 0.0 }
  0xd3   :  { %v99_v18 = vmin.f32 %v97_v16, 20.0 }
  0xd5   :  { %v100_v19 = vpack.c.bf16 %v99_v18, %v98_v17 }
  0xd7   :  { %249 = vmatmul.mubr.msk.bf16.vlgmr.msra.gmra.mxu1 %vm140_vm2, %v100_v19 }
 0x197   :  { %v178_v21 = vpop.f32.mrf.mxu1 }
 0x198   :  { %v179_v22 = vadd.f32 %v218_v20, %v178_v21 }
 0x199   :  { %v250_v23 = vpop.f32.mrf.mxu1 }
 0x19a   :  { %185 = vmax.xlane.f32.xlu0 %v179_v22 }
 0x19b   :  { %v181_v24 = vpop.f32.mrf.mxu1 }
 0x19c   :  { %v182_v25 = vadd.f32 %v218_v20, %v181_v24 }
 0x19d   :  { %v251_v26 = vpop.f32.mrf.mxu1 }
 0x19e   :  { %187 = vmax.xlane.f32.xlu0 %v182_v25 }
 0x223   :  { %v186_v27 = vpop.xlane.xlu0 %185 }
 0x224   :  { %v189_v28 = vsub.f32 %v179_v22, %v186_v27 }
 0x226   :  { %v191_v29 = vmul.f32 1.442695, %v189_v28 }
 0x227   :  { %v188_v30 = vpop.xlane.xlu0 %187 }
 0x228   :  { %261 = vpow2.f32 %v191_v29  ;;  %v190_v31 = vsub.f32 %v182_v25, %v188_v30 }
 0x22a   :  { %v193_v32 = vmul.f32 1.442695, %v190_v31 }
 0x22c   :  { %263 = vpow2.f32 %v193_v32 }
 0x235   :  { %v262_v33 = vpop.eup %261 }
 0x236   :  { %195 = vadd.xlane.f32.xlu1 %v262_v33 }
 0x239   :  { %v264_v34 = vpop.eup %263 }
 0x23a   :  { %197 = vadd.xlane.f32.xlu1 %v264_v34 }
 0x2bf   :  { %v196_v35 = vpop.xlane.xlu1 %195 }
 0x2c0   :  { %265 = vlog2.f32 %v196_v35 }
 0x2c3   :  { %v198_v36 = vpop.xlane.xlu1 %197 }
 0x2c4   :  { %267 = vlog2.f32 %v198_v36 }
 0x2cd   :  { %v266_v37 = vpop.eup %265 }
 0x2ce   :  { %v200_v38 = vmul.f32 0.6931472, %v266_v37 }
 0x2d0   :  { %v203_v39 = vadd.f32 %v200_v38, %v186_v27 }
 0x2d1   :  { %v268_v40 = vpop.eup %267 }
 0x2d2   :  { %v205_v41 = vsub.f32 %v179_v22, %v203_v39  ;;  %v202_v42 = vmul.f32 0.6931472, %v268_v40 }
 0x2d4   :  { %207 = vst [vmem:[%s339_s5] sm:$0xff] %v205_v41  ;;  %v204_v43 = vadd.f32 %v202_v42, %v188_v30 }
 0x2d6   :  { %v206_v44 = vsub.f32 %v182_v25, %v204_v43 }
 0x2d8   :  { %208 = vst [vmem:[%s339_s5 + $0x8] sm:$0xff] %v206_v44 }

// kernel: deepspeech2_forward.10
= control target key start
LH: loop header
LB: loop body
LE: loop exit
PB: predicated region body
PF: predicated region fallthrough
CT: control target
= control target key end

     0   :  { %vm22_vm0 = vcmask 517120   ;;  %v1231_v1 = vmov 0   ;;  %v1232_v2 = vmov 0.0   ;;  %vm93_vm1 = vcmask 523264   ;;  %s1571_s2 = inlined_call_operand.vmem [shape: bf16[64,192], index: 2, kind: input, shape index: {}]   ;;  %s1572_s0 = inlined_call_operand.vmem [shape: s32[2,1], index: 0, kind: input, shape index: {}]   ;;  %s1573_s3 = inlined_call_operand.vmem [shape: f32[1,192], index: 3, kind: input, shape index: {}]   ;;  %s1574_s1 = inlined_call_operand.vmem [shape: f32[8,2,192], index: 1, kind: input, shape index: {}]   ;;  %s1575_s4 = inlined_call_operand.vmem [shape: f32[8,2,64], index: 4, kind: output, shape index: {}]  }
   0x1   :  { %v1263_v0 = vld [vmem:[%s1571_s2 + $0x34] ss:$8 sps:$4 sm:$0xff]   ;;  %129 = vmatprep.mubr.bf16.mxu0 %v1231_v1  ;;  %23 = vst.msk [vmem:[#allocation2] sm:$0x3] %vm22_vm0, %v1232_v2  ;;  %1129 = vset.pattern.permute.xlu1 %v1231_v1  ;;  %v1272_v3 = vld [vmem:[%s1571_s2 + $0x30] ss:$8 sps:$4 sm:$0xff]   ;;  %v34_v17 = vlaneseq }
   0x2   :  { %249 = vmatprep.mubr.bf16.mxu1 %v1231_v1  ;;  %1135 = vset.pattern.permute.xlu0 %v1231_v1  ;;  %v1280_v4 = vld [vmem:[%s1571_s2 + $0x24] ss:$8 sps:$4 sm:$0xff]   ;;  %v1287_v5 = vld [vmem:[%s1571_s2 + $0x20] ss:$8 sps:$4 sm:$0xff]   ;;  %v1294_v6 = vld [vmem:[%s1571_s2 + $0x14] ss:$8 sps:$4 sm:$0xff]  }
   0x3   :  { %105 = vmatprep.subr.bf16.mxu0 %v1263_v0  ;;  %225 = vmatprep.subr.bf16.mxu1 %v1263_v0  ;;  %v1301_v7 = vld [vmem:[%s1571_s2 + $0x10] ss:$8 sps:$4 sm:$0xff]   ;;  %v1308_v8 = vld [vmem:[%s1571_s2 + $0x4] ss:$8 sps:$4 sm:$0xff]   ;;  %v1315_v9 = vld [vmem:[%s1571_s2] ss:$8 sps:$4 sm:$0xff]  }
   0x4   :  { %106 = vmatpush1.bf16.msra.mxu0 %v1272_v3  ;;  %226 = vmatpush1.bf16.msra.mxu1 %v1272_v3  ;;  %v1341_v12 = vld [vmem:[%s1572_s0] sm:$0x3]  ;;  %v44_v18 = vshrl.u32 %v34_v17, 7  ;;  %v1233_v39 = vmov 1983009808   ;;  %v1370_v53 = vand.u32 127, %v34_v17 }
   0x5   :  { %107 = vmatprep.subr.bf16.mxu0 %v1280_v4  ;;  %227 = vmatprep.subr.bf16.mxu1 %v1280_v4  ;;  %v1344_v13 = vsub.s32 8, %v1341_v12  ;;  %vm1065_vm2 = vcmp.gt.s32.totalorder %v1341_v12, 0  ;;  %v32_v20 = vld [vmem:[%s1573_s3] sm:$0x3]  ;;  %v159_v40 = vunpack.c.l.s4 %v1233_v39  ;;  %s1234_s3 = smov 64   ;;  %vm1072_vm5 = vcmp.gt.s32.totalorder %v1341_v12, 1 }
   0x6   :  { %v1066_v14 = vsel %vm1065_vm2, 1.0, %v1232_v2  ;;  %v45_v19 = vsub.s32 0, %v44_v18  ;;  %v40_v22 = vld [vmem:[%s1574_s1] sm:$0xf]  ;;  %v49_v32 = vsub.s32 1, %v44_v18  ;;  %vm36_vm4 = vcmp.lt.s32.totalorder %v1370_v53, 32 }
   0x7   :  { %vm1067_vm3 = vcmp.le.s32.totalorder %v1344_v13, 0  ;;  %v147_v34 = vrot.slane %v40_v22, 2  ;;  %v160_v41 = vunpack.c.0.s8 %v159_v40  ;;  %vm1074_vm6 = vcmp.le.s32.totalorder %v1344_v13, 1 }
   0x8   :  { %108 = vmatpush1.bf16.msra.mxu0 %v1287_v5  ;;  %228 = vmatpush1.bf16.msra.mxu1 %v1287_v5  ;;  %v1317_v10 = vld [vmem:[#allocation2] sm:$0x3]  ;;  %v1068_v15 = vsel %vm1067_vm3, 1.0, %v1232_v2  ;;  %v1353_v21 = vrot.slane %v32_v20, %v45_v19  ;;  %v1359_v33 = vrot.slane %v32_v20, %v49_v32  ;;  %vm1080_vm7 = vcmp.gt.s32.totalorder %v1341_v12, 2 }
   0x9   :  { %109 = vmatprep.subr.bf16.mxu0 %v1294_v6  ;;  %229 = vmatprep.subr.bf16.mxu1 %v1294_v6  ;;  %v41_v11 = vpack.c.bf16 %v1317_v10, %v1317_v10  ;;  %v1130_v16 = vpack.i.bf16 %v1068_v15, %v1066_v14  ;;  %v1362_v42 = vsub.s32 %v160_v41, %v44_v18  ;;  %vm1082_vm8 = vcmp.le.s32.totalorder %v1344_v13, 2 }
   0xa   :  { %vm1088_vm9 = vcmp.gt.s32.totalorder %v1341_v12, 3  ;;  %vm1090_vm10 = vcmp.le.s32.totalorder %v1344_v13, 3  ;;  %vm1096_vm11 = vcmp.gt.s32.totalorder %v1341_v12, 4  ;;  %vm1098_vm12 = vcmp.le.s32.totalorder %v1344_v13, 4 }
   0xb   :  { %1131 = vperm.xlu1 %1129, %v1130_v16   ;;  %v164_v44 = vrot.slane %v1317_v10, %v1362_v42  ;;  %vm1104_vm13 = vcmp.gt.s32.totalorder %v1341_v12, 5  ;;  %vm1106_vm14 = vcmp.le.s32.totalorder %v1344_v13, 5  ;;  %vm1112_vm15 = vcmp.gt.s32.totalorder %v1341_v12, 6 }
   0xc   :  { %110 = vmatpush1.bf16.msra.mxu0 %v1301_v7  ;;  %230 = vmatpush1.bf16.msra.mxu1 %v1301_v7  ;;  %vm1114_vm2 = vcmp.le.s32.totalorder %v1344_v13, 6  ;;  %vm1122_vm3 = vcmp.le.s32.totalorder %v1344_v13, 7 }
   0xd   :  { %111 = vmatprep.subr.bf16.mxu0 %v1308_v8  ;;  %231 = vmatprep.subr.bf16.mxu1 %v1308_v8 }
  0x10   :  { %112 = vmatpush1.bf16.msra.mxu0 %v1315_v9  ;;  %232 = vmatpush1.bf16.msra.mxu1 %v1315_v9 }
  0x11   :  { %345 = vmatprep.subr.bf16.mxu0 %v1263_v0  ;;  %465 = vmatprep.subr.bf16.mxu1 %v1263_v0 }
  0x13   :  { %1063 = vmatmul.mubr.msk.bf16.vlgmr.msra.gmra.mxu0 %vm93_vm1, %v41_v11 }
  0x14   :  { %346 = vmatpush1.bf16.msra.mxu0 %v1272_v3  ;;  %369 = vmatprep.mubr.bf16.mxu0 %v1231_v1 }
  0x15   :  { %347 = vmatprep.subr.bf16.mxu0 %v1280_v4 }
  0x18   :  { %348 = vmatpush1.bf16.msra.mxu0 %v1287_v5 }
  0x19   :  { %349 = vmatprep.subr.bf16.mxu0 %v1294_v6 }
  0x1c   :  { %350 = vmatpush1.bf16.msra.mxu0 %v1301_v7 }
  0x1d   :  { %351 = vmatprep.subr.bf16.mxu0 %v1308_v8 }
  0x20   :  { %352 = vmatpush1.bf16.msra.mxu0 %v1315_v9 }
  0x21   :  { %585 = vmatprep.subr.bf16.mxu0 %v1263_v0 }
  0x86   :  { %v1132_v52 = vpop.permute.xlu1 %1131 }
  0x87   :  { %v1134_v54 = vunpack.i.h.bf16 %v1132_v52  ;;  %v1133_v55 = vunpack.i.l.bf16 %v1132_v52  ;;  %v1077_v52 = vld [vmem:[%s1574_s1 + $0x8] sm:$0xf] }
  0x89   :  { %v192_v56 = vsel %vm36_vm4, %v1133_v55, %v1134_v54 }
  0x8a   :  { %v207_v57 = vsub.f32 1.0, %v192_v56 }
  0x8c   :  { %v208_v58 = vmul.f32 %v207_v57, %v1317_v10  ;;  %v1069_v10 = vld [vmem:[%s1574_s1 + $0x4] sm:$0xf] }
  0xd3   :  { %v131_v23 = vpop.f32.mrf.mxu0 }
  0xd4   :  { %v132_v24 = vadd.f32 %v131_v23, %v1353_v21  ;;  %v267_v23 = vrot.slane %v1069_v10, 2 }
  0xd5   :  { %v133_v25 = vpop.f32.mrf.mxu0 }
  0xd6   :  { %v138_v26 = vadd.f32 %v132_v24, %v40_v22  ;;  %v134_v35 = vadd.f32 %v133_v25, %v1359_v33 }
  0xd7   :  { %v135_v27 = vpop.f32.mrf.mxu0 }
  0xd8   :  { %v1064_v28 = vmul.f32 -1.442695, %v138_v26 }
  0xd9   :  { %v136_v29 = vpop.f32.mrf.mxu0 }
  0xda   :  { %1183 = vpow2.f32 %v1064_v28  ;;  %v1073_v28 = vsel %vm1072_vm5, 1.0, %v1232_v2  ;;  %v1075_v29 = vsel %vm1074_vm6, 1.0, %v1232_v2 }
  0xe7   :  { %v1184_v30 = vpop.eup %1183 }
  0xe8   :  { %v142_v31 = vadd.f32 1.0, %v1184_v30 }
  0xea   :  { %1185 = vrcp.f32 %v142_v31  ;;  %v1136_v31 = vpack.i.bf16 %v1075_v29, %v1073_v28 }
  0xf7   :  { %v1186_v36 = vpop.eup %1185 }
  0xf8   :  { %v145_v37 = vmul.f32 %v1186_v36, %v134_v35  ;;  %v151_v46 = vsub.f32 1.0, %v1186_v36 }
  0xfa   :  { %v149_v38 = vadd.f32 %v147_v34, %v145_v37 }
  0xfc   :  { %1187 = vtanh.f32 %v149_v38 }
 0x109   :  { %v1188_v43 = vpop.eup %1187 }
 0x10a   :  { %153 = vrot.lane.b32.xlu0 %v1188_v43, %s1234_s3 }
 0x10e   :  { %165 = vrot.lane.b32.xlu0 %v164_v44, %s1234_s3 }
 0x17c   :  { %v154_v45 = vpop.permute.xlu0 %153 }
 0x17d   :  { %v156_v48 = vmul.f32 %v154_v45, %v151_v46 }
 0x180   :  { %v166_v47 = vpop.permute.xlu0 %165 }
 0x181   :  { %v168_v49 = vmul.f32 %v1186_v36, %v166_v47 }
 0x183   :  { %v169_v50 = vadd.f32 %v168_v49, %v156_v48 }
 0x185   :  { %v200_v51 = vrot.slane %v169_v50, %v1362_v42 }
 0x187   :  { %201 = vrot.lane.b32.xlu1 %v200_v51, %s1234_s3 }
 0x1f9   :  { %v202_v59 = vpop.permute.xlu1 %201 }
 0x1fa   :  { %v204_v60 = vmul.f32 %v202_v59, %v192_v56 }
 0x1fc   :  { %206 = vst.msk [vmem:[%s1575_s4] sm:$0x3] %vm22_vm0, %v204_v60  ;;  %v209_v61 = vadd.f32 %v208_v58, %v204_v60 }
 0x1fe   :  { %v213_v62 = vpack.c.bf16 %v209_v61, %v209_v61  ;;  %v284_v63 = vrot.slane %v209_v61, %v1362_v42 }
 0x200   :  { %285 = vrot.lane.b32.xlu1 %v284_v63, %s1234_s3  ;;  %1070 = vmatmul.mubr.msk.bf16.vlgmr.msra.gmra.mxu1 %vm93_vm1, %v213_v62  ;;  %v387_v63 = vrot.slane %v1077_v52, 2 }
 0x201   :  { %466 = vmatpush1.bf16.msra.mxu1 %v1272_v3  ;;  %489 = vmatprep.mubr.bf16.mxu1 %v1231_v1 }
 0x202   :  { %467 = vmatprep.subr.bf16.mxu1 %v1280_v4 }
 0x205   :  { %468 = vmatpush1.bf16.msra.mxu1 %v1287_v5 }
 0x206   :  { %469 = vmatprep.subr.bf16.mxu1 %v1294_v6 }
 0x209   :  { %470 = vmatpush1.bf16.msra.mxu1 %v1301_v7 }
 0x20a   :  { %471 = vmatprep.subr.bf16.mxu1 %v1308_v8 }
 0x20d   :  { %472 = vmatpush1.bf16.msra.mxu1 %v1315_v9 }
 0x20e   :  { %705 = vmatprep.subr.bf16.mxu1 %v1263_v0 }
 0x272   :  { %v286_v34 = vpop.permute.xlu1 %285 }
 0x2c0   :  { %v251_v11 = vpop.f32.mrf.mxu1 }
 0x2c1   :  { %v252_v14 = vadd.f32 %v251_v11, %v1353_v21 }
 0x2c2   :  { %v253_v15 = vpop.f32.mrf.mxu1 }
 0x2c3   :  { %v258_v16 = vadd.f32 %v1069_v10, %v252_v14  ;;  %v254_v24 = vadd.f32 %v253_v15, %v1359_v33 }
 0x2c4   :  { %v255_v17 = vpop.f32.mrf.mxu1 }
 0x2c5   :  { %v1071_v18 = vmul.f32 -1.442695, %v258_v16  ;;  %v1081_v16 = vsel %vm1080_vm7, 1.0, %v1232_v2  ;;  %v1083_v17 = vsel %vm1082_vm8, 1.0, %v1232_v2 }
 0x2c6   :  { %v256_v19 = vpop.f32.mrf.mxu1 }
 0x2c7   :  { %1189 = vpow2.f32 %v1071_v18  ;;  %v1141_v19 = vpack.i.bf16 %v1083_v17, %v1081_v16 }
 0x2d4   :  { %v1190_v20 = vpop.eup %1189 }
 0x2d5   :  { %v262_v22 = vadd.f32 1.0, %v1190_v20 }
 0x2d7   :  { %1191 = vrcp.f32 %v262_v22 }
 0x2e4   :  { %v1192_v25 = vpop.eup %1191 }
 0x2e5   :  { %v265_v26 = vmul.f32 %v1192_v25, %v254_v24  ;;  %v271_v32 = vsub.f32 1.0, %v1192_v25  ;;  %v288_v36 = vmul.f32 %v1192_v25, %v286_v34 }
 0x2e7   :  { %v269_v27 = vadd.f32 %v267_v23, %v265_v26 }
 0x2e9   :  { %1193 = vtanh.f32 %v269_v27 }
 0x2f6   :  { %v1194_v30 = vpop.eup %1193 }
 0x2f7   :  { %273 = vrot.lane.b32.xlu0 %v1194_v30, %s1234_s3 }
 0x2fb   :  { %1137 = vperm.xlu0 %1135, %v1136_v31  }
 0x369   :  { %v274_v35 = vpop.permute.xlu0 %273 }
 0x36a   :  { %v276_v37 = vmul.f32 %v274_v35, %v271_v32 }
 0x36c   :  { %v289_v38 = vadd.f32 %v288_v36, %v276_v37 }
 0x36e   :  { %v320_v39 = vrot.slane %v289_v38, %v1362_v42 }
 0x370   :  { %321 = vrot.lane.b32.xlu1 %v320_v39, %s1234_s3 }
 0x376   :  { %v1138_v40 = vpop.permute.xlu0 %1137 }
 0x377   :  { %v1140_v41 = vunpack.i.h.bf16 %v1138_v40  ;;  %v1139_v43 = vunpack.i.l.bf16 %v1138_v40  ;;  %v1085_v40 = vld [vmem:[%s1574_s1 + $0xc] sm:$0xf] }
 0x379   :  { %v312_v44 = vsel %vm36_vm4, %v1139_v43, %v1140_v41 }
 0x37a   :  { %v327_v45 = vsub.f32 1.0, %v312_v44 }
 0x37c   :  { %v328_v48 = vmul.f32 %v327_v45, %v209_v61 }
 0x3e2   :  { %v322_v46 = vpop.permute.xlu1 %321 }
 0x3e3   :  { %v324_v47 = vmul.f32 %v322_v46, %v312_v44 }
 0x3e5   :  { %1076 = vst.msk [vmem:[%s1575_s4 + $0x2] sm:$0x3] %vm22_vm0, %v324_v47  ;;  %v329_v49 = vadd.f32 %v328_v48, %v324_v47 }
 0x3e7   :  { %v333_v50 = vpack.c.bf16 %v329_v49, %v329_v49  ;;  %v404_v51 = vrot.slane %v329_v49, %v1362_v42 }
 0x3e9   :  { %405 = vrot.lane.b32.xlu0 %v404_v51, %s1234_s3  ;;  %1078 = vmatmul.mubr.msk.bf16.vlgmr.msra.gmra.mxu0 %vm93_vm1, %v333_v50  ;;  %v507_v51 = vrot.slane %v1085_v40, 2 }
 0x3ea   :  { %586 = vmatpush1.bf16.msra.mxu0 %v1272_v3  ;;  %609 = vmatprep.mubr.bf16.mxu0 %v1231_v1 }
 0x3eb   :  { %587 = vmatprep.subr.bf16.mxu0 %v1280_v4 }
 0x3ee   :  { %588 = vmatpush1.bf16.msra.mxu0 %v1287_v5 }
 0x3ef   :  { %589 = vmatprep.subr.bf16.mxu0 %v1294_v6 }
 0x3f2   :  { %590 = vmatpush1.bf16.msra.mxu0 %v1301_v7 }
 0x3f3   :  { %591 = vmatprep.subr.bf16.mxu0 %v1308_v8 }
 0x3f6   :  { %592 = vmatpush1.bf16.msra.mxu0 %v1315_v9 }
 0x3f7   :  { %825 = vmatprep.subr.bf16.mxu0 %v1263_v0 }
 0x45b   :  { %v406_v22 = vpop.permute.xlu0 %405 }
 0x4a9   :  { %v371_v54 = vpop.f32.mrf.mxu0 }
 0x4aa   :  { %v372_v55 = vadd.f32 %v371_v54, %v1353_v21 }
 0x4ab   :  { %v373_v56 = vpop.f32.mrf.mxu0 }
 0x4ac   :  { %v378_v57 = vadd.f32 %v1077_v52, %v372_v55  ;;  %v374_v10 = vadd.f32 %v373_v56, %v1359_v33  ;;  %v1089_v56 = vsel %vm1088_vm9, 1.0, %v1232_v2 }
 0x4ad   :  { %v375_v58 = vpop.f32.mrf.mxu0 }
 0x4ae   :  { %v1079_v59 = vmul.f32 -1.442695, %v378_v57  ;;  %v1091_v57 = vsel %vm1090_vm10, 1.0, %v1232_v2 }
 0x4af   :  { %v376_v60 = vpop.f32.mrf.mxu0 }
 0x4b0   :  { %1195 = vpow2.f32 %v1079_v59  ;;  %v1146_v59 = vpack.i.bf16 %v1091_v57, %v1089_v56 }
 0x4bd   :  { %v1196_v61 = vpop.eup %1195 }
 0x4be   :  { %v382_v62 = vadd.f32 1.0, %v1196_v61 }
 0x4c0   :  { %1197 = vrcp.f32 %v382_v62 }
 0x4cd   :  { %v1198_v11 = vpop.eup %1197 }
 0x4ce   :  { %v385_v14 = vmul.f32 %v1198_v11, %v374_v10  ;;  %v391_v20 = vsub.f32 1.0, %v1198_v11  ;;  %v408_v24 = vmul.f32 %v1198_v11, %v406_v22 }
 0x4d0   :  { %v389_v15 = vadd.f32 %v387_v63, %v385_v14 }
 0x4d2   :  { %1199 = vtanh.f32 %v389_v15 }
 0x4df   :  { %v1200_v18 = vpop.eup %1199 }
 0x4e0   :  { %393 = vrot.lane.b32.xlu1 %v1200_v18, %s1234_s3 }
 0x4e4   :  { %1142 = vperm.xlu1 %1129, %v1141_v19  }
 0x552   :  { %v394_v23 = vpop.permute.xlu1 %393 }
 0x553   :  { %v396_v25 = vmul.f32 %v394_v23, %v391_v20 }
 0x555   :  { %v409_v26 = vadd.f32 %v408_v24, %v396_v25 }
 0x557   :  { %v440_v27 = vrot.slane %v409_v26, %v1362_v42 }
 0x559   :  { %441 = vrot.lane.b32.xlu0 %v440_v27, %s1234_s3  ;;  %v1093_v27 = vld [vmem:[%s1574_s1 + $0x10] sm:$0xf] }
 0x55f   :  { %v1143_v28 = vpop.permute.xlu1 %1142 }
 0x560   :  { %v1145_v29 = vunpack.i.h.bf16 %v1143_v28  ;;  %v1144_v30 = vunpack.i.l.bf16 %v1143_v28 }
 0x562   :  { %v432_v31 = vsel %vm36_vm4, %v1144_v30, %v1145_v29 }
 0x563   :  { %v447_v32 = vsub.f32 1.0, %v432_v31 }
 0x565   :  { %v448_v36 = vmul.f32 %v447_v32, %v329_v49 }
 0x5cb   :  { %v442_v34 = vpop.permute.xlu0 %441 }
 0x5cc   :  { %v444_v35 = vmul.f32 %v442_v34, %v432_v31 }
 0x5ce   :  { %1084 = vst.msk [vmem:[%s1575_s4 + $0x4] sm:$0x3] %vm22_vm0, %v444_v35  ;;  %v449_v37 = vadd.f32 %v448_v36, %v444_v35 }
 0x5d0   :  { %v453_v38 = vpack.c.bf16 %v449_v37, %v449_v37  ;;  %v524_v39 = vrot.slane %v449_v37, %v1362_v42 }
 0x5d2   :  { %525 = vrot.lane.b32.xlu0 %v524_v39, %s1234_s3  ;;  %1086 = vmatmul.mubr.msk.bf16.vlgmr.msra.gmra.mxu1 %vm93_vm1, %v453_v38  ;;  %v627_v38 = vrot.slane %v1093_v27, 2 }
 0x5d3   :  { %706 = vmatpush1.bf16.msra.mxu1 %v1272_v3  ;;  %729 = vmatprep.mubr.bf16.mxu1 %v1231_v1 }
 0x5d4   :  { %707 = vmatprep.subr.bf16.mxu1 %v1280_v4 }
 0x5d7   :  { %708 = vmatpush1.bf16.msra.mxu1 %v1287_v5 }
 0x5d8   :  { %709 = vmatprep.subr.bf16.mxu1 %v1294_v6 }
 0x5db   :  { %710 = vmatpush1.bf16.msra.mxu1 %v1301_v7 }
 0x5dc   :  { %711 = vmatprep.subr.bf16.mxu1 %v1308_v8 }
 0x5df   :  { %712 = vmatpush1.bf16.msra.mxu1 %v1315_v9 }
 0x5e0   :  { %945 = vmatprep.subr.bf16.mxu1 %v1263_v0 }
 0x644   :  { %v526_v61 = vpop.permute.xlu0 %525 }
 0x692   :  { %v491_v41 = vpop.f32.mrf.mxu1 }
 0x693   :  { %v492_v43 = vadd.f32 %v491_v41, %v1353_v21 }
 0x694   :  { %v493_v44 = vpop.f32.mrf.mxu1 }
 0x695   :  { %v498_v45 = vadd.f32 %v1085_v40, %v492_v43  ;;  %v494_v52 = vadd.f32 %v493_v44, %v1359_v33  ;;  %v1097_v44 = vsel %vm1096_vm11, 1.0, %v1232_v2 }
 0x696   :  { %v495_v46 = vpop.f32.mrf.mxu1 }
 0x697   :  { %v1087_v47 = vmul.f32 -1.442695, %v498_v45  ;;  %v1099_v45 = vsel %vm1098_vm12, 1.0, %v1232_v2 }
 0x698   :  { %v496_v48 = vpop.f32.mrf.mxu1 }
 0x699   :  { %1201 = vpow2.f32 %v1087_v47  ;;  %v1151_v47 = vpack.i.bf16 %v1099_v45, %v1097_v44 }
 0x6a6   :  { %v1202_v49 = vpop.eup %1201 }
 0x6a7   :  { %v502_v50 = vadd.f32 1.0, %v1202_v49 }
 0x6a9   :  { %1203 = vrcp.f32 %v502_v50 }
 0x6b6   :  { %v1204_v0 = vpop.eup %1203 }
 0x6b7   :  { %v505_v54 = vmul.f32 %v1204_v0, %v494_v52  ;;  %v511_v60 = vsub.f32 1.0, %v1204_v0  ;;  %v528_v63 = vmul.f32 %v1204_v0, %v526_v61 }
 0x6b9   :  { %v509_v55 = vadd.f32 %v507_v51, %v505_v54 }
 0x6bb   :  { %1205 = vtanh.f32 %v509_v55 }
 0x6c8   :  { %v1206_v58 = vpop.eup %1205 }
 0x6c9   :  { %513 = vrot.lane.b32.xlu1 %v1206_v58, %s1234_s3 }
 0x6cd   :  { %1147 = vperm.xlu1 %1129, %v1146_v59  }
 0x73b   :  { %v514_v62 = vpop.permute.xlu1 %513 }
 0x73c   :  { %v516_v10 = vmul.f32 %v514_v62, %v511_v60 }
 0x73e   :  { %v529_v11 = vadd.f32 %v528_v63, %v516_v10 }
 0x740   :  { %v560_v14 = vrot.slane %v529_v11, %v1362_v42 }
 0x742   :  { %561 = vrot.lane.b32.xlu0 %v560_v14, %s1234_s3  ;;  %v1101_v14 = vld [vmem:[%s1574_s1 + $0x14] sm:$0xf] }
 0x748   :  { %v1148_v15 = vpop.permute.xlu1 %1147 }
 0x749   :  { %v1150_v16 = vunpack.i.h.bf16 %v1148_v15  ;;  %v1149_v17 = vunpack.i.l.bf16 %v1148_v15 }
 0x74b   :  { %v552_v18 = vsel %vm36_vm4, %v1149_v17, %v1150_v16 }
 0x74c   :  { %v567_v19 = vsub.f32 1.0, %v552_v18 }
 0x74e   :  { %v568_v23 = vmul.f32 %v567_v19, %v449_v37 }
 0x7b4   :  { %v562_v20 = vpop.permute.xlu0 %561 }
 0x7b5   :  { %v564_v22 = vmul.f32 %v562_v20, %v552_v18 }
 0x7b7   :  { %1092 = vst.msk [vmem:[%s1575_s4 + $0x6] sm:$0x3] %vm22_vm0, %v564_v22  ;;  %v569_v24 = vadd.f32 %v568_v23, %v564_v22  ;;  %v1105_v22 = vsel %vm1104_vm13, 1.0, %v1232_v2  ;;  %v1107_v23 = vsel %vm1106_vm14, 1.0, %v1232_v2 }
 0x7b9   :  { %v573_v25 = vpack.c.bf16 %v569_v24, %v569_v24  ;;  %v644_v26 = vrot.slane %v569_v24, %v1362_v42 }
 0x7bb   :  { %645 = vrot.lane.b32.xlu0 %v644_v26, %s1234_s3  ;;  %1094 = vmatmul.mubr.msk.bf16.vlgmr.msra.gmra.mxu0 %vm93_vm1, %v573_v25  ;;  %v1156_v25 = vpack.i.bf16 %v1107_v23, %v1105_v22 }
 0x7bc   :  { %826 = vmatpush1.bf16.msra.mxu0 %v1272_v3  ;;  %849 = vmatprep.mubr.bf16.mxu0 %v1231_v1 }
 0x7bd   :  { %827 = vmatprep.subr.bf16.mxu0 %v1280_v4 }
 0x7c0   :  { %828 = vmatpush1.bf16.msra.mxu0 %v1287_v5 }
 0x7c1   :  { %829 = vmatprep.subr.bf16.mxu0 %v1294_v6 }
 0x7c4   :  { %830 = vmatpush1.bf16.msra.mxu0 %v1301_v7 }
 0x7c5   :  { %831 = vmatprep.subr.bf16.mxu0 %v1308_v8 }
 0x7c8   :  { %832 = vmatpush1.bf16.msra.mxu0 %v1315_v9 }
 0x82d   :  { %v646_v49 = vpop.permute.xlu0 %645 }
 0x87b   :  { %v611_v28 = vpop.f32.mrf.mxu0 }
 0x87c   :  { %v612_v29 = vadd.f32 %v611_v28, %v1353_v21 }
 0x87d   :  { %v613_v30 = vpop.f32.mrf.mxu0 }
 0x87e   :  { %v618_v31 = vadd.f32 %v1093_v27, %v612_v29  ;;  %v614_v39 = vadd.f32 %v613_v30, %v1359_v33 }
 0x87f   :  { %v615_v32 = vpop.f32.mrf.mxu0 }
 0x880   :  { %v1095_v34 = vmul.f32 -1.442695, %v618_v31 }
 0x881   :  { %v616_v35 = vpop.f32.mrf.mxu0 }
 0x882   :  { %1207 = vpow2.f32 %v1095_v34 }
 0x88f   :  { %v1208_v36 = vpop.eup %1207 }
 0x890   :  { %v622_v37 = vadd.f32 1.0, %v1208_v36 }
 0x892   :  { %1209 = vrcp.f32 %v622_v37 }
 0x89f   :  { %v1210_v40 = vpop.eup %1209 }
 0x8a0   :  { %v625_v41 = vmul.f32 %v1210_v40, %v614_v39  ;;  %v631_v48 = vsub.f32 1.0, %v1210_v40  ;;  %v648_v51 = vmul.f32 %v1210_v40, %v646_v49 }
 0x8a2   :  { %v629_v43 = vadd.f32 %v627_v38, %v625_v41 }
 0x8a4   :  { %1211 = vtanh.f32 %v629_v43 }
 0x8b1   :  { %v1212_v46 = vpop.eup %1211 }
 0x8b2   :  { %633 = vrot.lane.b32.xlu1 %v1212_v46, %s1234_s3  ;;  %v1109_v46 = vld [vmem:[%s1574_s1 + $0x18] sm:$0xf] }
 0x8b6   :  { %1152 = vperm.xlu1 %1129, %v1151_v47  }
 0x924   :  { %v634_v50 = vpop.permute.xlu1 %633 }
 0x925   :  { %v636_v52 = vmul.f32 %v634_v50, %v631_v48 }
 0x927   :  { %v649_v0 = vadd.f32 %v648_v51, %v636_v52 }
 0x929   :  { %v680_v54 = vrot.slane %v649_v0, %v1362_v42 }
 0x92b   :  { %681 = vrot.lane.b32.xlu0 %v680_v54, %s1234_s3 }
 0x931   :  { %v1153_v55 = vpop.permute.xlu1 %1152 }
 0x932   :  { %v1155_v56 = vunpack.i.h.bf16 %v1153_v55  ;;  %v1154_v57 = vunpack.i.l.bf16 %v1153_v55 }
 0x934   :  { %v672_v58 = vsel %vm36_vm4, %v1154_v57, %v1155_v56  ;;  %v867_v56 = vrot.slane %v1109_v46, 2 }
 0x935   :  { %v687_v59 = vsub.f32 1.0, %v672_v58 }
 0x937   :  { %v688_v62 = vmul.f32 %v687_v59, %v569_v24 }
 0x99d   :  { %v682_v60 = vpop.permute.xlu0 %681 }
 0x99e   :  { %v684_v61 = vmul.f32 %v682_v60, %v672_v58 }
 0x9a0   :  { %1100 = vst.msk [vmem:[%s1575_s4 + $0x8] sm:$0x3] %vm22_vm0, %v684_v61  ;;  %v689_v63 = vadd.f32 %v688_v62, %v684_v61  ;;  %v1113_v61 = vsel %vm1112_vm15, 1.0, %v1232_v2  ;;  %v1115_v62 = vsel %vm1114_vm2, 1.0, %v1232_v2 }
 0x9a2   :  { %v693_v10 = vpack.c.bf16 %v689_v63, %v689_v63  ;;  %v764_v11 = vrot.slane %v689_v63, %v1362_v42 }
 0x9a4   :  { %765 = vrot.lane.b32.xlu0 %v764_v11, %s1234_s3  ;;  %1102 = vmatmul.mubr.msk.bf16.vlgmr.msra.gmra.mxu1 %vm93_vm1, %v693_v10  ;;  %v1161_v10 = vpack.i.bf16 %v1115_v62, %v1113_v61 }
 0x9a5   :  { %946 = vmatpush1.bf16.msra.mxu1 %v1272_v3  ;;  %969 = vmatprep.mubr.bf16.mxu1 %v1231_v1 }
 0x9a6   :  { %947 = vmatprep.subr.bf16.mxu1 %v1280_v4 }
 0x9a9   :  { %948 = vmatpush1.bf16.msra.mxu1 %v1287_v5 }
 0x9aa   :  { %949 = vmatprep.subr.bf16.mxu1 %v1294_v6 }
 0x9ad   :  { %950 = vmatpush1.bf16.msra.mxu1 %v1301_v7  ;;  %v747_v7 = vrot.slane %v1101_v14, 2 }
 0x9ae   :  { %951 = vmatprep.subr.bf16.mxu1 %v1308_v8 }
 0x9b1   :  { %952 = vmatpush1.bf16.msra.mxu1 %v1315_v9 }
 0xa16   :  { %v766_v27 = vpop.permute.xlu0 %765 }
 0xa64   :  { %v731_v15 = vpop.f32.mrf.mxu1 }
 0xa65   :  { %v732_v3 = vadd.f32 %v731_v15, %v1353_v21 }
 0xa66   :  { %v733_v1 = vpop.f32.mrf.mxu1 }
 0xa67   :  { %v738_v16 = vadd.f32 %v1101_v14, %v732_v3  ;;  %v734_v8 = vadd.f32 %v733_v1, %v1359_v33 }
 0xa68   :  { %v735_v4 = vpop.f32.mrf.mxu1 }
 0xa69   :  { %v1103_v17 = vmul.f32 -1.442695, %v738_v16 }
 0xa6a   :  { %v736_v5 = vpop.f32.mrf.mxu1 }
 0xa6b   :  { %1213 = vpow2.f32 %v1103_v17 }
 0xa78   :  { %v1214_v6 = vpop.eup %1213 }
 0xa79   :  { %v742_v18 = vadd.f32 1.0, %v1214_v6 }
 0xa7b   :  { %1215 = vrcp.f32 %v742_v18 }
 0xa88   :  { %v1216_v9 = vpop.eup %1215 }
 0xa89   :  { %v745_v19 = vmul.f32 %v1216_v9, %v734_v8  ;;  %v751_v26 = vsub.f32 1.0, %v1216_v9  ;;  %v768_v29 = vmul.f32 %v1216_v9, %v766_v27 }
 0xa8b   :  { %v749_v20 = vadd.f32 %v747_v7, %v745_v19 }
 0xa8d   :  { %1217 = vtanh.f32 %v749_v20 }
 0xa9a   :  { %v1218_v24 = vpop.eup %1217 }
 0xa9b   :  { %753 = vrot.lane.b32.xlu1 %v1218_v24, %s1234_s3  ;;  %v1117_v24 = vld [vmem:[%s1574_s1 + $0x1c] sm:$0xf] }
 0xa9f   :  { %1157 = vperm.xlu1 %1129, %v1156_v25  }
 0xb0d   :  { %v754_v28 = vpop.permute.xlu1 %753 }
 0xb0e   :  { %v756_v30 = vmul.f32 %v754_v28, %v751_v26 }
 0xb10   :  { %v769_v31 = vadd.f32 %v768_v29, %v756_v30 }
 0xb12   :  { %v800_v32 = vrot.slane %v769_v31, %v1362_v42 }
 0xb14   :  { %801 = vrot.lane.b32.xlu0 %v800_v32, %s1234_s3 }
 0xb1a   :  { %v1158_v34 = vpop.permute.xlu1 %1157 }
 0xb1b   :  { %v1160_v35 = vunpack.i.h.bf16 %v1158_v34  ;;  %v1159_v36 = vunpack.i.l.bf16 %v1158_v34 }
 0xb1d   :  { %v792_v37 = vsel %vm36_vm4, %v1159_v36, %v1160_v35  ;;  %v987_v35 = vrot.slane %v1117_v24, 2 }
 0xb1e   :  { %v807_v38 = vsub.f32 1.0, %v792_v37 }
 0xb20   :  { %v808_v41 = vmul.f32 %v807_v38, %v689_v63 }
 0xb86   :  { %v802_v39 = vpop.permute.xlu0 %801 }
 0xb87   :  { %v804_v40 = vmul.f32 %v802_v39, %v792_v37 }
 0xb89   :  { %1108 = vst.msk [vmem:[%s1575_s4 + $0xa] sm:$0x3] %vm22_vm0, %v804_v40  ;;  %v809_v43 = vadd.f32 %v808_v41, %v804_v40  ;;  %v1123_v40 = vsel %vm1122_vm3, 1.0, %v1232_v2 }
 0xb8b   :  { %v813_v44 = vpack.c.bf16 %v809_v43, %v809_v43  ;;  %v884_v45 = vrot.slane %v809_v43, %v1362_v42 }
 0xb8d   :  { %885 = vrot.lane.b32.xlu0 %v884_v45, %s1234_s3  ;;  %1110 = vmatmul.mubr.msk.bf16.vlgmr.msra.gmra.mxu0 %vm93_vm1, %v813_v44 }
 0xbff   :  { %v886_v14 = vpop.permute.xlu0 %885 }
 0xc4d   :  { %v851_v47 = vpop.f32.mrf.mxu0 }
 0xc4e   :  { %v852_v48 = vadd.f32 %v851_v47, %v1353_v21 }
 0xc4f   :  { %v853_v49 = vpop.f32.mrf.mxu0 }
 0xc50   :  { %v858_v50 = vadd.f32 %v1109_v46, %v852_v48  ;;  %v854_v57 = vadd.f32 %v853_v49, %v1359_v33 }
 0xc51   :  { %v855_v51 = vpop.f32.mrf.mxu0 }
 0xc52   :  { %v1111_v52 = vmul.f32 -1.442695, %v858_v50 }
 0xc53   :  { %v856_v0 = vpop.f32.mrf.mxu0 }
 0xc54   :  { %1219 = vpow2.f32 %v1111_v52 }
 0xc61   :  { %v1220_v54 = vpop.eup %1219 }
 0xc62   :  { %v862_v55 = vadd.f32 1.0, %v1220_v54 }
 0xc64   :  { %1221 = vrcp.f32 %v862_v55 }
 0xc71   :  { %v1222_v58 = vpop.eup %1221 }
 0xc72   :  { %v865_v59 = vmul.f32 %v1222_v58, %v854_v57  ;;  %v871_v11 = vsub.f32 1.0, %v1222_v58  ;;  %v888_v3 = vmul.f32 %v1222_v58, %v886_v14 }
 0xc74   :  { %v869_v60 = vadd.f32 %v867_v56, %v865_v59 }
 0xc76   :  { %1223 = vtanh.f32 %v869_v60 }
 0xc83   :  { %v1224_v63 = vpop.eup %1223 }
 0xc84   :  { %873 = vrot.lane.b32.xlu1 %v1224_v63, %s1234_s3 }
 0xc88   :  { %1162 = vperm.xlu1 %1129, %v1161_v10  }
 0xcf6   :  { %v874_v15 = vpop.permute.xlu1 %873 }
 0xcf7   :  { %v876_v1 = vmul.f32 %v874_v15, %v871_v11 }
 0xcf9   :  { %v889_v16 = vadd.f32 %v888_v3, %v876_v1 }
 0xcfb   :  { %v920_v4 = vrot.slane %v889_v16, %v1362_v42 }
 0xcfd   :  { %921 = vrot.lane.b32.xlu0 %v920_v4, %s1234_s3 }
 0xd03   :  { %v1163_v17 = vpop.permute.xlu1 %1162 }
 0xd04   :  { %v1165_v5 = vunpack.i.h.bf16 %v1163_v17  ;;  %v1164_v6 = vunpack.i.l.bf16 %v1163_v17 }
 0xd06   :  { %v912_v18 = vsel %vm36_vm4, %v1164_v6, %v1165_v5 }
 0xd07   :  { %v927_v7 = vsub.f32 1.0, %v912_v18 }
 0xd09   :  { %v928_v19 = vmul.f32 %v927_v7, %v809_v43 }
 0xd6f   :  { %v922_v8 = vpop.permute.xlu0 %921 }
 0xd70   :  { %v924_v9 = vmul.f32 %v922_v8, %v912_v18 }
 0xd72   :  { %1116 = vst.msk [vmem:[%s1575_s4 + $0xc] sm:$0x3] %vm22_vm0, %v924_v9  ;;  %v929_v20 = vadd.f32 %v928_v19, %v924_v9 }
 0xd74   :  { %v933_v22 = vpack.c.bf16 %v929_v20, %v929_v20  ;;  %v1004_v23 = vrot.slane %v929_v20, %v1362_v42 }
 0xd76   :  { %1005 = vrot.lane.b32.xlu0 %v1004_v23, %s1234_s3  ;;  %1118 = vmatmul.mubr.msk.bf16.vlgmr.msra.gmra.mxu1 %vm93_vm1, %v933_v22  ;;  %vm1120_vm1 = vcmp.gt.s32.totalorder %v1341_v12, 7 }
 0xde8   :  { %v1006_v45 = vpop.permute.xlu0 %1005 }
 0xe36   :  { %v971_v25 = vpop.f32.mrf.mxu1 }
 0xe37   :  { %v972_v26 = vadd.f32 %v971_v25, %v1353_v21  ;;  %v1121_v21 = vsel %vm1120_vm1, 1.0, %v1232_v2 }
 0xe38   :  { %v973_v27 = vpop.f32.mrf.mxu1  ;;  %v1166_v43 = vpack.i.bf16 %v1123_v40, %v1121_v21 }
 0xe39   :  { %v978_v28 = vadd.f32 %v1117_v24, %v972_v26  ;;  %v974_v36 = vadd.f32 %v973_v27, %v1359_v33 }
 0xe3a   :  { %v975_v29 = vpop.f32.mrf.mxu1 }
 0xe3b   :  { %v1119_v30 = vmul.f32 -1.442695, %v978_v28 }
 0xe3c   :  { %v976_v31 = vpop.f32.mrf.mxu1 }
 0xe3d   :  { %1225 = vpow2.f32 %v1119_v30 }
 0xe4a   :  { %v1226_v32 = vpop.eup %1225 }
 0xe4b   :  { %v982_v34 = vadd.f32 1.0, %v1226_v32 }
 0xe4d   :  { %1227 = vrcp.f32 %v982_v34 }
 0xe5a   :  { %v1228_v37 = vpop.eup %1227 }
 0xe5b   :  { %v985_v38 = vmul.f32 %v1228_v37, %v974_v36  ;;  %v991_v44 = vsub.f32 1.0, %v1228_v37  ;;  %v1008_v46 = vmul.f32 %v1228_v37, %v1006_v45 }
 0xe5d   :  { %v989_v39 = vadd.f32 %v987_v35, %v985_v38 }
 0xe5f   :  { %1229 = vtanh.f32 %v989_v39 }
 0xe6c   :  { %v1230_v41 = vpop.eup %1229 }
 0xe6d   :  { %993 = vrot.lane.b32.xlu1 %v1230_v41, %s1234_s3 }
 0xe71   :  { %1167 = vperm.xlu1 %1129, %v1166_v43  }
 0xedf   :  { %v994_v33 = vpop.permute.xlu1 %993 }
 0xee0   :  { %v996_v47 = vmul.f32 %v994_v33, %v991_v44 }
 0xee2   :  { %v1009_v48 = vadd.f32 %v1008_v46, %v996_v47 }
 0xee4   :  { %v1040_v49 = vrot.slane %v1009_v48, %v1362_v42 }
 0xee6   :  { %1041 = vrot.lane.b32.xlu0 %v1040_v49, %s1234_s3 }
 0xeec   :  { %v1168_v12 = vpop.permute.xlu1 %1167 }
 0xeed   :  { %v1170_v13 = vunpack.i.h.bf16 %v1168_v12  ;;  %v1169_v50 = vunpack.i.l.bf16 %v1168_v12 }
 0xeef   :  { %v1032_v2 = vsel %vm36_vm4, %v1169_v50, %v1170_v13 }
 0xef0   :  { %v1047_v51 = vsub.f32 1.0, %v1032_v2 }
 0xef2   :  { %v1048_v54 = vmul.f32 %v1047_v51, %v929_v20 }
 0xf58   :  { %v1042_v52 = vpop.permute.xlu0 %1041 }
 0xf59   :  { %v1044_v0 = vmul.f32 %v1042_v52, %v1032_v2 }
 0xf5b   :  { %1124 = vst.msk [vmem:[%s1575_s4 + $0xe] sm:$0x3] %vm22_vm0, %v1044_v0  ;;  %v1049_v55 = vadd.f32 %v1048_v54, %v1044_v0 }
 0xf5d   :  { %1050 = vst.msk [vmem:[#allocation2] sm:$0x3] %vm22_vm0, %v1049_v55 }

// kernel: deepspeech2_forward.8
= control target key start
LH: loop header
LB: loop body
LE: loop exit
PB: predicated region body
PF: predicated region fallthrough
CT: control target
= control target key end

     0   :  { %vm7714_vm0 = vcmask 257024   ;;  %s13603_s1 = inlined_call_operand.vmem [shape: bf16[7424,32], index: 1, kind: input, shape index: {}]   ;;  %s13604_s0 = inlined_call_operand.vmem [shape: bf16[80,7424], index: 0, kind: input, shape index: {}]   ;;  %s13605_s2 = inlined_call_operand.vmem [shape: f32[1,32], index: 2, kind: input, shape index: {}]   ;;  %s13606_s3 = inlined_call_operand.vmem [shape: f32[80,1], index: 3, kind: input, shape index: {}]   ;;  %s13607_s4 = inlined_call_operand.vmem [shape: bf16[80,32], index: 4, kind: output, shape index: {}]  }
   0x1   :  { %v9857_v0 = vld [vmem:[%s13603_s1 + $0x78] sm:$0xff]   ;;  %v9861_v4 = vld [vmem:[%s13603_s1 + $0x70] sm:$0xff]   ;;  %v9865_v8 = vld [vmem:[%s13603_s1 + $0x68] sm:$0xff]  }
   0x2   :  { %v9858_v1 = vld [vmem:[%s13603_s1 + $0xf8] sm:$0xff]   ;;  %8504 = vmatprep.subr.bf16.mxu0 %v9857_v0  ;;  %v9862_v5 = vld [vmem:[%s13603_s1 + $0xf0] sm:$0xff]   ;;  %v9866_v9 = vld [vmem:[%s13603_s1 + $0xe8] sm:$0xff]  }
   0x3   :  { %v9859_v2 = vld [vmem:[%s13603_s1 + $0x38] sm:$0xff]   ;;  %8550 = vmatprep.subr.bf16.mxu1 %v9858_v1  ;;  %v9863_v6 = vld [vmem:[%s13603_s1 + $0x30] sm:$0xff]   ;;  %v9867_v10 = vld [vmem:[%s13603_s1 + $0x28] sm:$0xff]  }
   0x4   :  { %v9860_v3 = vld [vmem:[%s13603_s1 + $0xb8] sm:$0xff]   ;;  %8505 = vmatpush3.bf16.msra.mxu0 %v9859_v2  ;;  %v9864_v7 = vld [vmem:[%s13603_s1 + $0xb0] sm:$0xff]   ;;  %v9868_v11 = vld [vmem:[%s13603_s1 + $0xa8] sm:$0xff]  }
   0x5   :  { %8551 = vmatpush3.bf16.msra.mxu1 %v9860_v3  ;;  %8506 = vmatprep.subr.bf16.mxu0 %v9861_v4  ;;  %v9869_v12 = vld [vmem:[%s13603_s1 + $0x60] sm:$0xff]   ;;  %v9873_v16 = vld [vmem:[%s13603_s1 + $0x58] sm:$0xff]   ;;  %v9877_v20 = vld [vmem:[%s13603_s1 + $0x50] sm:$0xff]  }
   0x6   :  { %8552 = vmatprep.subr.bf16.mxu1 %v9862_v5  ;;  %v9870_v13 = vld [vmem:[%s13603_s1 + $0xe0] sm:$0xff]   ;;  %v9874_v17 = vld [vmem:[%s13603_s1 + $0xd8] sm:$0xff]   ;;  %v9878_v21 = vld [vmem:[%s13603_s1 + $0xd0] sm:$0xff]  }
   0x7   :  { %v9871_v14 = vld [vmem:[%s13603_s1 + $0x20] sm:$0xff]   ;;  %v9875_v18 = vld [vmem:[%s13603_s1 + $0x18] sm:$0xff]   ;;  %v9879_v22 = vld [vmem:[%s13603_s1 + $0x10] sm:$0xff]  }
   0x8   :  { %8507 = vmatpush3.bf16.msra.mxu0 %v9863_v6  ;;  %v9872_v15 = vld [vmem:[%s13603_s1 + $0xa0] sm:$0xff]   ;;  %v9876_v19 = vld [vmem:[%s13603_s1 + $0x98] sm:$0xff]   ;;  %v9880_v23 = vld [vmem:[%s13603_s1 + $0x90] sm:$0xff]  }
   0x9   :  { %8553 = vmatpush3.bf16.msra.mxu1 %v9864_v7  ;;  %8508 = vmatprep.subr.bf16.mxu0 %v9865_v8  ;;  %v9881_v24 = vld [vmem:[%s13603_s1 + $0x48] sm:$0xff]   ;;  %v9885_v28 = vld [vmem:[%s13603_s1 + $0x40] sm:$0xff]   ;;  %v9895_v36 = vld [vmem:[%s13603_s1 + $0x178] sm:$0xff]  }
   0xa   :  { %8554 = vmatprep.subr.bf16.mxu1 %v9866_v9  ;;  %v9882_v25 = vld [vmem:[%s13603_s1 + $0xc8] sm:$0xff]   ;;  %v9886_v29 = vld [vmem:[%s13603_s1 + $0xc0] sm:$0xff]   ;;  %v9896_v37 = vld [vmem:[%s13603_s1 + $0x138] sm:$0xff]  }
   0xb   :  { %v9883_v26 = vld [vmem:[%s13603_s1 + $0x8] sm:$0xff]   ;;  %v9887_v30 = vld [vmem:[%s13603_s1] sm:$0xff]   ;;  %v9897_v38 = vld [vmem:[%s13603_s1 + $0x170] sm:$0xff]  }
   0xc   :  { %8509 = vmatpush3.bf16.msra.mxu0 %v9867_v10  ;;  %v9884_v27 = vld [vmem:[%s13603_s1 + $0x88] sm:$0xff]   ;;  %v9888_v31 = vld [vmem:[%s13603_s1 + $0x80] sm:$0xff]   ;;  %v9898_v39 = vld [vmem:[%s13603_s1 + $0x130] sm:$0xff]  }
   0xd   :  { %8555 = vmatpush3.bf16.msra.mxu1 %v9868_v11  ;;  %8510 = vmatprep.subr.bf16.mxu0 %v9869_v12  ;;  %v9889_v32 = vld [vmem:[%s13604_s0] ss:$232 sps:$4 sm:$0xff]   ;;  %v9891_v33 = vld [vmem:[%s13604_s0 + $0x4] ss:$232 sps:$4 sm:$0xff]   ;;  %v9899_v40 = vld [vmem:[%s13604_s0 + $0x1d4] ss:$232 sps:$4 sm:$0xff]  }
   0xe   :  { %8556 = vmatprep.subr.bf16.mxu1 %v9870_v13  ;;  %v9892_v34 = vld [vmem:[%s13604_s0 + $0x8] ss:$232 sps:$4 sm:$0xff]   ;;  %v9894_v35 = vld [vmem:[%s13604_s0 + $0xc] ss:$232 sps:$4 sm:$0xff]   ;;  %5509 = vmatprep.mubr.bf16.mxu0 %v9891_v33  ;;  %v9901_v41 = vld [vmem:[%s13604_s0 + $0x1dc] ss:$232 sps:$4 sm:$0xff]  }
   0xf   :  { %5582 = vmatprep.mubr.bf16.mxu1 %v9894_v35  ;;  %v9903_v42 = vld [vmem:[%s13604_s0 + $0x1d0] ss:$232 sps:$4 sm:$0xff]   ;;  %v9907_v46 = vld [vmem:[%s13603_s1 + $0x168] sm:$0xff]   ;;  %v9915_v52 = vld [vmem:[%s13603_s1 + $0x160] sm:$0xff]  }
  0x10   :  { %8511 = vmatpush3.bf16.msra.mxu0 %v9871_v14  ;;  %v9904_v43 = vld [vmem:[%s13604_s0 + $0x1d8] ss:$232 sps:$4 sm:$0xff]   ;;  %v9908_v47 = vld [vmem:[%s13603_s1 + $0x128] sm:$0xff]   ;;  %v9909_v48 = vld [vmem:[%s13603_s1 + $0x1f0] sm:$0xff]  }
  0x11   :  { %8557 = vmatpush3.bf16.msra.mxu1 %v9872_v15  ;;  %8512 = vmatprep.subr.bf16.mxu0 %v9873_v16  ;;  %v9905_v44 = vld [vmem:[%s13603_s1 + $0x1f8] sm:$0xff]   ;;  %v9910_v49 = vld [vmem:[%s13603_s1 + $0x1b0] sm:$0xff]   ;;  %v9911_v50 = vld [vmem:[%s13604_s0 + $0x3a4] ss:$232 sps:$4 sm:$0xff]  }
  0x12   :  { %8558 = vmatprep.subr.bf16.mxu1 %v9874_v17  ;;  %v9906_v45 = vld [vmem:[%s13603_s1 + $0x1b8] sm:$0xff]   ;;  %v9913_v51 = vld [vmem:[%s13604_s0 + $0x3ac] ss:$232 sps:$4 sm:$0xff]   ;;  %v9916_v53 = vld [vmem:[%s13604_s0 + $0x3a0] ss:$232 sps:$4 sm:$0xff]  }
  0x13   :  { %v9917_v54 = vld [vmem:[%s13604_s0 + $0x3a8] ss:$232 sps:$4 sm:$0xff]   ;;  %v9918_v55 = vld [vmem:[%s13603_s1 + $0x120] sm:$0xff]   ;;  %v9921_v58 = vld [vmem:[%s13603_s1 + $0x158] sm:$0xff]  }
  0x14   :  { %8513 = vmatpush3.bf16.msra.mxu0 %v9875_v18  ;;  %v9919_v56 = vld [vmem:[%s13603_s1 + $0x1e8] sm:$0xff]   ;;  %v9922_v59 = vld [vmem:[%s13603_s1 + $0x1e0] sm:$0xff]   ;;  %v9923_v60 = vld [vmem:[%s13603_s1 + $0x118] sm:$0xff]  }
  0x15   :  { %8559 = vmatpush3.bf16.msra.mxu1 %v9876_v19  ;;  %8514 = vmatprep.subr.bf16.mxu0 %v9877_v20  ;;  %v9920_v57 = vld [vmem:[%s13603_s1 + $0x1a8] sm:$0xff]   ;;  %v9924_v61 = vld [vmem:[%s13603_s1 + $0x1a0] sm:$0xff]   ;;  %v9925_v62 = vld [vmem:[%s13604_s0 + $0x574] ss:$232 sps:$4 sm:$0xff]  }
  0x16   :  { %8560 = vmatprep.subr.bf16.mxu1 %v9878_v21  ;;  %v9927_v63 = vld [vmem:[%s13604_s0 + $0x57c] ss:$232 sps:$4 sm:$0xff]   ;;  %v9929_v0 = vld [vmem:[%s13604_s0 + $0x570] ss:$232 sps:$4 sm:$0xff]   ;;  %v9937_v8 = vld [vmem:[%s13603_s1 + $0x148] sm:$0xff]  }
  0x17   :  { %v9930_v1 = vld [vmem:[%s13604_s0 + $0x578] ss:$232 sps:$4 sm:$0xff]   ;;  %v9932_v3 = vld [vmem:[%s13603_s1 + $0x150] sm:$0xff]   ;;  %v9938_v9 = vld [vmem:[%s13604_s0 + $0x744] ss:$232 sps:$4 sm:$0xff]  }
  0x18   :  { %8515 = vmatpush3.bf16.msra.mxu0 %v9879_v22  ;;  %v9931_v2 = vld [vmem:[%s13603_s1 + $0x1d8] sm:$0xff]   ;;  %v9934_v5 = vld [vmem:[%s13603_s1 + $0x110] sm:$0xff]   ;;  %v9942_v11 = vld [vmem:[%s13603_s1 + $0x108] sm:$0xff]  }
  0x19   :  { %8561 = vmatpush3.bf16.msra.mxu1 %v9880_v23  ;;  %8516 = vmatprep.subr.bf16.mxu0 %v9881_v24  ;;  %v9933_v4 = vld [vmem:[%s13603_s1 + $0x198] sm:$0xff]   ;;  %v9935_v6 = vld [vmem:[%s13603_s1 + $0x1d0] sm:$0xff]   ;;  %v9943_v12 = vld [vmem:[%s13604_s0 + $0x740] ss:$232 sps:$4 sm:$0xff]  }
  0x1a   :  { %8562 = vmatprep.subr.bf16.mxu1 %v9882_v25  ;;  %v9936_v7 = vld [vmem:[%s13603_s1 + $0x190] sm:$0xff]   ;;  %v9945_v14 = vld [vmem:[%s13603_s1 + $0x1c8] sm:$0xff]   ;;  %v9947_v16 = vld [vmem:[%s13603_s1 + $0x140] sm:$0xff]  }
  0x1b   :  { %v9940_v10 = vld [vmem:[%s13604_s0 + $0x74c] ss:$232 sps:$4 sm:$0xff]   ;;  %v9944_v13 = vld [vmem:[%s13604_s0 + $0x748] ss:$232 sps:$4 sm:$0xff]   ;;  %v9948_v17 = vld [vmem:[%s13603_s1 + $0x100] sm:$0xff]  }
  0x1c   :  { %8517 = vmatpush3.bf16.msra.mxu0 %v9883_v26  ;;  %v9946_v15 = vld [vmem:[%s13603_s1 + $0x188] sm:$0xff]   ;;  %v9949_v18 = vld [vmem:[%s13603_s1 + $0x1c0] sm:$0xff]   ;;  %v9951_v20 = vld [vmem:[%s13604_s0 + $0x10] ss:$232 sps:$4 sm:$0xff]  }
  0x1d   :  { %8563 = vmatpush3.bf16.msra.mxu1 %v9884_v27  ;;  %8518 = vmatprep.subr.bf16.mxu0 %v9885_v28  ;;  %v9950_v19 = vld [vmem:[%s13603_s1 + $0x180] sm:$0xff]   ;;  %v9953_v21 = vld [vmem:[%s13604_s0 + $0x14] ss:$232 sps:$4 sm:$0xff]   ;;  %v9970_v35 = vld [vmem:[%s13603_s1 + $0x228] sm:$0xff]  }
  0x1e   :  { %8564 = vmatprep.subr.bf16.mxu1 %v9886_v29  ;;  %v9954_v22 = vld [vmem:[%s13604_s0 + $0x18] ss:$232 sps:$4 sm:$0xff]   ;;  %v9956_v23 = vld [vmem:[%s13604_s0 + $0x1c] ss:$232 sps:$4 sm:$0xff]   ;;  %v9959_v26 = vld [vmem:[%s13603_s1 + $0x270] sm:$0xff]  }
  0x1f   :  { %v9957_v24 = vld [vmem:[%s13603_s1 + $0x278] sm:$0xff]   ;;  %v9960_v27 = vld [vmem:[%s13603_s1 + $0x230] sm:$0xff]   ;;  %v9961_v28 = vld [vmem:[%s13604_s0 + $0x1e4] ss:$232 sps:$4 sm:$0xff]  }
  0x20   :  { %8519 = vmatpush3.bf16.msra.mxu0 %v9887_v30  ;;  %v9958_v25 = vld [vmem:[%s13603_s1 + $0x238] sm:$0xff]   ;;  %v9963_v29 = vld [vmem:[%s13604_s0 + $0x1ec] ss:$232 sps:$4 sm:$0xff]   ;;  %v9965_v30 = vld [vmem:[%s13604_s0 + $0x1e0] ss:$232 sps:$4 sm:$0xff]  }
  0x21   :  { %8565 = vmatpush3.bf16.msra.mxu1 %v9888_v31  ;;  %8596 = vmatprep.subr.bf16.mxu0 %v9895_v36  ;;  %v9966_v31 = vld [vmem:[%s13604_s0 + $0x1e8] ss:$232 sps:$4 sm:$0xff]   ;;  %v9968_v33 = vld [vmem:[%s13603_s1 + $0x2b8] sm:$0xff]  }
  0x22   :  { %8642 = vmatprep.subr.bf16.mxu1 %v9905_v44  ;;  %v9971_v36 = vld [vmem:[%s13603_s1 + $0x2f0] sm:$0xff]   ;;  %v9981_v44 = vld [vmem:[%s13603_s1 + $0x2e8] sm:$0xff]  }
  0x23   :  { %5510 = vmatmul.mubr.bf16.vlgmr.msra.gmra.mxu0 %v9889_v32  ;;  %v9967_v32 = vld [vmem:[%s13603_s1 + $0x2f8] sm:$0xff]  }
  0x24   :  { %5583 = vmatmul.mubr.bf16.vlgmr.msra.gmra.mxu1 %v9892_v34  ;;  %8597 = vmatpush3.bf16.msra.mxu0 %v9896_v37  ;;  %v9969_v34 = vld [vmem:[%s13603_s1 + $0x268] sm:$0xff]   ;;  %v9972_v37 = vld [vmem:[%s13603_s1 + $0x2b0] sm:$0xff]  }
  0x25   :  { %8598 = vmatprep.subr.bf16.mxu0 %v9897_v38  ;;  %5517 = vmatprep.mubr.bf16.mxu0 %v9899_v40  ;;  %v9973_v38 = vld [vmem:[%s13604_s0 + $0x3b4] ss:$232 sps:$4 sm:$0xff]   ;;  %v9977_v40 = vld [vmem:[%s13603_s1 + $0x260] sm:$0xff]  }
  0x26   :  { %5590 = vmatprep.mubr.bf16.mxu1 %v9901_v41  ;;  %8643 = vmatpush3.bf16.msra.mxu1 %v9906_v45  ;;  %v9978_v41 = vld [vmem:[%s13604_s0 + $0x3b0] ss:$232 sps:$4 sm:$0xff]   ;;  %v9982_v45 = vld [vmem:[%s13603_s1 + $0x2a8] sm:$0xff]  }
  0x27   :  { %8644 = vmatprep.subr.bf16.mxu1 %v9909_v48  ;;  %v9985_v48 = vld [vmem:[%s13603_s1 + $0x218] sm:$0xff]  }
  0x28   :  { %8599 = vmatpush3.bf16.msra.mxu0 %v9898_v39  ;;  %v9975_v39 = vld [vmem:[%s13604_s0 + $0x3bc] ss:$232 sps:$4 sm:$0xff]  }
  0x29   :  { %8600 = vmatprep.subr.bf16.mxu0 %v9907_v46  ;;  %v9983_v46 = vld [vmem:[%s13603_s1 + $0x258] sm:$0xff]  }
  0x2a   :  { %8645 = vmatpush3.bf16.msra.mxu1 %v9910_v49  ;;  %v9986_v49 = vld [vmem:[%s13603_s1 + $0x2a0] sm:$0xff]  }
  0x2b   :  { %5518 = vmatmul.mubr.bf16.gmra.mxu0 %v9903_v42  ;;  %8646 = vmatprep.subr.bf16.mxu1 %v9919_v56  ;;  %v9979_v42 = vld [vmem:[%s13604_s0 + $0x3b8] ss:$232 sps:$4 sm:$0xff]  }
  0x2c   :  { %5591 = vmatmul.mubr.bf16.gmra.mxu1 %v9904_v43  ;;  %8601 = vmatpush3.bf16.msra.mxu0 %v9908_v47  ;;  %v9980_v43 = vld [vmem:[%s13603_s1 + $0x220] sm:$0xff]   ;;  %v9995_v56 = vld [vmem:[%s13603_s1 + $0x298] sm:$0xff]  }
  0x2d   :  { %5525 = vmatprep.mubr.bf16.mxu0 %v9911_v50  ;;  %5598 = vmatprep.mubr.bf16.mxu1 %v9913_v51  ;;  %v9984_v47 = vld [vmem:[%s13603_s1 + $0x2e0] sm:$0xff]   ;;  %v9989_v51 = vld [vmem:[%s13604_s0 + $0x58c] ss:$232 sps:$4 sm:$0xff]  }
  0x2e   :  { %8602 = vmatprep.subr.bf16.mxu0 %v9915_v52  ;;  %8647 = vmatpush3.bf16.msra.mxu1 %v9920_v57  ;;  %v9987_v50 = vld [vmem:[%s13604_s0 + $0x584] ss:$232 sps:$4 sm:$0xff]   ;;  %v9991_v52 = vld [vmem:[%s13604_s0 + $0x580] ss:$232 sps:$4 sm:$0xff]   ;;  %v9996_v57 = vld [vmem:[%s13603_s1 + $0x210] sm:$0xff]  }
  0x2f   :  { %8648 = vmatprep.subr.bf16.mxu1 %v9922_v59  ;;  %v9998_v59 = vld [vmem:[%s13603_s1 + $0x290] sm:$0xff]  }
  0x30   :  { %8603 = vmatpush3.bf16.msra.mxu0 %v9918_v55  ;;  %v9994_v55 = vld [vmem:[%s13603_s1 + $0x250] sm:$0xff]  }
  0x31   :  { %8604 = vmatprep.subr.bf16.mxu0 %v9921_v58  ;;  %v9997_v58 = vld [vmem:[%s13603_s1 + $0x2d0] sm:$0xff]  }
  0x32   :  { %8649 = vmatpush3.bf16.msra.mxu1 %v9924_v61  ;;  %v10000_v61 = vld [vmem:[%s13604_s0 + $0x754] ss:$232 sps:$4 sm:$0xff]  }
  0x33   :  { %5526 = vmatmul.mubr.bf16.gmra.mxu0 %v9916_v53  ;;  %8650 = vmatprep.subr.bf16.mxu1 %v9931_v2  ;;  %v9992_v53 = vld [vmem:[%s13604_s0 + $0x588] ss:$232 sps:$4 sm:$0xff]  }
  0x34   :  { %5599 = vmatmul.mubr.bf16.gmra.mxu1 %v9917_v54  ;;  %8605 = vmatpush3.bf16.msra.mxu0 %v9923_v60  ;;  %v9993_v54 = vld [vmem:[%s13603_s1 + $0x2d8] sm:$0xff]   ;;  %v9999_v60 = vld [vmem:[%s13603_s1 + $0x248] sm:$0xff]  }
  0x35   :  { %5533 = vmatprep.mubr.bf16.mxu0 %v9925_v62  ;;  %5606 = vmatprep.mubr.bf16.mxu1 %v9927_v63  ;;  %v10002_v62 = vld [vmem:[%s13604_s0 + $0x75c] ss:$232 sps:$4 sm:$0xff]   ;;  %v10004_v63 = vld [vmem:[%s13603_s1 + $0x208] sm:$0xff]  }
  0x36   :  { %8606 = vmatprep.subr.bf16.mxu0 %v9932_v3  ;;  %8651 = vmatpush3.bf16.msra.mxu1 %v9933_v4  ;;  %v10007_v2 = vld [vmem:[%s13603_s1 + $0x2c8] sm:$0xff]   ;;  %v10009_v4 = vld [vmem:[%s13603_s1 + $0x240] sm:$0xff]  }
  0x37   :  { %8652 = vmatprep.subr.bf16.mxu1 %v9935_v6  ;;  %v10008_v3 = vld [vmem:[%s13603_s1 + $0x288] sm:$0xff]   ;;  %v10011_v6 = vld [vmem:[%s13603_s1 + $0x2c0] sm:$0xff]  }
  0x38   :  { %8607 = vmatpush3.bf16.msra.mxu0 %v9934_v5  ;;  %v10010_v5 = vld [vmem:[%s13603_s1 + $0x200] sm:$0xff]  }
  0x39   :  { %8608 = vmatprep.subr.bf16.mxu0 %v9937_v8  ;;  %v10013_v8 = vld [vmem:[%s13604_s0 + $0x20] ss:$232 sps:$4 sm:$0xff]  }
  0x3a   :  { %8653 = vmatpush3.bf16.msra.mxu1 %v9936_v7  ;;  %v10012_v7 = vld [vmem:[%s13603_s1 + $0x280] sm:$0xff]  }
  0x3b   :  { %5534 = vmatmul.mubr.bf16.gmra.mxu0 %v9929_v0  ;;  %8654 = vmatprep.subr.bf16.mxu1 %v9945_v14  ;;  %v10005_v0 = vld [vmem:[%s13604_s0 + $0x750] ss:$232 sps:$4 sm:$0xff]  }
  0x3c   :  { %5607 = vmatmul.mubr.bf16.gmra.mxu1 %v9930_v1  ;;  %5541 = vmatprep.mubr.bf16.mxu0 %v9938_v9  ;;  %v10006_v1 = vld [vmem:[%s13604_s0 + $0x758] ss:$232 sps:$4 sm:$0xff]   ;;  %v10015_v9 = vld [vmem:[%s13604_s0 + $0x24] ss:$232 sps:$4 sm:$0xff]   ;;  %v10021_v14 = vld [vmem:[%s13603_s1 + $0x370] sm:$0xff]  }
  0x3d   :  { %5614 = vmatprep.mubr.bf16.mxu1 %v9940_v10  ;;  %8609 = vmatpush3.bf16.msra.mxu0 %v9942_v11  ;;  %v10016_v10 = vld [vmem:[%s13604_s0 + $0x28] ss:$232 sps:$4 sm:$0xff]   ;;  %v10018_v11 = vld [vmem:[%s13604_s0 + $0x2c] ss:$232 sps:$4 sm:$0xff]  }
  0x3e   :  { %8655 = vmatpush3.bf16.msra.mxu1 %v9946_v15  ;;  %8610 = vmatprep.subr.bf16.mxu0 %v9947_v16  ;;  %v10022_v15 = vld [vmem:[%s13603_s1 + $0x330] sm:$0xff]  }
  0x3f   :  { %8656 = vmatprep.subr.bf16.mxu1 %v9949_v18  ;;  %v10023_v16 = vld [vmem:[%s13604_s0 + $0x1f4] ss:$232 sps:$4 sm:$0xff]   ;;  %v10027_v18 = vld [vmem:[%s13604_s0 + $0x1f0] ss:$232 sps:$4 sm:$0xff]  }
  0x41   :  { %8611 = vmatpush3.bf16.msra.mxu0 %v9948_v17  ;;  %v10025_v17 = vld [vmem:[%s13604_s0 + $0x1fc] ss:$232 sps:$4 sm:$0xff]  }
  0x42   :  { %8657 = vmatpush3.bf16.msra.mxu1 %v9950_v19  ;;  %8688 = vmatprep.subr.bf16.mxu0 %v9957_v24  ;;  %v10028_v19 = vld [vmem:[%s13604_s0 + $0x1f8] ss:$232 sps:$4 sm:$0xff]   ;;  %v10033_v24 = vld [vmem:[%s13603_s1 + $0x3f0] sm:$0xff]  }
  0x43   :  { %5542 = vmatmul.mubr.bf16.gmra.mxu0 %v9943_v12  ;;  %8734 = vmatprep.subr.bf16.mxu1 %v9967_v32  ;;  %v10019_v12 = vld [vmem:[%s13603_s1 + $0x378] sm:$0xff]   ;;  %v10043_v32 = vld [vmem:[%s13603_s1 + $0x3e8] sm:$0xff]  }
  0x44   :  { %5615 = vmatmul.mubr.bf16.gmra.mxu1 %v9944_v13  ;;  %5655 = vmatprep.mubr.bf16.mxu0 %v9953_v21  ;;  %v10020_v13 = vld [vmem:[%s13603_s1 + $0x338] sm:$0xff]  }
  0x45   :  { %5728 = vmatprep.mubr.bf16.mxu1 %v9956_v23  ;;  %v10030_v21 = vld [vmem:[%s13603_s1 + $0x3b8] sm:$0xff]   ;;  %v10032_v23 = vld [vmem:[%s13603_s1 + $0x328] sm:$0xff]  }
  0x4b   :  { %5656 = vmatmul.mubr.bf16.vlgmr.msra.gmra.mxu0 %v9951_v20  ;;  %v10029_v20 = vld [vmem:[%s13603_s1 + $0x3f8] sm:$0xff]  }
  0x4c   :  { %5729 = vmatmul.mubr.bf16.vlgmr.msra.gmra.mxu1 %v9954_v22  ;;  %8689 = vmatpush3.bf16.msra.mxu0 %v9958_v25  ;;  %v10031_v22 = vld [vmem:[%s13603_s1 + $0x368] sm:$0xff]   ;;  %v10034_v25 = vld [vmem:[%s13603_s1 + $0x3b0] sm:$0xff]  }
  0x4d   :  { %8690 = vmatprep.subr.bf16.mxu0 %v9959_v26  ;;  %5663 = vmatprep.mubr.bf16.mxu0 %v9961_v28  ;;  %v10035_v26 = vld [vmem:[%s13604_s0 + $0x3c4] ss:$232 sps:$4 sm:$0xff]  }
  0x4e   :  { %5736 = vmatprep.mubr.bf16.mxu1 %v9963_v29  ;;  %8735 = vmatpush3.bf16.msra.mxu1 %v9968_v33  ;;  %v10039_v28 = vld [vmem:[%s13603_s1 + $0x360] sm:$0xff]   ;;  %v10044_v33 = vld [vmem:[%s13603_s1 + $0x3a8] sm:$0xff]  }
  0x4f   :  { %8736 = vmatprep.subr.bf16.mxu1 %v9971_v36  ;;  %v10040_v29 = vld [vmem:[%s13604_s0 + $0x3c0] ss:$232 sps:$4 sm:$0xff]   ;;  %v10047_v36 = vld [vmem:[%s13603_s1 + $0x318] sm:$0xff]  }
  0x50   :  { %8691 = vmatpush3.bf16.msra.mxu0 %v9960_v27  ;;  %v10037_v27 = vld [vmem:[%s13604_s0 + $0x3cc] ss:$232 sps:$4 sm:$0xff]  }
  0x51   :  { %8692 = vmatprep.subr.bf16.mxu0 %v9969_v34  ;;  %v10045_v34 = vld [vmem:[%s13603_s1 + $0x358] sm:$0xff]  }
  0x52   :  { %8737 = vmatpush3.bf16.msra.mxu1 %v9972_v37  ;;  %v10048_v37 = vld [vmem:[%s13603_s1 + $0x3a0] sm:$0xff]  }
  0x53   :  { %5664 = vmatmul.mubr.bf16.gmra.mxu0 %v9965_v30  ;;  %8738 = vmatprep.subr.bf16.mxu1 %v9981_v44  ;;  %v10041_v30 = vld [vmem:[%s13604_s0 + $0x3c8] ss:$232 sps:$4 sm:$0xff]   ;;  %v10057_v44 = vld [vmem:[%s13603_s1 + $0x398] sm:$0xff]  }
  0x54   :  { %5737 = vmatmul.mubr.bf16.gmra.mxu1 %v9966_v31  ;;  %8693 = vmatpush3.bf16.msra.mxu0 %v9970_v35  ;;  %v10042_v31 = vld [vmem:[%s13603_s1 + $0x320] sm:$0xff]  }
  0x55   :  { %5671 = vmatprep.mubr.bf16.mxu0 %v9973_v38  ;;  %5744 = vmatprep.mubr.bf16.mxu1 %v9975_v39  ;;  %v10046_v35 = vld [vmem:[%s13603_s1 + $0x3e0] sm:$0xff]   ;;  %v10049_v38 = vld [vmem:[%s13604_s0 + $0x594] ss:$232 sps:$4 sm:$0xff]  }
  0x56   :  { %8694 = vmatprep.subr.bf16.mxu0 %v9977_v40  ;;  %8739 = vmatpush3.bf16.msra.mxu1 %v9982_v45  ;;  %v10051_v39 = vld [vmem:[%s13604_s0 + $0x59c] ss:$232 sps:$4 sm:$0xff]   ;;  %v10053_v40 = vld [vmem:[%s13604_s0 + $0x590] ss:$232 sps:$4 sm:$0xff]  }
  0x57   :  { %8740 = vmatprep.subr.bf16.mxu1 %v9984_v47  ;;  %v10058_v45 = vld [vmem:[%s13603_s1 + $0x310] sm:$0xff]  }
  0x58   :  { %8695 = vmatpush3.bf16.msra.mxu0 %v9980_v43  ;;  %v10056_v43 = vld [vmem:[%s13603_s1 + $0x350] sm:$0xff]  }
  0x59   :  { %8696 = vmatprep.subr.bf16.mxu0 %v9983_v46  ;;  %v10059_v46 = vld [vmem:[%s13603_s1 + $0x3d0] sm:$0xff]  }
  0x5a   :  { %8741 = vmatpush3.bf16.msra.mxu1 %v9986_v49  ;;  %v10060_v47 = vld [vmem:[%s13603_s1 + $0x390] sm:$0xff]   ;;  %v10062_v49 = vld [vmem:[%s13604_s0 + $0x764] ss:$232 sps:$4 sm:$0xff]  }
  0x5b   :  { %5672 = vmatmul.mubr.bf16.gmra.mxu0 %v9978_v41  ;;  %8742 = vmatprep.subr.bf16.mxu1 %v9993_v54  ;;  %v10054_v41 = vld [vmem:[%s13604_s0 + $0x598] ss:$232 sps:$4 sm:$0xff]   ;;  %v10069_v54 = vld [vmem:[%s13603_s1 + $0x3c8] sm:$0xff]  }
  0x5c   :  { %5745 = vmatmul.mubr.bf16.gmra.mxu1 %v9979_v42  ;;  %8697 = vmatpush3.bf16.msra.mxu0 %v9985_v48  ;;  %v10055_v42 = vld [vmem:[%s13603_s1 + $0x3d8] sm:$0xff]   ;;  %v10061_v48 = vld [vmem:[%s13603_s1 + $0x348] sm:$0xff]  }
  0x5d   :  { %5679 = vmatprep.mubr.bf16.mxu0 %v9987_v50  ;;  %5752 = vmatprep.mubr.bf16.mxu1 %v9989_v51  ;;  %v10064_v50 = vld [vmem:[%s13604_s0 + $0x76c] ss:$232 sps:$4 sm:$0xff]  }
  0x5e   :  { %8698 = vmatprep.subr.bf16.mxu0 %v9994_v55  ;;  %8743 = vmatpush3.bf16.msra.mxu1 %v9995_v56  ;;  %v10066_v51 = vld [vmem:[%s13603_s1 + $0x308] sm:$0xff]   ;;  %v10071_v56 = vld [vmem:[%s13603_s1 + $0x340] sm:$0xff]  }
  0x5f   :  { %8744 = vmatprep.subr.bf16.mxu1 %v9997_v58  ;;  %v10070_v55 = vld [vmem:[%s13603_s1 + $0x388] sm:$0xff]   ;;  %v10073_v58 = vld [vmem:[%s13603_s1 + $0x3c0] sm:$0xff]  }
  0x60   :  { %8699 = vmatpush3.bf16.msra.mxu0 %v9996_v57  ;;  %v10072_v57 = vld [vmem:[%s13603_s1 + $0x300] sm:$0xff]  }
  0x61   :  { %8700 = vmatprep.subr.bf16.mxu0 %v9999_v60  ;;  %v10075_v60 = vld [vmem:[%s13604_s0 + $0x30] ss:$232 sps:$4 sm:$0xff]  }
  0x62   :  { %8745 = vmatpush3.bf16.msra.mxu1 %v9998_v59  ;;  %v10074_v59 = vld [vmem:[%s13603_s1 + $0x380] sm:$0xff]  }
  0x63   :  { %5680 = vmatmul.mubr.bf16.gmra.mxu0 %v9991_v52  ;;  %8746 = vmatprep.subr.bf16.mxu1 %v10007_v2  ;;  %v10067_v52 = vld [vmem:[%s13604_s0 + $0x760] ss:$232 sps:$4 sm:$0xff]   ;;  %v10083_v2 = vld [vmem:[%s13603_s1 + $0x470] sm:$0xff]  }
  0x64   :  { %5753 = vmatmul.mubr.bf16.gmra.mxu1 %v9992_v53  ;;  %5687 = vmatprep.mubr.bf16.mxu0 %v10000_v61  ;;  %v10068_v53 = vld [vmem:[%s13604_s0 + $0x768] ss:$232 sps:$4 sm:$0xff]   ;;  %v10077_v61 = vld [vmem:[%s13604_s0 + $0x34] ss:$232 sps:$4 sm:$0xff]  }
  0x65   :  { %5760 = vmatprep.mubr.bf16.mxu1 %v10002_v62  ;;  %8701 = vmatpush3.bf16.msra.mxu0 %v10004_v63  ;;  %v10078_v62 = vld [vmem:[%s13604_s0 + $0x38] ss:$232 sps:$4 sm:$0xff]   ;;  %v10080_v63 = vld [vmem:[%s13604_s0 + $0x3c] ss:$232 sps:$4 sm:$0xff]  }
  0x66   :  { %8747 = vmatpush3.bf16.msra.mxu1 %v10008_v3  ;;  %8702 = vmatprep.subr.bf16.mxu0 %v10009_v4  ;;  %v10084_v3 = vld [vmem:[%s13603_s1 + $0x430] sm:$0xff]   ;;  %v10085_v4 = vld [vmem:[%s13604_s0 + $0x204] ss:$232 sps:$4 sm:$0xff]  }
  0x67   :  { %8748 = vmatprep.subr.bf16.mxu1 %v10011_v6  ;;  %v10089_v6 = vld [vmem:[%s13604_s0 + $0x200] ss:$232 sps:$4 sm:$0xff]  }
  0x69   :  { %8703 = vmatpush3.bf16.msra.mxu0 %v10010_v5  ;;  %v10087_v5 = vld [vmem:[%s13604_s0 + $0x20c] ss:$232 sps:$4 sm:$0xff]  }
  0x6a   :  { %8749 = vmatpush3.bf16.msra.mxu1 %v10012_v7  ;;  %8780 = vmatprep.subr.bf16.mxu0 %v10019_v12  ;;  %v10090_v7 = vld [vmem:[%s13604_s0 + $0x208] ss:$232 sps:$4 sm:$0xff]  }
  0x6b   :  { %5688 = vmatmul.mubr.bf16.gmra.mxu0 %v10005_v0  ;;  %8826 = vmatprep.subr.bf16.mxu1 %v10029_v20  ;;  %v10081_v0 = vld [vmem:[%s13603_s1 + $0x478] sm:$0xff]   ;;  %v10095_v12 = vld [vmem:[%s13603_s1 + $0x4f0] sm:$0xff]   ;;  %v10105_v20 = vld [vmem:[%s13603_s1 + $0x4e8] sm:$0xff]  }
  0x6c   :  { %5761 = vmatmul.mubr.bf16.gmra.mxu1 %v10006_v1  ;;  %5801 = vmatprep.mubr.bf16.mxu0 %v10015_v9  ;;  %v10082_v1 = vld [vmem:[%s13603_s1 + $0x438] sm:$0xff]  }
  0x6d   :  { %5874 = vmatprep.mubr.bf16.mxu1 %v10018_v11  ;;  %v10092_v9 = vld [vmem:[%s13603_s1 + $0x4b8] sm:$0xff]   ;;  %v10094_v11 = vld [vmem:[%s13603_s1 + $0x428] sm:$0xff]  }
  0x73   :  { %5802 = vmatmul.mubr.bf16.vlgmr.msra.gmra.mxu0 %v10013_v8  ;;  %v10091_v8 = vld [vmem:[%s13603_s1 + $0x4f8] sm:$0xff]  }
  0x74   :  { %5875 = vmatmul.mubr.bf16.vlgmr.msra.gmra.mxu1 %v10016_v10  ;;  %8781 = vmatpush3.bf16.msra.mxu0 %v10020_v13  ;;  %v10093_v10 = vld [vmem:[%s13603_s1 + $0x468] sm:$0xff]   ;;  %v10096_v13 = vld [vmem:[%s13603_s1 + $0x4b0] sm:$0xff]  }
  0x75   :  { %8782 = vmatprep.subr.bf16.mxu0 %v10021_v14  ;;  %5809 = vmatprep.mubr.bf16.mxu0 %v10023_v16  ;;  %v10097_v14 = vld [vmem:[%s13604_s0 + $0x3d4] ss:$232 sps:$4 sm:$0xff]   ;;  %v10101_v16 = vld [vmem:[%s13603_s1 + $0x460] sm:$0xff]  }
  0x76   :  { %5882 = vmatprep.mubr.bf16.mxu1 %v10025_v17  ;;  %8827 = vmatpush3.bf16.msra.mxu1 %v10030_v21  ;;  %v10102_v17 = vld [vmem:[%s13604_s0 + $0x3d0] ss:$232 sps:$4 sm:$0xff]   ;;  %v10106_v21 = vld [vmem:[%s13603_s1 + $0x4a8] sm:$0xff]  }
  0x77   :  { %8828 = vmatprep.subr.bf16.mxu1 %v10033_v24  ;;  %v10109_v24 = vld [vmem:[%s13603_s1 + $0x418] sm:$0xff]  }
  0x78   :  { %8783 = vmatpush3.bf16.msra.mxu0 %v10022_v15  ;;  %v10099_v15 = vld [vmem:[%s13604_s0 + $0x3dc] ss:$232 sps:$4 sm:$0xff]  }
  0x79   :  { %8784 = vmatprep.subr.bf16.mxu0 %v10031_v22  ;;  %v10107_v22 = vld [vmem:[%s13603_s1 + $0x458] sm:$0xff]  }
  0x7a   :  { %8829 = vmatpush3.bf16.msra.mxu1 %v10034_v25  ;;  %v10110_v25 = vld [vmem:[%s13603_s1 + $0x4a0] sm:$0xff]  }
  0x7b   :  { %5810 = vmatmul.mubr.bf16.gmra.mxu0 %v10027_v18  ;;  %8830 = vmatprep.subr.bf16.mxu1 %v10043_v32  ;;  %v10103_v18 = vld [vmem:[%s13604_s0 + $0x3d8] ss:$232 sps:$4 sm:$0xff]  }
  0x7c   :  { %5883 = vmatmul.mubr.bf16.gmra.mxu1 %v10028_v19  ;;  %8785 = vmatpush3.bf16.msra.mxu0 %v10032_v23  ;;  %v10104_v19 = vld [vmem:[%s13603_s1 + $0x420] sm:$0xff]   ;;  %v10119_v32 = vld [vmem:[%s13603_s1 + $0x498] sm:$0xff]  }
  0x7d   :  { %5817 = vmatprep.mubr.bf16.mxu0 %v10035_v26  ;;  %5890 = vmatprep.mubr.bf16.mxu1 %v10037_v27  ;;  %v10108_v23 = vld [vmem:[%s13603_s1 + $0x4e0] sm:$0xff]   ;;  %v10113_v27 = vld [vmem:[%s13604_s0 + $0x5ac] ss:$232 sps:$4 sm:$0xff]  }
  0x7e   :  { %8786 = vmatprep.subr.bf16.mxu0 %v10039_v28  ;;  %8831 = vmatpush3.bf16.msra.mxu1 %v10044_v33  ;;  %v10111_v26 = vld [vmem:[%s13604_s0 + $0x5a4] ss:$232 sps:$4 sm:$0xff]   ;;  %v10115_v28 = vld [vmem:[%s13604_s0 + $0x5a0] ss:$232 sps:$4 sm:$0xff]   ;;  %v10120_v33 = vld [vmem:[%s13603_s1 + $0x410] sm:$0xff]  }
  0x7f   :  { %8832 = vmatprep.subr.bf16.mxu1 %v10046_v35  ;;  %v10122_v35 = vld [vmem:[%s13603_s1 + $0x490] sm:$0xff]  }
  0x80   :  { %8787 = vmatpush3.bf16.msra.mxu0 %v10042_v31  ;;  %v10118_v31 = vld [vmem:[%s13603_s1 + $0x450] sm:$0xff]  }
  0x81   :  { %8788 = vmatprep.subr.bf16.mxu0 %v10045_v34  ;;  %v10121_v34 = vld [vmem:[%s13603_s1 + $0x4d0] sm:$0xff]  }
  0x82   :  { %8833 = vmatpush3.bf16.msra.mxu1 %v10048_v37  ;;  %v10124_v37 = vld [vmem:[%s13604_s0 + $0x774] ss:$232 sps:$4 sm:$0xff]  }
  0x83   :  { %5818 = vmatmul.mubr.bf16.gmra.mxu0 %v10040_v29  ;;  %8834 = vmatprep.subr.bf16.mxu1 %v10055_v42  ;;  %v10116_v29 = vld [vmem:[%s13604_s0 + $0x5a8] ss:$232 sps:$4 sm:$0xff]  }
  0x84   :  { %5891 = vmatmul.mubr.bf16.gmra.mxu1 %v10041_v30  ;;  %8789 = vmatpush3.bf16.msra.mxu0 %v10047_v36  ;;  %v10117_v30 = vld [vmem:[%s13603_s1 + $0x4d8] sm:$0xff]   ;;  %v10123_v36 = vld [vmem:[%s13603_s1 + $0x448] sm:$0xff]  }
  0x85   :  { %5825 = vmatprep.mubr.bf16.mxu0 %v10049_v38  ;;  %5898 = vmatprep.mubr.bf16.mxu1 %v10051_v39  ;;  %v10126_v38 = vld [vmem:[%s13604_s0 + $0x77c] ss:$232 sps:$4 sm:$0xff]   ;;  %v10128_v39 = vld [vmem:[%s13603_s1 + $0x408] sm:$0xff]  }
  0x86   :  { %8790 = vmatprep.subr.bf16.mxu0 %v10056_v43  ;;  %8835 = vmatpush3.bf16.msra.mxu1 %v10057_v44  ;;  %v10131_v42 = vld [vmem:[%s13603_s1 + $0x4c8] sm:$0xff]   ;;  %v10133_v44 = vld [vmem:[%s13603_s1 + $0x440] sm:$0xff]  }
  0x87   :  { %8836 = vmatprep.subr.bf16.mxu1 %v10059_v46  ;;  %v10132_v43 = vld [vmem:[%s13603_s1 + $0x488] sm:$0xff]   ;;  %v10135_v46 = vld [vmem:[%s13603_s1 + $0x4c0] sm:$0xff]  }
  0x88   :  { %8791 = vmatpush3.bf16.msra.mxu0 %v10058_v45  ;;  %v10134_v45 = vld [vmem:[%s13603_s1 + $0x400] sm:$0xff]  }
  0x89   :  { %8792 = vmatprep.subr.bf16.mxu0 %v10061_v48  ;;  %v10137_v48 = vld [vmem:[%s13604_s0 + $0x40] ss:$232 sps:$4 sm:$0xff]  }
  0x8a   :  { %8837 = vmatpush3.bf16.msra.mxu1 %v10060_v47  ;;  %v10136_v47 = vld [vmem:[%s13603_s1 + $0x480] sm:$0xff]  }
  0x8b   :  { %5826 = vmatmul.mubr.bf16.gmra.mxu0 %v10053_v40  ;;  %8838 = vmatprep.subr.bf16.mxu1 %v10069_v54  ;;  %v10129_v40 = vld [vmem:[%s13604_s0 + $0x770] ss:$232 sps:$4 sm:$0xff]  }
  0x8c   :  { %5899 = vmatmul.mubr.bf16.gmra.mxu1 %v10054_v41  ;;  %5833 = vmatprep.mubr.bf16.mxu0 %v10062_v49  ;;  %v10130_v41 = vld [vmem:[%s13604_s0 + $0x778] ss:$232 sps:$4 sm:$0xff]   ;;  %v10139_v49 = vld [vmem:[%s13604_s0 + $0x44] ss:$232 sps:$4 sm:$0xff]   ;;  %v10145_v54 = vld [vmem:[%s13603_s1 + $0x570] sm:$0xff]  }
  0x8d   :  { %5906 = vmatprep.mubr.bf16.mxu1 %v10064_v50  ;;  %8793 = vmatpush3.bf16.msra.mxu0 %v10066_v51  ;;  %v10140_v50 = vld [vmem:[%s13604_s0 + $0x48] ss:$232 sps:$4 sm:$0xff]   ;;  %v10142_v51 = vld [vmem:[%s13604_s0 + $0x4c] ss:$232 sps:$4 sm:$0xff]  }
  0x8e   :  { %8839 = vmatpush3.bf16.msra.mxu1 %v10070_v55  ;;  %8794 = vmatprep.subr.bf16.mxu0 %v10071_v56  ;;  %v10146_v55 = vld [vmem:[%s13603_s1 + $0x530] sm:$0xff]  }
  0x8f   :  { %8840 = vmatprep.subr.bf16.mxu1 %v10073_v58  ;;  %v10147_v56 = vld [vmem:[%s13604_s0 + $0x214] ss:$232 sps:$4 sm:$0xff]   ;;  %v10151_v58 = vld [vmem:[%s13604_s0 + $0x210] ss:$232 sps:$4 sm:$0xff]  }
  0x91   :  { %8795 = vmatpush3.bf16.msra.mxu0 %v10072_v57  ;;  %v10149_v57 = vld [vmem:[%s13604_s0 + $0x21c] ss:$232 sps:$4 sm:$0xff]  }
  0x92   :  { %8841 = vmatpush3.bf16.msra.mxu1 %v10074_v59  ;;  %8872 = vmatprep.subr.bf16.mxu0 %v10081_v0  ;;  %v10152_v59 = vld [vmem:[%s13604_s0 + $0x218] ss:$232 sps:$4 sm:$0xff]   ;;  %v10157_v0 = vld [vmem:[%s13603_s1 + $0x5f0] sm:$0xff]  }
  0x93   :  { %5834 = vmatmul.mubr.bf16.gmra.mxu0 %v10067_v52  ;;  %8918 = vmatprep.subr.bf16.mxu1 %v10091_v8  ;;  %v10143_v52 = vld [vmem:[%s13603_s1 + $0x578] sm:$0xff]   ;;  %v10164_v8 = vld [vmem:[%s13604_s0 + $0x3e0] ss:$232 sps:$4 sm:$0xff]  }
  0x94   :  { %5907 = vmatmul.mubr.bf16.gmra.mxu1 %v10068_v53  ;;  %5947 = vmatprep.mubr.bf16.mxu0 %v10077_v61  ;;  %v10144_v53 = vld [vmem:[%s13603_s1 + $0x538] sm:$0xff]  }
  0x95   :  { %6020 = vmatprep.mubr.bf16.mxu1 %v10080_v63  ;;  %v10154_v61 = vld [vmem:[%s13603_s1 + $0x5b8] sm:$0xff]   ;;  %v10156_v63 = vld [vmem:[%s13603_s1 + $0x528] sm:$0xff]  }
  0x9b   :  { %5948 = vmatmul.mubr.bf16.vlgmr.msra.gmra.mxu0 %v10075_v60  ;;  %v10153_v60 = vld [vmem:[%s13603_s1 + $0x5f8] sm:$0xff]  }
  0x9c   :  { %6021 = vmatmul.mubr.bf16.vlgmr.msra.gmra.mxu1 %v10078_v62  ;;  %8873 = vmatpush3.bf16.msra.mxu0 %v10082_v1  ;;  %v10155_v62 = vld [vmem:[%s13603_s1 + $0x568] sm:$0xff]   ;;  %v10158_v1 = vld [vmem:[%s13603_s1 + $0x5b0] sm:$0xff]  }
  0x9d   :  { %8874 = vmatprep.subr.bf16.mxu0 %v10083_v2  ;;  %5955 = vmatprep.mubr.bf16.mxu0 %v10085_v4 }
  0x9e   :  { %6028 = vmatprep.mubr.bf16.mxu1 %v10087_v5  ;;  %8919 = vmatpush3.bf16.msra.mxu1 %v10092_v9  ;;  %v10161_v5 = vld [vmem:[%s13604_s0 + $0x3ec] ss:$232 sps:$4 sm:$0xff]  }
  0x9f   :  { %8920 = vmatprep.subr.bf16.mxu1 %v10095_v12 }
  0xa0   :  { %8875 = vmatpush3.bf16.msra.mxu0 %v10084_v3  ;;  %v10159_v3 = vld [vmem:[%s13604_s0 + $0x3e4] ss:$232 sps:$4 sm:$0xff]  }
  0xa1   :  { %8876 = vmatprep.subr.bf16.mxu0 %v10093_v10 }
  0xa2   :  { %8921 = vmatpush3.bf16.msra.mxu1 %v10096_v13 }
  0xa3   :  { %5956 = vmatmul.mubr.bf16.gmra.mxu0 %v10089_v6  ;;  %8922 = vmatprep.subr.bf16.mxu1 %v10105_v20 }
  0xa4   :  { %6029 = vmatmul.mubr.bf16.gmra.mxu1 %v10090_v7  ;;  %8877 = vmatpush3.bf16.msra.mxu0 %v10094_v11  ;;  %v10163_v7 = vld [vmem:[%s13603_s1 + $0x560] sm:$0xff]   ;;  %v10165_v11 = vld [vmem:[%s13604_s0 + $0x3e8] ss:$232 sps:$4 sm:$0xff]  }
  0xa5   :  { %5963 = vmatprep.mubr.bf16.mxu0 %v10097_v14  ;;  %6036 = vmatprep.mubr.bf16.mxu1 %v10099_v15  ;;  %v10166_v14 = vld [vmem:[%s13603_s1 + $0x520] sm:$0xff]  }
  0xa6   :  { %8878 = vmatprep.subr.bf16.mxu0 %v10101_v16  ;;  %8923 = vmatpush3.bf16.msra.mxu1 %v10106_v21  ;;  %v10167_v16 = vld [vmem:[%s13603_s1 + $0x5e8] sm:$0xff]   ;;  %v10169_v21 = vld [vmem:[%s13603_s1 + $0x558] sm:$0xff]  }
  0xa7   :  { %8924 = vmatprep.subr.bf16.mxu1 %v10108_v23 }
  0xa8   :  { %8879 = vmatpush3.bf16.msra.mxu0 %v10104_v19 }
  0xa9   :  { %8880 = vmatprep.subr.bf16.mxu0 %v10107_v22 }
  0xaa   :  { %8925 = vmatpush3.bf16.msra.mxu1 %v10110_v25 }
  0xab   :  { %5964 = vmatmul.mubr.bf16.gmra.mxu0 %v10102_v17  ;;  %8926 = vmatprep.subr.bf16.mxu1 %v10117_v30 }
  0xac   :  { %6037 = vmatmul.mubr.bf16.gmra.mxu1 %v10103_v18  ;;  %8881 = vmatpush3.bf16.msra.mxu0 %v10109_v24  ;;  %v10168_v18 = vld [vmem:[%s13603_s1 + $0x5a8] sm:$0xff]   ;;  %v10170_v24 = vld [vmem:[%s13603_s1 + $0x5e0] sm:$0xff]  }
  0xad   :  { %5971 = vmatprep.mubr.bf16.mxu0 %v10111_v26  ;;  %6044 = vmatprep.mubr.bf16.mxu1 %v10113_v27  ;;  %v10171_v26 = vld [vmem:[%s13603_s1 + $0x518] sm:$0xff]  }
  0xae   :  { %8882 = vmatprep.subr.bf16.mxu0 %v10118_v31  ;;  %8927 = vmatpush3.bf16.msra.mxu1 %v10119_v32  ;;  %v10173_v31 = vld [vmem:[%s13604_s0 + $0x5b4] ss:$232 sps:$4 sm:$0xff]  }
  0xaf   :  { %8928 = vmatprep.subr.bf16.mxu1 %v10121_v34  ;;  %v10175_v34 = vld [vmem:[%s13604_s0 + $0x5bc] ss:$232 sps:$4 sm:$0xff]  }
  0xb0   :  { %8883 = vmatpush3.bf16.msra.mxu0 %v10120_v33 }
  0xb1   :  { %8884 = vmatprep.subr.bf16.mxu0 %v10123_v36  ;;  %v10178_v36 = vld [vmem:[%s13604_s0 + $0x5b8] ss:$232 sps:$4 sm:$0xff]  }
  0xb2   :  { %8929 = vmatpush3.bf16.msra.mxu1 %v10122_v35  ;;  %v10177_v35 = vld [vmem:[%s13604_s0 + $0x5b0] ss:$232 sps:$4 sm:$0xff]  }
  0xb3   :  { %5972 = vmatmul.mubr.bf16.gmra.mxu0 %v10115_v28  ;;  %8930 = vmatprep.subr.bf16.mxu1 %v10131_v42  ;;  %v10172_v28 = vld [vmem:[%s13603_s1 + $0x5a0] sm:$0xff]  }
  0xb4   :  { %6045 = vmatmul.mubr.bf16.gmra.mxu1 %v10116_v29  ;;  %5979 = vmatprep.mubr.bf16.mxu0 %v10124_v37 }
  0xb5   :  { %6052 = vmatprep.mubr.bf16.mxu1 %v10126_v38  ;;  %8885 = vmatpush3.bf16.msra.mxu0 %v10128_v39  ;;  %v10179_v38 = vld [vmem:[%s13603_s1 + $0x5d8] sm:$0xff]  }
  0xb6   :  { %8931 = vmatpush3.bf16.msra.mxu1 %v10132_v43  ;;  %8886 = vmatprep.subr.bf16.mxu0 %v10133_v44  ;;  %v10181_v43 = vld [vmem:[%s13603_s1 + $0x598] sm:$0xff]  }
  0xb7   :  { %8932 = vmatprep.subr.bf16.mxu1 %v10135_v46  ;;  %v10182_v46 = vld [vmem:[%s13603_s1 + $0x510] sm:$0xff]  }
  0xb9   :  { %8887 = vmatpush3.bf16.msra.mxu0 %v10134_v45 }
  0xba   :  { %8933 = vmatpush3.bf16.msra.mxu1 %v10136_v47  ;;  %8964 = vmatprep.subr.bf16.mxu0 %v10143_v52 }
  0xbb   :  { %5980 = vmatmul.mubr.bf16.gmra.mxu0 %v10129_v40  ;;  %9010 = vmatprep.subr.bf16.mxu1 %v10153_v60  ;;  %v10180_v40 = vld [vmem:[%s13603_s1 + $0x550] sm:$0xff]   ;;  %v10190_v60 = vld [vmem:[%s13603_s1 + $0x508] sm:$0xff]  }
  0xbc   :  { %6053 = vmatmul.mubr.bf16.gmra.mxu1 %v10130_v41  ;;  %6093 = vmatprep.mubr.bf16.mxu0 %v10139_v49 }
  0xbd   :  { %6166 = vmatprep.mubr.bf16.mxu1 %v10142_v51 }
  0xc3   :  { %6094 = vmatmul.mubr.bf16.vlgmr.msra.gmra.mxu0 %v10137_v48  ;;  %v10183_v48 = vld [vmem:[%s13603_s1 + $0x5d0] sm:$0xff]  }
  0xc4   :  { %6167 = vmatmul.mubr.bf16.vlgmr.msra.gmra.mxu1 %v10140_v50  ;;  %8965 = vmatpush3.bf16.msra.mxu0 %v10144_v53  ;;  %v10184_v50 = vld [vmem:[%s13603_s1 + $0x590] sm:$0xff]   ;;  %v10185_v53 = vld [vmem:[%s13603_s1 + $0x548] sm:$0xff]  }
  0xc5   :  { %8966 = vmatprep.subr.bf16.mxu0 %v10145_v54  ;;  %6101 = vmatprep.mubr.bf16.mxu0 %v10147_v56  ;;  %v10186_v56 = vld [vmem:[%s13604_s0 + $0x784] ss:$232 sps:$4 sm:$0xff]  }
  0xc6   :  { %6174 = vmatprep.mubr.bf16.mxu1 %v10149_v57  ;;  %9011 = vmatpush3.bf16.msra.mxu1 %v10154_v61 }
  0xc7   :  { %9012 = vmatprep.subr.bf16.mxu1 %v10157_v0  ;;  %v10192_v0 = vld [vmem:[%s13604_s0 + $0x788] ss:$232 sps:$4 sm:$0xff]  }
  0xc8   :  { %8967 = vmatpush3.bf16.msra.mxu0 %v10146_v55 }
  0xc9   :  { %8968 = vmatprep.subr.bf16.mxu0 %v10155_v62 }
  0xca   :  { %9013 = vmatpush3.bf16.msra.mxu1 %v10158_v1 }
  0xcb   :  { %6102 = vmatmul.mubr.bf16.gmra.mxu0 %v10151_v58  ;;  %9014 = vmatprep.subr.bf16.mxu1 %v10167_v16  ;;  %v10188_v58 = vld [vmem:[%s13604_s0 + $0x78c] ss:$232 sps:$4 sm:$0xff]  }
  0xcc   :  { %6175 = vmatmul.mubr.bf16.gmra.mxu1 %v10152_v59  ;;  %8969 = vmatpush3.bf16.msra.mxu0 %v10156_v63  ;;  %v10191_v63 = vld [vmem:[%s13604_s0 + $0x780] ss:$232 sps:$4 sm:$0xff]  }
  0xcd   :  { %6109 = vmatprep.mubr.bf16.mxu0 %v10159_v3  ;;  %6182 = vmatprep.mubr.bf16.mxu1 %v10161_v5  ;;  %v10194_v3 = vld [vmem:[%s13603_s1 + $0x588] sm:$0xff]  }
  0xce   :  { %8970 = vmatprep.subr.bf16.mxu0 %v10163_v7  ;;  %9015 = vmatpush3.bf16.msra.mxu1 %v10168_v18 }
  0xcf   :  { %9016 = vmatprep.subr.bf16.mxu1 %v10170_v24  ;;  %v10198_v24 = vld [vmem:[%s13603_s1 + $0x580] sm:$0xff]  }
  0xd0   :  { %8971 = vmatpush3.bf16.msra.mxu0 %v10166_v14  ;;  %v10196_v14 = vld [vmem:[%s13603_s1 + $0x500] sm:$0xff]  }
  0xd1   :  { %8972 = vmatprep.subr.bf16.mxu0 %v10169_v21 }
  0xd2   :  { %9017 = vmatpush3.bf16.msra.mxu1 %v10172_v28 }
  0xd3   :  { %6110 = vmatmul.mubr.bf16.gmra.mxu0 %v10164_v8  ;;  %9018 = vmatprep.subr.bf16.mxu1 %v10179_v38  ;;  %v10195_v8 = vld [vmem:[%s13603_s1 + $0x540] sm:$0xff]   ;;  %v10205_v38 = vld [vmem:[%s13603_s1 + $0x678] sm:$0xff]  }
  0xd4   :  { %6183 = vmatmul.mubr.bf16.gmra.mxu1 %v10165_v11  ;;  %8973 = vmatpush3.bf16.msra.mxu0 %v10171_v26 }
  0xd5   :  { %6117 = vmatprep.mubr.bf16.mxu0 %v10173_v31  ;;  %6190 = vmatprep.mubr.bf16.mxu1 %v10175_v34  ;;  %v10202_v34 = vld [vmem:[%s13604_s0 + $0x58] ss:$232 sps:$4 sm:$0xff]  }
  0xd6   :  { %8974 = vmatprep.subr.bf16.mxu0 %v10180_v40  ;;  %9019 = vmatpush3.bf16.msra.mxu1 %v10181_v43  ;;  %v10206_v40 = vld [vmem:[%s13603_s1 + $0x638] sm:$0xff]   ;;  %v10208_v43 = vld [vmem:[%s13603_s1 + $0x630] sm:$0xff]  }
  0xd7   :  { %9020 = vmatprep.subr.bf16.mxu1 %v10183_v48  ;;  %v10211_v48 = vld [vmem:[%s13604_s0 + $0x22c] ss:$232 sps:$4 sm:$0xff]  }
  0xd8   :  { %8975 = vmatpush3.bf16.msra.mxu0 %v10182_v46 }
  0xd9   :  { %8976 = vmatprep.subr.bf16.mxu0 %v10185_v53 }
  0xda   :  { %9021 = vmatpush3.bf16.msra.mxu1 %v10184_v50 }
  0xdb   :  { %6118 = vmatmul.mubr.bf16.gmra.mxu0 %v10177_v35  ;;  %v10204_v35 = vld [vmem:[%s13604_s0 + $0x5c] ss:$232 sps:$4 sm:$0xff]  }
  0xdc   :  { %6191 = vmatmul.mubr.bf16.gmra.mxu1 %v10178_v36  ;;  %6125 = vmatprep.mubr.bf16.mxu0 %v10186_v56 }
  0xdd   :  { %6198 = vmatprep.mubr.bf16.mxu1 %v10188_v58  ;;  %8977 = vmatpush3.bf16.msra.mxu0 %v10190_v60  ;;  %v10216_v58 = vld [vmem:[%s13603_s1 + $0x6b8] sm:$0xff]   ;;  %v10217_v60 = vld [vmem:[%s13603_s1 + $0x668] sm:$0xff]  }
  0xde   :  { %8978 = vmatprep.subr.bf16.mxu0 %v10195_v8 }
  0xe1   :  { %8979 = vmatpush3.bf16.msra.mxu0 %v10196_v14 }
  0xe2   :  { %9056 = vmatprep.subr.bf16.mxu0 %v10205_v38 }
  0xe3   :  { %v8520_v2 = vpop.f32.mrf.mxu0  ;;  %6126 = vmatmul.mubr.bf16.gmra.mxu0 %v10191_v63  ;;  %v10218_v63 = vld [vmem:[%s13603_s1 + $0x628] sm:$0xff]  }
  0xe4   :  { %v8566_v4 = vpop.f32.mrf.mxu1  ;;  %6199 = vmatmul.mubr.bf16.gmra.mxu1 %v10192_v0 }
  0xe5   :  { %v8521_v6 = vpop.f32.mrf.mxu0  ;;  %6312 = vmatprep.mubr.bf16.mxu1 %v10204_v35 }
  0xe6   :  { %v11568_v9 = vadd.f32 %v8521_v6, %v8520_v2  ;;  %v8567_v10 = vpop.f32.mrf.mxu1  ;;  %v10193_v2 = vld [vmem:[%s13603_s1 + $0x5c8] sm:$0xff]  }
  0xe7   :  { %v11573_v12 = vadd.f32 %v8567_v10, %v8566_v4  ;;  %v8523_v13 = vpop.f32.mrf.mxu0  ;;  %v11661_v4 = vld [vmem:[%s13605_s2] ss:$0 sm:$0xff]  ;;  %9022 = vmatprep.subr.bf16.mxu1 %v10193_v2 }
  0xe8   :  { %v8569_v15 = vpop.f32.mrf.mxu1  ;;  %v5512_v7 = vadd.f32 %v11568_v9, %v11661_v4  ;;  %9023 = vmatpush3.bf16.msra.mxu1 %v10194_v3  ;;  %v10219_v3 = vld [vmem:[%s13603_s1 + $0x6f0] sm:$0xff]  }
  0xe9   :  { %v8524_v17 = vpop.f32.mrf.mxu0 }
  0xea   :  { %v11584_v19 = vadd.f32 %v8524_v17, %v8523_v13  ;;  %v8570_v20 = vpop.f32.mrf.mxu1  ;;  %v11679_v18 = vadd.f32 %v11573_v12, %v5512_v7 }
  0xeb   :  { %v11589_v22 = vadd.f32 %v8570_v20, %v8569_v15  ;;  %v8526_v23 = vpop.f32.mrf.mxu0 }
  0xec   :  { %v8572_v25 = vpop.f32.mrf.mxu1  ;;  %v5515_v10 = vadd.f32 %v11584_v19, %v11661_v4  ;;  %v10197_v19 = vld [vmem:[%s13603_s1 + $0x5c0] sm:$0xff]  }
  0xed   :  { %v8527_v27 = vpop.f32.mrf.mxu0  ;;  %9024 = vmatprep.subr.bf16.mxu1 %v10197_v19 }
  0xee   :  { %v11600_v29 = vadd.f32 %v8527_v27, %v8526_v23  ;;  %v8573_v30 = vpop.f32.mrf.mxu1  ;;  %v11685_v20 = vadd.f32 %v11589_v22, %v5515_v10  ;;  %v10199_v22 = vld [vmem:[%s13604_s0 + $0x50] ss:$232 sps:$4 sm:$0xff]   ;;  %9025 = vmatpush3.bf16.msra.mxu1 %v10198_v24  ;;  %v10221_v10 = vld [vmem:[%s13604_s0 + $0x3f4] ss:$232 sps:$4 sm:$0xff]  }
  0xef   :  { %v11605_v32 = vadd.f32 %v8573_v30, %v8572_v25  ;;  %v8529_v33 = vpop.f32.mrf.mxu0  ;;  %v10201_v30 = vld [vmem:[%s13604_s0 + $0x54] ss:$232 sps:$4 sm:$0xff]  }
  0xf0   :  { %v8575_v37 = vpop.f32.mrf.mxu1  ;;  %v5520_v11 = vadd.f32 %v11600_v29, %v11661_v4  ;;  %6239 = vmatprep.mubr.bf16.mxu0 %v10201_v30  ;;  %v10230_v30 = vld [vmem:[%s13603_s1 + $0x6a8] sm:$0xff]  }
  0xf1   :  { %v8530_v39 = vpop.f32.mrf.mxu0  ;;  %6240 = vmatmul.mubr.bf16.vlgmr.msra.gmra.mxu0 %v10199_v22  ;;  %6313 = vmatmul.mubr.bf16.vlgmr.msra.gmra.mxu1 %v10202_v34 }
  0xf2   :  { %v8531_v41 = vadd.f32 %v8530_v39, %v8529_v33  ;;  %v8576_v42 = vpop.f32.mrf.mxu1  ;;  %v11688_v21 = vadd.f32 %v11605_v32, %v5520_v11  ;;  %9057 = vmatpush3.bf16.msra.mxu0 %v10206_v40  ;;  %6320 = vmatprep.mubr.bf16.mxu1 %v10211_v48  ;;  %v10233_v40 = vld [vmem:[%s13603_s1 + $0x618] sm:$0xff]  }
  0xf3   :  { %v8577_v44 = vadd.f32 %v8576_v42, %v8575_v37  ;;  %v8532_v45 = vpop.f32.mrf.mxu0  ;;  %v10207_v42 = vld [vmem:[%s13603_s1 + $0x670] sm:$0xff]  }
  0xf4   :  { %v8578_v47 = vpop.f32.mrf.mxu1  ;;  %v5523_v13 = vadd.f32 %v8531_v41, %v11661_v4  ;;  %9058 = vmatprep.subr.bf16.mxu0 %v10207_v42  ;;  %v10234_v42 = vld [vmem:[%s13603_s1 + $0x6a0] sm:$0xff]  }
  0xf5   :  { %v8533_v49 = vpop.f32.mrf.mxu0 }
  0xf6   :  { %v8534_v51 = vadd.f32 %v8533_v49, %v8532_v45  ;;  %v8579_v52 = vpop.f32.mrf.mxu1  ;;  %v11690_v23 = vadd.f32 %v8577_v44, %v5523_v13  ;;  %v10213_v49 = vld [vmem:[%s13604_s0 + $0x220] ss:$232 sps:$4 sm:$0xff]   ;;  %9059 = vmatpush3.bf16.msra.mxu0 %v10208_v43  ;;  %v10223_v13 = vld [vmem:[%s13604_s0 + $0x3fc] ss:$232 sps:$4 sm:$0xff]  }
  0xf7   :  { %v8580_v54 = vadd.f32 %v8579_v52, %v8578_v47  ;;  %v8535_v55 = vpop.f32.mrf.mxu0  ;;  %v10209_v47 = vld [vmem:[%s13604_s0 + $0x224] ss:$232 sps:$4 sm:$0xff]   ;;  %v10214_v52 = vld [vmem:[%s13604_s0 + $0x228] ss:$232 sps:$4 sm:$0xff]   ;;  %9060 = vmatprep.subr.bf16.mxu0 %v10217_v60 }
  0xf8   :  { %v8581_v57 = vpop.f32.mrf.mxu1  ;;  %v5528_v15 = vadd.f32 %v8534_v51, %v11661_v4  ;;  %6247 = vmatprep.mubr.bf16.mxu0 %v10209_v47 }
  0xf9   :  { %v8536_v59 = vpop.f32.mrf.mxu0  ;;  %6248 = vmatmul.mubr.bf16.gmra.mxu0 %v10213_v49  ;;  %6321 = vmatmul.mubr.bf16.gmra.mxu1 %v10214_v52  ;;  %v10237_v49 = vld [vmem:[%s13604_s0 + $0x5c4] ss:$232 sps:$4 sm:$0xff]   ;;  %v10238_v52 = vld [vmem:[%s13604_s0 + $0x5c8] ss:$232 sps:$4 sm:$0xff]  }
  0xfa   :  { %v8537_v61 = vadd.f32 %v8536_v59, %v8535_v55  ;;  %v8582_v62 = vpop.f32.mrf.mxu1  ;;  %v11695_v12 = vadd.f32 %v8580_v54, %v5528_v15  ;;  %v10215_v55 = vld [vmem:[%s13603_s1 + $0x6f8] sm:$0xff]   ;;  %9061 = vmatpush3.bf16.msra.mxu0 %v10218_v63  ;;  %6255 = vmatprep.mubr.bf16.mxu0 %v10221_v10 }
  0xfb   :  { %v8583_v1 = vadd.f32 %v8582_v62, %v8581_v57  ;;  %v8538_v5 = vpop.f32.mrf.mxu0  ;;  %9102 = vmatprep.subr.bf16.mxu1 %v10215_v55  ;;  %6328 = vmatprep.mubr.bf16.mxu1 %v10223_v13  ;;  %v10241_v55 = vld [vmem:[%s13603_s1 + $0x6d8] sm:$0xff]  }
  0xfc   :  { %v8584_v6 = vpop.f32.mrf.mxu1  ;;  %v5531_v9 = vadd.f32 %v8537_v61, %v11661_v4  ;;  %9103 = vmatpush3.bf16.msra.mxu1 %v10216_v58 }
  0xfd   :  { %v8539_v16 = vpop.f32.mrf.mxu0  ;;  %9104 = vmatprep.subr.bf16.mxu1 %v10219_v3  ;;  %v10245_v3 = vld [vmem:[%s13603_s1 + $0x6d0] sm:$0xff]  }
  0xfe   :  { %v8585_v17 = vpop.f32.mrf.mxu1  ;;  %v11697_v25 = vadd.f32 %v8583_v1, %v5531_v9  ;;  %v8540_v26 = vadd.f32 %v8539_v16, %v8538_v5  ;;  %v10226_v16 = vld [vmem:[%s13604_s0 + $0x3f0] ss:$232 sps:$4 sm:$0xff]  }
  0xff   :  { %v8586_v27 = vadd.f32 %v8585_v17, %v8584_v6  ;;  %v8541_v28 = vpop.f32.mrf.mxu0  ;;  %v10220_v6 = vld [vmem:[%s13603_s1 + $0x6b0] sm:$0xff]   ;;  %v10227_v17 = vld [vmem:[%s13604_s0 + $0x3f8] ss:$232 sps:$4 sm:$0xff]  }
 0x100   :  { %v8587_v29 = vpop.f32.mrf.mxu1  ;;  %v5536_v31 = vadd.f32 %v8540_v26, %v11661_v4  ;;  %9105 = vmatpush3.bf16.msra.mxu1 %v10220_v6  ;;  %v10228_v26 = vld [vmem:[%s13603_s1 + $0x620] sm:$0xff]  }
 0x101   :  { %v8542_v32 = vpop.f32.mrf.mxu0  ;;  %6256 = vmatmul.mubr.bf16.gmra.mxu0 %v10226_v16  ;;  %6329 = vmatmul.mubr.bf16.gmra.mxu1 %v10227_v17  ;;  %v10251_v17 = vld [vmem:[%s13604_s0 + $0x798] ss:$232 sps:$4 sm:$0xff]  }
 0x102   :  { %v8588_v33 = vpop.f32.mrf.mxu1  ;;  %v8543_v36 = vadd.f32 %v8542_v32, %v8541_v28  ;;  %v11715_v39 = vadd.f32 %v8586_v27, %v5536_v31  ;;  %6263 = vmatprep.mubr.bf16.mxu0 %v10237_v49  ;;  %v10264_v49 = vld [vmem:[%s13604_s0 + $0x68] ss:$232 sps:$4 sm:$0xff]  }
 0x103   :  { %v8589_v37 = vadd.f32 %v8588_v33, %v8587_v29  ;;  %v8544_v45 = vpop.f32.mrf.mxu0  ;;  %v10229_v29 = vld [vmem:[%s13603_s1 + $0x6e8] sm:$0xff]  }
 0x104   :  { %v5539_v41 = vadd.f32 %v8543_v36, %v11661_v4  ;;  %v8590_v46 = vpop.f32.mrf.mxu1  ;;  %9106 = vmatprep.subr.bf16.mxu1 %v10229_v29  ;;  %v10232_v36 = vld [vmem:[%s13603_s1 + $0x6e0] sm:$0xff]  }
 0x105   :  { %v8545_v50 = vpop.f32.mrf.mxu0  ;;  %9107 = vmatpush3.bf16.msra.mxu1 %v10230_v30 }
 0x106   :  { %v11727_v44 = vadd.f32 %v8589_v37, %v5539_v41  ;;  %v8591_v51 = vpop.f32.mrf.mxu1  ;;  %v8546_v53 = vadd.f32 %v8545_v50, %v8544_v45  ;;  %9108 = vmatprep.subr.bf16.mxu1 %v10232_v36 }
 0x107   :  { %v8592_v54 = vadd.f32 %v8591_v51, %v8590_v46  ;;  %v8547_v56 = vpop.f32.mrf.mxu0 }
 0x108   :  { %v8593_v57 = vpop.f32.mrf.mxu1  ;;  %v5544_v59 = vadd.f32 %v8546_v53, %v11661_v4  ;;  %v10240_v53 = vld [vmem:[%s13604_s0 + $0x5cc] ss:$232 sps:$4 sm:$0xff]  }
 0x109   :  { %v8548_v61 = vpop.f32.mrf.mxu0  ;;  %9109 = vmatpush3.bf16.msra.mxu1 %v10234_v42  ;;  %6336 = vmatprep.mubr.bf16.mxu1 %v10240_v53  ;;  %v10260_v42 = vld [vmem:[%s13603_s1 + $0x680] sm:$0xff]   ;;  %v10267_v53 = vld [vmem:[%s13603_s1 + $0x778] sm:$0xff]  }
 0x10a   :  { %v8594_v62 = vpop.f32.mrf.mxu1  ;;  %v11754_v0 = vadd.f32 %v8592_v54, %v5544_v59  ;;  %v8549_v1 = vadd.f32 %v8548_v61, %v8547_v56  ;;  %6337 = vmatmul.mubr.bf16.gmra.mxu1 %v10238_v52  ;;  %9110 = vmatprep.subr.bf16.mxu1 %v10241_v55  ;;  %v10243_v61 = vld [vmem:[%s13603_s1 + $0x698] sm:$0xff]  }
 0x10b   :  { %v8595_v2 = vadd.f32 %v8594_v62, %v8593_v57  ;;  %v8612_v5 = vpop.f32.mrf.mxu0  ;;  %v10268_v55 = vld [vmem:[%s13603_s1 + $0x738] sm:$0xff]  }
 0x10c   :  { %v5547_v7 = vadd.f32 %v8549_v1, %v11661_v4  ;;  %v8658_v8 = vpop.f32.mrf.mxu1  ;;  %v10225_v4 = vld [vmem:[%s13603_s1 + $0x660] sm:$0xff]   ;;  %v10244_v1 = vld [vmem:[%s13603_s1 + $0x610] sm:$0xff]  }
 0x10d   :  { %v8613_v11 = vpop.f32.mrf.mxu0  ;;  %9062 = vmatprep.subr.bf16.mxu0 %v10225_v4  ;;  %9111 = vmatpush3.bf16.msra.mxu1 %v10243_v61  ;;  %v10250_v4 = vld [vmem:[%s13604_s0 + $0x794] ss:$232 sps:$4 sm:$0xff]  }
 0x10e   :  { %v11769_v14 = vadd.f32 %v8595_v2, %v5547_v7  ;;  %v8614_v15 = vadd.f32 %v8613_v11, %v8612_v5  ;;  %v8659_v9 = vpop.f32.mrf.mxu1  ;;  %9063 = vmatpush3.bf16.msra.mxu0 %v10228_v26  ;;  %9112 = vmatprep.subr.bf16.mxu1 %v10245_v3  ;;  %v10247_v11 = vld [vmem:[%s13603_s1 + $0x648] sm:$0xff]   ;;  %v10253_v26 = vld [vmem:[%s13604_s0 + $0x79c] ss:$232 sps:$4 sm:$0xff]  }
 0x10f   :  { %v8660_v19 = vadd.f32 %v8659_v9, %v8658_v8  ;;  %v8615_v24 = vpop.f32.mrf.mxu0  ;;  %v10248_v9 = vld [vmem:[%s13604_s0 + $0x790] ss:$232 sps:$4 sm:$0xff]   ;;  %6344 = vmatprep.mubr.bf16.mxu1 %v10253_v26  ;;  %v10276_v3 = vld [vmem:[%s13604_s0 + $0x23c] ss:$232 sps:$4 sm:$0xff]  }
 0x110   :  { %v5658_v27 = vadd.f32 %v8614_v15, %v11679_v18  ;;  %v8661_v28 = vpop.f32.mrf.mxu1  ;;  %v10231_v18 = vld [vmem:[%s13603_s1 + $0x658] sm:$0xff]  }
 0x111   :  { %v8616_v22 = vpop.f32.mrf.mxu0  ;;  %9064 = vmatprep.subr.bf16.mxu0 %v10231_v18 }
 0x112   :  { %v11790_v31 = vadd.f32 %v8660_v19, %v5658_v27  ;;  %v8617_v32 = vadd.f32 %v8616_v22, %v8615_v24  ;;  %v8662_v33 = vpop.f32.mrf.mxu1  ;;  %9065 = vmatpush3.bf16.msra.mxu0 %v10233_v40  ;;  %v10255_v22 = vld [vmem:[%s13603_s1 + $0x6c8] sm:$0xff]   ;;  %6345 = vmatmul.mubr.bf16.gmra.mxu1 %v10251_v17 }
 0x113   :  { %v8663_v34 = vadd.f32 %v8662_v33, %v8661_v28  ;;  %v8618_v35 = vpop.f32.mrf.mxu0  ;;  %v10254_v28 = vld [vmem:[%s13603_s1 + $0x608] sm:$0xff]  }
 0x114   :  { %v5661_v37 = vadd.f32 %v8617_v32, %v11685_v20  ;;  %v8664_v38 = vpop.f32.mrf.mxu1  ;;  %v10235_v20 = vld [vmem:[%s13604_s0 + $0x5c0] ss:$232 sps:$4 sm:$0xff]  }
 0x115   :  { %v8619_v41 = vpop.f32.mrf.mxu0  ;;  %6264 = vmatmul.mubr.bf16.gmra.mxu0 %v10235_v20  ;;  %v10256_v32 = vld [vmem:[%s13603_s1 + $0x688] sm:$0xff]  }
 0x116   :  { %v11805_v43 = vadd.f32 %v8663_v34, %v5661_v37  ;;  %v8620_v45 = vadd.f32 %v8619_v41, %v8618_v35  ;;  %v8665_v46 = vpop.f32.mrf.mxu1  ;;  %6271 = vmatprep.mubr.bf16.mxu0 %v10250_v4  ;;  %v10258_v35 = vld [vmem:[%s13603_s1 + $0x600] sm:$0xff]  }
 0x117   :  { %v8666_v47 = vadd.f32 %v8665_v46, %v8664_v38  ;;  %v8621_v48 = vpop.f32.mrf.mxu0  ;;  %v10259_v38 = vld [vmem:[%s13603_s1 + $0x6c0] sm:$0xff]  }
 0x118   :  { %v5666_v50 = vadd.f32 %v8620_v45, %v11688_v21  ;;  %v8667_v51 = vpop.f32.mrf.mxu1  ;;  %v10242_v21 = vld [vmem:[%s13603_s1 + $0x650] sm:$0xff]   ;;  %v10261_v20 = vld [vmem:[%s13604_s0 + $0x60] ss:$232 sps:$4 sm:$0xff]  }
 0x119   :  { %v8622_v54 = vpop.f32.mrf.mxu0  ;;  %9066 = vmatprep.subr.bf16.mxu0 %v10242_v21  ;;  %v10270_v21 = vld [vmem:[%s13603_s1 + $0x730] sm:$0xff]  }
 0x11a   :  { %v11823_v56 = vadd.f32 %v8666_v47, %v5666_v50  ;;  %v8623_v57 = vadd.f32 %v8622_v54, %v8621_v48  ;;  %v8668_v58 = vpop.f32.mrf.mxu1  ;;  %9067 = vmatpush3.bf16.msra.mxu0 %v10244_v1  ;;  %v10263_v47 = vld [vmem:[%s13604_s0 + $0x64] ss:$232 sps:$4 sm:$0xff]  }
 0x11b   :  { %v8669_v59 = vadd.f32 %v8668_v58, %v8667_v51  ;;  %v8624_v60 = vpop.f32.mrf.mxu0  ;;  %9068 = vmatprep.subr.bf16.mxu0 %v10247_v11  ;;  %v10269_v58 = vld [vmem:[%s13603_s1 + $0x770] sm:$0xff]   ;;  %v10278_v11 = vld [vmem:[%s13603_s1 + $0x7b8] sm:$0xff]  }
 0x11c   :  { %v5669_v62 = vadd.f32 %v8623_v57, %v11690_v23  ;;  %v8670_v63 = vpop.f32.mrf.mxu1  ;;  %v10246_v23 = vld [vmem:[%s13603_s1 + $0x690] sm:$0xff]  }
 0x11d   :  { %v8625_v2 = vpop.f32.mrf.mxu0  ;;  %9113 = vmatpush3.bf16.msra.mxu1 %v10246_v23  ;;  %6272 = vmatmul.mubr.bf16.gmra.mxu0 %v10248_v9  ;;  %v10277_v23 = vld [vmem:[%s13603_s1 + $0x7f8] sm:$0xff]  }
 0x11e   :  { %v11838_v5 = vadd.f32 %v8669_v59, %v5669_v62  ;;  %v8626_v6 = vadd.f32 %v8625_v2, %v8624_v60  ;;  %v8671_v7 = vpop.f32.mrf.mxu1  ;;  %9069 = vmatpush3.bf16.msra.mxu0 %v10254_v28  ;;  %9114 = vmatprep.subr.bf16.mxu1 %v10255_v22  ;;  %v10273_v62 = vld [vmem:[%s13604_s0 + $0x234] ss:$232 sps:$4 sm:$0xff]   ;;  %v10274_v2 = vld [vmem:[%s13604_s0 + $0x238] ss:$232 sps:$4 sm:$0xff]   ;;  %v10285_v22 = vld [vmem:[%s13604_s0 + $0x404] ss:$232 sps:$4 sm:$0xff]  }
 0x11f   :  { %v8672_v8 = vadd.f32 %v8671_v7, %v8670_v63  ;;  %v8627_v10 = vpop.f32.mrf.mxu0  ;;  %6385 = vmatprep.mubr.bf16.mxu0 %v10263_v47 }
 0x120   :  { %v5674_v13 = vadd.f32 %v8626_v6, %v11695_v12  ;;  %v8673_v15 = vpop.f32.mrf.mxu1 }
 0x121   :  { %v8628_v16 = vpop.f32.mrf.mxu0  ;;  %9115 = vmatpush3.bf16.msra.mxu1 %v10256_v32 }
 0x122   :  { %v11856_v19 = vadd.f32 %v8672_v8, %v5674_v13  ;;  %v8629_v24 = vadd.f32 %v8628_v16, %v8627_v10  ;;  %v8674_v12 = vpop.f32.mrf.mxu1  ;;  %9116 = vmatprep.subr.bf16.mxu1 %v10259_v38  ;;  %v10280_v16 = vld [vmem:[%s13603_s1 + $0x728] sm:$0xff]  }
 0x123   :  { %v8675_v27 = vadd.f32 %v8674_v12, %v8673_v15  ;;  %v8630_v30 = vpop.f32.mrf.mxu0  ;;  %v10279_v15 = vld [vmem:[%s13603_s1 + $0x768] sm:$0xff]  }
 0x124   :  { %v5677_v29 = vadd.f32 %v8629_v24, %v11697_v25  ;;  %v8676_v18 = vpop.f32.mrf.mxu1  ;;  %v10257_v25 = vld [vmem:[%s13603_s1 + $0x640] sm:$0xff]  }
 0x125   :  { %v8631_v34 = vpop.f32.mrf.mxu0  ;;  %9070 = vmatprep.subr.bf16.mxu0 %v10257_v25  ;;  %9117 = vmatpush3.bf16.msra.mxu1 %v10260_v42 }
 0x126   :  { %v11871_v33 = vadd.f32 %v8675_v27, %v5677_v29  ;;  %v8632_v36 = vadd.f32 %v8631_v34, %v8630_v30  ;;  %v8677_v37 = vpop.f32.mrf.mxu1  ;;  %9071 = vmatpush3.bf16.msra.mxu0 %v10258_v35  ;;  %9194 = vmatprep.subr.bf16.mxu1 %v10277_v23  ;;  %v10282_v27 = vld [vmem:[%s13603_s1 + $0x7b0] sm:$0xff]   ;;  %v10283_v29 = vld [vmem:[%s13604_s0 + $0x400] ss:$232 sps:$4 sm:$0xff]   ;;  %v10303_v23 = vld [vmem:[%s13603_s1 + $0x7d8] sm:$0xff]  }
 0x127   :  { %v8678_v40 = vadd.f32 %v8677_v37, %v8676_v18  ;;  %v8633_v41 = vpop.f32.mrf.mxu0  ;;  %9148 = vmatprep.subr.bf16.mxu0 %v10267_v53  ;;  %v10286_v18 = vld [vmem:[%s13604_s0 + $0x408] ss:$232 sps:$4 sm:$0xff]   ;;  %v10289_v37 = vld [vmem:[%s13603_s1 + $0x760] sm:$0xff]  }
 0x128   :  { %v5682_v45 = vadd.f32 %v8632_v36, %v11715_v39  ;;  %v8679_v46 = vpop.f32.mrf.mxu1  ;;  %v10266_v39 = vld [vmem:[%s13604_s0 + $0x6c] ss:$232 sps:$4 sm:$0xff]   ;;  %v10294_v53 = vld [vmem:[%s13603_s1 + $0x7e0] sm:$0xff]  }
 0x129   :  { %v8634_v48 = vpop.f32.mrf.mxu0  ;;  %6458 = vmatprep.mubr.bf16.mxu1 %v10266_v39  ;;  %6386 = vmatmul.mubr.bf16.vlgmr.msra.gmra.mxu0 %v10261_v20  ;;  %v10293_v39 = vld [vmem:[%s13603_s1 + $0x758] sm:$0xff]  }
 0x12a   :  { %v11898_v50 = vadd.f32 %v8678_v40, %v5682_v45  ;;  %v8635_v51 = vadd.f32 %v8634_v48, %v8633_v41  ;;  %v8680_v52 = vpop.f32.mrf.mxu1  ;;  %6459 = vmatmul.mubr.bf16.vlgmr.msra.gmra.mxu1 %v10264_v49  ;;  %9149 = vmatpush3.bf16.msra.mxu0 %v10268_v55  ;;  %v10290_v41 = vld [vmem:[%s13603_s1 + $0x720] sm:$0xff]  }
 0x12b   :  { %v8681_v54 = vadd.f32 %v8680_v52, %v8679_v46  ;;  %v8636_v60 = vpop.f32.mrf.mxu0  ;;  %9150 = vmatprep.subr.bf16.mxu0 %v10269_v58  ;;  %6393 = vmatprep.mubr.bf16.mxu0 %v10273_v62  ;;  %v10291_v46 = vld [vmem:[%s13603_s1 + $0x7e8] sm:$0xff]   ;;  %v10299_v62 = vld [vmem:[%s13604_s0 + $0x5d4] ss:$232 sps:$4 sm:$0xff]  }
 0x12c   :  { %v5685_v57 = vadd.f32 %v8635_v51, %v11727_v44  ;;  %v8682_v61 = vpop.f32.mrf.mxu1  ;;  %v10271_v44 = vld [vmem:[%s13604_s0 + $0x230] ss:$232 sps:$4 sm:$0xff]   ;;  %6466 = vmatprep.mubr.bf16.mxu1 %v10276_v3  ;;  %9195 = vmatpush3.bf16.msra.mxu1 %v10278_v11  ;;  %v10302_v3 = vld [vmem:[%s13604_s0 + $0x5dc] ss:$232 sps:$4 sm:$0xff]  }
 0x12d   :  { %v8637_v63 = vpop.f32.mrf.mxu0 }
 0x12e   :  { %v11913_v59 = vadd.f32 %v8681_v54, %v5685_v57  ;;  %v8683_v1 = vpop.f32.mrf.mxu1  ;;  %v8638_v6 = vadd.f32 %v8637_v63, %v8636_v60  ;;  %9151 = vmatpush3.bf16.msra.mxu0 %v10270_v21  ;;  %v10295_v57 = vld [vmem:[%s13603_s1 + $0x718] sm:$0xff]  }
 0x12f   :  { %v8684_v7 = vadd.f32 %v8683_v1, %v8682_v61  ;;  %v8639_v8 = vpop.f32.mrf.mxu0  ;;  %9152 = vmatprep.subr.bf16.mxu0 %v10279_v15 }
 0x130   :  { %v8685_v10 = vpop.f32.mrf.mxu1  ;;  %v5690_v13 = vadd.f32 %v8638_v6, %v11754_v0  ;;  %v10281_v0 = vld [vmem:[%s13603_s1 + $0x7f0] sm:$0xff]  }
 0x131   :  { %6394 = vmatmul.mubr.bf16.gmra.mxu0 %v10271_v44  ;;  %v8640_v9 = vpop.f32.mrf.mxu0  ;;  %9196 = vmatprep.subr.bf16.mxu1 %v10281_v0  ;;  %v10297_v44 = vld [vmem:[%s13604_s0 + $0x5d0] ss:$232 sps:$4 sm:$0xff]  }
 0x132   :  { %v8686_v4 = vpop.f32.mrf.mxu1  ;;  %6467 = vmatmul.mubr.bf16.gmra.mxu1 %v10274_v2  ;;  %v11940_v17 = vadd.f32 %v8684_v7, %v5690_v13  ;;  %v8641_v24 = vadd.f32 %v8640_v9, %v8639_v8  ;;  %9153 = vmatpush3.bf16.msra.mxu0 %v10280_v16  ;;  %v10300_v2 = vld [vmem:[%s13604_s0 + $0x5d8] ss:$232 sps:$4 sm:$0xff]   ;;  %v10306_v16 = vld [vmem:[%s13603_s1 + $0x710] sm:$0xff]  }
 0x133   :  { %v8687_v12 = vadd.f32 %v8686_v4, %v8685_v10  ;;  %v8704_v26 = vpop.f32.mrf.mxu0  ;;  %9197 = vmatpush3.bf16.msra.mxu1 %v10282_v27  ;;  %6401 = vmatprep.mubr.bf16.mxu0 %v10285_v22  ;;  %v10304_v10 = vld [vmem:[%s13603_s1 + $0x750] sm:$0xff]   ;;  %v10305_v13 = vld [vmem:[%s13603_s1 + $0x798] sm:$0xff]  }
 0x134   :  { %v5693_v28 = vadd.f32 %v8641_v24, %v11769_v14  ;;  %v8750_v30 = vpop.f32.mrf.mxu1  ;;  %v10288_v14 = vld [vmem:[%s13604_s0 + $0x40c] ss:$232 sps:$4 sm:$0xff]   ;;  %9154 = vmatprep.subr.bf16.mxu0 %v10289_v37  ;;  %9198 = vmatprep.subr.bf16.mxu1 %v10291_v46 }
 0x135   :  { %v8705_v32 = vpop.f32.mrf.mxu0  ;;  %6474 = vmatprep.mubr.bf16.mxu1 %v10288_v14  ;;  %v10312_v14 = vld [vmem:[%s13604_s0 + $0x7a4] ss:$232 sps:$4 sm:$0xff]  }
 0x136   :  { %v11958_v25 = vadd.f32 %v8687_v12, %v5693_v28  ;;  %v8706_v34 = vadd.f32 %v8705_v32, %v8704_v26  ;;  %v8751_v35 = vpop.f32.mrf.mxu1  ;;  %9155 = vmatpush3.bf16.msra.mxu0 %v10290_v41  ;;  %v10307_v12 = vld [vmem:[%s13603_s1 + $0x7d0] sm:$0xff]   ;;  %v10310_v32 = vld [vmem:[%s13604_s0 + $0x7a0] ss:$232 sps:$4 sm:$0xff]  }
 0x137   :  { %v8707_v36 = vpop.f32.mrf.mxu0  ;;  %v8752_v40 = vadd.f32 %v8751_v35, %v8750_v30  ;;  %9156 = vmatprep.subr.bf16.mxu0 %v10293_v39  ;;  %v10315_v37 = vld [vmem:[%s13604_s0 + $0x7ac] ss:$232 sps:$4 sm:$0xff]  }
 0x138   :  { %v5804_v38 = vadd.f32 %v8706_v34, %v11790_v31  ;;  %v8753_v42 = vpop.f32.mrf.mxu1  ;;  %v10292_v31 = vld [vmem:[%s13603_s1 + $0x7a8] sm:$0xff]  }
 0x139   :  { %6402 = vmatmul.mubr.bf16.gmra.mxu0 %v10283_v29  ;;  %v8708_v45 = vpop.f32.mrf.mxu0  ;;  %9199 = vmatpush3.bf16.msra.mxu1 %v10292_v31  ;;  %v10309_v29 = vld [vmem:[%s13603_s1 + $0x748] sm:$0xff]  }
 0x13a   :  { %6475 = vmatmul.mubr.bf16.gmra.mxu1 %v10286_v18  ;;  %v11973_v20 = vadd.f32 %v8752_v40, %v5804_v38  ;;  %v8709_v47 = vadd.f32 %v8708_v45, %v8707_v36  ;;  %v8754_v48 = vpop.f32.mrf.mxu1  ;;  %9200 = vmatprep.subr.bf16.mxu1 %v10294_v53  ;;  %v10313_v36 = vld [vmem:[%s13604_s0 + $0x7a8] ss:$232 sps:$4 sm:$0xff]  }
 0x13b   :  { %v8710_v49 = vpop.f32.mrf.mxu0  ;;  %v8755_v52 = vadd.f32 %v8754_v48, %v8753_v42  ;;  %9157 = vmatpush3.bf16.msra.mxu0 %v10295_v57  ;;  %6409 = vmatprep.mubr.bf16.mxu0 %v10299_v62  ;;  %v10316_v41 = vld [vmem:[%s13603_s1 + $0x708] sm:$0xff]  }
 0x13c   :  { %v5807_v51 = vadd.f32 %v8709_v47, %v11805_v43  ;;  %v8756_v54 = vpop.f32.mrf.mxu1  ;;  %v10296_v43 = vld [vmem:[%s13603_s1 + $0x7a0] sm:$0xff]   ;;  %6482 = vmatprep.mubr.bf16.mxu1 %v10302_v3  ;;  %9158 = vmatprep.subr.bf16.mxu0 %v10304_v10  ;;  %v10317_v45 = vld [vmem:[%s13603_s1 + $0x7c8] sm:$0xff]   ;;  %v10331_v10 = vld [vmem:[%s13603_s1 + $0x870] sm:$0xff]  }
 0x13d   :  { %v8711_v55 = vpop.f32.mrf.mxu0  ;;  %9201 = vmatpush3.bf16.msra.mxu1 %v10296_v43  ;;  %v10318_v31 = vld [vmem:[%s13603_s1 + $0x788] sm:$0xff]   ;;  %v10328_v3 = vld [vmem:[%s13604_s0 + $0x7c] ss:$232 sps:$4 sm:$0xff]  }
 0x13e   :  { %v11988_v58 = vadd.f32 %v8755_v52, %v5807_v51  ;;  %v8712_v21 = vadd.f32 %v8711_v55, %v8710_v49  ;;  %v8757_v60 = vpop.f32.mrf.mxu1  ;;  %9202 = vmatprep.subr.bf16.mxu1 %v10303_v23  ;;  %v10319_v49 = vld [vmem:[%s13603_s1 + $0x740] sm:$0xff]  }
 0x13f   :  { %v8713_v61 = vpop.f32.mrf.mxu0  ;;  %v8758_v1 = vadd.f32 %v8757_v60, %v8756_v54  ;;  %9159 = vmatpush3.bf16.msra.mxu0 %v10306_v16  ;;  %v10321_v54 = vld [vmem:[%s13603_s1 + $0x7c0] sm:$0xff]  }
 0x140   :  { %v5812_v63 = vadd.f32 %v8712_v21, %v11823_v56  ;;  %v8759_v6 = vpop.f32.mrf.mxu1  ;;  %9160 = vmatprep.subr.bf16.mxu0 %v10309_v29  ;;  %v10322_v21 = vld [vmem:[%s13603_s1 + $0x780] sm:$0xff]  }
 0x141   :  { %v8714_v7 = vpop.f32.mrf.mxu0  ;;  %6410 = vmatmul.mubr.bf16.gmra.mxu0 %v10297_v44  ;;  %9203 = vmatpush3.bf16.msra.mxu1 %v10305_v13  ;;  %v10325_v44 = vld [vmem:[%s13604_s0 + $0x74] ss:$232 sps:$4 sm:$0xff]  }
 0x142   :  { %v12009_v8 = vadd.f32 %v8758_v1, %v5812_v63  ;;  %v8715_v56 = vadd.f32 %v8714_v7, %v8713_v61  ;;  %v8760_v11 = vpop.f32.mrf.mxu1  ;;  %6483 = vmatmul.mubr.bf16.gmra.mxu1 %v10300_v2  ;;  %9204 = vmatprep.subr.bf16.mxu1 %v10307_v12  ;;  %v10323_v61 = vld [vmem:[%s13604_s0 + $0x70] ss:$232 sps:$4 sm:$0xff]   ;;  %v10338_v12 = vld [vmem:[%s13604_s0 + $0x24c] ss:$232 sps:$4 sm:$0xff]  }
 0x143   :  { %v8761_v9 = vadd.f32 %v8760_v11, %v8759_v6  ;;  %v8716_v4 = vpop.f32.mrf.mxu0  ;;  %6417 = vmatprep.mubr.bf16.mxu0 %v10312_v14  ;;  %6490 = vmatprep.mubr.bf16.mxu1 %v10315_v37  ;;  %v10326_v63 = vld [vmem:[%s13604_s0 + $0x78] ss:$232 sps:$4 sm:$0xff]   ;;  %v10342_v14 = vld [vmem:[%s13603_s1 + $0x828] sm:$0xff]   ;;  %v10343_v37 = vld [vmem:[%s13603_s1 + $0x8f0] sm:$0xff]  }
 0x144   :  { %v5815_v15 = vadd.f32 %v8715_v56, %v11838_v5  ;;  %v8762_v24 = vpop.f32.mrf.mxu1  ;;  %v10308_v5 = vld [vmem:[%s13603_s1 + $0x790] sm:$0xff]   ;;  %9161 = vmatpush3.bf16.msra.mxu0 %v10316_v41  ;;  %v10329_v7 = vld [vmem:[%s13603_s1 + $0x878] sm:$0xff]  }
 0x145   :  { %v8717_v26 = vpop.f32.mrf.mxu0  ;;  %9205 = vmatpush3.bf16.msra.mxu1 %v10308_v5  ;;  %9162 = vmatprep.subr.bf16.mxu0 %v10319_v49  ;;  %v10330_v56 = vld [vmem:[%s13603_s1 + $0x838] sm:$0xff]  }
 0x146   :  { %v12024_v0 = vadd.f32 %v8761_v9, %v5815_v15  ;;  %v8718_v27 = vadd.f32 %v8717_v26, %v8716_v4  ;;  %v8763_v28 = vpop.f32.mrf.mxu1  ;;  %9206 = vmatprep.subr.bf16.mxu1 %v10317_v45  ;;  %v10332_v15 = vld [vmem:[%s13603_s1 + $0x830] sm:$0xff]   ;;  %v10333_v9 = vld [vmem:[%s13604_s0 + $0x240] ss:$232 sps:$4 sm:$0xff]   ;;  %v10335_v4 = vld [vmem:[%s13604_s0 + $0x244] ss:$232 sps:$4 sm:$0xff]  }
 0x147   :  { %v8764_v22 = vadd.f32 %v8763_v28, %v8762_v24  ;;  %v8719_v30 = vpop.f32.mrf.mxu0  ;;  %v10336_v24 = vld [vmem:[%s13604_s0 + $0x248] ss:$232 sps:$4 sm:$0xff]   ;;  %v10350_v49 = vld [vmem:[%s13604_s0 + $0x41c] ss:$232 sps:$4 sm:$0xff]  }
 0x148   :  { %v5820_v18 = vadd.f32 %v8718_v27, %v11856_v19  ;;  %v8765_v34 = vpop.f32.mrf.mxu1  ;;  %v10339_v27 = vld [vmem:[%s13603_s1 + $0x8f8] sm:$0xff]  }
 0x149   :  { %v8720_v35 = vpop.f32.mrf.mxu0  ;;  %6418 = vmatmul.mubr.bf16.gmra.mxu0 %v10310_v32  ;;  %9207 = vmatpush3.bf16.msra.mxu1 %v10318_v31  ;;  %v10341_v32 = vld [vmem:[%s13603_s1 + $0x868] sm:$0xff]  }
 0x14a   :  { %v12045_v38 = vadd.f32 %v8764_v22, %v5820_v18  ;;  %v8721_v40 = vadd.f32 %v8720_v35, %v8719_v30  ;;  %v8766_v19 = vpop.f32.mrf.mxu1  ;;  %6491 = vmatmul.mubr.bf16.gmra.mxu1 %v10313_v36  ;;  %9208 = vmatprep.subr.bf16.mxu1 %v10321_v54  ;;  %v10340_v22 = vld [vmem:[%s13603_s1 + $0x8b8] sm:$0xff]  }
 0x14b   :  { %v8767_v42 = vadd.f32 %v8766_v19, %v8765_v34  ;;  %v8722_v47 = vpop.f32.mrf.mxu0  ;;  %6531 = vmatprep.mubr.bf16.mxu0 %v10325_v44  ;;  %6604 = vmatprep.mubr.bf16.mxu1 %v10328_v3  ;;  %v10356_v3 = vld [vmem:[%s13603_s1 + $0x8e0] sm:$0xff]  }
 0x14c   :  { %v5823_v46 = vadd.f32 %v8721_v40, %v11871_v33  ;;  %v8768_v48 = vpop.f32.mrf.mxu1  ;;  %v10320_v33 = vld [vmem:[%s13603_s1 + $0x700] sm:$0xff]  }
 0x14d   :  { %v8723_v51 = vpop.f32.mrf.mxu0  ;;  %9163 = vmatpush3.bf16.msra.mxu0 %v10320_v33  ;;  %9209 = vmatpush3.bf16.msra.mxu1 %v10322_v21 }
 0x14e   :  { %v12060_v39 = vadd.f32 %v8767_v42, %v5823_v46  ;;  %v8724_v52 = vadd.f32 %v8723_v51, %v8722_v47  ;;  %v8769_v53 = vpop.f32.mrf.mxu1  ;;  %9240 = vmatprep.subr.bf16.mxu0 %v10329_v7  ;;  %9286 = vmatprep.subr.bf16.mxu1 %v10339_v27  ;;  %v10345_v42 = vld [vmem:[%s13604_s0 + $0x410] ss:$232 sps:$4 sm:$0xff]   ;;  %v10347_v47 = vld [vmem:[%s13604_s0 + $0x414] ss:$232 sps:$4 sm:$0xff]  }
 0x14f   :  { %v8770_v55 = vadd.f32 %v8769_v53, %v8768_v48  ;;  %v8725_v57 = vpop.f32.mrf.mxu0  ;;  %v10348_v48 = vld [vmem:[%s13604_s0 + $0x418] ss:$232 sps:$4 sm:$0xff]  }
 0x150   :  { %v5828_v43 = vadd.f32 %v8724_v52, %v11898_v50  ;;  %v8771_v60 = vpop.f32.mrf.mxu1 }
 0x151   :  { %v8726_v62 = vpop.f32.mrf.mxu0  ;;  %6532 = vmatmul.mubr.bf16.vlgmr.msra.gmra.mxu0 %v10323_v61  ;;  %v10354_v61 = vld [vmem:[%s13603_s1 + $0x8a8] sm:$0xff]  }
 0x152   :  { %v12081_v1 = vadd.f32 %v8770_v55, %v5828_v43  ;;  %v8727_v2 = vadd.f32 %v8726_v62, %v8725_v57  ;;  %v8772_v50 = vpop.f32.mrf.mxu1  ;;  %6605 = vmatmul.mubr.bf16.vlgmr.msra.gmra.mxu1 %v10326_v63  ;;  %9241 = vmatpush3.bf16.msra.mxu0 %v10330_v56  ;;  %v10352_v55 = vld [vmem:[%s13603_s1 + $0x820] sm:$0xff]   ;;  %v10353_v43 = vld [vmem:[%s13603_s1 + $0x8e8] sm:$0xff]  }
 0x153   :  { %v8773_v6 = vadd.f32 %v8772_v50, %v8771_v60  ;;  %9242 = vmatprep.subr.bf16.mxu0 %v10331_v10  ;;  %6539 = vmatprep.mubr.bf16.mxu0 %v10335_v4  ;;  %v10358_v10 = vld [vmem:[%s13603_s1 + $0x8a0] sm:$0xff]  }
 0x154   :  { %v5831_v23 = vadd.f32 %v8727_v2, %v11913_v59  ;;  %v8774_v13 = vpop.f32.mrf.mxu1  ;;  %v8728_v59 = vpop.f32.mrf.mxu0  ;;  %6612 = vmatprep.mubr.bf16.mxu1 %v10338_v12  ;;  %9287 = vmatpush3.bf16.msra.mxu1 %v10340_v22 }
 0x155   :  { %9288 = vmatprep.subr.bf16.mxu1 %v10343_v37 }
 0x156   :  { %v12096_v11 = vadd.f32 %v8773_v6, %v5831_v23  ;;  %v8775_v16 = vpop.f32.mrf.mxu1  ;;  %v8729_v26 = vpop.f32.mrf.mxu0  ;;  %9243 = vmatpush3.bf16.msra.mxu0 %v10332_v15  ;;  %v10357_v23 = vld [vmem:[%s13603_s1 + $0x818] sm:$0xff]  }
 0x157   :  { %v8776_v5 = vadd.f32 %v8775_v16, %v8774_v13  ;;  %v8730_v28 = vadd.f32 %v8729_v26, %v8728_v59  ;;  %9244 = vmatprep.subr.bf16.mxu0 %v10341_v32 }
 0x158   :  { %v8777_v29 = vpop.f32.mrf.mxu1  ;;  %v8731_v30 = vpop.f32.mrf.mxu0 }
 0x159   :  { %6540 = vmatmul.mubr.bf16.gmra.mxu0 %v10333_v9  ;;  %v5836_v18 = vadd.f32 %v8730_v28, %v11940_v17  ;;  %v10344_v17 = vld [vmem:[%s13603_s1 + $0x8b0] sm:$0xff]   ;;  %v10361_v9 = vld [vmem:[%s13604_s0 + $0x5e4] ss:$232 sps:$4 sm:$0xff]   ;;  %v10365_v28 = vld [vmem:[%s13603_s1 + $0x8d8] sm:$0xff]  }
 0x15a   :  { %v8778_v34 = vpop.f32.mrf.mxu1  ;;  %v8732_v35 = vpop.f32.mrf.mxu0  ;;  %6613 = vmatmul.mubr.bf16.gmra.mxu1 %v10336_v24  ;;  %9245 = vmatpush3.bf16.msra.mxu0 %v10342_v14  ;;  %v10362_v24 = vld [vmem:[%s13604_s0 + $0x5e8] ss:$232 sps:$4 sm:$0xff]  }
 0x15b   :  { %v8779_v36 = vadd.f32 %v8778_v34, %v8777_v29  ;;  %v12129_v40 = vadd.f32 %v8776_v5, %v5836_v18  ;;  %v8733_v19 = vadd.f32 %v8732_v35, %v8731_v30  ;;  %9289 = vmatpush3.bf16.msra.mxu1 %v10344_v17  ;;  %6547 = vmatprep.mubr.bf16.mxu0 %v10347_v47  ;;  %v10364_v5 = vld [vmem:[%s13604_s0 + $0x5ec] ss:$232 sps:$4 sm:$0xff]   ;;  %v10367_v34 = vld [vmem:[%s13603_s1 + $0x898] sm:$0xff]  }
 0x15c   :  { %v8796_v41 = vpop.f32.mrf.mxu0  ;;  %v8842_v46 = vpop.f32.mrf.mxu1  ;;  %6620 = vmatprep.mubr.bf16.mxu1 %v10350_v49  ;;  %9290 = vmatprep.subr.bf16.mxu1 %v10353_v43  ;;  %v10371_v47 = vld [vmem:[%s13603_s1 + $0x848] sm:$0xff]   ;;  %v10372_v49 = vld [vmem:[%s13604_s0 + $0x7b0] ss:$232 sps:$4 sm:$0xff]  }
 0x15d   :  { %v5839_v45 = vadd.f32 %v8733_v19, %v11958_v25  ;;  %v10351_v25 = vld [vmem:[%s13603_s1 + $0x860] sm:$0xff]   ;;  %v10369_v19 = vld [vmem:[%s13603_s1 + $0x8d0] sm:$0xff]   ;;  %v10379_v43 = vld [vmem:[%s13603_s1 + $0x8c8] sm:$0xff]  }
 0x15e   :  { %v8797_v31 = vpop.f32.mrf.mxu0  ;;  %v8843_v52 = vpop.f32.mrf.mxu1  ;;  %9246 = vmatprep.subr.bf16.mxu0 %v10351_v25  ;;  %v10375_v25 = vld [vmem:[%s13604_s0 + $0x7b8] ss:$232 sps:$4 sm:$0xff]  }
 0x15f   :  { %v12147_v51 = vadd.f32 %v8779_v36, %v5839_v45  ;;  %v8798_v33 = vadd.f32 %v8797_v31, %v8796_v41  ;;  %v8844_v53 = vadd.f32 %v8843_v52, %v8842_v46  ;;  %9247 = vmatpush3.bf16.msra.mxu0 %v10352_v55  ;;  %9291 = vmatpush3.bf16.msra.mxu1 %v10354_v61  ;;  %v10368_v36 = vld [vmem:[%s13603_s1 + $0x810] sm:$0xff]   ;;  %v10380_v61 = vld [vmem:[%s13603_s1 + $0x888] sm:$0xff]  }
 0x160   :  { %v8799_v54 = vpop.f32.mrf.mxu0  ;;  %v8845_v21 = vpop.f32.mrf.mxu1  ;;  %9292 = vmatprep.subr.bf16.mxu1 %v10356_v3 }
 0x161   :  { %6548 = vmatmul.mubr.bf16.gmra.mxu0 %v10345_v42  ;;  %v5950_v57 = vadd.f32 %v8798_v33, %v11973_v20  ;;  %v10355_v20 = vld [vmem:[%s13603_s1 + $0x858] sm:$0xff]  }
 0x162   :  { %v8800_v60 = vpop.f32.mrf.mxu0  ;;  %6621 = vmatmul.mubr.bf16.gmra.mxu1 %v10348_v48  ;;  %v8846_v63 = vpop.f32.mrf.mxu1  ;;  %9248 = vmatprep.subr.bf16.mxu0 %v10355_v20  ;;  %v10374_v33 = vld [vmem:[%s13604_s0 + $0x7b4] ss:$232 sps:$4 sm:$0xff]   ;;  %v10381_v20 = vld [vmem:[%s13603_s1 + $0x840] sm:$0xff]  }
 0x163   :  { %v12162_v44 = vadd.f32 %v8844_v53, %v5950_v57  ;;  %v8801_v62 = vadd.f32 %v8800_v60, %v8799_v54  ;;  %v8847_v2 = vadd.f32 %v8846_v63, %v8845_v21  ;;  %9249 = vmatpush3.bf16.msra.mxu0 %v10357_v23  ;;  %9293 = vmatpush3.bf16.msra.mxu1 %v10358_v10  ;;  %v10378_v57 = vld [vmem:[%s13603_s1 + $0x808] sm:$0xff]  }
 0x164   :  { %v8802_v50 = vpop.f32.mrf.mxu0  ;;  %v8848_v7 = vpop.f32.mrf.mxu1  ;;  %6555 = vmatprep.mubr.bf16.mxu0 %v10361_v9  ;;  %6628 = vmatprep.mubr.bf16.mxu1 %v10364_v5  ;;  %v10387_v9 = vld [vmem:[%s13604_s0 + $0x84] ss:$232 sps:$4 sm:$0xff]  }
 0x165   :  { %v5953_v6 = vadd.f32 %v8801_v62, %v11988_v58  ;;  %v10359_v58 = vld [vmem:[%s13604_s0 + $0x5e0] ss:$232 sps:$4 sm:$0xff]   ;;  %9294 = vmatprep.subr.bf16.mxu1 %v10365_v28  ;;  %v10392_v28 = vld [vmem:[%s13603_s1 + $0x938] sm:$0xff]  }
 0x166   :  { %v8803_v56 = vpop.f32.mrf.mxu0  ;;  %v8849_v59 = vpop.f32.mrf.mxu1 }
 0x167   :  { %v12177_v13 = vadd.f32 %v8847_v2, %v5953_v6  ;;  %v8804_v15 = vadd.f32 %v8803_v56, %v8802_v50  ;;  %v8850_v4 = vadd.f32 %v8849_v59, %v8848_v7  ;;  %9295 = vmatpush3.bf16.msra.mxu1 %v10367_v34  ;;  %v10383_v6 = vld [vmem:[%s13603_s1 + $0x8c0] sm:$0xff]  }
 0x168   :  { %v8805_v16 = vpop.f32.mrf.mxu0  ;;  %v8851_v26 = vpop.f32.mrf.mxu1  ;;  %9296 = vmatprep.subr.bf16.mxu1 %v10369_v19  ;;  %v10384_v56 = vld [vmem:[%s13603_s1 + $0x880] sm:$0xff]  }
 0x169   :  { %v5958_v12 = vadd.f32 %v8804_v15, %v12009_v8  ;;  %6556 = vmatmul.mubr.bf16.gmra.mxu0 %v10359_v58  ;;  %v10366_v8 = vld [vmem:[%s13603_s1 + $0x850] sm:$0xff]   ;;  %v10385_v59 = vld [vmem:[%s13604_s0 + $0x80] ss:$232 sps:$4 sm:$0xff]   ;;  %v10400_v19 = vld [vmem:[%s13604_s0 + $0x25c] ss:$232 sps:$4 sm:$0xff]  }
 0x16a   :  { %v8806_v27 = vpop.f32.mrf.mxu0  ;;  %v8852_v30 = vpop.f32.mrf.mxu1  ;;  %6629 = vmatmul.mubr.bf16.gmra.mxu1 %v10362_v24  ;;  %9250 = vmatprep.subr.bf16.mxu0 %v10366_v8  ;;  %v10388_v24 = vld [vmem:[%s13604_s0 + $0x88] ss:$232 sps:$4 sm:$0xff]  }
 0x16b   :  { %v12195_v29 = vadd.f32 %v8850_v4, %v5958_v12  ;;  %v8807_v22 = vadd.f32 %v8806_v27, %v8805_v16  ;;  %v8853_v32 = vadd.f32 %v8852_v30, %v8851_v26  ;;  %9251 = vmatpush3.bf16.msra.mxu0 %v10368_v36  ;;  %6563 = vmatprep.mubr.bf16.mxu0 %v10374_v33  ;;  %v10390_v12 = vld [vmem:[%s13604_s0 + $0x8c] ss:$232 sps:$4 sm:$0xff]  }
 0x16c   :  { %v8808_v18 = vpop.f32.mrf.mxu0  ;;  %v8854_v35 = vpop.f32.mrf.mxu1  ;;  %9252 = vmatprep.subr.bf16.mxu0 %v10371_v47  ;;  %v10393_v30 = vld [vmem:[%s13603_s1 + $0x970] sm:$0xff]   ;;  %v10402_v47 = vld [vmem:[%s13603_s1 + $0x9b8] sm:$0xff]  }
 0x16d   :  { %v5961_v14 = vadd.f32 %v8807_v22, %v12024_v0  ;;  %v10370_v0 = vld [vmem:[%s13603_s1 + $0x890] sm:$0xff]  }
 0x16e   :  { %v8809_v37 = vpop.f32.mrf.mxu0  ;;  %v8855_v42 = vpop.f32.mrf.mxu1  ;;  %9297 = vmatpush3.bf16.msra.mxu1 %v10370_v0  ;;  %v10394_v8 = vld [vmem:[%s13603_s1 + $0x930] sm:$0xff]   ;;  %v10401_v0 = vld [vmem:[%s13603_s1 + $0x9f8] sm:$0xff]  }
 0x16f   :  { %v12210_v17 = vadd.f32 %v8853_v32, %v5961_v14  ;;  %v8810_v41 = vadd.f32 %v8809_v37, %v8808_v18  ;;  %v8856_v45 = vadd.f32 %v8855_v42, %v8854_v35  ;;  %9253 = vmatpush3.bf16.msra.mxu0 %v10378_v57  ;;  %9298 = vmatprep.subr.bf16.mxu1 %v10379_v43  ;;  %v10397_v14 = vld [vmem:[%s13604_s0 + $0x254] ss:$232 sps:$4 sm:$0xff]   ;;  %v10398_v35 = vld [vmem:[%s13604_s0 + $0x258] ss:$232 sps:$4 sm:$0xff]  }
 0x170   :  { %v8811_v46 = vpop.f32.mrf.mxu0  ;;  %v8857_v48 = vpop.f32.mrf.mxu1  ;;  %9254 = vmatprep.subr.bf16.mxu0 %v10381_v20  ;;  %v10406_v57 = vld [vmem:[%s13603_s1 + $0x9b0] sm:$0xff]  }
 0x171   :  { %v5966_v31 = vadd.f32 %v8810_v41, %v12045_v38  ;;  %v10377_v38 = vld [vmem:[%s13604_s0 + $0x7bc] ss:$232 sps:$4 sm:$0xff]   ;;  %6564 = vmatmul.mubr.bf16.gmra.mxu0 %v10372_v49  ;;  %v10412_v20 = vld [vmem:[%s13604_s0 + $0x42c] ss:$232 sps:$4 sm:$0xff]  }
 0x172   :  { %v8812_v52 = vpop.f32.mrf.mxu0  ;;  %v8858_v55 = vpop.f32.mrf.mxu1  ;;  %6636 = vmatprep.mubr.bf16.mxu1 %v10377_v38  ;;  %9299 = vmatpush3.bf16.msra.mxu1 %v10380_v61  ;;  %v10409_v61 = vld [vmem:[%s13604_s0 + $0x424] ss:$232 sps:$4 sm:$0xff]  }
 0x173   :  { %v12231_v53 = vadd.f32 %v8856_v45, %v5966_v31  ;;  %v8813_v54 = vadd.f32 %v8812_v52, %v8811_v46  ;;  %v8859_v21 = vadd.f32 %v8858_v55, %v8857_v48  ;;  %6637 = vmatmul.mubr.bf16.gmra.mxu1 %v10375_v25  ;;  %9300 = vmatprep.subr.bf16.mxu1 %v10383_v6  ;;  %v10403_v48 = vld [vmem:[%s13603_s1 + $0x968] sm:$0xff]  }
 0x174   :  { %v8814_v62 = vpop.f32.mrf.mxu0  ;;  %v8860_v63 = vpop.f32.mrf.mxu1  ;;  %6677 = vmatprep.mubr.bf16.mxu0 %v10387_v9  ;;  %6750 = vmatprep.mubr.bf16.mxu1 %v10390_v12  ;;  %v10404_v52 = vld [vmem:[%s13603_s1 + $0x928] sm:$0xff]  }
 0x175   :  { %v5969_v60 = vadd.f32 %v8813_v54, %v12060_v39  ;;  %v10382_v39 = vld [vmem:[%s13603_s1 + $0x800] sm:$0xff]  }
 0x176   :  { %v8815_v50 = vpop.f32.mrf.mxu0  ;;  %v8861_v3 = vpop.f32.mrf.mxu1  ;;  %9255 = vmatpush3.bf16.msra.mxu0 %v10382_v39  ;;  %9301 = vmatpush3.bf16.msra.mxu1 %v10384_v56 }
 0x177   :  { %v12246_v2 = vadd.f32 %v8859_v21, %v5969_v60  ;;  %v8816_v7 = vadd.f32 %v8815_v50, %v8814_v62  ;;  %v8862_v23 = vadd.f32 %v8861_v3, %v8860_v63  ;;  %9378 = vmatprep.subr.bf16.mxu1 %v10401_v0  ;;  %v10407_v60 = vld [vmem:[%s13604_s0 + $0x420] ss:$232 sps:$4 sm:$0xff]   ;;  %v10427_v0 = vld [vmem:[%s13603_s1 + $0x9d8] sm:$0xff]  }
 0x178   :  { %v8817_v10 = vpop.f32.mrf.mxu0  ;;  %v8863_v15 = vpop.f32.mrf.mxu1  ;;  %v10410_v63 = vld [vmem:[%s13604_s0 + $0x428] ss:$232 sps:$4 sm:$0xff]   ;;  %v10413_v3 = vld [vmem:[%s13603_s1 + $0x960] sm:$0xff]  }
 0x179   :  { %v5974_v58 = vadd.f32 %v8816_v7, %v12081_v1  ;;  %v10391_v1 = vld [vmem:[%s13603_s1 + $0x978] sm:$0xff]   ;;  %6678 = vmatmul.mubr.bf16.vlgmr.msra.gmra.mxu0 %v10385_v59 }
 0x17a   :  { %v8818_v4 = vpop.f32.mrf.mxu0  ;;  %v8864_v16 = vpop.f32.mrf.mxu1  ;;  %9332 = vmatprep.subr.bf16.mxu0 %v10391_v1  ;;  %6685 = vmatprep.mubr.bf16.mxu0 %v10397_v14 }
 0x17b   :  { %v12270_v26 = vadd.f32 %v8862_v23, %v5974_v58  ;;  %v8819_v5 = vadd.f32 %v8818_v4, %v8817_v10  ;;  %v8865_v27 = vadd.f32 %v8864_v16, %v8863_v15  ;;  %6751 = vmatmul.mubr.bf16.vlgmr.msra.gmra.mxu1 %v10388_v24  ;;  %9333 = vmatpush3.bf16.msra.mxu0 %v10392_v28  ;;  %v10414_v23 = vld [vmem:[%s13603_s1 + $0x920] sm:$0xff]   ;;  %v10415_v15 = vld [vmem:[%s13603_s1 + $0x9e8] sm:$0xff]   ;;  %v10419_v28 = vld [vmem:[%s13603_s1 + $0x918] sm:$0xff]  }
 0x17c   :  { %v8820_v18 = vpop.f32.mrf.mxu0  ;;  %v8866_v34 = vpop.f32.mrf.mxu1  ;;  %9334 = vmatprep.subr.bf16.mxu0 %v10393_v30  ;;  %6758 = vmatprep.mubr.bf16.mxu1 %v10400_v19  ;;  %v10416_v58 = vld [vmem:[%s13603_s1 + $0x9a8] sm:$0xff]   ;;  %v10420_v30 = vld [vmem:[%s13603_s1 + $0x9a0] sm:$0xff]  }
 0x17d   :  { %v5977_v22 = vadd.f32 %v8819_v5, %v12096_v11  ;;  %v10395_v11 = vld [vmem:[%s13604_s0 + $0x250] ss:$232 sps:$4 sm:$0xff]   ;;  %9379 = vmatpush3.bf16.msra.mxu1 %v10402_v47  ;;  %v10418_v5 = vld [vmem:[%s13603_s1 + $0x9e0] sm:$0xff]  }
 0x17e   :  { %v8821_v36 = vpop.f32.mrf.mxu0  ;;  %v8867_v37 = vpop.f32.mrf.mxu1  ;;  %v10424_v19 = vld [vmem:[%s13604_s0 + $0x5f8] ss:$232 sps:$4 sm:$0xff]  }
 0x17f   :  { %v12285_v32 = vadd.f32 %v8865_v27, %v5977_v22  ;;  %v8822_v41 = vadd.f32 %v8821_v36, %v8820_v18  ;;  %v8868_v42 = vadd.f32 %v8867_v37, %v8866_v34  ;;  %9335 = vmatpush3.bf16.msra.mxu0 %v10394_v8 }
 0x180   :  { %v8823_v45 = vpop.f32.mrf.mxu0  ;;  %v8869_v46 = vpop.f32.mrf.mxu1  ;;  %9336 = vmatprep.subr.bf16.mxu0 %v10403_v48 }
 0x181   :  { %v5982_v31 = vadd.f32 %v8822_v41, %v12129_v40  ;;  %6686 = vmatmul.mubr.bf16.gmra.mxu0 %v10395_v11  ;;  %v10405_v40 = vld [vmem:[%s13603_s1 + $0x9f0] sm:$0xff]   ;;  %v10426_v41 = vld [vmem:[%s13604_s0 + $0x5fc] ss:$232 sps:$4 sm:$0xff]  }
 0x182   :  { %v8824_v49 = vpop.f32.mrf.mxu0  ;;  %v8870_v33 = vpop.f32.mrf.mxu1  ;;  %9380 = vmatprep.subr.bf16.mxu1 %v10405_v40  ;;  %6693 = vmatprep.mubr.bf16.mxu0 %v10409_v61  ;;  %v10431_v40 = vld [vmem:[%s13603_s1 + $0x9d0] sm:$0xff]   ;;  %v10433_v61 = vld [vmem:[%s13603_s1 + $0x948] sm:$0xff]  }
 0x183   :  { %6759 = vmatmul.mubr.bf16.gmra.mxu1 %v10398_v35  ;;  %v12312_v25 = vadd.f32 %v8868_v42, %v5982_v31  ;;  %v8825_v38 = vadd.f32 %v8824_v49, %v8823_v45  ;;  %v8871_v54 = vadd.f32 %v8870_v33, %v8869_v46  ;;  %9337 = vmatpush3.bf16.msra.mxu0 %v10404_v52  ;;  %v10423_v35 = vld [vmem:[%s13604_s0 + $0x5f4] ss:$232 sps:$4 sm:$0xff]  }
 0x184   :  { %v8888_v55 = vpop.f32.mrf.mxu0  ;;  %v8934_v43 = vpop.f32.mrf.mxu1  ;;  %9381 = vmatpush3.bf16.msra.mxu1 %v10406_v57  ;;  %6766 = vmatprep.mubr.bf16.mxu1 %v10412_v20  ;;  %v10429_v49 = vld [vmem:[%s13603_s1 + $0x998] sm:$0xff]   ;;  %v10434_v20 = vld [vmem:[%s13604_s0 + $0x7c0] ss:$232 sps:$4 sm:$0xff]  }
 0x185   :  { %v5985_v21 = vadd.f32 %v8825_v38, %v12147_v51  ;;  %9338 = vmatprep.subr.bf16.mxu0 %v10413_v3  ;;  %9382 = vmatprep.subr.bf16.mxu1 %v10415_v15  ;;  %v10430_v38 = vld [vmem:[%s13603_s1 + $0x910] sm:$0xff]  }
 0x186   :  { %v8889_v62 = vpop.f32.mrf.mxu0  ;;  %v8935_v50 = vpop.f32.mrf.mxu1  ;;  %v10437_v3 = vld [vmem:[%s13604_s0 + $0x7c8] ss:$232 sps:$4 sm:$0xff]  }
 0x187   :  { %v12333_v51 = vadd.f32 %v8871_v54, %v5985_v21  ;;  %v8890_v39 = vadd.f32 %v8889_v62, %v8888_v55  ;;  %v8936_v6 = vadd.f32 %v8935_v50, %v8934_v43  ;;  %9339 = vmatpush3.bf16.msra.mxu0 %v10414_v23  ;;  %v10439_v23 = vld [vmem:[%s13604_s0 + $0x7cc] ss:$232 sps:$4 sm:$0xff]  }
 0x188   :  { %v8891_v7 = vpop.f32.mrf.mxu0  ;;  %v8937_v10 = vpop.f32.mrf.mxu1  ;;  %9383 = vmatpush3.bf16.msra.mxu1 %v10416_v58 }
 0x189   :  { %v6096_v56 = vadd.f32 %v8890_v39, %v12162_v44  ;;  %6694 = vmatmul.mubr.bf16.gmra.mxu0 %v10407_v60  ;;  %v10417_v44 = vld [vmem:[%s13603_s1 + $0x958] sm:$0xff]   ;;  %9384 = vmatprep.subr.bf16.mxu1 %v10418_v5  ;;  %v10436_v39 = vld [vmem:[%s13604_s0 + $0x7c4] ss:$232 sps:$4 sm:$0xff]  }
 0x18a   :  { %v8892_v59 = vpop.f32.mrf.mxu0  ;;  %v8938_v16 = vpop.f32.mrf.mxu1  ;;  %9340 = vmatprep.subr.bf16.mxu0 %v10417_v44  ;;  %6701 = vmatprep.mubr.bf16.mxu0 %v10423_v35  ;;  %v10450_v35 = vld [vmem:[%s13604_s0 + $0x98] ss:$232 sps:$4 sm:$0xff]  }
 0x18b   :  { %6767 = vmatmul.mubr.bf16.gmra.mxu1 %v10410_v63  ;;  %v12348_v9 = vadd.f32 %v8936_v6, %v6096_v56  ;;  %v8893_v4 = vadd.f32 %v8892_v59, %v8891_v7  ;;  %v8939_v24 = vadd.f32 %v8938_v16, %v8937_v10  ;;  %9341 = vmatpush3.bf16.msra.mxu0 %v10419_v28  ;;  %v10440_v10 = vld [vmem:[%s13603_s1 + $0x908] sm:$0xff]  }
 0x18c   :  { %v8894_v12 = vpop.f32.mrf.mxu0  ;;  %v8940_v1 = vpop.f32.mrf.mxu1  ;;  %9385 = vmatpush3.bf16.msra.mxu1 %v10420_v30  ;;  %6774 = vmatprep.mubr.bf16.mxu1 %v10426_v41  ;;  %v10441_v59 = vld [vmem:[%s13603_s1 + $0x9c8] sm:$0xff]   ;;  %v10446_v30 = vld [vmem:[%s13603_s1 + $0x980] sm:$0xff]   ;;  %v10453_v41 = vld [vmem:[%s13603_s1 + $0xa78] sm:$0xff]  }
 0x18d   :  { %v6099_v27 = vadd.f32 %v8893_v4, %v12177_v13  ;;  %v10421_v13 = vld [vmem:[%s13604_s0 + $0x5f0] ss:$232 sps:$4 sm:$0xff]   ;;  %9386 = vmatprep.subr.bf16.mxu1 %v10427_v0  ;;  %v10442_v4 = vld [vmem:[%s13603_s1 + $0x988] sm:$0xff]  }
 0x18e   :  { %v8895_v22 = vpop.f32.mrf.mxu0  ;;  %v8941_v34 = vpop.f32.mrf.mxu1  ;;  %v10454_v0 = vld [vmem:[%s13603_s1 + $0xa38] sm:$0xff]  }
 0x18f   :  { %v12363_v8 = vadd.f32 %v8939_v24, %v6099_v27  ;;  %v8896_v18 = vadd.f32 %v8895_v22, %v8894_v12  ;;  %v8942_v11 = vadd.f32 %v8941_v34, %v8940_v1  ;;  %v10444_v12 = vld [vmem:[%s13603_s1 + $0x900] sm:$0xff]  }
 0x190   :  { %v8897_v14 = vpop.f32.mrf.mxu0  ;;  %v8943_v37 = vpop.f32.mrf.mxu1  ;;  %9387 = vmatpush3.bf16.msra.mxu1 %v10429_v49  ;;  %v10445_v1 = vld [vmem:[%s13603_s1 + $0x9c0] sm:$0xff]  }
 0x191   :  { %v6104_v36 = vadd.f32 %v8896_v18, %v12195_v29  ;;  %6702 = vmatmul.mubr.bf16.gmra.mxu0 %v10421_v13  ;;  %v10428_v29 = vld [vmem:[%s13603_s1 + $0x950] sm:$0xff]   ;;  %9388 = vmatprep.subr.bf16.mxu1 %v10431_v40 }
 0x192   :  { %v8898_v42 = vpop.f32.mrf.mxu0  ;;  %v8944_v47 = vpop.f32.mrf.mxu1  ;;  %9342 = vmatprep.subr.bf16.mxu0 %v10428_v29  ;;  %6709 = vmatprep.mubr.bf16.mxu0 %v10436_v39  ;;  %v10447_v13 = vld [vmem:[%s13604_s0 + $0x90] ss:$232 sps:$4 sm:$0xff]   ;;  %v10462_v40 = vld [vmem:[%s13604_s0 + $0x26c] ss:$232 sps:$4 sm:$0xff]  }
 0x193   :  { %v12381_v45 = vadd.f32 %v8942_v11, %v6104_v36  ;;  %v8899_v46 = vadd.f32 %v8898_v42, %v8897_v14  ;;  %v8945_v31 = vadd.f32 %v8944_v47, %v8943_v37  ;;  %6775 = vmatmul.mubr.bf16.gmra.mxu1 %v10424_v19  ;;  %9343 = vmatpush3.bf16.msra.mxu0 %v10430_v38  ;;  %v10449_v11 = vld [vmem:[%s13604_s0 + $0x94] ss:$232 sps:$4 sm:$0xff]  }
 0x194   :  { %v8900_v48 = vpop.f32.mrf.mxu0  ;;  %v8946_v52 = vpop.f32.mrf.mxu1  ;;  %9344 = vmatprep.subr.bf16.mxu0 %v10433_v61  ;;  %6782 = vmatprep.mubr.bf16.mxu1 %v10439_v23  ;;  %v10455_v47 = vld [vmem:[%s13603_s1 + $0xa70] sm:$0xff]   ;;  %v10464_v61 = vld [vmem:[%s13603_s1 + $0xab8] sm:$0xff]  }
 0x195   :  { %v6107_v33 = vadd.f32 %v8899_v46, %v12210_v17  ;;  %v10432_v17 = vld [vmem:[%s13603_s1 + $0x990] sm:$0xff]  }
 0x196   :  { %v8901_v54 = vpop.f32.mrf.mxu0  ;;  %v8947_v21 = vpop.f32.mrf.mxu1  ;;  %9389 = vmatpush3.bf16.msra.mxu1 %v10432_v17  ;;  %v10456_v29 = vld [vmem:[%s13603_s1 + $0xa30] sm:$0xff]   ;;  %v10463_v17 = vld [vmem:[%s13603_s1 + $0xaf8] sm:$0xff]  }
 0x197   :  { %v12396_v55 = vadd.f32 %v8945_v31, %v6107_v33  ;;  %v8902_v57 = vadd.f32 %v8901_v54, %v8900_v48  ;;  %v8948_v43 = vadd.f32 %v8947_v21, %v8946_v52  ;;  %9345 = vmatpush3.bf16.msra.mxu0 %v10440_v10  ;;  %9390 = vmatprep.subr.bf16.mxu1 %v10441_v59  ;;  %v10459_v33 = vld [vmem:[%s13604_s0 + $0x264] ss:$232 sps:$4 sm:$0xff]   ;;  %v10460_v54 = vld [vmem:[%s13604_s0 + $0x268] ss:$232 sps:$4 sm:$0xff]   ;;  %v10471_v59 = vld [vmem:[%s13604_s0 + $0x434] ss:$232 sps:$4 sm:$0xff]  }
 0x198   :  { %v8903_v60 = vpop.f32.mrf.mxu0  ;;  %v8949_v63 = vpop.f32.mrf.mxu1  ;;  %v10468_v23 = vld [vmem:[%s13603_s1 + $0xab0] sm:$0xff]  }
 0x199   :  { %v6112_v62 = vadd.f32 %v8902_v57, %v12231_v53  ;;  %6710 = vmatmul.mubr.bf16.gmra.mxu0 %v10434_v20 }
 0x19a   :  { %v8904_v50 = vpop.f32.mrf.mxu0  ;;  %v8950_v53 = vpop.f32.mrf.mxu1  ;;  %9391 = vmatpush3.bf16.msra.mxu1 %v10442_v4  ;;  %6823 = vmatprep.mubr.bf16.mxu0 %v10449_v11  ;;  %v10472_v4 = vld [vmem:[%s13604_s0 + $0x438] ss:$232 sps:$4 sm:$0xff]  }
 0x19b   :  { %v12414_v6 = vadd.f32 %v8948_v43, %v6112_v62  ;;  %v8905_v7 = vadd.f32 %v8904_v50, %v8903_v60  ;;  %v8951_v56 = vadd.f32 %v8950_v53, %v8949_v63  ;;  %6783 = vmatmul.mubr.bf16.gmra.mxu1 %v10437_v3  ;;  %9392 = vmatprep.subr.bf16.mxu1 %v10445_v1  ;;  %v10465_v63 = vld [vmem:[%s13603_s1 + $0xa68] sm:$0xff]  }
 0x19c   :  { %v8906_v58 = vpop.f32.mrf.mxu0  ;;  %v8952_v44 = vpop.f32.mrf.mxu1  ;;  %v10466_v50 = vld [vmem:[%s13603_s1 + $0xa28] sm:$0xff]  }
 0x19d   :  { %v6115_v15 = vadd.f32 %v8905_v7, %v12246_v2  ;;  %v10443_v2 = vld [vmem:[%s13603_s1 + $0x940] sm:$0xff]  }
 0x19e   :  { %v8907_v24 = vpop.f32.mrf.mxu0  ;;  %v8953_v27 = vpop.f32.mrf.mxu1  ;;  %9346 = vmatprep.subr.bf16.mxu0 %v10443_v2  ;;  %9393 = vmatpush3.bf16.msra.mxu1 %v10446_v30 }
 0x19f   :  { %v12429_v16 = vadd.f32 %v8951_v56, %v6115_v15  ;;  %v8908_v5 = vadd.f32 %v8907_v24, %v8906_v58  ;;  %v8954_v28 = vadd.f32 %v8953_v27, %v8952_v44  ;;  %9347 = vmatpush3.bf16.msra.mxu0 %v10444_v12  ;;  %9470 = vmatprep.subr.bf16.mxu1 %v10463_v17  ;;  %v10469_v15 = vld [vmem:[%s13604_s0 + $0x430] ss:$232 sps:$4 sm:$0xff]  }
 0x1a0   :  { %v8909_v22 = vpop.f32.mrf.mxu0  ;;  %v8955_v34 = vpop.f32.mrf.mxu1  ;;  %9424 = vmatprep.subr.bf16.mxu0 %v10453_v41 }
 0x1a1   :  { %v6120_v18 = vadd.f32 %v8908_v5, %v12270_v26  ;;  %v10452_v26 = vld [vmem:[%s13604_s0 + $0x9c] ss:$232 sps:$4 sm:$0xff]  }
 0x1a2   :  { %v8910_v14 = vpop.f32.mrf.mxu0  ;;  %v8956_v19 = vpop.f32.mrf.mxu1  ;;  %6896 = vmatprep.mubr.bf16.mxu1 %v10452_v26  ;;  %6824 = vmatmul.mubr.bf16.vlgmr.msra.gmra.mxu0 %v10447_v13  ;;  %v10475_v5 = vld [vmem:[%s13603_s1 + $0xa60] sm:$0xff]   ;;  %v10478_v13 = vld [vmem:[%s13603_s1 + $0xaa8] sm:$0xff]  }
 0x1a3   :  { %v12456_v36 = vadd.f32 %v8954_v28, %v6120_v18  ;;  %v8911_v37 = vadd.f32 %v8910_v14, %v8909_v22  ;;  %v8957_v42 = vadd.f32 %v8956_v19, %v8955_v34  ;;  %6897 = vmatmul.mubr.bf16.vlgmr.msra.gmra.mxu1 %v10450_v35  ;;  %9425 = vmatpush3.bf16.msra.mxu0 %v10454_v0  ;;  %v10476_v28 = vld [vmem:[%s13603_s1 + $0xa20] sm:$0xff]   ;;  %v10477_v18 = vld [vmem:[%s13603_s1 + $0xae8] sm:$0xff]   ;;  %v10481_v0 = vld [vmem:[%s13603_s1 + $0xa18] sm:$0xff]  }
 0x1a4   :  { %v8912_v48 = vpop.f32.mrf.mxu0  ;;  %v8958_v49 = vpop.f32.mrf.mxu1  ;;  %9426 = vmatprep.subr.bf16.mxu0 %v10455_v47  ;;  %6831 = vmatprep.mubr.bf16.mxu0 %v10459_v33  ;;  %v10480_v19 = vld [vmem:[%s13603_s1 + $0xae0] sm:$0xff]  }
 0x1a5   :  { %v6123_v46 = vadd.f32 %v8911_v37, %v12285_v32  ;;  %v10457_v32 = vld [vmem:[%s13604_s0 + $0x260] ss:$232 sps:$4 sm:$0xff]   ;;  %6904 = vmatprep.mubr.bf16.mxu1 %v10462_v40  ;;  %9471 = vmatpush3.bf16.msra.mxu1 %v10464_v61 }
 0x1a6   :  { %v8913_v52 = vpop.f32.mrf.mxu0  ;;  %v8959_v38 = vpop.f32.mrf.mxu1  ;;  %v10482_v47 = vld [vmem:[%s13603_s1 + $0xaa0] sm:$0xff]  }
 0x1a7   :  { %v12471_v31 = vadd.f32 %v8957_v42, %v6123_v46  ;;  %v8914_v57 = vadd.f32 %v8913_v52, %v8912_v48  ;;  %v8960_v21 = vadd.f32 %v8959_v38, %v8958_v49  ;;  %9427 = vmatpush3.bf16.msra.mxu0 %v10456_v29  ;;  %v10486_v38 = vld [vmem:[%s13604_s0 + $0x608] ss:$232 sps:$4 sm:$0xff]  }
 0x1a8   :  { %v8915_v43 = vpop.f32.mrf.mxu0  ;;  %v8961_v60 = vpop.f32.mrf.mxu1  ;;  %9428 = vmatprep.subr.bf16.mxu0 %v10465_v63 }
 0x1a9   :  { %v6128_v62 = vadd.f32 %v8914_v57, %v12312_v25  ;;  %v10467_v25 = vld [vmem:[%s13603_s1 + $0xaf0] sm:$0xff]  }
 0x1aa   :  { %6832 = vmatmul.mubr.bf16.gmra.mxu0 %v10457_v32  ;;  %v8916_v20 = vpop.f32.mrf.mxu0  ;;  %v8962_v39 = vpop.f32.mrf.mxu1  ;;  %9472 = vmatprep.subr.bf16.mxu1 %v10467_v25  ;;  %v10485_v32 = vld [vmem:[%s13604_s0 + $0x604] ss:$232 sps:$4 sm:$0xff]  }
 0x1ab   :  { %6905 = vmatmul.mubr.bf16.gmra.mxu1 %v10460_v54  ;;  %v12498_v3 = vadd.f32 %v8960_v21, %v6128_v62  ;;  %v8917_v7 = vadd.f32 %v8916_v20, %v8915_v43  ;;  %v8963_v53 = vadd.f32 %v8962_v39, %v8961_v60  ;;  %9429 = vmatpush3.bf16.msra.mxu0 %v10466_v50  ;;  %v10488_v54 = vld [vmem:[%s13604_s0 + $0x60c] ss:$232 sps:$4 sm:$0xff]   ;;  %v10489_v21 = vld [vmem:[%s13603_s1 + $0xad8] sm:$0xff]  }
 0x1ac   :  { %9473 = vmatpush3.bf16.msra.mxu1 %v10468_v23  ;;  %6839 = vmatprep.mubr.bf16.mxu0 %v10471_v59  ;;  %v10490_v43 = vld [vmem:[%s13603_s1 + $0xa50] sm:$0xff]  }
 0x1ad   :  { %v6131_v56 = vadd.f32 %v8917_v7, %v12333_v51  ;;  %v10474_v51 = vld [vmem:[%s13604_s0 + $0x43c] ss:$232 sps:$4 sm:$0xff]   ;;  %9430 = vmatprep.subr.bf16.mxu0 %v10475_v5  ;;  %9474 = vmatprep.subr.bf16.mxu1 %v10477_v18  ;;  %v10492_v39 = vld [vmem:[%s13603_s1 + $0xa10] sm:$0xff]   ;;  %v10499_v5 = vld [vmem:[%s13604_s0 + $0x7d8] ss:$232 sps:$4 sm:$0xff]  }
 0x1ae   :  { %6912 = vmatprep.mubr.bf16.mxu1 %v10474_v51  ;;  %v10494_v23 = vld [vmem:[%s13603_s1 + $0xa90] sm:$0xff]   ;;  %v10503_v18 = vld [vmem:[%s13603_s1 + $0xac8] sm:$0xff]  }
 0x1af   :  { %v12516_v44 = vadd.f32 %v8963_v53, %v6131_v56  ;;  %9431 = vmatpush3.bf16.msra.mxu0 %v10476_v28  ;;  %v10493_v53 = vld [vmem:[%s13603_s1 + $0xad0] sm:$0xff]  }
 0x1b0   :  { %9475 = vmatpush3.bf16.msra.mxu1 %v10478_v13  ;;  %v10504_v13 = vld [vmem:[%s13603_s1 + $0xa88] sm:$0xff]  }
 0x1b1   :  { %v8980_v10 = vpop.f32.mrf.mxu0  ;;  %v9026_v58 = vpop.f32.mrf.mxu1  ;;  %9476 = vmatprep.subr.bf16.mxu1 %v10480_v19  ;;  %v10507_v19 = vld [vmem:[%s13603_s1 + $0xac0] sm:$0xff]  }
 0x1b2   :  { %6840 = vmatmul.mubr.bf16.gmra.mxu0 %v10469_v15 }
 0x1b3   :  { %v8981_v2 = vpop.f32.mrf.mxu0  ;;  %v9027_v12 = vpop.f32.mrf.mxu1  ;;  %6913 = vmatmul.mubr.bf16.gmra.mxu1 %v10472_v4  ;;  %6847 = vmatprep.mubr.bf16.mxu0 %v10485_v32  ;;  %v10496_v4 = vld [vmem:[%s13604_s0 + $0x7d0] ss:$232 sps:$4 sm:$0xff]  }
 0x1b4   :  { %v8982_v24 = vadd.f32 %v8981_v2, %v8980_v10  ;;  %v9028_v27 = vadd.f32 %v9027_v12, %v9026_v58  ;;  %9477 = vmatpush3.bf16.msra.mxu1 %v10482_v47  ;;  %6920 = vmatprep.mubr.bf16.mxu1 %v10488_v54 }
 0x1b5   :  { %v8983_v1 = vpop.f32.mrf.mxu0  ;;  %v9029_v30 = vpop.f32.mrf.mxu1  ;;  %9478 = vmatprep.subr.bf16.mxu1 %v10489_v21 }
 0x1b6   :  { %v6242_v22 = vadd.f32 %v8982_v24, %v12348_v9  ;;  %v10479_v9 = vld [vmem:[%s13603_s1 + $0xa58] sm:$0xff]  }
 0x1b7   :  { %v8984_v34 = vpop.f32.mrf.mxu0  ;;  %v9030_v35 = vpop.f32.mrf.mxu1  ;;  %9432 = vmatprep.subr.bf16.mxu0 %v10479_v9  ;;  %v10498_v24 = vld [vmem:[%s13604_s0 + $0x7d4] ss:$232 sps:$4 sm:$0xff]  }
 0x1b8   :  { %v12534_v11 = vadd.f32 %v9028_v27, %v6242_v22  ;;  %v8985_v14 = vadd.f32 %v8984_v34, %v8983_v1  ;;  %v9031_v26 = vadd.f32 %v9030_v35, %v9029_v30  ;;  %9433 = vmatpush3.bf16.msra.mxu0 %v10481_v0  ;;  %v10501_v27 = vld [vmem:[%s13604_s0 + $0x7dc] ss:$232 sps:$4 sm:$0xff]   ;;  %v10502_v22 = vld [vmem:[%s13603_s1 + $0xa08] sm:$0xff]  }
 0x1b9   :  { %v8986_v37 = vpop.f32.mrf.mxu0  ;;  %v9032_v42 = vpop.f32.mrf.mxu1  ;;  %9434 = vmatprep.subr.bf16.mxu0 %v10490_v43  ;;  %v10505_v35 = vld [vmem:[%s13603_s1 + $0xa40] sm:$0xff]  }
 0x1ba   :  { %v6245_v41 = vadd.f32 %v8985_v14, %v12363_v8  ;;  %v10483_v8 = vld [vmem:[%s13604_s0 + $0x600] ss:$232 sps:$4 sm:$0xff]  }
 0x1bb   :  { %v8987_v46 = vpop.f32.mrf.mxu0  ;;  %v9033_v49 = vpop.f32.mrf.mxu1  ;;  %6848 = vmatmul.mubr.bf16.gmra.mxu0 %v10483_v8  ;;  %6921 = vmatmul.mubr.bf16.gmra.mxu1 %v10486_v38  ;;  %v10508_v0 = vld [vmem:[%s13603_s1 + $0xa80] sm:$0xff]   ;;  %v10514_v38 = vld [vmem:[%s13604_s0 + $0xac] ss:$232 sps:$4 sm:$0xff]  }
 0x1bc   :  { %v12549_v29 = vadd.f32 %v9031_v26, %v6245_v41  ;;  %v8988_v48 = vadd.f32 %v8987_v46, %v8986_v37  ;;  %v9034_v33 = vadd.f32 %v9033_v49, %v9032_v42  ;;  %9435 = vmatpush3.bf16.msra.mxu0 %v10492_v39  ;;  %6855 = vmatprep.mubr.bf16.mxu0 %v10498_v24  ;;  %v10511_v49 = vld [vmem:[%s13604_s0 + $0xa4] ss:$232 sps:$4 sm:$0xff]  }
 0x1bd   :  { %v8989_v52 = vpop.f32.mrf.mxu0  ;;  %v9035_v57 = vpop.f32.mrf.mxu1  ;;  %6928 = vmatprep.mubr.bf16.mxu1 %v10501_v27  ;;  %v10529_v27 = vld [vmem:[%s13603_s1 + $0xbf0] sm:$0xff]  }
 0x1be   :  { %v6250_v40 = vadd.f32 %v8988_v48, %v12381_v45  ;;  %v10491_v45 = vld [vmem:[%s13603_s1 + $0xa98] sm:$0xff]   ;;  %v10509_v48 = vld [vmem:[%s13604_s0 + $0xa0] ss:$232 sps:$4 sm:$0xff]  }
 0x1bf   :  { %v8990_v17 = vpop.f32.mrf.mxu0  ;;  %v9036_v62 = vpop.f32.mrf.mxu1  ;;  %9479 = vmatpush3.bf16.msra.mxu1 %v10491_v45  ;;  %v10518_v45 = vld [vmem:[%s13603_s1 + $0xb30] sm:$0xff]  }
 0x1c0   :  { %v12570_v60 = vadd.f32 %v9034_v33, %v6250_v40  ;;  %v8991_v61 = vadd.f32 %v8990_v17, %v8989_v52  ;;  %v9037_v63 = vadd.f32 %v9036_v62, %v9035_v57  ;;  %9480 = vmatprep.subr.bf16.mxu1 %v10493_v53  ;;  %v10512_v33 = vld [vmem:[%s13604_s0 + $0xa8] ss:$232 sps:$4 sm:$0xff]   ;;  %v10516_v17 = vld [vmem:[%s13603_s1 + $0xb38] sm:$0xff]  }
 0x1c1   :  { %v8992_v20 = vpop.f32.mrf.mxu0  ;;  %v9038_v7 = vpop.f32.mrf.mxu1  ;;  %v10517_v62 = vld [vmem:[%s13603_s1 + $0xb70] sm:$0xff]   ;;  %v10522_v53 = vld [vmem:[%s13604_s0 + $0x278] ss:$232 sps:$4 sm:$0xff]  }
 0x1c2   :  { %v6253_v50 = vadd.f32 %v8991_v61, %v12396_v55  ;;  %v10495_v55 = vld [vmem:[%s13603_s1 + $0xa48] sm:$0xff]  }
 0x1c3   :  { %v8993_v25 = vpop.f32.mrf.mxu0  ;;  %v9039_v15 = vpop.f32.mrf.mxu1  ;;  %9481 = vmatpush3.bf16.msra.mxu1 %v10494_v23  ;;  %9436 = vmatprep.subr.bf16.mxu0 %v10495_v55 }
 0x1c4   :  { %v12585_v56 = vadd.f32 %v9037_v63, %v6253_v50  ;;  %v8994_v10 = vadd.f32 %v8993_v25, %v8992_v20  ;;  %v9040_v59 = vadd.f32 %v9039_v15, %v9038_v7  ;;  %6856 = vmatmul.mubr.bf16.gmra.mxu0 %v10496_v4  ;;  %6929 = vmatmul.mubr.bf16.gmra.mxu1 %v10499_v5  ;;  %v10521_v50 = vld [vmem:[%s13604_s0 + $0x274] ss:$232 sps:$4 sm:$0xff]  }
 0x1c5   :  { %v8995_v58 = vpop.f32.mrf.mxu0  ;;  %v9041_v51 = vpop.f32.mrf.mxu1  ;;  %9437 = vmatpush3.bf16.msra.mxu0 %v10502_v22  ;;  %9482 = vmatprep.subr.bf16.mxu1 %v10503_v18  ;;  %v10524_v25 = vld [vmem:[%s13604_s0 + $0x27c] ss:$232 sps:$4 sm:$0xff]   ;;  %v10530_v22 = vld [vmem:[%s13603_s1 + $0xbb0] sm:$0xff]   ;;  %v10531_v18 = vld [vmem:[%s13604_s0 + $0x440] ss:$232 sps:$4 sm:$0xff]  }
 0x1c6   :  { %v6258_v2 = vadd.f32 %v8994_v10, %v12414_v6  ;;  %9438 = vmatprep.subr.bf16.mxu0 %v10505_v35  ;;  %6969 = vmatprep.mubr.bf16.mxu0 %v10511_v49  ;;  %v10525_v15 = vld [vmem:[%s13603_s1 + $0xbf8] sm:$0xff]   ;;  %v10534_v35 = vld [vmem:[%s13604_s0 + $0x448] ss:$232 sps:$4 sm:$0xff]  }
 0x1c7   :  { %v8996_v12 = vpop.f32.mrf.mxu0  ;;  %v9042_v6 = vpop.f32.mrf.mxu1  ;;  %9483 = vmatpush3.bf16.msra.mxu1 %v10504_v13  ;;  %7042 = vmatprep.mubr.bf16.mxu1 %v10514_v38 }
 0x1c8   :  { %v12603_v1 = vadd.f32 %v9040_v59, %v6258_v2  ;;  %v8997_v28 = vadd.f32 %v8996_v12, %v8995_v58  ;;  %v9043_v30 = vadd.f32 %v9042_v6, %v9041_v51  ;;  %9484 = vmatprep.subr.bf16.mxu1 %v10507_v19  ;;  %v10526_v58 = vld [vmem:[%s13603_s1 + $0xbb8] sm:$0xff]   ;;  %v10527_v51 = vld [vmem:[%s13603_s1 + $0xb68] sm:$0xff]   ;;  %v10537_v19 = vld [vmem:[%s13603_s1 + $0xb60] sm:$0xff]  }
 0x1ca   :  { %v6261_v34 = vadd.f32 %v8997_v28, %v12429_v16  ;;  %v9044_v26 = vpop.f32.mrf.mxu1  ;;  %v10506_v16 = vld [vmem:[%s13603_s1 + $0xa00] sm:$0xff]  }
 0x1cb   :  { %9439 = vmatpush3.bf16.msra.mxu0 %v10506_v16  ;;  %9485 = vmatpush3.bf16.msra.mxu1 %v10508_v0  ;;  %v10538_v0 = vld [vmem:[%s13603_s1 + $0xb20] sm:$0xff]  }
 0x1cc   :  { %v12618_v9 = vadd.f32 %v9043_v30, %v6261_v34  ;;  %v9045_v42 = vpop.f32.mrf.mxu1  ;;  %9562 = vmatprep.subr.bf16.mxu1 %v10525_v15  ;;  %v10551_v15 = vld [vmem:[%s13603_s1 + $0xbd8] sm:$0xff]  }
 0x1cd   :  { %v9046_v46 = vadd.f32 %v9045_v42, %v9044_v26  ;;  %v10536_v26 = vld [vmem:[%s13604_s0 + $0x44c] ss:$232 sps:$4 sm:$0xff]  }
 0x1ce   :  { %v9047_v32 = vpop.f32.mrf.mxu1  ;;  %6970 = vmatmul.mubr.bf16.vlgmr.msra.gmra.mxu0 %v10509_v48  ;;  %7043 = vmatmul.mubr.bf16.vlgmr.msra.gmra.mxu1 %v10512_v33  ;;  %v10539_v48 = vld [vmem:[%s13603_s1 + $0xbe8] sm:$0xff]  }
 0x1cf   :  { %6977 = vmatprep.mubr.bf16.mxu0 %v10521_v50  ;;  %7050 = vmatprep.mubr.bf16.mxu1 %v10524_v25 }
 0x1d0   :  { %v9048_v57 = vpop.f32.mrf.mxu1  ;;  %9563 = vmatpush3.bf16.msra.mxu1 %v10526_v58 }
 0x1d1   :  { %v9049_v21 = vadd.f32 %v9048_v57, %v9047_v32  ;;  %9564 = vmatprep.subr.bf16.mxu1 %v10529_v27  ;;  %v10542_v57 = vld [vmem:[%s13603_s1 + $0xbe0] sm:$0xff]  }
 0x1d2   :  { %v9050_v20 = vpop.f32.mrf.mxu1 }
 0x1d4   :  { %v9051_v23 = vpop.f32.mrf.mxu1  ;;  %9565 = vmatpush3.bf16.msra.mxu1 %v10530_v22 }
 0x1d5   :  { %v8998_v14 = vpop.f32.mrf.mxu0  ;;  %v9052_v59 = vadd.f32 %v9051_v23, %v9050_v20  ;;  %9566 = vmatprep.subr.bf16.mxu1 %v10539_v48  ;;  %v10550_v23 = vld [vmem:[%s13604_s0 + $0x61c] ss:$232 sps:$4 sm:$0xff]   ;;  %v10565_v48 = vld [vmem:[%s13603_s1 + $0xbc8] sm:$0xff]  }
 0x1d6   :  { %v9053_v4 = vpop.f32.mrf.mxu1  ;;  %7051 = vmatmul.mubr.bf16.gmra.mxu1 %v10522_v53 }
 0x1d7   :  { %v8999_v37 = vpop.f32.mrf.mxu0  ;;  %7058 = vmatprep.mubr.bf16.mxu1 %v10536_v26  ;;  %v10558_v26 = vld [vmem:[%s13604_s0 + $0x7e0] ss:$232 sps:$4 sm:$0xff]  }
 0x1d8   :  { %v9000_v41 = vadd.f32 %v8999_v37, %v8998_v14  ;;  %v9054_v5 = vpop.f32.mrf.mxu1 }
 0x1d9   :  { %v9001_v47 = vpop.f32.mrf.mxu0  ;;  %v9055_v6 = vadd.f32 %v9054_v5, %v9053_v4  ;;  %v10554_v5 = vld [vmem:[%s13603_s1 + $0xb10] sm:$0xff]  }
 0x1da   :  { %v6266_v8 = vadd.f32 %v9000_v41, %v12456_v36  ;;  %v10515_v36 = vld [vmem:[%s13603_s1 + $0xb78] sm:$0xff]  }
 0x1db   :  { %v9002_v52 = vpop.f32.mrf.mxu0  ;;  %9516 = vmatprep.subr.bf16.mxu0 %v10515_v36 }
 0x1dc   :  { %v12642_v54 = vadd.f32 %v9046_v46, %v6266_v8  ;;  %v9003_v40 = vadd.f32 %v9002_v52, %v9001_v47  ;;  %9517 = vmatpush3.bf16.msra.mxu0 %v10516_v17  ;;  %v10540_v8 = vld [vmem:[%s13603_s1 + $0xba8] sm:$0xff]   ;;  %v10543_v17 = vld [vmem:[%s13603_s1 + $0xb18] sm:$0xff]  }
 0x1dd   :  { %v9004_v61 = vpop.f32.mrf.mxu0  ;;  %9518 = vmatprep.subr.bf16.mxu0 %v10517_v62  ;;  %9567 = vmatpush3.bf16.msra.mxu1 %v10540_v8  ;;  %v10566_v8 = vld [vmem:[%s13603_s1 + $0xb88] sm:$0xff]  }
 0x1de   :  { %v6269_v43 = vadd.f32 %v9003_v40, %v12471_v31  ;;  %v10519_v31 = vld [vmem:[%s13604_s0 + $0x270] ss:$232 sps:$4 sm:$0xff]   ;;  %7059 = vmatmul.mubr.bf16.gmra.mxu1 %v10534_v35  ;;  %9568 = vmatprep.subr.bf16.mxu1 %v10542_v57  ;;  %v10569_v57 = vld [vmem:[%s13603_s1 + $0xbc0] sm:$0xff]  }
 0x1df   :  { %v9005_v39 = vpop.f32.mrf.mxu0  ;;  %6978 = vmatmul.mubr.bf16.gmra.mxu0 %v10519_v31  ;;  %7066 = vmatprep.mubr.bf16.mxu1 %v10550_v23 }
 0x1e0   :  { %v12657_v63 = vadd.f32 %v9049_v21, %v6269_v43  ;;  %v9006_v7 = vadd.f32 %v9005_v39, %v9004_v61  ;;  %9519 = vmatpush3.bf16.msra.mxu0 %v10518_v45  ;;  %v10544_v61 = vld [vmem:[%s13603_s1 + $0xba0] sm:$0xff]   ;;  %v10547_v39 = vld [vmem:[%s13604_s0 + $0x614] ss:$232 sps:$4 sm:$0xff]  }
 0x1e1   :  { %v9007_v10 = vpop.f32.mrf.mxu0  ;;  %9520 = vmatprep.subr.bf16.mxu0 %v10527_v51  ;;  %9569 = vmatpush3.bf16.msra.mxu1 %v10544_v61  ;;  %v10553_v51 = vld [vmem:[%s13603_s1 + $0xb98] sm:$0xff]  }
 0x1e2   :  { %v6274_v55 = vadd.f32 %v9006_v7, %v12498_v3  ;;  %v10528_v3 = vld [vmem:[%s13603_s1 + $0xb28] sm:$0xff]   ;;  %v10548_v7 = vld [vmem:[%s13604_s0 + $0x618] ss:$232 sps:$4 sm:$0xff]   ;;  %9570 = vmatprep.subr.bf16.mxu1 %v10551_v15 }
 0x1e3   :  { %v9008_v2 = vpop.f32.mrf.mxu0  ;;  %v10578_v15 = vld [vmem:[%s13603_s1 + $0xc38] sm:$0xff]  }
 0x1e4   :  { %v12681_v24 = vadd.f32 %v9052_v59, %v6274_v55  ;;  %v9009_v12 = vadd.f32 %v9008_v2, %v9007_v10  ;;  %9521 = vmatpush3.bf16.msra.mxu0 %v10528_v3 }
 0x1e5   :  { %9522 = vmatprep.subr.bf16.mxu0 %v10537_v19  ;;  %9571 = vmatpush3.bf16.msra.mxu1 %v10553_v51  ;;  %v10561_v19 = vld [vmem:[%s13604_s0 + $0x7e8] ss:$232 sps:$4 sm:$0xff]  }
 0x1e6   :  { %v6277_v28 = vadd.f32 %v9009_v12, %v12516_v44  ;;  %v10533_v44 = vld [vmem:[%s13604_s0 + $0x444] ss:$232 sps:$4 sm:$0xff]   ;;  %7067 = vmatmul.mubr.bf16.gmra.mxu1 %v10548_v7 }
 0x1e7   :  { %6985 = vmatprep.mubr.bf16.mxu0 %v10533_v44  ;;  %v10557_v44 = vld [vmem:[%s13603_s1 + $0xb48] sm:$0xff]   ;;  %v10576_v7 = vld [vmem:[%s13604_s0 + $0xbc] ss:$232 sps:$4 sm:$0xff]  }
 0x1e8   :  { %v12696_v34 = vadd.f32 %v9055_v6, %v6277_v28  ;;  %6986 = vmatmul.mubr.bf16.gmra.mxu0 %v10531_v18  ;;  %v10555_v28 = vld [vmem:[%s13603_s1 + $0xbd0] sm:$0xff]  }
 0x1e9   :  { %v9072_v30 = vpop.f32.mrf.mxu0  ;;  %9523 = vmatpush3.bf16.msra.mxu0 %v10538_v0  ;;  %6993 = vmatprep.mubr.bf16.mxu0 %v10547_v39  ;;  %v10573_v39 = vld [vmem:[%s13604_s0 + $0xb4] ss:$232 sps:$4 sm:$0xff]  }
 0x1ea   :  { %v9118_v13 = vpop.f32.mrf.mxu1  ;;  %9572 = vmatprep.subr.bf16.mxu1 %v10555_v28 }
 0x1eb   :  { %v9073_v14 = vpop.f32.mrf.mxu0 }
 0x1ec   :  { %v9074_v16 = vadd.f32 %v9073_v14, %v9072_v30  ;;  %v9119_v37 = vpop.f32.mrf.mxu1 }
 0x1ed   :  { %v9120_v41 = vadd.f32 %v9119_v37, %v9118_v13  ;;  %v9075_v42 = vpop.f32.mrf.mxu0 }
 0x1ee   :  { %v6388_v46 = vadd.f32 %v9074_v16, %v12534_v11  ;;  %v9121_v47 = vpop.f32.mrf.mxu1  ;;  %v10541_v11 = vld [vmem:[%s13603_s1 + $0xb58] sm:$0xff]   ;;  %v10560_v16 = vld [vmem:[%s13604_s0 + $0x7e4] ss:$232 sps:$4 sm:$0xff]  }
 0x1ef   :  { %v9076_v49 = vpop.f32.mrf.mxu0  ;;  %9524 = vmatprep.subr.bf16.mxu0 %v10541_v11 }
 0x1f0   :  { %v12720_v32 = vadd.f32 %v9120_v41, %v6388_v46  ;;  %v9077_v33 = vadd.f32 %v9076_v49, %v9075_v42  ;;  %v9122_v52 = vpop.f32.mrf.mxu1  ;;  %9525 = vmatpush3.bf16.msra.mxu0 %v10543_v17  ;;  %v10564_v46 = vld [vmem:[%s13603_s1 + $0xb08] sm:$0xff]   ;;  %v10570_v17 = vld [vmem:[%s13603_s1 + $0xb80] sm:$0xff]  }
 0x1f1   :  { %v9123_v38 = vadd.f32 %v9122_v52, %v9121_v47  ;;  %v9078_v40 = vpop.f32.mrf.mxu0  ;;  %v10567_v52 = vld [vmem:[%s13603_s1 + $0xb40] sm:$0xff]  }
 0x1f2   :  { %v6391_v36 = vadd.f32 %v9077_v33, %v12549_v29  ;;  %v9124_v21 = vpop.f32.mrf.mxu1  ;;  %v10545_v29 = vld [vmem:[%s13604_s0 + $0x610] ss:$232 sps:$4 sm:$0xff]  }
 0x1f3   :  { %v9079_v43 = vpop.f32.mrf.mxu0  ;;  %6994 = vmatmul.mubr.bf16.gmra.mxu0 %v10545_v29 }
 0x1f4   :  { %v12735_v62 = vadd.f32 %v9123_v38, %v6391_v36  ;;  %v9080_v45 = vadd.f32 %v9079_v43, %v9078_v40  ;;  %v9125_v20 = vpop.f32.mrf.mxu1  ;;  %7001 = vmatprep.mubr.bf16.mxu0 %v10560_v16 }
 0x1f5   :  { %v9126_v31 = vadd.f32 %v9125_v20, %v9124_v21  ;;  %v9081_v50 = vpop.f32.mrf.mxu0 }
 0x1f6   :  { %v6396_v53 = vadd.f32 %v9080_v45, %v12570_v60  ;;  %v9127_v25 = vpop.f32.mrf.mxu1  ;;  %v10552_v60 = vld [vmem:[%s13603_s1 + $0xb50] sm:$0xff]  }
 0x1f7   :  { %v9082_v10 = vpop.f32.mrf.mxu0  ;;  %9526 = vmatprep.subr.bf16.mxu0 %v10552_v60  ;;  %v10571_v45 = vld [vmem:[%s13604_s0 + $0xb0] ss:$232 sps:$4 sm:$0xff]  }
 0x1f8   :  { %v12753_v55 = vadd.f32 %v9126_v31, %v6396_v53  ;;  %v9083_v59 = vadd.f32 %v9082_v10, %v9081_v50  ;;  %v9128_v58 = vpop.f32.mrf.mxu1  ;;  %9527 = vmatpush3.bf16.msra.mxu0 %v10554_v5  ;;  %v10574_v50 = vld [vmem:[%s13604_s0 + $0xb8] ss:$232 sps:$4 sm:$0xff]   ;;  %v10584_v5 = vld [vmem:[%s13604_s0 + $0x288] ss:$232 sps:$4 sm:$0xff]  }
 0x1f9   :  { %v9129_v4 = vadd.f32 %v9128_v58, %v9127_v25  ;;  %v9084_v2 = vpop.f32.mrf.mxu0  ;;  %9528 = vmatprep.subr.bf16.mxu0 %v10557_v44  ;;  %v10579_v58 = vld [vmem:[%s13603_s1 + $0xc70] sm:$0xff]  }
 0x1fa   :  { %v6399_v12 = vadd.f32 %v9083_v59, %v12585_v56  ;;  %v9130_v3 = vpop.f32.mrf.mxu1  ;;  %v10556_v56 = vld [vmem:[%s13603_s1 + $0xb90] sm:$0xff]  }
 0x1fb   :  { %v9085_v27 = vpop.f32.mrf.mxu0  ;;  %9573 = vmatpush3.bf16.msra.mxu1 %v10556_v56  ;;  %7002 = vmatmul.mubr.bf16.gmra.mxu0 %v10558_v26  ;;  %v10589_v26 = vld [vmem:[%s13603_s1 + $0xc68] sm:$0xff]  }
 0x1fc   :  { %v12768_v6 = vadd.f32 %v9129_v4, %v6399_v12  ;;  %v9086_v22 = vadd.f32 %v9085_v27, %v9084_v2  ;;  %v9131_v30 = vpop.f32.mrf.mxu1  ;;  %9529 = vmatpush3.bf16.msra.mxu0 %v10564_v46  ;;  %9574 = vmatprep.subr.bf16.mxu1 %v10565_v48  ;;  %v10580_v4 = vld [vmem:[%s13603_s1 + $0xc30] sm:$0xff]   ;;  %v10583_v12 = vld [vmem:[%s13604_s0 + $0x284] ss:$232 sps:$4 sm:$0xff]  }
 0x1fd   :  { %v9132_v18 = vadd.f32 %v9131_v30, %v9130_v3  ;;  %v9087_v13 = vpop.f32.mrf.mxu0  ;;  %9530 = vmatprep.subr.bf16.mxu0 %v10567_v52  ;;  %7115 = vmatprep.mubr.bf16.mxu0 %v10573_v39  ;;  %v10593_v48 = vld [vmem:[%s13604_s0 + $0x450] ss:$232 sps:$4 sm:$0xff]  }
 0x1fe   :  { %v6404_v14 = vadd.f32 %v9086_v22, %v12603_v1  ;;  %v9133_v35 = vpop.f32.mrf.mxu1  ;;  %v10563_v1 = vld [vmem:[%s13604_s0 + $0x7ec] ss:$232 sps:$4 sm:$0xff]  }
 0x1ff   :  { %v9088_v37 = vpop.f32.mrf.mxu0  ;;  %7074 = vmatprep.mubr.bf16.mxu1 %v10563_v1  ;;  %9575 = vmatpush3.bf16.msra.mxu1 %v10566_v8  ;;  %v10586_v22 = vld [vmem:[%s13604_s0 + $0x28c] ss:$232 sps:$4 sm:$0xff]  }
 0x200   :  { %v12789_v41 = vadd.f32 %v9132_v18, %v6404_v14  ;;  %v9089_v42 = vadd.f32 %v9088_v37, %v9087_v13  ;;  %v9134_v0 = vpop.f32.mrf.mxu1  ;;  %7075 = vmatmul.mubr.bf16.gmra.mxu1 %v10561_v19  ;;  %9576 = vmatprep.subr.bf16.mxu1 %v10569_v57  ;;  %v10587_v18 = vld [vmem:[%s13603_s1 + $0xcf8] sm:$0xff]  }
 0x201   :  { %v9135_v47 = vadd.f32 %v9134_v0, %v9133_v35  ;;  %v9090_v33 = vpop.f32.mrf.mxu0  ;;  %7188 = vmatprep.mubr.bf16.mxu1 %v10576_v7  ;;  %v10588_v14 = vld [vmem:[%s13603_s1 + $0xcb8] sm:$0xff]  }
 0x202   :  { %v6407_v49 = vadd.f32 %v9089_v42, %v12618_v9  ;;  %v9136_v38 = vpop.f32.mrf.mxu1  ;;  %v10568_v9 = vld [vmem:[%s13603_s1 + $0xb00] sm:$0xff]   ;;  %v10591_v42 = vld [vmem:[%s13603_s1 + $0xcf0] sm:$0xff]  }
 0x203   :  { %v9091_v40 = vpop.f32.mrf.mxu0  ;;  %9531 = vmatpush3.bf16.msra.mxu0 %v10568_v9  ;;  %9577 = vmatpush3.bf16.msra.mxu1 %v10570_v17 }
 0x204   :  { %v12804_v11 = vadd.f32 %v9135_v47, %v6407_v49  ;;  %v9092_v36 = vadd.f32 %v9091_v40, %v9090_v33  ;;  %v9137_v21 = vpop.f32.mrf.mxu1  ;;  %9654 = vmatprep.subr.bf16.mxu1 %v10587_v18  ;;  %v10592_v47 = vld [vmem:[%s13603_s1 + $0xcb0] sm:$0xff]   ;;  %v10599_v40 = vld [vmem:[%s13603_s1 + $0xc60] sm:$0xff]  }
 0x205   :  { %v9138_v43 = vadd.f32 %v9137_v21, %v9136_v38  ;;  %v9093_v61 = vpop.f32.mrf.mxu0  ;;  %v10595_v49 = vld [vmem:[%s13604_s0 + $0x454] ss:$232 sps:$4 sm:$0xff]   ;;  %v10600_v21 = vld [vmem:[%s13603_s1 + $0xc20] sm:$0xff]  }
 0x206   :  { %v6412_v20 = vadd.f32 %v9092_v36, %v12642_v54  ;;  %v9139_v29 = vpop.f32.mrf.mxu1  ;;  %v10577_v54 = vld [vmem:[%s13603_s1 + $0xc78] sm:$0xff]   ;;  %7116 = vmatmul.mubr.bf16.vlgmr.msra.gmra.mxu0 %v10571_v45 }
 0x207   :  { %v9094_v31 = vpop.f32.mrf.mxu0  ;;  %9608 = vmatprep.subr.bf16.mxu0 %v10577_v54  ;;  %7123 = vmatprep.mubr.bf16.mxu0 %v10583_v12  ;;  %v10598_v38 = vld [vmem:[%s13604_s0 + $0x45c] ss:$232 sps:$4 sm:$0xff]  }
 0x208   :  { %v12828_v53 = vadd.f32 %v9138_v43, %v6412_v20  ;;  %v9095_v25 = vadd.f32 %v9094_v31, %v9093_v61  ;;  %v9140_v23 = vpop.f32.mrf.mxu1  ;;  %7189 = vmatmul.mubr.bf16.vlgmr.msra.gmra.mxu1 %v10574_v50  ;;  %9609 = vmatpush3.bf16.msra.mxu0 %v10578_v15  ;;  %v10601_v61 = vld [vmem:[%s13603_s1 + $0xce8] sm:$0xff]  }
 0x209   :  { %v9141_v10 = vadd.f32 %v9140_v23, %v9139_v29  ;;  %v9096_v60 = vpop.f32.mrf.mxu0  ;;  %9610 = vmatprep.subr.bf16.mxu0 %v10579_v58  ;;  %7196 = vmatprep.mubr.bf16.mxu1 %v10586_v22  ;;  %v10602_v29 = vld [vmem:[%s13603_s1 + $0xca8] sm:$0xff]   ;;  %v10606_v58 = vld [vmem:[%s13603_s1 + $0xca0] sm:$0xff]  }
 0x20a   :  { %v6415_v59 = vadd.f32 %v9095_v25, %v12657_v63  ;;  %v9142_v51 = vpop.f32.mrf.mxu1  ;;  %v10581_v63 = vld [vmem:[%s13604_s0 + $0x280] ss:$232 sps:$4 sm:$0xff]   ;;  %9655 = vmatpush3.bf16.msra.mxu1 %v10588_v14  ;;  %v10609_v12 = vld [vmem:[%s13604_s0 + $0x624] ss:$232 sps:$4 sm:$0xff]  }
 0x20b   :  { %v9097_v3 = vpop.f32.mrf.mxu0  ;;  %9656 = vmatprep.subr.bf16.mxu1 %v10591_v42  ;;  %v10604_v25 = vld [vmem:[%s13603_s1 + $0xce0] sm:$0xff]   ;;  %v10617_v42 = vld [vmem:[%s13603_s1 + $0xcd0] sm:$0xff]  }
 0x20c   :  { %v12843_v2 = vadd.f32 %v9141_v10, %v6415_v59  ;;  %v9098_v27 = vadd.f32 %v9097_v3, %v9096_v60  ;;  %v9143_v28 = vpop.f32.mrf.mxu1  ;;  %9611 = vmatpush3.bf16.msra.mxu0 %v10580_v4  ;;  %v10605_v10 = vld [vmem:[%s13603_s1 + $0xc18] sm:$0xff]  }
 0x20d   :  { %v9144_v30 = vadd.f32 %v9143_v28, %v9142_v51  ;;  %v9099_v56 = vpop.f32.mrf.mxu0  ;;  %9612 = vmatprep.subr.bf16.mxu0 %v10589_v26  ;;  %v10612_v28 = vld [vmem:[%s13604_s0 + $0x62c] ss:$232 sps:$4 sm:$0xff]  }
 0x20e   :  { %v6420_v13 = vadd.f32 %v9098_v27, %v12681_v24  ;;  %v9145_v44 = vpop.f32.mrf.mxu1  ;;  %7124 = vmatmul.mubr.bf16.gmra.mxu0 %v10581_v63  ;;  %v10590_v24 = vld [vmem:[%s13603_s1 + $0xc28] sm:$0xff]   ;;  %9657 = vmatpush3.bf16.msra.mxu1 %v10592_v47 }
 0x20f   :  { %v9100_v35 = vpop.f32.mrf.mxu0  ;;  %7131 = vmatprep.mubr.bf16.mxu0 %v10595_v49  ;;  %9658 = vmatprep.subr.bf16.mxu1 %v10601_v61  ;;  %v10610_v27 = vld [vmem:[%s13604_s0 + $0x628] ss:$232 sps:$4 sm:$0xff]  }
 0x210   :  { %v12867_v16 = vadd.f32 %v9144_v30, %v6420_v13  ;;  %v9101_v37 = vadd.f32 %v9100_v35, %v9099_v56  ;;  %v9146_v19 = vpop.f32.mrf.mxu1  ;;  %7197 = vmatmul.mubr.bf16.gmra.mxu1 %v10584_v5  ;;  %9613 = vmatpush3.bf16.msra.mxu0 %v10590_v24  ;;  %v10613_v56 = vld [vmem:[%s13603_s1 + $0xcd8] sm:$0xff]   ;;  %v10619_v49 = vld [vmem:[%s13603_s1 + $0xc48] sm:$0xff]  }
 0x211   :  { %v9147_v1 = vadd.f32 %v9146_v19, %v9145_v44  ;;  %v9164_v46 = vpop.f32.mrf.mxu0  ;;  %7204 = vmatprep.mubr.bf16.mxu1 %v10598_v38  ;;  %9614 = vmatprep.subr.bf16.mxu0 %v10599_v40  ;;  %v10615_v35 = vld [vmem:[%s13603_s1 + $0xc98] sm:$0xff]   ;;  %v10616_v19 = vld [vmem:[%s13603_s1 + $0xc10] sm:$0xff]  }
 0x212   :  { %v6423_v0 = vadd.f32 %v9101_v37, %v12696_v34  ;;  %v9210_v33 = vpop.f32.mrf.mxu1  ;;  %v10596_v34 = vld [vmem:[%s13604_s0 + $0x458] ss:$232 sps:$4 sm:$0xff]   ;;  %9659 = vmatpush3.bf16.msra.mxu1 %v10602_v29  ;;  %v10622_v38 = vld [vmem:[%s13604_s0 + $0x7f4] ss:$232 sps:$4 sm:$0xff]  }
 0x213   :  { %v9165_v52 = vpop.f32.mrf.mxu0  ;;  %9660 = vmatprep.subr.bf16.mxu1 %v10604_v25  ;;  %v10630_v25 = vld [vmem:[%s13603_s1 + $0xc00] sm:$0xff]  }
 0x214   :  { %v12885_v8 = vadd.f32 %v9147_v1, %v6423_v0  ;;  %v9166_v9 = vadd.f32 %v9165_v52, %v9164_v46  ;;  %v9211_v57 = vpop.f32.mrf.mxu1  ;;  %9615 = vmatpush3.bf16.msra.mxu0 %v10600_v21  ;;  %v10625_v21 = vld [vmem:[%s13604_s0 + $0x7fc] ss:$232 sps:$4 sm:$0xff]  }
 0x215   :  { %v9167_v36 = vpop.f32.mrf.mxu0  ;;  %v9212_v43 = vadd.f32 %v9211_v57, %v9210_v33  ;;  %v10623_v57 = vld [vmem:[%s13604_s0 + $0x7f8] ss:$232 sps:$4 sm:$0xff]  }
 0x216   :  { %v6534_v17 = vadd.f32 %v9166_v9, %v12720_v32  ;;  %7132 = vmatmul.mubr.bf16.gmra.mxu0 %v10593_v48  ;;  %v9213_v45 = vpop.f32.mrf.mxu1  ;;  %v10603_v32 = vld [vmem:[%s13603_s1 + $0xc58] sm:$0xff]   ;;  %9661 = vmatpush3.bf16.msra.mxu1 %v10606_v58 }
 0x217   :  { %v9168_v20 = vpop.f32.mrf.mxu0  ;;  %9616 = vmatprep.subr.bf16.mxu0 %v10603_v32  ;;  %7139 = vmatprep.mubr.bf16.mxu0 %v10609_v12 }
 0x218   :  { %7205 = vmatmul.mubr.bf16.gmra.mxu1 %v10596_v34  ;;  %v12906_v39 = vadd.f32 %v9212_v43, %v6534_v17  ;;  %v9169_v31 = vadd.f32 %v9168_v20, %v9167_v36  ;;  %v9214_v50 = vpop.f32.mrf.mxu1  ;;  %9617 = vmatpush3.bf16.msra.mxu0 %v10605_v10  ;;  %v10620_v34 = vld [vmem:[%s13604_s0 + $0x7f0] ss:$232 sps:$4 sm:$0xff]   ;;  %v10626_v43 = vld [vmem:[%s13603_s1 + $0xc08] sm:$0xff]  }
 0x219   :  { %v9170_v7 = vpop.f32.mrf.mxu0  ;;  %v9215_v54 = vadd.f32 %v9214_v50, %v9213_v45  ;;  %7212 = vmatprep.mubr.bf16.mxu1 %v10612_v28  ;;  %9662 = vmatprep.subr.bf16.mxu1 %v10613_v56  ;;  %v10627_v20 = vld [vmem:[%s13603_s1 + $0xcc8] sm:$0xff]   ;;  %v10639_v28 = vld [vmem:[%s13603_s1 + $0xd78] sm:$0xff]  }
 0x21a   :  { %v6537_v23 = vadd.f32 %v9169_v31, %v12735_v62  ;;  %v9216_v15 = vpop.f32.mrf.mxu1  ;;  %v10607_v62 = vld [vmem:[%s13604_s0 + $0x620] ss:$232 sps:$4 sm:$0xff]   ;;  %9663 = vmatpush3.bf16.msra.mxu1 %v10615_v35 }
 0x21b   :  { %v9171_v59 = vpop.f32.mrf.mxu0  ;;  %9664 = vmatprep.subr.bf16.mxu1 %v10617_v42  ;;  %v10628_v31 = vld [vmem:[%s13603_s1 + $0xc88] sm:$0xff]   ;;  %v10646_v42 = vld [vmem:[%s13604_s0 + $0x298] ss:$232 sps:$4 sm:$0xff]  }
 0x21c   :  { %v12921_v60 = vadd.f32 %v9215_v54, %v6537_v23  ;;  %v9172_v4 = vadd.f32 %v9171_v59, %v9170_v7  ;;  %v9217_v51 = vpop.f32.mrf.mxu1  ;;  %v10631_v54 = vld [vmem:[%s13603_s1 + $0xcc0] sm:$0xff]  }
 0x21d   :  { %v9173_v63 = vpop.f32.mrf.mxu0  ;;  %v9218_v5 = vadd.f32 %v9217_v51, %v9216_v15  ;;  %v10632_v59 = vld [vmem:[%s13603_s1 + $0xc80] sm:$0xff]  }
 0x21e   :  { %v6542_v3 = vadd.f32 %v9172_v4, %v12753_v55  ;;  %v9219_v22 = vpop.f32.mrf.mxu1  ;;  %7140 = vmatmul.mubr.bf16.gmra.mxu0 %v10607_v62  ;;  %v10614_v55 = vld [vmem:[%s13603_s1 + $0xc50] sm:$0xff]   ;;  %v10633_v62 = vld [vmem:[%s13604_s0 + $0xc0] ss:$232 sps:$4 sm:$0xff]   ;;  %v10635_v51 = vld [vmem:[%s13604_s0 + $0xc4] ss:$232 sps:$4 sm:$0xff]  }
 0x21f   :  { %v9174_v30 = vpop.f32.mrf.mxu0  ;;  %9618 = vmatprep.subr.bf16.mxu0 %v10614_v55  ;;  %7147 = vmatprep.mubr.bf16.mxu0 %v10622_v38  ;;  %v10641_v55 = vld [vmem:[%s13603_s1 + $0xd70] sm:$0xff]   ;;  %v10651_v38 = vld [vmem:[%s13603_s1 + $0xd68] sm:$0xff]  }
 0x220   :  { %v12939_v18 = vadd.f32 %v9218_v5, %v6542_v3  ;;  %v9175_v13 = vadd.f32 %v9174_v30, %v9173_v63  ;;  %v9220_v44 = vpop.f32.mrf.mxu1  ;;  %7213 = vmatmul.mubr.bf16.gmra.mxu1 %v10610_v27  ;;  %9619 = vmatpush3.bf16.msra.mxu0 %v10616_v19  ;;  %v10636_v3 = vld [vmem:[%s13604_s0 + $0xc8] ss:$232 sps:$4 sm:$0xff]   ;;  %v10640_v30 = vld [vmem:[%s13603_s1 + $0xd38] sm:$0xff]  }
 0x221   :  { %v9176_v14 = vpop.f32.mrf.mxu0  ;;  %v9221_v37 = vadd.f32 %v9220_v44, %v9219_v22  ;;  %9620 = vmatprep.subr.bf16.mxu0 %v10619_v49  ;;  %7220 = vmatprep.mubr.bf16.mxu1 %v10625_v21  ;;  %v10645_v19 = vld [vmem:[%s13604_s0 + $0x294] ss:$232 sps:$4 sm:$0xff]  }
 0x222   :  { %v6545_v26 = vadd.f32 %v9175_v13, %v12768_v6  ;;  %v9222_v24 = vpop.f32.mrf.mxu1  ;;  %v10618_v6 = vld [vmem:[%s13603_s1 + $0xc90] sm:$0xff]  }
 0x223   :  { %v9177_v1 = vpop.f32.mrf.mxu0  ;;  %9665 = vmatpush3.bf16.msra.mxu1 %v10618_v6  ;;  %v10653_v21 = vld [vmem:[%s13603_s1 + $0xdf0] sm:$0xff]  }
 0x224   :  { %v12954_v0 = vadd.f32 %v9221_v37, %v6545_v26  ;;  %v9178_v46 = vadd.f32 %v9177_v1, %v9176_v14  ;;  %v9223_v47 = vpop.f32.mrf.mxu1  ;;  %9621 = vmatpush3.bf16.msra.mxu0 %v10626_v43  ;;  %9666 = vmatprep.subr.bf16.mxu1 %v10627_v20  ;;  %v10642_v14 = vld [vmem:[%s13603_s1 + $0xd30] sm:$0xff]   ;;  %v10655_v20 = vld [vmem:[%s13604_s0 + $0x460] ss:$232 sps:$4 sm:$0xff]  }
 0x225   :  { %v9179_v48 = vpop.f32.mrf.mxu0  ;;  %v9224_v52 = vadd.f32 %v9223_v47, %v9222_v24  ;;  %v10654_v43 = vld [vmem:[%s13603_s1 + $0xdb0] sm:$0xff]  }
 0x226   :  { %v6550_v33 = vadd.f32 %v9178_v46, %v12789_v41  ;;  %v9225_v9 = vpop.f32.mrf.mxu1  ;;  %7148 = vmatmul.mubr.bf16.gmra.mxu0 %v10620_v34  ;;  %v10648_v46 = vld [vmem:[%s13604_s0 + $0x29c] ss:$232 sps:$4 sm:$0xff]  }
 0x227   :  { %v9180_v40 = vpop.f32.mrf.mxu0  ;;  %9667 = vmatpush3.bf16.msra.mxu1 %v10628_v31  ;;  %7261 = vmatprep.mubr.bf16.mxu0 %v10635_v51 }
 0x228   :  { %v12972_v36 = vadd.f32 %v9224_v52, %v6550_v33  ;;  %v9181_v41 = vadd.f32 %v9180_v40, %v9179_v48  ;;  %v9226_v17 = vpop.f32.mrf.mxu1  ;;  %7221 = vmatmul.mubr.bf16.gmra.mxu1 %v10623_v57  ;;  %9668 = vmatprep.subr.bf16.mxu1 %v10631_v54  ;;  %v10649_v48 = vld [vmem:[%s13603_s1 + $0xdf8] sm:$0xff]   ;;  %v10661_v54 = vld [vmem:[%s13603_s1 + $0xd60] sm:$0xff]  }
 0x229   :  { %v9227_v45 = vadd.f32 %v9226_v17, %v9225_v9  ;;  %v9182_v29 = vpop.f32.mrf.mxu0  ;;  %v10650_v52 = vld [vmem:[%s13603_s1 + $0xdb8] sm:$0xff]  }
 0x22a   :  { %v6553_v61 = vadd.f32 %v9181_v41, %v12804_v11  ;;  %v10629_v11 = vld [vmem:[%s13603_s1 + $0xc40] sm:$0xff]   ;;  %v9228_v50 = vpop.f32.mrf.mxu1 }
 0x22b   :  { %v9183_v7 = vpop.f32.mrf.mxu0  ;;  %9622 = vmatprep.subr.bf16.mxu0 %v10629_v11  ;;  %9669 = vmatpush3.bf16.msra.mxu1 %v10632_v59  ;;  %v10658_v11 = vld [vmem:[%s13604_s0 + $0x468] ss:$232 sps:$4 sm:$0xff]   ;;  %v10662_v59 = vld [vmem:[%s13603_s1 + $0xd20] sm:$0xff]  }
 0x22c   :  { %v12987_v32 = vadd.f32 %v9227_v45, %v6553_v61  ;;  %v9184_v23 = vadd.f32 %v9183_v7, %v9182_v29  ;;  %v9229_v10 = vpop.f32.mrf.mxu1  ;;  %9623 = vmatpush3.bf16.msra.mxu0 %v10630_v25  ;;  %9746 = vmatprep.subr.bf16.mxu1 %v10649_v48  ;;  %v10756_v45 = vmov 0   ;;  %v10657_v29 = vld [vmem:[%s13604_s0 + $0x464] ss:$232 sps:$4 sm:$0xff]  }
 0x22d   :  { %v9185_v15 = vpop.f32.mrf.mxu0  ;;  %v9230_v4 = vadd.f32 %v9229_v10, %v9228_v50  ;;  %9700 = vmatprep.subr.bf16.mxu0 %v10639_v28  ;;  %9855 = vset.pattern.permute.xlu0 %v10756_v45  ;;  %v10660_v7 = vld [vmem:[%s13604_s0 + $0x46c] ss:$232 sps:$4 sm:$0xff]  }
 0x22e   :  { %v6558_v58 = vadd.f32 %v9184_v23, %v12828_v53  ;;  %v9231_v63 = vpop.f32.mrf.mxu1  ;;  %v10638_v53 = vld [vmem:[%s13604_s0 + $0xcc] ss:$232 sps:$4 sm:$0xff]   ;;  %9856 = vset.pattern.permute.xlu1 %v10756_v45 }
 0x22f   :  { %v9186_v12 = vpop.f32.mrf.mxu0  ;;  %7334 = vmatprep.mubr.bf16.mxu1 %v10638_v53  ;;  %7262 = vmatmul.mubr.bf16.vlgmr.msra.gmra.mxu0 %v10633_v62  ;;  %v10663_v62 = vld [vmem:[%s13603_s1 + $0xde8] sm:$0xff]  }
 0x230   :  { %v13014_v5 = vadd.f32 %v9230_v4, %v6558_v58  ;;  %v9187_v27 = vadd.f32 %v9186_v12, %v9185_v15  ;;  %v9232_v22 = vpop.f32.mrf.mxu1  ;;  %7335 = vmatmul.mubr.bf16.vlgmr.msra.gmra.mxu1 %v10636_v3  ;;  %9701 = vmatpush3.bf16.msra.mxu0 %v10640_v30 }
 0x231   :  { %v9233_v13 = vadd.f32 %v9232_v22, %v9231_v63  ;;  %v9188_v44 = vpop.f32.mrf.mxu0  ;;  %9702 = vmatprep.subr.bf16.mxu0 %v10641_v55  ;;  %7269 = vmatprep.mubr.bf16.mxu0 %v10645_v19  ;;  %v10664_v63 = vld [vmem:[%s13603_s1 + $0xda8] sm:$0xff]   ;;  %v10666_v22 = vld [vmem:[%s13603_s1 + $0xde0] sm:$0xff]  }
 0x232   :  { %v6561_v56 = vadd.f32 %v9187_v27, %v12843_v2  ;;  %v10643_v2 = vld [vmem:[%s13604_s0 + $0x290] ss:$232 sps:$4 sm:$0xff]   ;;  %7342 = vmatprep.mubr.bf16.mxu1 %v10648_v46  ;;  %9747 = vmatpush3.bf16.msra.mxu1 %v10650_v52 }
 0x233   :  { %v9234_v26 = vpop.f32.mrf.mxu1  ;;  %v9189_v37 = vpop.f32.mrf.mxu0  ;;  %9748 = vmatprep.subr.bf16.mxu1 %v10653_v21  ;;  %v10679_v21 = vld [vmem:[%s13603_s1 + $0xdd0] sm:$0xff]  }
 0x234   :  { %v13029_v35 = vadd.f32 %v9233_v13, %v6561_v56  ;;  %v9190_v24 = vadd.f32 %v9189_v37, %v9188_v44  ;;  %9703 = vmatpush3.bf16.msra.mxu0 %v10642_v14  ;;  %v10667_v13 = vld [vmem:[%s13603_s1 + $0xd18] sm:$0xff]   ;;  %v10668_v44 = vld [vmem:[%s13603_s1 + $0xda0] sm:$0xff]  }
 0x235   :  { %v9235_v1 = vpop.f32.mrf.mxu1  ;;  %v9191_v47 = vpop.f32.mrf.mxu0  ;;  %9704 = vmatprep.subr.bf16.mxu0 %v10651_v38  ;;  %v10671_v37 = vld [vmem:[%s13604_s0 + $0x634] ss:$232 sps:$4 sm:$0xff]  }
 0x236   :  { %v9236_v6 = vadd.f32 %v9235_v1, %v9234_v26  ;;  %v6566_v49 = vadd.f32 %v9190_v24, %v12867_v16  ;;  %v10652_v16 = vld [vmem:[%s13603_s1 + $0xd28] sm:$0xff]   ;;  %9749 = vmatpush3.bf16.msra.mxu1 %v10654_v43  ;;  %v10672_v1 = vld [vmem:[%s13604_s0 + $0x638] ss:$232 sps:$4 sm:$0xff]   ;;  %v10680_v43 = vld [vmem:[%s13603_s1 + $0xd90] sm:$0xff]  }
 0x237   :  { %v9237_v33 = vpop.f32.mrf.mxu1  ;;  %v9192_v34 = vpop.f32.mrf.mxu0  ;;  %7270 = vmatmul.mubr.bf16.gmra.mxu0 %v10643_v2  ;;  %9750 = vmatprep.subr.bf16.mxu1 %v10663_v62  ;;  %v10689_v62 = vld [vmem:[%s13603_s1 + $0xdc8] sm:$0xff]  }
 0x238   :  { %v13053_v9 = vadd.f32 %v9236_v6, %v6566_v49  ;;  %v9193_v40 = vadd.f32 %v9192_v34, %v9191_v47  ;;  %7343 = vmatmul.mubr.bf16.gmra.mxu1 %v10646_v42  ;;  %9705 = vmatpush3.bf16.msra.mxu0 %v10652_v16  ;;  %v10674_v42 = vld [vmem:[%s13604_s0 + $0x63c] ss:$232 sps:$4 sm:$0xff]   ;;  %v10676_v49 = vld [vmem:[%s13603_s1 + $0xd50] sm:$0xff]  }
 0x239   :  { %v9238_v57 = vpop.f32.mrf.mxu1  ;;  %v9256_v61 = vpop.f32.mrf.mxu0  ;;  %7277 = vmatprep.mubr.bf16.mxu0 %v10657_v29  ;;  %7350 = vmatprep.mubr.bf16.mxu1 %v10660_v7  ;;  %v10675_v47 = vld [vmem:[%s13603_s1 + $0xdd8] sm:$0xff]  }
 0x23a   :  { %v9239_v41 = vadd.f32 %v9238_v57, %v9237_v33  ;;  %v6569_v17 = vadd.f32 %v9193_v40, %v12885_v8  ;;  %9706 = vmatprep.subr.bf16.mxu0 %v10661_v54  ;;  %9751 = vmatpush3.bf16.msra.mxu1 %v10664_v63  ;;  %v10678_v57 = vld [vmem:[%s13603_s1 + $0xd10] sm:$0xff]   ;;  %v10690_v63 = vld [vmem:[%s13603_s1 + $0xd88] sm:$0xff]  }
 0x23b   :  { %v9302_v8 = vpop.f32.mrf.mxu1  ;;  %v9257_v50 = vpop.f32.mrf.mxu0  ;;  %9752 = vmatprep.subr.bf16.mxu1 %v10666_v22  ;;  %v10685_v54 = vld [vmem:[%s13604_s0 + $0x808] ss:$232 sps:$4 sm:$0xff]   ;;  %v10693_v22 = vld [vmem:[%s13603_s1 + $0xdc0] sm:$0xff]  }
 0x23c   :  { %v13071_v31 = vadd.f32 %v9239_v41, %v6569_v17  ;;  %v9258_v25 = vadd.f32 %v9257_v50, %v9256_v61  ;;  %9707 = vmatpush3.bf16.msra.mxu0 %v10662_v59 }
 0x23d   :  { %v9303_v23 = vpop.f32.mrf.mxu1  ;;  %v9259_v15 = vpop.f32.mrf.mxu0 }
 0x23e   :  { %v9304_v10 = vadd.f32 %v9303_v23, %v9302_v8  ;;  %v6680_v58 = vadd.f32 %v9258_v25, %v12906_v39  ;;  %v10665_v39 = vld [vmem:[%s13603_s1 + $0xd58] sm:$0xff]   ;;  %9753 = vmatpush3.bf16.msra.mxu1 %v10668_v44  ;;  %v10684_v25 = vld [vmem:[%s13604_s0 + $0x804] ss:$232 sps:$4 sm:$0xff]  }
 0x23f   :  { %7278 = vmatmul.mubr.bf16.gmra.mxu0 %v10655_v20  ;;  %v9305_v4 = vpop.f32.mrf.mxu1  ;;  %v9260_v51 = vpop.f32.mrf.mxu0  ;;  %9708 = vmatprep.subr.bf16.mxu0 %v10665_v39 }
 0x240   :  { %7351 = vmatmul.mubr.bf16.gmra.mxu1 %v10658_v11  ;;  %v13092_v12 = vadd.f32 %v9304_v10, %v6680_v58  ;;  %v9261_v3 = vadd.f32 %v9260_v51, %v9259_v15  ;;  %9709 = vmatpush3.bf16.msra.mxu0 %v10667_v13  ;;  %v10682_v11 = vld [vmem:[%s13604_s0 + $0x800] ss:$232 sps:$4 sm:$0xff]   ;;  %v10687_v10 = vld [vmem:[%s13604_s0 + $0x80c] ss:$232 sps:$4 sm:$0xff]  }
 0x241   :  { %v9306_v53 = vpop.f32.mrf.mxu1  ;;  %v9262_v28 = vpop.f32.mrf.mxu0  ;;  %7285 = vmatprep.mubr.bf16.mxu0 %v10671_v37  ;;  %7358 = vmatprep.mubr.bf16.mxu1 %v10674_v42  ;;  %v10688_v58 = vld [vmem:[%s13603_s1 + $0xd08] sm:$0xff]   ;;  %v10694_v13 = vld [vmem:[%s13603_s1 + $0xd80] sm:$0xff]  }
 0x242   :  { %v9307_v27 = vadd.f32 %v9306_v53, %v9305_v4  ;;  %v6683_v30 = vadd.f32 %v9261_v3, %v12921_v60  ;;  %v10669_v60 = vld [vmem:[%s13604_s0 + $0x630] ss:$232 sps:$4 sm:$0xff]   ;;  %9754 = vmatprep.subr.bf16.mxu1 %v10675_v47  ;;  %9710 = vmatprep.subr.bf16.mxu0 %v10676_v49  ;;  %v10691_v53 = vld [vmem:[%s13603_s1 + $0xd40] sm:$0xff]  }
 0x243   :  { %v9308_v56 = vpop.f32.mrf.mxu1  ;;  %v9263_v55 = vpop.f32.mrf.mxu0 }
 0x244   :  { %v13107_v14 = vadd.f32 %v9307_v27, %v6683_v30  ;;  %v9264_v26 = vadd.f32 %v9263_v55, %v9262_v28  ;;  %9711 = vmatpush3.bf16.msra.mxu0 %v10678_v57 }
 0x245   :  { %v9309_v2 = vpop.f32.mrf.mxu1  ;;  %v9265_v24 = vpop.f32.mrf.mxu0 }
 0x246   :  { %v9310_v19 = vadd.f32 %v9309_v2, %v9308_v56  ;;  %v6688_v46 = vadd.f32 %v9264_v26, %v12939_v18  ;;  %v10677_v18 = vld [vmem:[%s13603_s1 + $0xd98] sm:$0xff]  }
 0x247   :  { %v9311_v6 = vpop.f32.mrf.mxu1  ;;  %v9266_v48 = vpop.f32.mrf.mxu0  ;;  %7286 = vmatmul.mubr.bf16.gmra.mxu0 %v10669_v60  ;;  %9755 = vmatpush3.bf16.msra.mxu1 %v10677_v18  ;;  %v10695_v26 = vld [vmem:[%s13604_s0 + $0xd0] ss:$232 sps:$4 sm:$0xff]   ;;  %v10697_v2 = vld [vmem:[%s13604_s0 + $0xd4] ss:$232 sps:$4 sm:$0xff]  }
 0x248   :  { %v13128_v33 = vadd.f32 %v9310_v19, %v6688_v46  ;;  %v9267_v52 = vadd.f32 %v9266_v48, %v9265_v24  ;;  %7359 = vmatmul.mubr.bf16.gmra.mxu1 %v10672_v1  ;;  %9756 = vmatprep.subr.bf16.mxu1 %v10679_v21  ;;  %v10698_v19 = vld [vmem:[%s13604_s0 + $0xd8] ss:$232 sps:$4 sm:$0xff]   ;;  %v10700_v1 = vld [vmem:[%s13604_s0 + $0xdc] ss:$232 sps:$4 sm:$0xff]   ;;  %v10704_v18 = vld [vmem:[%s13603_s1 + $0xe30] sm:$0xff]  }
 0x249   :  { %v9312_v34 = vpop.f32.mrf.mxu1  ;;  %v9268_v40 = vpop.f32.mrf.mxu0  ;;  %7293 = vmatprep.mubr.bf16.mxu0 %v10684_v25  ;;  %7366 = vmatprep.mubr.bf16.mxu1 %v10687_v10  ;;  %v10702_v48 = vld [vmem:[%s13603_s1 + $0xe38] sm:$0xff]   ;;  %v10708_v21 = vld [vmem:[%s13604_s0 + $0x2a8] ss:$232 sps:$4 sm:$0xff]  }
 0x24a   :  { %v9313_v38 = vadd.f32 %v9312_v34, %v9311_v6  ;;  %v6691_v16 = vadd.f32 %v9267_v52, %v12954_v0  ;;  %v10681_v0 = vld [vmem:[%s13603_s1 + $0xd48] sm:$0xff]   ;;  %v10703_v34 = vld [vmem:[%s13603_s1 + $0xe70] sm:$0xff]   ;;  %v10718_v10 = vld [vmem:[%s13604_s0 + $0x47c] ss:$232 sps:$4 sm:$0xff]  }
 0x24b   :  { %v9314_v41 = vpop.f32.mrf.mxu1  ;;  %v9269_v17 = vpop.f32.mrf.mxu0  ;;  %9757 = vmatpush3.bf16.msra.mxu1 %v10680_v43  ;;  %9712 = vmatprep.subr.bf16.mxu0 %v10681_v0 }
 0x24c   :  { %v13143_v61 = vadd.f32 %v9313_v38, %v6691_v16  ;;  %v9270_v45 = vadd.f32 %v9269_v17, %v9268_v40  ;;  %9713 = vmatpush3.bf16.msra.mxu0 %v10688_v58  ;;  %9758 = vmatprep.subr.bf16.mxu1 %v10689_v62  ;;  %v10707_v16 = vld [vmem:[%s13604_s0 + $0x2a4] ss:$232 sps:$4 sm:$0xff]  }
 0x24d   :  { %v9315_v20 = vpop.f32.mrf.mxu1  ;;  %v9271_v8 = vpop.f32.mrf.mxu0  ;;  %9714 = vmatprep.subr.bf16.mxu0 %v10691_v53  ;;  %v10710_v17 = vld [vmem:[%s13604_s0 + $0x2ac] ss:$232 sps:$4 sm:$0xff]   ;;  %v10719_v58 = vld [vmem:[%s13603_s1 + $0xe60] sm:$0xff]  }
 0x24e   :  { %v9316_v29 = vadd.f32 %v9315_v20, %v9314_v41  ;;  %v6696_v50 = vadd.f32 %v9270_v45, %v12972_v36  ;;  %v10711_v20 = vld [vmem:[%s13603_s1 + $0xe68] sm:$0xff]   ;;  %v10720_v62 = vld [vmem:[%s13603_s1 + $0xe20] sm:$0xff]  }
 0x24f   :  { %v9317_v7 = vpop.f32.mrf.mxu1  ;;  %v9272_v23 = vpop.f32.mrf.mxu0  ;;  %7294 = vmatmul.mubr.bf16.gmra.mxu0 %v10682_v11  ;;  %9759 = vmatpush3.bf16.msra.mxu1 %v10690_v63  ;;  %v10716_v53 = vld [vmem:[%s13604_s0 + $0x478] ss:$232 sps:$4 sm:$0xff]  }
 0x250   :  { %v13161_v15 = vadd.f32 %v9316_v29, %v6696_v50  ;;  %v9273_v59 = vadd.f32 %v9272_v23, %v9271_v8  ;;  %7367 = vmatmul.mubr.bf16.gmra.mxu1 %v10685_v54  ;;  %9760 = vmatprep.subr.bf16.mxu1 %v10693_v22  ;;  %v10712_v8 = vld [vmem:[%s13603_s1 + $0xe28] sm:$0xff]   ;;  %v10715_v23 = vld [vmem:[%s13604_s0 + $0x474] ss:$232 sps:$4 sm:$0xff]   ;;  %v10713_v54 = vld [vmem:[%s13604_s0 + $0x470] ss:$232 sps:$4 sm:$0xff]  }
 0x251   :  { %v9318_v36 = vpop.f32.mrf.mxu1  ;;  %v9274_v3 = vpop.f32.mrf.mxu0  ;;  %7407 = vmatprep.mubr.bf16.mxu0 %v10697_v2  ;;  %7480 = vmatprep.mubr.bf16.mxu1 %v10700_v1  ;;  %v10725_v22 = vld [vmem:[%s13604_s0 + $0x644] ss:$232 sps:$4 sm:$0xff]   ;;  %v10723_v2 = vld [vmem:[%s13604_s0 + $0x640] ss:$232 sps:$4 sm:$0xff]  }
 0x252   :  { %v9319_v4 = vadd.f32 %v9318_v36, %v9317_v7  ;;  %v6699_v51 = vadd.f32 %v9273_v59, %v12987_v32  ;;  %v10692_v32 = vld [vmem:[%s13603_s1 + $0xd00] sm:$0xff]  }
 0x253   :  { %v9320_v27 = vpop.f32.mrf.mxu1  ;;  %v9275_v28 = vpop.f32.mrf.mxu0  ;;  %9715 = vmatpush3.bf16.msra.mxu0 %v10692_v32  ;;  %9761 = vmatpush3.bf16.msra.mxu1 %v10694_v13 }
 0x254   :  { %v13176_v39 = vadd.f32 %v9319_v4, %v6699_v51  ;;  %v9276_v30 = vadd.f32 %v9275_v28, %v9274_v3  ;;  %v10722_v28 = vld [vmem:[%s13603_s1 + $0xe18] sm:$0xff]  }
 0x255   :  { %v9321_v56 = vpop.f32.mrf.mxu1  ;;  %v9277_v44 = vpop.f32.mrf.mxu0 }
 0x256   :  { %v9322_v55 = vadd.f32 %v9321_v56, %v9320_v27  ;;  %v6704_v60 = vadd.f32 %v9276_v30, %v13014_v5  ;;  %v10701_v5 = vld [vmem:[%s13603_s1 + $0xe78] sm:$0xff]  }
 0x257   :  { %v9323_v37 = vpop.f32.mrf.mxu1  ;;  %v9278_v24 = vpop.f32.mrf.mxu0  ;;  %7408 = vmatmul.mubr.bf16.vlgmr.msra.gmra.mxu0 %v10695_v26  ;;  %9792 = vmatprep.subr.bf16.mxu0 %v10701_v5 }
 0x258   :  { %v13200_v42 = vadd.f32 %v9322_v55, %v6704_v60  ;;  %v9279_v46 = vadd.f32 %v9278_v24, %v9277_v44  ;;  %7481 = vmatmul.mubr.bf16.vlgmr.msra.gmra.mxu1 %v10698_v19  ;;  %9793 = vmatpush3.bf16.msra.mxu0 %v10702_v48  ;;  %v10728_v44 = vld [vmem:[%s13604_s0 + $0x64c] ss:$232 sps:$4 sm:$0xff]  }
 0x259   :  { %v9324_v6 = vpop.f32.mrf.mxu1  ;;  %v9280_v52 = vpop.f32.mrf.mxu0  ;;  %9838 = vmatprep.subr.bf16.mxu1 %v10701_v5  ;;  %9794 = vmatprep.subr.bf16.mxu0 %v10703_v34  ;;  %v10729_v60 = vld [vmem:[%s13603_s1 + $0xe50] sm:$0xff]  }
 0x25a   :  { %v9325_v47 = vadd.f32 %v9324_v6, %v9323_v37  ;;  %v6707_v49 = vadd.f32 %v9279_v46, %v13029_v35  ;;  %v10705_v35 = vld [vmem:[%s13604_s0 + $0x2a0] ss:$232 sps:$4 sm:$0xff]   ;;  %9846 = vmatpush3.bf16.msra.mxu1 %v10702_v48  ;;  %7415 = vmatprep.mubr.bf16.mxu0 %v10707_v16  ;;  %v10730_v24 = vld [vmem:[%s13603_s1 + $0xe10] sm:$0xff]  }
 0x25b   :  { %v9326_v40 = vpop.f32.mrf.mxu1  ;;  %v9281_v57 = vpop.f32.mrf.mxu0  ;;  %9839 = vmatprep.subr.bf16.mxu1 %v10703_v34  ;;  %7488 = vmatprep.mubr.bf16.mxu1 %v10710_v17  ;;  %v10731_v6 = vld [vmem:[%s13603_s1 + $0xe48] sm:$0xff]   ;;  %v10734_v48 = vld [vmem:[%s13604_s0 + $0x814] ss:$232 sps:$4 sm:$0xff]  }
 0x25c   :  { %v13215_v38 = vadd.f32 %v9325_v47, %v6707_v49  ;;  %v9282_v41 = vadd.f32 %v9281_v57, %v9280_v52  ;;  %9795 = vmatpush3.bf16.msra.mxu0 %v10704_v18  ;;  %v10726_v52 = vld [vmem:[%s13604_s0 + $0x648] ss:$232 sps:$4 sm:$0xff]   ;;  %v10737_v34 = vld [vmem:[%s13604_s0 + $0x81c] ss:$232 sps:$4 sm:$0xff]  }
 0x25d   :  { %v9327_v43 = vpop.f32.mrf.mxu1  ;;  %v9283_v45 = vpop.f32.mrf.mxu0  ;;  %9796 = vmatprep.subr.bf16.mxu0 %v10711_v20  ;;  %v10738_v57 = vld [vmem:[%s13603_s1 + $0xe08] sm:$0xff]  }
 0x25e   :  { %v6712_v0 = vadd.f32 %v9282_v41, %v13053_v9  ;;  %v9328_v29 = vadd.f32 %v9327_v43, %v9326_v40  ;;  %9847 = vmatpush3.bf16.msra.mxu1 %v10704_v18  ;;  %v10739_v41 = vld [vmem:[%s13603_s1 + $0xe40] sm:$0xff]  }
 0x25f   :  { %v9329_v11 = vpop.f32.mrf.mxu1  ;;  %v9284_v50 = vpop.f32.mrf.mxu0  ;;  %7416 = vmatmul.mubr.bf16.gmra.mxu0 %v10705_v35  ;;  %9840 = vmatprep.subr.bf16.mxu1 %v10711_v20 }
 0x260   :  { %v13236_v7 = vadd.f32 %v9328_v29, %v6712_v0  ;;  %v9285_v25 = vadd.f32 %v9284_v50, %v9283_v45  ;;  %7489 = vmatmul.mubr.bf16.gmra.mxu1 %v10708_v21  ;;  %9797 = vmatpush3.bf16.msra.mxu0 %v10712_v8  ;;  %v10740_v29 = vld [vmem:[%s13603_s1 + $0xe00] sm:$0xff]  }
 0x261   :  { %v9330_v9 = vpop.f32.mrf.mxu1  ;;  %7423 = vmatprep.mubr.bf16.mxu0 %v10715_v23  ;;  %7496 = vmatprep.mubr.bf16.mxu1 %v10718_v10  ;;  %v10743_v23 = vld [vmem:[%s13604_s0 + $0xe4] ss:$232 sps:$4 sm:$0xff]  }
 0x262   :  { %v6715_v59 = vadd.f32 %v9285_v25, %v13071_v31  ;;  %v9331_v36 = vadd.f32 %v9330_v9, %v9329_v11  ;;  %v9348_v4 = vpop.f32.mrf.mxu0  ;;  %9798 = vmatprep.subr.bf16.mxu0 %v10719_v58  ;;  %9848 = vmatpush3.bf16.msra.mxu1 %v10712_v8  ;;  %v10721_v31 = vld [vmem:[%s13603_s1 + $0xe58] sm:$0xff]  }
 0x263   :  { %v9394_v63 = vpop.f32.mrf.mxu1  ;;  %9841 = vmatprep.subr.bf16.mxu1 %v10719_v58 }
 0x264   :  { %v13254_v51 = vadd.f32 %v9331_v36, %v6715_v59  ;;  %v9349_v3 = vpop.f32.mrf.mxu0  ;;  %9799 = vmatpush3.bf16.msra.mxu0 %v10720_v62 }
 0x265   :  { %v9350_v27 = vadd.f32 %v9349_v3, %v9348_v4  ;;  %v9395_v32 = vpop.f32.mrf.mxu1  ;;  %9800 = vmatprep.subr.bf16.mxu0 %v10721_v31 }
 0x266   :  { %v9396_v30 = vadd.f32 %v9395_v32, %v9394_v63  ;;  %v9351_v56 = vpop.f32.mrf.mxu0  ;;  %9849 = vmatpush3.bf16.msra.mxu1 %v10720_v62 }
 0x267   :  { %7424 = vmatmul.mubr.bf16.gmra.mxu0 %v10713_v54  ;;  %v6826_v13 = vadd.f32 %v9350_v27, %v13092_v12  ;;  %v9397_v55 = vpop.f32.mrf.mxu1  ;;  %9842 = vmatprep.subr.bf16.mxu1 %v10721_v31  ;;  %v10735_v54 = vld [vmem:[%s13604_s0 + $0x818] ss:$232 sps:$4 sm:$0xff]  }
 0x268   :  { %7431 = vmatprep.mubr.bf16.mxu0 %v10725_v22  ;;  %v9352_v26 = vpop.f32.mrf.mxu0  ;;  %7497 = vmatmul.mubr.bf16.gmra.mxu1 %v10716_v53  ;;  %v7604_v31 = vld [vmem:[%s13606_s3] sm:$0xff]  ;;  %v7606_v53 = vld [vmem:[%s13606_s3 + $0x10] sm:$0xff]  ;;  %v7605_v22 = vld [vmem:[%s13606_s3 + $0x8] sm:$0xff] }
 0x269   :  { %v13278_v37 = vadd.f32 %v9396_v30, %v6826_v13  ;;  %v9353_v12 = vadd.f32 %v9352_v26, %v9351_v56  ;;  %v9398_v19 = vpop.f32.mrf.mxu1  ;;  %9801 = vmatpush3.bf16.msra.mxu0 %v10722_v28  ;;  %7504 = vmatprep.mubr.bf16.mxu1 %v10728_v44  ;;  %v10741_v30 = vld [vmem:[%s13604_s0 + $0xe0] ss:$232 sps:$4 sm:$0xff]   ;;  %v7607_v13 = vld [vmem:[%s13606_s3 + $0x18] sm:$0xff] }
 0x26a   :  { %v9399_v1 = vadd.f32 %v9398_v19, %v9397_v55  ;;  %v9354_v46 = vpop.f32.mrf.mxu0  ;;  %9802 = vmatprep.subr.bf16.mxu0 %v10729_v60  ;;  %9850 = vmatpush3.bf16.msra.mxu1 %v10722_v28  ;;  %v10749_v55 = vld [vmem:[%s13604_s0 + $0x2b4] ss:$232 sps:$4 sm:$0xff]   ;;  %v10744_v26 = vld [vmem:[%s13604_s0 + $0x650] ss:$232 sps:$4 sm:$0xff]   ;;  %v7608_v19 = vld [vmem:[%s13606_s3 + $0x20] sm:$0xff] }
 0x26b   :  { %v6829_v5 = vadd.f32 %v9353_v12, %v13107_v14  ;;  %v9400_v47 = vpop.f32.mrf.mxu1  ;;  %9843 = vmatprep.subr.bf16.mxu1 %v10729_v60  ;;  %7616 = vperm.xlu0 %9855, %v7604_v31  }
 0x26c   :  { %v9355_v49 = vpop.f32.mrf.mxu0  ;;  %7626 = vperm.xlu1 %9856, %v7606_v53  }
 0x26d   :  { %v13296_v18 = vadd.f32 %v9399_v1, %v6829_v5  ;;  %v9356_v40 = vadd.f32 %v9355_v49, %v9354_v46  ;;  %v9401_v14 = vpop.f32.mrf.mxu1  ;;  %9803 = vmatpush3.bf16.msra.mxu0 %v10730_v24  ;;  %v7609_v46 = vld [vmem:[%s13606_s3 + $0x28] sm:$0xff] }
 0x26e   :  { %v9402_v35 = vadd.f32 %v9401_v14, %v9400_v47  ;;  %v9357_v16 = vpop.f32.mrf.mxu0  ;;  %9804 = vmatprep.subr.bf16.mxu0 %v10731_v6  ;;  %9851 = vmatpush3.bf16.msra.mxu1 %v10730_v24 }
 0x26f   :  { %7432 = vmatmul.mubr.bf16.gmra.mxu0 %v10723_v2  ;;  %v6834_v21 = vadd.f32 %v9356_v40, %v13128_v33  ;;  %v9403_v17 = vpop.f32.mrf.mxu1  ;;  %9844 = vmatprep.subr.bf16.mxu1 %v10731_v6  ;;  %v10732_v33 = vld [vmem:[%s13604_s0 + $0x810] ss:$232 sps:$4 sm:$0xff]  }
 0x270   :  { %7439 = vmatprep.mubr.bf16.mxu0 %v10734_v48  ;;  %v9358_v43 = vpop.f32.mrf.mxu0  ;;  %7505 = vmatmul.mubr.bf16.gmra.mxu1 %v10726_v52  ;;  %v7610_v52 = vld [vmem:[%s13606_s3 + $0x30] sm:$0xff] }
 0x271   :  { %v13305_v45 = vadd.f32 %v9402_v35, %v6834_v21  ;;  %v9359_v20 = vadd.f32 %v9358_v43, %v9357_v16  ;;  %v9404_v0 = vpop.f32.mrf.mxu1  ;;  %7512 = vmatprep.mubr.bf16.mxu1 %v10737_v34  ;;  %9805 = vmatpush3.bf16.msra.mxu0 %v10738_v57  ;;  %v10747_v34 = vld [vmem:[%s13604_s0 + $0x2b0] ss:$232 sps:$4 sm:$0xff]   ;;  %v10755_v35 = vld [vmem:[%s13604_s0 + $0x484] ss:$232 sps:$4 sm:$0xff]  }
 0x272   :  { %v9405_v8 = vadd.f32 %v9404_v0, %v9403_v17  ;;  %v9360_v11 = vpop.f32.mrf.mxu0  ;;  %9806 = vmatprep.subr.bf16.mxu0 %v10739_v41  ;;  %9852 = vmatpush3.bf16.msra.mxu1 %v10738_v57  ;;  %v7612_v43 = vld [vmem:[%s13606_s3 + $0x40] sm:$0xff] }
 0x273   :  { %v6837_v50 = vadd.f32 %v9359_v20, %v13143_v61  ;;  %v9406_v25 = vpop.f32.mrf.mxu1  ;;  %9845 = vmatprep.subr.bf16.mxu1 %v10739_v41  ;;  %v10746_v61 = vld [vmem:[%s13604_s0 + $0x654] ss:$232 sps:$4 sm:$0xff]   ;;  %7621 = vperm.xlu0 %9855, %v7605_v22   ;;  %v10750_v41 = vld [vmem:[%s13604_s0 + $0x820] ss:$232 sps:$4 sm:$0xff]  }
 0x274   :  { %v9361_v9 = vpop.f32.mrf.mxu0  ;;  %7631 = vperm.xlu1 %9856, %v7607_v13  }
 0x275   :  { %v13320_v10 = vadd.f32 %v9405_v8, %v6837_v50  ;;  %v9362_v59 = vadd.f32 %v9361_v9, %v9360_v11  ;;  %v9407_v36 = vpop.f32.mrf.mxu1  ;;  %9807 = vmatpush3.bf16.msra.mxu0 %v10740_v29 }
 0x276   :  { %v9408_v58 = vadd.f32 %v9407_v36, %v9406_v25  ;;  %v9363_v4 = vpop.f32.mrf.mxu0  ;;  %9853 = vmatpush3.bf16.msra.mxu1 %v10740_v29  ;;  %v7613_v29 = vld [vmem:[%s13606_s3 + $0x48] sm:$0xff] }
 0x277   :  { %7440 = vmatmul.mubr.bf16.gmra.mxu0 %v10732_v33  ;;  %v6842_v62 = vadd.f32 %v9362_v59, %v13161_v15  ;;  %v9409_v63 = vpop.f32.mrf.mxu1  ;;  %7636 = vperm.xlu0 %9855, %v7608_v19   ;;  %v10753_v25 = vld [vmem:[%s13604_s0 + $0x480] ss:$232 sps:$4 sm:$0xff]  }
 0x278   :  { %7553 = vmatprep.mubr.bf16.mxu0 %v10743_v23  ;;  %v9364_v3 = vpop.f32.mrf.mxu0  ;;  %7513 = vmatmul.mubr.bf16.gmra.mxu1 %v10735_v54 }
 0x279   :  { %v13332_v27 = vadd.f32 %v9408_v58, %v6842_v62  ;;  %v9365_v32 = vadd.f32 %v9364_v3, %v9363_v4  ;;  %v9410_v28 = vpop.f32.mrf.mxu1  ;;  %7577 = vmatprep.mubr.bf16.mxu1 %v10746_v61  ;;  %7641 = vperm.xlu1 %9856, %v7609_v46  }
 0x27a   :  { %v9411_v15 = vadd.f32 %v9410_v28, %v9409_v63 }
 0x27b   :  { %v6845_v56 = vadd.f32 %v9365_v32, %v13176_v39  ;;  %v9366_v44 = vpop.f32.mrf.mxu0  ;;  %v9412_v60 = vpop.f32.mrf.mxu1  ;;  %v10752_v39 = vld [vmem:[%s13604_s0 + $0x824] ss:$232 sps:$4 sm:$0xff]   ;;  %7646 = vperm.xlu0 %9855, %v7610_v52  }
 0x27d   :  { %v13350_v2 = vadd.f32 %v9411_v15, %v6845_v56  ;;  %v9367_v12 = vpop.f32.mrf.mxu0  ;;  %v9413_v1 = vpop.f32.mrf.mxu1 }
 0x27e   :  { %v9368_v24 = vadd.f32 %v9367_v12, %v9366_v44  ;;  %v9414_v6 = vadd.f32 %v9413_v1, %v9412_v60 }
 0x27f   :  { %7554 = vmatmul.mubr.bf16.vlgmr.msra.gmra.mxu0 %v10741_v30  ;;  %v9369_v5 = vpop.f32.mrf.mxu0  ;;  %v9415_v48 = vpop.f32.mrf.mxu1  ;;  %7656 = vperm.xlu0 %9855, %v7612_v43  }
 0x280   :  { %7561 = vmatprep.mubr.bf16.mxu0 %v10749_v55  ;;  %7578 = vmatmul.mubr.bf16.vlgmr.msra.gmra.mxu1 %v10744_v26  ;;  %v6850_v47 = vadd.f32 %v9368_v24, %v13200_v42  ;;  %v7611_v42 = vld [vmem:[%s13606_s3 + $0x38] sm:$0xff] }
 0x281   :  { %7585 = vmatprep.mubr.bf16.mxu1 %v10752_v39  ;;  %v9370_v49 = vpop.f32.mrf.mxu0  ;;  %v9416_v57 = vpop.f32.mrf.mxu1  ;;  %7651 = vperm.xlu1 %9856, %v7611_v42  }
 0x282   :  { %v13368_v40 = vadd.f32 %v9414_v6, %v6850_v47  ;;  %v9371_v14 = vadd.f32 %v9370_v49, %v9369_v5  ;;  %v9417_v16 = vadd.f32 %v9416_v57, %v9415_v48 }
 0x284   :  { %v6853_v21 = vadd.f32 %v9371_v14, %v13215_v38  ;;  %v9372_v17 = vpop.f32.mrf.mxu0  ;;  %v9418_v0 = vpop.f32.mrf.mxu1 }
 0x285   :  { %7661 = vperm.xlu1 %9856, %v7613_v29  }
 0x286   :  { %v13383_v20 = vadd.f32 %v9417_v16, %v6853_v21  ;;  %v9373_v8 = vpop.f32.mrf.mxu0  ;;  %v9419_v38 = vpop.f32.mrf.mxu1 }
 0x287   :  { %7562 = vmatmul.mubr.bf16.gmra.mxu0 %v10747_v34  ;;  %v9374_v11 = vadd.f32 %v9373_v8, %v9372_v17  ;;  %v9420_v33 = vadd.f32 %v9419_v38, %v9418_v0 }
 0x288   :  { %7569 = vmatprep.mubr.bf16.mxu0 %v10755_v35  ;;  %7586 = vmatmul.mubr.bf16.gmra.mxu1 %v10750_v41  ;;  %v9375_v50 = vpop.f32.mrf.mxu0  ;;  %v9421_v9 = vpop.f32.mrf.mxu1 }
 0x289   :  { %v6858_v23 = vadd.f32 %v9374_v11, %v13236_v7 }
 0x28a   :  { %v9376_v54 = vpop.f32.mrf.mxu0  ;;  %v9422_v61 = vpop.f32.mrf.mxu1 }
 0x28b   :  { %v13392_v59 = vadd.f32 %v9420_v33, %v6858_v23  ;;  %v9377_v36 = vadd.f32 %v9376_v54, %v9375_v50  ;;  %v9423_v58 = vadd.f32 %v9422_v61, %v9421_v9 }
 0x28d   :  { %v6861_v4 = vadd.f32 %v9377_v36, %v13254_v51 }
 0x28e   :  { %v9440_v62 = vpop.f32.mrf.mxu0  ;;  %v9486_v31 = vpop.f32.mrf.mxu1 }
 0x28f   :  { %7570 = vmatmul.mubr.bf16.gmra.mxu0 %v10753_v25  ;;  %v13395_v63 = vadd.f32 %v9423_v58, %v6861_v4 }
 0x290   :  { %v9441_v3 = vpop.f32.mrf.mxu0  ;;  %v9487_v32 = vpop.f32.mrf.mxu1 }
 0x291   :  { %v9442_v53 = vadd.f32 %v9441_v3, %v9440_v62  ;;  %v9488_v15 = vadd.f32 %v9487_v32, %v9486_v31 }
 0x292   :  { %v9443_v28 = vpop.f32.mrf.mxu0  ;;  %v9489_v22 = vpop.f32.mrf.mxu1 }
 0x293   :  { %v6972_v7 = vadd.f32 %v9442_v53, %v13278_v37 }
 0x294   :  { %v9444_v30 = vpop.f32.mrf.mxu0  ;;  %v9490_v55 = vpop.f32.mrf.mxu1 }
 0x295   :  { %v13398_v56 = vadd.f32 %v9488_v15, %v6972_v7  ;;  %v9445_v13 = vadd.f32 %v9444_v30, %v9443_v28  ;;  %v9491_v26 = vadd.f32 %v9490_v55, %v9489_v22 }
 0x296   :  { %v9492_v60 = vpop.f32.mrf.mxu1 }
 0x297   :  { %v6975_v51 = vadd.f32 %v9445_v13, %v13296_v18 }
 0x298   :  { %v9493_v24 = vpop.f32.mrf.mxu1 }
 0x299   :  { %v13401_v12 = vadd.f32 %v9491_v26, %v6975_v51  ;;  %v9494_v46 = vadd.f32 %v9493_v24, %v9492_v60 }
 0x29a   :  { %v9495_v6 = vpop.f32.mrf.mxu1 }
 0x29c   :  { %v9496_v49 = vpop.f32.mrf.mxu1 }
 0x29d   :  { %v9497_v34 = vadd.f32 %v9496_v49, %v9495_v6 }
 0x29e   :  { %v9498_v14 = vpop.f32.mrf.mxu1 }
 0x29f   :  { %v9446_v44 = vpop.f32.mrf.mxu0 }
 0x2a0   :  { %v9499_v16 = vpop.f32.mrf.mxu1 }
 0x2a1   :  { %v9447_v39 = vpop.f32.mrf.mxu0  ;;  %v9500_v21 = vadd.f32 %v9499_v16, %v9498_v14 }
 0x2a2   :  { %v9448_v19 = vadd.f32 %v9447_v39, %v9446_v44  ;;  %v9501_v17 = vpop.f32.mrf.mxu1 }
 0x2a3   :  { %v9449_v1 = vpop.f32.mrf.mxu0 }
 0x2a4   :  { %v6980_v37 = vadd.f32 %v9448_v19, %v13305_v45  ;;  %v9502_v8 = vpop.f32.mrf.mxu1 }
 0x2a5   :  { %v9450_v5 = vpop.f32.mrf.mxu0 }
 0x2a6   :  { %v13404_v47 = vadd.f32 %v9494_v46, %v6980_v37  ;;  %v9451_v48 = vadd.f32 %v9450_v5, %v9449_v1  ;;  %v9504_v50 = vpop.f32.mrf.mxu1 }
 0x2a8   :  { %v9452_v52 = vpop.f32.mrf.mxu0  ;;  %v6983_v18 = vadd.f32 %v9451_v48, %v13320_v10  ;;  %v9503_v10 = vadd.f32 %v9502_v8, %v9501_v17  ;;  %v9505_v9 = vpop.f32.mrf.mxu1 }
 0x2a9   :  { %v9506_v36 = vadd.f32 %v9505_v9, %v9504_v50 }
 0x2aa   :  { %v9453_v57 = vpop.f32.mrf.mxu0  ;;  %v13407_v42 = vadd.f32 %v9497_v34, %v6983_v18  ;;  %v9507_v61 = vpop.f32.mrf.mxu1 }
 0x2ab   :  { %v9454_v35 = vadd.f32 %v9453_v57, %v9452_v52 }
 0x2ac   :  { %v9455_v41 = vpop.f32.mrf.mxu0  ;;  %v9508_v31 = vpop.f32.mrf.mxu1 }
 0x2ad   :  { %v6988_v45 = vadd.f32 %v9454_v35, %v13332_v27  ;;  %v9509_v3 = vadd.f32 %v9508_v31, %v9507_v61 }
 0x2ae   :  { %v9456_v43 = vpop.f32.mrf.mxu0 }
 0x2af   :  { %v13410_v0 = vadd.f32 %v9500_v21, %v6988_v45  ;;  %v9457_v29 = vadd.f32 %v9456_v43, %v9455_v41 }
 0x2b1   :  { %v6991_v11 = vadd.f32 %v9457_v29, %v13350_v2 }
 0x2b3   :  { %v9458_v38 = vpop.f32.mrf.mxu0  ;;  %v13413_v33 = vadd.f32 %v9503_v10, %v6991_v11 }
 0x2b5   :  { %v9459_v25 = vpop.f32.mrf.mxu0 }
 0x2b6   :  { %v9460_v23 = vadd.f32 %v9459_v25, %v9458_v38 }
 0x2b7   :  { %v9461_v54 = vpop.f32.mrf.mxu0 }
 0x2b8   :  { %v6996_v27 = vadd.f32 %v9460_v23, %v13368_v40 }
 0x2b9   :  { %v9462_v58 = vpop.f32.mrf.mxu0 }
 0x2ba   :  { %v13416_v4 = vadd.f32 %v9506_v36, %v6996_v27  ;;  %v9463_v62 = vadd.f32 %v9462_v58, %v9461_v54 }
 0x2bb   :  { %v9464_v53 = vpop.f32.mrf.mxu0 }
 0x2bc   :  { %v6999_v2 = vadd.f32 %v9463_v62, %v13383_v20 }
 0x2bd   :  { %v9465_v7 = vpop.f32.mrf.mxu0 }
 0x2be   :  { %v13419_v32 = vadd.f32 %v9509_v3, %v6999_v2  ;;  %v9466_v15 = vadd.f32 %v9465_v7, %v9464_v53 }
 0x2bf   :  { %v9467_v13 = vpop.f32.mrf.mxu0 }
 0x2c0   :  { %v9510_v28 = vpop.f32.mrf.mxu1  ;;  %v7004_v40 = vadd.f32 %v9466_v15, %v13392_v59 }
 0x2c1   :  { %v9468_v44 = vpop.f32.mrf.mxu0 }
 0x2c2   :  { %v9511_v22 = vpop.f32.mrf.mxu1  ;;  %v9469_v26 = vadd.f32 %v9468_v44, %v9467_v13 }
 0x2c3   :  { %v9512_v30 = vadd.f32 %v9511_v22, %v9510_v28 }
 0x2c4   :  { %v9513_v55 = vpop.f32.mrf.mxu1  ;;  %v7007_v20 = vadd.f32 %v9469_v26, %v13395_v63 }
 0x2c5   :  { %v13422_v51 = vadd.f32 %v9512_v30, %v7004_v40 }
 0x2c6   :  { %v9514_v60 = vpop.f32.mrf.mxu1  ;;  %v9532_v19 = vpop.f32.mrf.mxu0 }
 0x2c7   :  { %v9515_v39 = vadd.f32 %v9514_v60, %v9513_v55 }
 0x2c8   :  { %v9578_v1 = vpop.f32.mrf.mxu1  ;;  %v9533_v37 = vpop.f32.mrf.mxu0 }
 0x2c9   :  { %v13425_v24 = vadd.f32 %v9515_v39, %v7007_v20  ;;  %v9534_v46 = vadd.f32 %v9533_v37, %v9532_v19 }
 0x2ca   :  { %v9579_v6 = vpop.f32.mrf.mxu1  ;;  %v9535_v48 = vpop.f32.mrf.mxu0 }
 0x2cb   :  { %v9580_v5 = vadd.f32 %v9579_v6, %v9578_v1  ;;  %v7118_v59 = vadd.f32 %v9534_v46, %v13398_v56 }
 0x2cc   :  { %v9581_v49 = vpop.f32.mrf.mxu1  ;;  %v9536_v52 = vpop.f32.mrf.mxu0 }
 0x2cd   :  { %v13428_v18 = vadd.f32 %v9580_v5, %v7118_v59  ;;  %v9537_v34 = vadd.f32 %v9536_v52, %v9535_v48 }
 0x2ce   :  { %v9582_v14 = vpop.f32.mrf.mxu1  ;;  %v9538_v35 = vpop.f32.mrf.mxu0 }
 0x2cf   :  { %v9583_v57 = vadd.f32 %v9582_v14, %v9581_v49  ;;  %v7121_v63 = vadd.f32 %v9537_v34, %v13401_v12 }
 0x2d0   :  { %v9584_v16 = vpop.f32.mrf.mxu1  ;;  %v9539_v41 = vpop.f32.mrf.mxu0 }
 0x2d1   :  { %v13431_v45 = vadd.f32 %v9583_v57, %v7121_v63  ;;  %v9540_v21 = vadd.f32 %v9539_v41, %v9538_v35 }
 0x2d2   :  { %v9585_v17 = vpop.f32.mrf.mxu1  ;;  %v9541_v29 = vpop.f32.mrf.mxu0 }
 0x2d3   :  { %v9586_v43 = vadd.f32 %v9585_v17, %v9584_v16  ;;  %v7126_v56 = vadd.f32 %v9540_v21, %v13404_v47 }
 0x2d4   :  { %v9587_v8 = vpop.f32.mrf.mxu1  ;;  %v9542_v11 = vpop.f32.mrf.mxu0 }
 0x2d5   :  { %v13434_v10 = vadd.f32 %v9586_v43, %v7126_v56  ;;  %v9543_v38 = vadd.f32 %v9542_v11, %v9541_v29 }
 0x2d6   :  { %v9588_v50 = vpop.f32.mrf.mxu1  ;;  %v9544_v23 = vpop.f32.mrf.mxu0 }
 0x2d7   :  { %v9589_v25 = vadd.f32 %v9588_v50, %v9587_v8  ;;  %v7129_v12 = vadd.f32 %v9543_v38, %v13407_v42 }
 0x2d8   :  { %v9590_v9 = vpop.f32.mrf.mxu1  ;;  %v9545_v54 = vpop.f32.mrf.mxu0 }
 0x2d9   :  { %v13437_v27 = vadd.f32 %v9589_v25, %v7129_v12  ;;  %v9546_v36 = vadd.f32 %v9545_v54, %v9544_v23 }
 0x2da   :  { %v9591_v61 = vpop.f32.mrf.mxu1  ;;  %v9547_v62 = vpop.f32.mrf.mxu0 }
 0x2db   :  { %v9592_v58 = vadd.f32 %v9591_v61, %v9590_v9  ;;  %v7134_v47 = vadd.f32 %v9546_v36, %v13410_v0 }
 0x2dc   :  { %v9593_v31 = vpop.f32.mrf.mxu1  ;;  %v9548_v2 = vpop.f32.mrf.mxu0 }
 0x2dd   :  { %v13440_v3 = vadd.f32 %v9592_v58, %v7134_v47  ;;  %v9549_v53 = vadd.f32 %v9548_v2, %v9547_v62 }
 0x2de   :  { %v9594_v28 = vpop.f32.mrf.mxu1  ;;  %v9550_v42 = vpop.f32.mrf.mxu0 }
 0x2df   :  { %v9595_v7 = vadd.f32 %v9594_v28, %v9593_v31  ;;  %v7137_v15 = vadd.f32 %v9549_v53, %v13413_v33 }
 0x2e0   :  { %v9596_v30 = vpop.f32.mrf.mxu1  ;;  %v9551_v13 = vpop.f32.mrf.mxu0 }
 0x2e1   :  { %v13443_v22 = vadd.f32 %v9595_v7, %v7137_v15  ;;  %v9552_v40 = vadd.f32 %v9551_v13, %v9550_v42 }
 0x2e2   :  { %v9597_v55 = vpop.f32.mrf.mxu1  ;;  %v9553_v26 = vpop.f32.mrf.mxu0 }
 0x2e3   :  { %v9598_v44 = vadd.f32 %v9597_v55, %v9596_v30  ;;  %v7142_v0 = vadd.f32 %v9552_v40, %v13416_v4 }
 0x2e4   :  { %v9599_v60 = vpop.f32.mrf.mxu1  ;;  %v9554_v39 = vpop.f32.mrf.mxu0 }
 0x2e5   :  { %v13446_v20 = vadd.f32 %v9598_v44, %v7142_v0  ;;  %v9555_v19 = vadd.f32 %v9554_v39, %v9553_v26 }
 0x2e6   :  { %v9600_v1 = vpop.f32.mrf.mxu1  ;;  %v9556_v46 = vpop.f32.mrf.mxu0 }
 0x2e7   :  { %v9601_v37 = vadd.f32 %v9600_v1, %v9599_v60  ;;  %v7145_v33 = vadd.f32 %v9555_v19, %v13419_v32 }
 0x2e8   :  { %v9602_v5 = vpop.f32.mrf.mxu1  ;;  %v9557_v48 = vpop.f32.mrf.mxu0 }
 0x2e9   :  { %v13449_v6 = vadd.f32 %v9601_v37, %v7145_v33  ;;  %v9558_v59 = vadd.f32 %v9557_v48, %v9556_v46 }
 0x2ea   :  { %v9603_v49 = vpop.f32.mrf.mxu1  ;;  %v9559_v52 = vpop.f32.mrf.mxu0 }
 0x2eb   :  { %v7150_v34 = vadd.f32 %v9558_v59, %v13422_v51  ;;  %v9604_v4 = vadd.f32 %v9603_v49, %v9602_v5 }
 0x2ec   :  { %v9605_v14 = vpop.f32.mrf.mxu1  ;;  %v9560_v57 = vpop.f32.mrf.mxu0 }
 0x2ed   :  { %v13452_v35 = vadd.f32 %v9604_v4, %v7150_v34  ;;  %v9561_v63 = vadd.f32 %v9560_v57, %v9559_v52 }
 0x2ee   :  { %v9606_v16 = vpop.f32.mrf.mxu1 }
 0x2ef   :  { %v7153_v41 = vadd.f32 %v9561_v63, %v13425_v24  ;;  %v9607_v32 = vadd.f32 %v9606_v16, %v9605_v14  ;;  %v9624_v21 = vpop.f32.mrf.mxu0 }
 0x2f0   :  { %v9670_v43 = vpop.f32.mrf.mxu1 }
 0x2f1   :  { %v13455_v17 = vadd.f32 %v9607_v32, %v7153_v41  ;;  %v9625_v29 = vpop.f32.mrf.mxu0 }
 0x2f2   :  { %v9626_v56 = vadd.f32 %v9625_v29, %v9624_v21  ;;  %v9671_v8 = vpop.f32.mrf.mxu1 }
 0x2f3   :  { %v9672_v11 = vadd.f32 %v9671_v8, %v9670_v43  ;;  %v9627_v38 = vpop.f32.mrf.mxu0 }
 0x2f4   :  { %v7264_v51 = vadd.f32 %v9626_v56, %v13428_v18  ;;  %v9673_v50 = vpop.f32.mrf.mxu1 }
 0x2f5   :  { %v9628_v25 = vpop.f32.mrf.mxu0 }
 0x2f6   :  { %v13458_v23 = vadd.f32 %v9672_v11, %v7264_v51  ;;  %v9629_v12 = vadd.f32 %v9628_v25, %v9627_v38  ;;  %v9674_v9 = vpop.f32.mrf.mxu1 }
 0x2f7   :  { %v9675_v54 = vadd.f32 %v9674_v9, %v9673_v50  ;;  %v9630_v24 = vpop.f32.mrf.mxu0 }
 0x2f8   :  { %v7267_v36 = vadd.f32 %v9629_v12, %v13431_v45  ;;  %v9676_v61 = vpop.f32.mrf.mxu1 }
 0x2f9   :  { %v9631_v58 = vpop.f32.mrf.mxu0 }
 0x2fa   :  { %v13461_v62 = vadd.f32 %v9675_v54, %v7267_v36  ;;  %v9632_v47 = vadd.f32 %v9631_v58, %v9630_v24  ;;  %v9677_v31 = vpop.f32.mrf.mxu1 }
 0x2fb   :  { %v9678_v2 = vadd.f32 %v9677_v31, %v9676_v61  ;;  %v9633_v53 = vpop.f32.mrf.mxu0 }
 0x2fc   :  { %v7272_v18 = vadd.f32 %v9632_v47, %v13434_v10  ;;  %v9679_v28 = vpop.f32.mrf.mxu1 }
 0x2fd   :  { %v9634_v7 = vpop.f32.mrf.mxu0 }
 0x2fe   :  { %v13464_v15 = vadd.f32 %v9678_v2, %v7272_v18  ;;  %v9635_v42 = vadd.f32 %v9634_v7, %v9633_v53  ;;  %v9680_v30 = vpop.f32.mrf.mxu1 }
 0x2ff   :  { %v9681_v13 = vadd.f32 %v9680_v30, %v9679_v28  ;;  %v9636_v40 = vpop.f32.mrf.mxu0 }
 0x300   :  { %v7275_v45 = vadd.f32 %v9635_v42, %v13437_v27  ;;  %v9682_v55 = vpop.f32.mrf.mxu1 }
 0x301   :  { %v9637_v44 = vpop.f32.mrf.mxu0 }
 0x302   :  { %v13467_v26 = vadd.f32 %v9681_v13, %v7275_v45  ;;  %v9638_v0 = vadd.f32 %v9637_v44, %v9636_v40  ;;  %v9683_v60 = vpop.f32.mrf.mxu1 }
 0x303   :  { %v9684_v39 = vadd.f32 %v9683_v60, %v9682_v55  ;;  %v9639_v19 = vpop.f32.mrf.mxu0 }
 0x304   :  { %v7280_v10 = vadd.f32 %v9638_v0, %v13440_v3  ;;  %v9685_v1 = vpop.f32.mrf.mxu1 }
 0x305   :  { %v9640_v37 = vpop.f32.mrf.mxu0 }
 0x306   :  { %v13470_v33 = vadd.f32 %v9684_v39, %v7280_v10  ;;  %v9641_v46 = vadd.f32 %v9640_v37, %v9639_v19  ;;  %v9686_v5 = vpop.f32.mrf.mxu1  ;;  %v13509_v39 = vpop.permute.xlu0 %7616 }
 0x307   :  { %v9687_v48 = vadd.f32 %v9686_v5, %v9685_v1  ;;  %v9642_v27 = vpop.f32.mrf.mxu0 }
 0x308   :  { %13608 = vst [vmem:[#allocation2_spill] sm:$0xff] %v13470_v33  ;;  %v7283_v59 = vadd.f32 %v9641_v46, %v13443_v22  ;;  %v9688_v52 = vpop.f32.mrf.mxu1 }
 0x309   :  { %v9643_v34 = vpop.f32.mrf.mxu0 }
 0x30a   :  { %v13473_v49 = vadd.f32 %v9687_v48, %v7283_v59  ;;  %v9689_v4 = vpop.f32.mrf.mxu1  ;;  %v9644_v1 = vadd.f32 %v9643_v34, %v9642_v27 }
 0x30b   :  { %v9645_v14 = vpop.f32.mrf.mxu0 }
 0x30c   :  { %13609 = vst [vmem:[#allocation3_spill] sm:$0xff] %v13473_v49  ;;  %v9691_v57 = vpop.f32.mrf.mxu1  ;;  %v7288_v49 = vadd.f32 %v9644_v1, %v13446_v20 }
 0x30d   :  { %v9646_v63 = vpop.f32.mrf.mxu0 }
 0x30e   :  { %v9692_v16 = vpop.f32.mrf.mxu1  ;;  %v9647_v5 = vadd.f32 %v9646_v63, %v9645_v14 }
 0x30f   :  { %v9648_v3 = vpop.f32.mrf.mxu0  ;;  %v9693_v34 = vadd.f32 %v9692_v16, %v9691_v57 }
 0x310   :  { %v9694_v41 = vpop.f32.mrf.mxu1  ;;  %v7291_v27 = vadd.f32 %v9647_v5, %v13449_v6 }
 0x311   :  { %v9649_v32 = vpop.f32.mrf.mxu0 }
 0x312   :  { %v9695_v21 = vpop.f32.mrf.mxu1  ;;  %v9650_v48 = vadd.f32 %v9649_v32, %v9648_v3  ;;  %v7364_v16 = vadd.f32 %v9693_v34, %v7291_v27 }
 0x313   :  { %v13475_v43 = vpop.f32.mrf.mxu0  ;;  %v9696_v63 = vadd.f32 %v9695_v21, %v9694_v41 }
 0x314   :  { %v13477_v29 = vpop.f32.mrf.mxu1  ;;  %v7296_v14 = vadd.f32 %v9650_v48, %v13452_v35 }
 0x315   :  { %v9652_v56 = vpop.f32.mrf.mxu0 }
 0x316   :  { %v13479_v22 = vpop.f32.mrf.mxu1  ;;  %v7369_v41 = vadd.f32 %v9696_v63, %v7296_v14 }
 0x317   :  { %v9716_v8 = vpop.f32.mrf.mxu0 }
 0x318   :  { %v9762_v11 = vpop.f32.mrf.mxu1 }
 0x319   :  { %v9717_v38 = vpop.f32.mrf.mxu0 }
 0x31a   :  { %v9763_v51 = vpop.f32.mrf.mxu1 }
 0x31b   :  { %v9719_v50 = vpop.f32.mrf.mxu0 }
 0x31c   :  { %v13481_v25 = vpop.f32.mrf.mxu1 }
 0x31d   :  { %v9720_v12 = vpop.f32.mrf.mxu0 }
 0x31e   :  { %v13483_v9 = vpop.f32.mrf.mxu1 }
 0x31f   :  { %v9722_v54 = vpop.f32.mrf.mxu0 }
 0x320   :  { %v13485_v24 = vpop.f32.mrf.mxu1 }
 0x321   :  { %v9723_v36 = vpop.f32.mrf.mxu0 }
 0x322   :  { %v13487_v61 = vpop.f32.mrf.mxu1  ;;  %v9724_v21 = vadd.f32 %v9723_v36, %v9722_v54 }
 0x323   :  { %v9725_v58 = vpop.f32.mrf.mxu0 }
 0x324   :  { %v13489_v47 = vpop.f32.mrf.mxu1 }
 0x325   :  { %v9726_v31 = vpop.f32.mrf.mxu0 }
 0x326   :  { %v13491_v2 = vpop.f32.mrf.mxu1 }
 0x327   :  { %v13493_v53 = vpop.f32.mrf.mxu0 }
 0x328   :  { %13610 = vst [vmem:[#allocation4_spill] sm:$0xff] %v13493_v53  ;;  %v13495_v18 = vpop.f32.mrf.mxu1 }
 0x329   :  { %13611 = vst [vmem:[#allocation5_spill] sm:$0xff] %v13495_v18  ;;  %v13497_v28 = vpop.f32.mrf.mxu0 }
 0x32a   :  { %13612 = vst [vmem:[#allocation6_spill] sm:$0xff] %v13497_v28  ;;  %v13499_v7 = vpop.f32.mrf.mxu1 }
 0x32b   :  { %13613 = vst [vmem:[#allocation7_spill] sm:$0xff] %v13499_v7  ;;  %v13501_v42 = vpop.f32.mrf.mxu0  ;;  %v13516_v7 = vpop.permute.xlu0 %7621 }
 0x32c   :  { %13614 = vst [vmem:[#allocation8_spill] sm:$0xff] %v13501_v42  ;;  %v13503_v30 = vpop.f32.mrf.mxu1  ;;  %v13514_v42 = vpop.permute.xlu1 %7626 }
 0x32d   :  { %13615 = vst [vmem:[#allocation9_spill] sm:$0xff] %v13503_v30  ;;  %v13505_v13 = vpop.f32.mrf.mxu0 }
 0x32e   :  { %13616 = vst [vmem:[#allocation10_spill] sm:$0xff] %v13505_v13  ;;  %v13507_v40 = vpop.f32.mrf.mxu1  ;;  %v9718_v13 = vadd.f32 %v9717_v38, %v9716_v8 }
 0x32f   :  { %13617 = vst [vmem:[#allocation11_spill] sm:$0xff] %v13507_v40  ;;  %v9734_v45 = vpop.f32.mrf.mxu0  ;;  %v9690_v40 = vadd.f32 %v9689_v4, %v9688_v52  ;;  %v9764_v52 = vadd.f32 %v9763_v51, %v9762_v11  ;;  %v9721_v4 = vadd.f32 %v9720_v12, %v9719_v50  ;;  %v13528_v35 = vpop.permute.xlu0 %7636  ;;  %v9767_v50 = vadd.f32 %v13483_v9, %v13481_v25 }
 0x330   :  { %v9780_v55 = vpop.f32.mrf.mxu1  ;;  %v7410_v20 = vadd.f32 %v9718_v13, %v13458_v23  ;;  %v13526_v57 = vpop.permute.xlu1 %7631 }
 0x331   :  { %v9735_v44 = vpop.f32.mrf.mxu0  ;;  %v7361_v53 = vadd.f32 %v9690_v40, %v7288_v49  ;;  %v9727_v49 = vadd.f32 %v9726_v31, %v9725_v58  ;;  %v7413_v51 = vadd.f32 %v9721_v4, %v13461_v62  ;;  %v9770_v62 = vadd.f32 %v13487_v61, %v13485_v24 }
 0x332   :  { %v9781_v0 = vpop.f32.mrf.mxu1  ;;  %v9736_v28 = vadd.f32 %v9735_v44, %v9734_v45  ;;  %v9653_v45 = vadd.f32 %v9652_v56, %v13475_v43  ;;  %v7483_v11 = vadd.f32 %v9764_v52, %v7410_v20  ;;  %v9699_v56 = vadd.f32 %v13479_v22, %v13477_v29  ;;  %v13618_v20 = vld [vmem:[#allocation4_spill] sm:$0xff]  ;;  %v13619_v52 = vld [vmem:[#allocation6_spill] sm:$0xff] }
 0x333   :  { %v9737_v60 = vpop.f32.mrf.mxu0  ;;  %v9782_v6 = vadd.f32 %v9781_v0, %v9780_v55  ;;  %v7418_v0 = vadd.f32 %v9724_v21, %v13464_v15  ;;  %v7421_v25 = vadd.f32 %v9727_v49, %v13467_v26  ;;  %v9773_v29 = vadd.f32 %v13491_v2, %v13489_v47 }
 0x334   :  { %v9783_v19 = vpop.f32.mrf.mxu1  ;;  %v7434_v44 = vadd.f32 %v9736_v28, %v7361_v53  ;;  %v7299_v54 = vadd.f32 %v9653_v45, %v13455_v17  ;;  %v9730_v4 = vadd.f32 %v13619_v52, %v13618_v20 }
 0x335   :  { %v9738_v10 = vpop.f32.mrf.mxu0  ;;  %v7491_v14 = vadd.f32 %v9770_v62, %v7418_v0  ;;  %v7494_v63 = vadd.f32 %v9773_v29, %v7421_v25 }
 0x336   :  { %v9784_v37 = vpop.f32.mrf.mxu1  ;;  %v9739_v8 = vadd.f32 %v9738_v10, %v9737_v60  ;;  %v7507_v36 = vadd.f32 %v9782_v6, %v7434_v44  ;;  %v13542_v10 = vpop.permute.xlu1 %7641  ;;  %v7372_v34 = vadd.f32 %v9699_v56, %v7299_v54  ;;  %v13622_v56 = vld [vmem:[#allocation7_spill] sm:$0xff] }
 0x337   :  { %v9740_v46 = vpop.f32.mrf.mxu0  ;;  %v9785_v53 = vadd.f32 %v9784_v37, %v9783_v19  ;;  %v7647_v37 = vpop.permute.xlu0 %7646 }
 0x338   :  { %v13511_v59 = vpop.f32.mrf.mxu1  ;;  %v7437_v12 = vadd.f32 %v9739_v8, %v7364_v16 }
 0x339   :  { %v9741_v30 = vpop.f32.mrf.mxu0 }
 0x33a   :  { %v9787_v18 = vpop.f32.mrf.mxu1  ;;  %v9742_v28 = vadd.f32 %v9741_v30, %v9740_v46  ;;  %v7486_v30 = vadd.f32 %v9767_v50, %v7413_v51  ;;  %v7510_v46 = vadd.f32 %v9785_v53, %v7437_v12  ;;  %v13620_v51 = vld [vmem:[#allocation2_spill] sm:$0xff] }
 0x33b   :  { %v9743_v33 = vpop.f32.mrf.mxu0  ;;  %v9788_v15 = vadd.f32 %v9787_v18, %v13511_v59  ;;  %v7426_v50 = vadd.f32 %v9730_v4, %v13620_v51 }
 0x33c   :  { %v13520_v3 = vpop.f32.mrf.mxu1  ;;  %v7442_v5 = vadd.f32 %v9742_v28, %v7369_v41 }
 0x33d   :  { %v9744_v32 = vpop.f32.mrf.mxu0 }
 0x33e   :  { %v13523_v38 = vpop.f32.mrf.mxu1  ;;  %v9745_v48 = vadd.f32 %v9744_v32, %v9743_v33  ;;  %v7515_v33 = vadd.f32 %v9788_v15, %v7442_v5 }
 0x33f   :  { %v9808_v1 = vpop.f32.mrf.mxu0 }
 0x340   :  { %v9826_v40 = vpop.f32.mrf.mxu1  ;;  %v7445_v59 = vadd.f32 %v9745_v48, %v7372_v34  ;;  %v7657_v48 = vpop.permute.xlu0 %7656 }
 0x341   :  { %v9809_v23 = vpop.f32.mrf.mxu0 }
 0x342   :  { %v9810_v43 = vadd.f32 %v9809_v23, %v9808_v1  ;;  %v9827_v13 = vpop.f32.mrf.mxu1 }
 0x343   :  { %v9811_v55 = vpop.f32.mrf.mxu0  ;;  %v9828_v31 = vadd.f32 %v9827_v13, %v9826_v40  ;;  %v7652_v40 = vpop.permute.xlu1 %7651 }
 0x344   :  { %v7556_v58 = vadd.f32 %v9810_v43, %v7483_v11  ;;  %v9829_v22 = vpop.f32.mrf.mxu1  ;;  %v13621_v43 = vld [vmem:[#allocation5_spill] sm:$0xff] }
 0x345   :  { %v9812_v9 = vpop.f32.mrf.mxu0  ;;  %v7580_v19 = vadd.f32 %v9828_v31, %v7507_v36  ;;  %v9776_v12 = vadd.f32 %v13622_v56, %v13621_v43 }
 0x346   :  { %v7594_v60 = vmax.f32 %v7556_v58, 0.0  ;;  %v9813_v17 = vadd.f32 %v9812_v9, %v9811_v55  ;;  %v9830_v24 = vpop.f32.mrf.mxu1 }
 0x347   :  { %v9814_v61 = vpop.f32.mrf.mxu0  ;;  %v9831_v47 = vadd.f32 %v9830_v24, %v9829_v22  ;;  %v7600_v2 = vmax.f32 %v7580_v19, 0.0  ;;  %v13625_v19 = vld [vmem:[#allocation3_spill] sm:$0xff] }
 0x348   :  { %v7664_v26 = vmul.f32 %v13509_v39, %v7594_v60  ;;  %v7559_v27 = vadd.f32 %v9813_v17, %v7486_v30  ;;  %v9832_v8 = vpop.f32.mrf.mxu1  ;;  %v9791_v39 = vadd.f32 %v13523_v38, %v13520_v3  ;;  %v13623_v3 = vld [vmem:[#allocation8_spill] sm:$0xff]  ;;  %v13624_v38 = vld [vmem:[#allocation10_spill] sm:$0xff]  ;;  %v7499_v60 = vadd.f32 %v9776_v12, %v7426_v50 }
 0x349   :  { %v9815_v1 = vpop.f32.mrf.mxu0  ;;  %v7583_v6 = vadd.f32 %v9831_v47, %v7510_v46  ;;  %v7670_v18 = vmul.f32 %v7647_v37, %v7600_v2  ;;  %v9733_v53 = vadd.f32 %v13624_v38, %v13623_v3  ;;  %v13626_v37 = vld [vmem:[#allocation9_spill] sm:$0xff]  ;;  %v13627_v46 = vld [vmem:[#allocation11_spill] sm:$0xff] }
 0x34a   :  { %v8494_v45 = vpack.c.bf16 %v7664_v26, %v7664_v26  ;;  %v7595_v44 = vmax.f32 %v7559_v27, 0.0  ;;  %v9816_v32 = vadd.f32 %v9815_v1, %v9814_v61  ;;  %v9833_v16 = vpop.f32.mrf.mxu1  ;;  %v7518_v31 = vadd.f32 %v9791_v39, %v7445_v59 }
 0x34b   :  { %v9817_v41 = vpop.f32.mrf.mxu0  ;;  %v8500_v49 = vpack.c.bf16 %v7670_v18, %v7670_v18  ;;  %v7601_v23 = vmax.f32 %v7583_v6, 0.0  ;;  %v9834_v11 = vadd.f32 %v9833_v16, %v9832_v8  ;;  %v7429_v17 = vadd.f32 %v9733_v53, %v13625_v19 }
 0x34c   :  { %7715 = vst.msk [vmem:[%s13607_s4] sm:$0xf] %vm7714_vm0, %v8494_v45  ;;  %v7665_v21 = vmul.f32 %v13516_v7, %v7595_v44  ;;  %v7564_v28 = vadd.f32 %v9816_v32, %v7491_v14  ;;  %v9835_v13 = vpop.f32.mrf.mxu1  ;;  %v9779_v5 = vadd.f32 %v13627_v46, %v13626_v37 }
 0x34d   :  { %v9818_v55 = vpop.f32.mrf.mxu0  ;;  %7721 = vst.msk [vmem:[%s13607_s4 + $0x18] sm:$0xf] %vm7714_vm0, %v8500_v49  ;;  %v7671_v7 = vmul.f32 %v7652_v40, %v7601_v23  ;;  %v7588_v36 = vadd.f32 %v9834_v11, %v7515_v33 }
 0x34e   :  { %v8495_v54 = vpack.c.bf16 %v7665_v21, %v7665_v21  ;;  %v9819_v58 = vadd.f32 %v9818_v55, %v9817_v41  ;;  %v7596_v0 = vmax.f32 %v7564_v28, 0.0  ;;  %v9836_v62 = vpop.f32.mrf.mxu1  ;;  %v7502_v4 = vadd.f32 %v9779_v5, %v7429_v17 }
 0x34f   :  { %v9820_v25 = vpop.f32.mrf.mxu0  ;;  %v8501_v29 = vpack.c.bf16 %v7671_v7, %v7671_v7  ;;  %v7602_v22 = vmax.f32 %v7588_v36, 0.0  ;;  %v9837_v30 = vadd.f32 %v9836_v62, %v9835_v13 }
 0x350   :  { %7716 = vst.msk [vmem:[%s13607_s4 + $0x4] sm:$0xf] %vm7714_vm0, %v8495_v54  ;;  %v7567_v9 = vadd.f32 %v9819_v58, %v7494_v63  ;;  %v7666_v15 = vmul.f32 %v13514_v42, %v7596_v0  ;;  %v7662_v42 = vpop.permute.xlu1 %7661 }
 0x351   :  { %v9821_v24 = vpop.f32.mrf.mxu0  ;;  %7722 = vst.msk [vmem:[%s13607_s4 + $0x1c] sm:$0xf] %vm7714_vm0, %v8501_v29  ;;  %v7672_v61 = vmul.f32 %v7657_v48, %v7602_v22  ;;  %v7591_v27 = vadd.f32 %v9837_v30, %v7518_v31 }
 0x352   :  { %v7597_v26 = vmax.f32 %v7567_v9, 0.0  ;;  %v9822_v47 = vadd.f32 %v9821_v24, %v9820_v25  ;;  %v8496_v2 = vpack.c.bf16 %v7666_v15, %v7666_v15 }
 0x353   :  { %v9823_v34 = vpop.f32.mrf.mxu0  ;;  %v8502_v14 = vpack.c.bf16 %v7672_v61, %v7672_v61  ;;  %v7603_v20 = vmax.f32 %v7591_v27, 0.0 }
 0x354   :  { %v7667_v63 = vmul.f32 %v13526_v57, %v7597_v26  ;;  %v7572_v52 = vadd.f32 %v9822_v47, %v7499_v60  ;;  %7717 = vst.msk [vmem:[%s13607_s4 + $0x8] sm:$0xf] %vm7714_vm0, %v8496_v2 }
 0x355   :  { %v9824_v8 = vpop.f32.mrf.mxu0  ;;  %7723 = vst.msk [vmem:[%s13607_s4 + $0x20] sm:$0xf] %vm7714_vm0, %v8502_v14  ;;  %v7673_v45 = vmul.f32 %v7662_v42, %v7603_v20 }
 0x356   :  { %v8497_v1 = vpack.c.bf16 %v7667_v63, %v7667_v63  ;;  %v7598_v44 = vmax.f32 %v7572_v52, 0.0  ;;  %v9825_v6 = vadd.f32 %v9824_v8, %v9823_v34 }
 0x357   :  { %v8503_v57 = vpack.c.bf16 %v7673_v45, %v7673_v45 }
 0x358   :  { %7718 = vst.msk [vmem:[%s13607_s4 + $0xc] sm:$0xf] %vm7714_vm0, %v8497_v1  ;;  %v7668_v18 = vmul.f32 %v13528_v35, %v7598_v44  ;;  %v7575_v33 = vadd.f32 %v9825_v6, %v7502_v4 }
 0x359   :  { %7724 = vst.msk [vmem:[%s13607_s4 + $0x24] sm:$0xf] %vm7714_vm0, %v8503_v57 }
 0x35a   :  { %v8498_v59 = vpack.c.bf16 %v7668_v18, %v7668_v18  ;;  %v7599_v39 = vmax.f32 %v7575_v33, 0.0 }
 0x35c   :  { %7719 = vst.msk [vmem:[%s13607_s4 + $0x10] sm:$0xf] %vm7714_vm0, %v8498_v59  ;;  %v7669_v32 = vmul.f32 %v13542_v10, %v7599_v39 }
 0x35e   :  { %v8499_v16 = vpack.c.bf16 %v7669_v32, %v7669_v32 }
 0x360   :  { %7720 = vst.msk [vmem:[%s13607_s4 + $0x14] sm:$0xf] %vm7714_vm0, %v8499_v16 }

</bundles_post_ra>
